<compile_context>
chip_gen: v7x
topology: tpu7x:2x2x1
jax: 0.10.0
libtpu: 0.0.40
codegen_flags: <defaults>
</compile_context>

<pallas_src>
import functools

import numpy as np
import jax
import jax.numpy as jnp
from jax.experimental import pallas as pl
from jax.experimental.pallas import tpu as pltpu

_VMEM = functools.partial(pl.BlockSpec, memory_space=pltpu.MemorySpace.VMEM)
_ANY = functools.partial(pl.BlockSpec, memory_space=pl.ANY)


# ------------------------------ fused kernel ----------------------------------

def fused_forward_kernel(x_ref, m1_ref, b1_ref, m2_hbm_ref, b2_ref, hw_ref,
                         w_ref, s_ref, o_ref, m2_scr, sem, *, wl, sl):
    """Whole AdHocWolfpackGNN forward (with_rfm=False) in one Pallas program.

    x_ref : (B, 25, 75)   image, (H, W*C) channel-minor layout
    m1_ref: (4, 75, 352)  ki-split block-Toeplitz conv1 weight (BN folded)
    m2_hbm: (2, 320, 608) ki-split block-Toeplitz conv2 weight (manual DMA)
    hw_ref: (du, 18, 576) head weight permuted to the conv output layout
    w_ref : (Rw, 128)     packed params + graph-incidence slab (static layout wl)
    s_ref : (Rs, 128)     packed features + hidden-state slab (static layout sl)
    o_ref : (E+N+G, 128)  packed [e_h|e_c], [n_h|n_c], [u_h|u_c|q] rows
    """

    def dot(a, b):
        return jnp.dot(a, b, preferred_element_type=jnp.float32)

    def wrd(name):                       # static slab slice, read at use site
        off, r, c = wl[name]
        return w_ref[off:off + r, 0:c]

    def srd(name):
        off, r, c = sl[name]
        return s_ref[off:off + r, 0:c]

    # Overlap the ~1.6 MB conv2 Toeplitz weight DMA with conv1+pool1 compute.
    m2_copy = pltpu.make_async_copy(m2_hbm_ref, m2_scr, sem.at[0])
    m2_copy.start()

    batch = x_ref.shape[0]
    du = hw_ref.shape[0]

    # ---- phase 1: conv1+bn1+relu -> maxpool 3x3/s1 (all batches) -------------
    b1 = b1_ref[...]                                         # (1, 352)
    p1s = []
    for b in range(batch):                                   # batch tiny; unrolled
        img = x_ref[b]                                       # (25, 75)
        a1 = b1
        for ki in range(4):                                  # conv1 = 4 partial dots
            a1 = a1 + dot(img[ki:ki + 22, :], m1_ref[ki])
        a1 = jnp.maximum(a1, 0.0)                            # (22, 352)
        p1 = a1[0:20, 0:320]                                 # maxpool 3x3 stride 1
        for dy in range(3):
            for dx in range(3):
                if dy == 0 and dx == 0:
                    continue
                p1 = jnp.maximum(p1, a1[dy:dy + 20, dx * 16:dx * 16 + 320])
        p1s.append(p1)                                       # (20, 320)

    # ---- phase 2: conv2+bn2+relu -> maxpool 2x2/s1 -> head --------------------
    m2_copy.wait()
    b2 = b2_ref[...]                                         # (1, 608)
    head_b = wrd('head.b')                                   # (1, du)
    g_rows = []
    for b in range(batch):
        p1 = p1s[b]
        a2 = jnp.maximum(dot(p1[0:19, :], m2_scr[0])
                         + dot(p1[1:20, :], m2_scr[1]) + b2, 0.0)  # (19, 608)
        p2 = a2[0:18, 0:576]                                 # maxpool 2x2 stride 1
        for dy in range(2):
            for dx in range(2):
                if dy == 0 and dx == 0:
                    continue
                p2 = jnp.maximum(p2, a2[dy:dy + 18, dx * 32:dx * 32 + 576])
        # Head Linear as per-u multiply + lane/sublane reduce (no flatten, no
        # transposed (10368,7) matmul; MXU is ~0% utilized at N=7 anyway).
        cols = [jnp.sum(p2 * hw_ref[u], axis=1, keepdims=True) for u in range(du)]
        t = jnp.concatenate(cols, axis=1)                    # (18, du)
        g_rows.append(jnp.sum(t, axis=0, keepdims=True))     # (1, du)
    g_repr = jnp.maximum(jnp.concatenate(g_rows, axis=0) + head_b, 0.0)  # (G, du)

    # ---- GNN: RFMBlock x2 + GraphLSTM + q_net (all slab slices, tiny dots) ----
    def mlp2(parts, pfx):
        # fc2(relu(fc1(concat(parts)))) with concat replaced by split-weight dots
        h = wrd(pfx + '.b1')
        for idx, xx in enumerate(parts):
            h = h + dot(xx, wrd('%s.w1.%d' % (pfx, idx)))
        h = jnp.maximum(h, 0.0)
        return dot(h, wrd(pfx + '.w2')) + wrd(pfx + '.b2')

    def rfm(pfx, e, n, u):
        u_e, u_n = dot(wrd('b_e'), u), dot(wrd('b_n'), u)
        new_e = mlp2([e, dot(wrd('g_src'), n), dot(wrd('g_dst'), n), u_e],
                     pfx + '.edge')
        h_agg = dot(wrd('a_in'), new_e)                      # fn.copy_edge + fn.sum
        new_n = mlp2([n, h_agg, u_n], pfx + '.node')
        e_comb, n_comb = dot(wrd('s_e'), new_e), dot(wrd('s_n'), new_n)
        new_u = mlp2([n_comb, e_comb, u], pfx + '.u')
        return new_e, new_n, new_u

    def lstm_cell(parts, h_prev, c_prev, pfx):
        # nn.LSTM single step, gate order i, f, g, o
        hid = h_prev.shape[1]
        gates = wrd(pfx + '.b') + dot(h_prev, wrd(pfx + '.whh'))
        for idx, xx in enumerate(parts):
            gates = gates + dot(xx, wrd('%s.wih.%d' % (pfx, idx)))
        i = jax.nn.sigmoid(gates[:, 0 * hid:1 * hid])
        f = jax.nn.sigmoid(gates[:, 1 * hid:2 * hid])
        g = jnp.tanh(gates[:, 2 * hid:3 * hid])
        o = jax.nn.sigmoid(gates[:, 3 * hid:4 * hid])
        c_new = f * c_prev + i * g
        return o * jnp.tanh(c_new), c_new

    e1, n1, u1 = rfm('gn1', srd('edge_feat'), srd('node_feat'), g_repr)
    e2, n2, u2 = rfm('gn2', e1, n1, u1)

    u_e, u_n = dot(wrd('b_e'), u2), dot(wrd('b_n'), u2)
    e_h, e_c = lstm_cell([e2, dot(wrd('g_src'), n2), dot(wrd('g_dst'), n2), u_e],
                         srd('he_h'), srd('he_c'), 'lstm.edge')
    h_agg = dot(wrd('a_in'), e_h)
    n_h, n_c = lstm_cell([n2, h_agg, u_n], srd('hn_h'), srd('hn_c'), 'lstm.node')
    e_comb, n_comb = dot(wrd('s_e'), e_h), dot(wrd('s_n'), n_h)
    u_h, u_c = lstm_cell([n_comb, e_comb, u2], srd('hu_h'), srd('hu_c'), 'lstm.u')

    q = dot(u_h, wrd('q.w')) + wrd('q.b')                    # (G, act)

    # ---- packed output: (h | c) pairs side by side, q appended on the u rows --
    E, N, G, L = e_h.shape[0], n_h.shape[0], u_h.shape[0], e_h.shape[1]
    act = q.shape[1]
    o_ref[0:E, 0:2 * L] = jnp.concatenate([e_h, e_c], axis=1)
    o_ref[E:E + N, 0:2 * L] = jnp.concatenate([n_h, n_c], axis=1)
    o_ref[E + N:E + N + G, 0:2 * L + act] = jnp.concatenate([u_h, u_c, q], axis=1)


# ------------------------------ slab packing -----------------------------------

def pack_slab(named_arrays, width=128):
    """Pack small 1-D/2-D arrays into one (rows, width) f32 slab.
    Returns (slab, layout) with layout[name] = (row_offset, rows, cols)."""
    layout, rows, off = {}, [], 0
    for name, a in named_arrays:
        a = jnp.asarray(a, jnp.float32)
        if a.ndim == 1:
            a = a.reshape(1, -1)
        r, c = a.shape
        layout[name] = (off, r, c)
        rows.append(jnp.pad(a, ((0, 0), (0, width - c))))
        off += r
    return jnp.concatenate(rows, axis=0), layout


# ------------------------------- forward ---------------------------------------

def build_forward(wlayout):
    """Build the forward pass; wlayout (static slab offsets) is closed over so it
    never becomes a traced jit argument."""
    act = wlayout['q.b'][2]

    def forward(prepped, edge_feat, node_feat, u_obs, hidden_e, hidden_n, hidden_u):
        batch = u_obs.shape[0]
        # NCHW -> (H, W*C) channel-minor layout (tiny one-time relayout).
        x2 = jnp.transpose(u_obs, (0, 2, 3, 1)).astype(jnp.float32)
        x2 = x2.reshape(batch, 25, 75)

        E, L = hidden_e[0].shape[1], hidden_e[0].shape[2]
        N, G = node_feat.shape[0], batch

        # Per-call state slab (features + hidden states): one DMA.
        s_slab, slayout = pack_slab([
            ('edge_feat', edge_feat), ('node_feat', node_feat),
            ('he_h', hidden_e[0][0]), ('he_c', hidden_e[1][0]),
            ('hn_h', hidden_n[0][0]), ('hn_c', hidden_n[1][0]),
            ('hu_h', hidden_u[0][0]), ('hu_c', hidden_u[1][0]),
        ])

        rows = E + N + G
        kernel = functools.partial(fused_forward_kernel, wl=wlayout, sl=slayout)
        slab = pl.pallas_call(
            kernel,
            out_shape=jax.ShapeDtypeStruct((rows, 128), jnp.float32),
            in_specs=[_VMEM(),     # image
                      _VMEM(),     # conv1 Toeplitz blocks
                      _VMEM(),     # conv1 bias
                      _ANY(),      # conv2 Toeplitz blocks (manual overlapped DMA)
                      _VMEM(),     # conv2 bias
                      _VMEM(),     # head weight (du, 18, 576)
                      _VMEM(),     # packed param/graph slab
                      _VMEM()],    # packed state slab
            out_specs=_VMEM(),
            scratch_shapes=[pltpu.VMEM((2, 320, 608), jnp.float32),
                            pltpu.SemaphoreType.DMA((1,))],
        )(x2, prepped['m1'], prepped['b1'], prepped['m2'], prepped['b2'],
          prepped['hw'], prepped['wslab'], s_slab)

        o = 0
        e_h, e_c = slab[o:o + E, 0:L], slab[o:o + E, L:2 * L]
        o += E
        n_h, n_c = slab[o:o + N, 0:L], slab[o:o + N, L:2 * L]
        o += N
        u_h, u_c = slab[o:o + G, 0:L], slab[o:o + G, L:2 * L]
        out = slab[o:o + G, 2 * L:2 * L + act]
        # TODO(synk): PyTorch returns per-unbatched-graph lists of (h, c) tuples;
        # we return the batched hidden arrays (same data, concatenated).
        return (out, (e_h[None], e_c[None]), (n_h[None], n_c[None]),
                (u_h[None], u_c[None]))

    return forward


# --------------------------- parameter construction ----------------------------

def _uniform(key, shape, fan_in):
    bound = 1.0 / (fan_in ** 0.5)
    return jax.random.uniform(key, shape, jnp.float32, -bound, bound)


def _init_linear(key, d_in, d_out):
    kw, kb = jax.random.split(key)
    return _uniform(kw, (d_in, d_out), d_in), _uniform(kb, (d_out,), d_in)


def _init_lstm(key, d_in, d_h):
    k1, k2, k3, k4 = jax.random.split(key, 4)
    return (_uniform(k1, (d_in, 4 * d_h), d_h),
            _uniform(k2, (d_h, 4 * d_h), d_h),
            _uniform(k3, (4 * d_h,), d_h) + _uniform(k4, (4 * d_h,), d_h))


def _init_rfm(key, d_e_in, d_n_in, d_u_in, d_hidden, d_out):
    k = jax.random.split(key, 6)
    return dict(fc_edge=_init_linear(k[0], d_e_in, d_hidden),
                fc_edge2=_init_linear(k[1], d_hidden, d_out),
                fc_node=_init_linear(k[2], d_n_in, d_hidden),
                fc_node2=_init_linear(k[3], d_hidden, d_out),
                fc_u=_init_linear(k[4], d_u_in, d_hidden),
                fc_u2=_init_linear(k[5], d_hidden, d_out))


def _init_map(key, u_dim):
    k = jax.random.split(key, 6)
    conv1_w = _uniform(k[0], (16, 3, 4, 4), 3 * 4 * 4)      # torch layout (Co,Ci,kh,kw)
    conv1_b = _uniform(k[1], (16,), 3 * 4 * 4)
    conv2_w = _uniform(k[2], (32, 16, 2, 2), 16 * 2 * 2)
    conv2_b = _uniform(k[3], (32,), 16 * 2 * 2)
    bn = lambda c: dict(gamma=jnp.ones(c, jnp.float32), beta=jnp.zeros(c, jnp.float32),
                        mean=jnp.zeros(c, jnp.float32), var=jnp.ones(c, jnp.float32))
    # MapProcessor sizes h=w=25: 25 -conv4-> 22 -pool3/s1-> 20 -conv2-> 19 -pool2/s1-> 18
    ff = 18 * 18 * 32
    head_w = _uniform(k[4], (u_dim, ff), ff)                # torch nn.Linear (out, in)
    head_b = _uniform(k[5], (u_dim,), ff)
    return dict(conv1_w=conv1_w, conv1_b=conv1_b, bn1=bn(16),
                conv2_w=conv2_w, conv2_b=conv2_b, bn2=bn(32),
                head_w=head_w, head_b=head_b)


def init_params(key, cfg):
    dn, de, du = cfg['dim_in_node'], cfg['dim_in_edge'], cfg['dim_in_u']
    h1, h2 = cfg['hidden_dim'], cfg['hidden_dim2']
    dm, do, dl, act = cfg['dim_mid'], cfg['dim_out'], cfg['dim_lstm_out'], cfg['act_dims']
    k = jax.random.split(key, 5)
    params = dict(
        map=_init_map(k[0], du),
        gn1=_init_rfm(k[1], d_e_in=2 * dn + du + de, d_n_in=dm + dn + du,
                      d_u_in=2 * dm + du, d_hidden=h1, d_out=dm),
        gn2=_init_rfm(k[2], d_e_in=4 * dm, d_n_in=do + 2 * dm,
                      d_u_in=2 * do + dm, d_hidden=h2, d_out=do),
        glstm=dict(edge=_init_lstm(jax.random.fold_in(k[3], 0), 4 * do, dl),
                   node=_init_lstm(jax.random.fold_in(k[3], 1), dl + 2 * do, dl),
                   u=_init_lstm(jax.random.fold_in(k[3], 2), 2 * dl + do, dl)),
    )
    params['q_w'], params['q_b'] = _init_linear(k[4], dl, act)
    return params


# ----- host-side prep: fold BN, expand conv weights, split concats, pack slab ---

def _split_rows(w, segs):
    assert sum(segs) == w.shape[0]
    out, start = [], 0
    for s in segs:
        out.append(w[start:start + s, :])
        start += s
    return out


def _add_mlp2(entries, pfx, fc1, fc2, segs):
    w1, b1 = fc1
    for idx, blk in enumerate(_split_rows(w1, segs)):
        entries.append(('%s.w1.%d' % (pfx, idx), blk))
    entries.append((pfx + '.b1', b1))
    w2, b2 = fc2
    entries.append((pfx + '.w2', w2))
    entries.append((pfx + '.b2', b2))


def _add_rfm(entries, pfx, p, e_segs, n_segs, u_segs):
    _add_mlp2(entries, pfx + '.edge', p['fc_edge'], p['fc_edge2'], e_segs)
    _add_mlp2(entries, pfx + '.node', p['fc_node'], p['fc_node2'], n_segs)
    _add_mlp2(entries, pfx + '.u', p['fc_u'], p['fc_u2'], u_segs)


def _add_lstm(entries, pfx, p, segs):
    wih, whh, b = p
    for idx, blk in enumerate(_split_rows(wih, segs)):
        entries.append(('%s.wih.%d' % (pfx, idx), blk))
    entries.append((pfx + '.whh', whh))
    entries.append((pfx + '.b', b))


def _conv_toeplitz_blocks(w_mat, kh, kw, cin, cout, w_in, w_out):
    """Per-ki block-Toeplitz expansion of a conv weight (rows in (ki,kj,c) order)
    so the conv in (H, W*C) channel-minor layout becomes kh partial matmuls:
        conv(img)[y, x*cout+co] = sum_ki (img[y+ki, :] @ M[ki])[x*cout+co]."""
    w4 = np.asarray(w_mat).reshape(kh, kw, cin, cout)
    m = np.zeros((kh, w_in * cin, w_out * cout), np.float32)
    for ki in range(kh):
        for kj in range(kw):
            for x in range(w_out):
                r0 = (x + kj) * cin
                m[ki, r0:r0 + cin, x * cout:(x + 1) * cout] = w4[ki, kj]
    return jnp.asarray(m)


def _prep_map(p, eps=1e-5):
    # eval-mode BatchNorm2d (running statistics) folded into the conv weights.
    # TODO(synk): training-mode BN (batch statistics) is not implemented.
    def fold(wc, bc, bn):
        cout, cin, kh, kw = wc.shape
        wm = jnp.transpose(wc, (2, 3, 1, 0)).reshape(kh * kw * cin, cout)
        scale = bn['gamma'] / jnp.sqrt(bn['var'] + eps)
        return wm * scale[None, :], (bc - bn['mean']) * scale + bn['beta']

    w1, b1 = fold(p['conv1_w'], p['conv1_b'], p['bn1'])
    w2, b2 = fold(p['conv2_w'], p['conv2_b'], p['bn2'])
    m1 = _conv_toeplitz_blocks(w1, 4, 4, 3, 16, 25, 22)      # (4, 75, 352)
    m2 = _conv_toeplitz_blocks(w2, 2, 2, 16, 32, 20, 19)     # (2, 320, 608)
    # Head weight permuted from torch's (c, y, x) flatten order to the kernel's
    # (y, x*32+c) conv-output layout, stored (u, 18, 576): no runtime flatten,
    # no transposed matmul, no 128-lane padding of a (10368, 7) array.
    u_dim = p['head_w'].shape[0]
    hw = p['head_w'].reshape(u_dim, 32, 18, 18).transpose(0, 2, 3, 1)
    hw = hw.reshape(u_dim, 18, 576)
    return dict(m1=m1, b1=jnp.tile(b1, 22).reshape(1, 22 * 16),
                m2=m2, b2=jnp.tile(b2, 19).reshape(1, 19 * 32),
                hw=hw, head_b=p['head_b'])


def prep_params(params, cfg, graph):
    dn, de, du = cfg['dim_in_node'], cfg['dim_in_edge'], cfg['dim_in_u']
    dm, do, dl = cfg['dim_mid'], cfg['dim_out'], cfg['dim_lstm_out']

    conv = _prep_map(params['map'])

    entries = [('head.b', conv['head_b'])]
    _add_rfm(entries, 'gn1', params['gn1'],
             (de, dn, dn, du), (dn, dm, du), (dm, dm, du))
    _add_rfm(entries, 'gn2', params['gn2'],
             (dm, dm, dm, dm), (dm, do, dm), (do, do, dm))
    _add_lstm(entries, 'lstm.edge', params['glstm']['edge'], (do, do, do, do))
    _add_lstm(entries, 'lstm.node', params['glstm']['node'], (do, dl, do))
    _add_lstm(entries, 'lstm.u', params['glstm']['u'], (dl, dl, do))
    entries.append(('q.w', params['q_w']))
    entries.append(('q.b', params['q_b']))
    for name in ('g_src', 'g_dst', 'a_in', 's_e', 's_n', 'b_e', 'b_n'):
        entries.append((name, graph[name]))

    wslab, wlayout = pack_slab(entries)
    prepped = dict(m1=conv['m1'], b1=conv['b1'], m2=conv['m2'], b2=conv['b2'],
                   hw=conv['hw'], wslab=wslab)
    return prepped, wlayout


def build_graph(num_graphs, n_per):
    # Batched DGL-like graph: fully-connected directed graphs, no self loops.
    src_l, dst_l = [], []
    for g in range(num_graphs):
        off = g * n_per
        for i in range(n_per):
            for j in range(n_per):
                if i != j:
                    src_l.append(off + i)
                    dst_l.append(off + j)
    src = jnp.asarray(src_l, jnp.int32)
    dst = jnp.asarray(dst_l, jnp.int32)
    n_nodes = num_graphs * n_per
    nodes = jnp.arange(n_nodes)
    gid = jnp.arange(num_graphs)
    node_gid = jnp.repeat(gid, n_per)
    edge_gid = jnp.repeat(gid, n_per * (n_per - 1))
    g_src = (src[:, None] == nodes[None, :]).astype(jnp.float32)   # (E, N)
    g_dst = (dst[:, None] == nodes[None, :]).astype(jnp.float32)   # (E, N)
    a_in = (nodes[:, None] == dst[None, :]).astype(jnp.float32)    # (N, E)
    s_n = (gid[:, None] == node_gid[None, :]).astype(jnp.float32)  # (G, N)
    s_e = (gid[:, None] == edge_gid[None, :]).astype(jnp.float32)  # (G, E)
    return dict(g_src=g_src, g_dst=g_dst, a_in=a_in, s_e=s_e, s_n=s_n,
                b_e=s_e.T, b_n=s_n.T)


# ----------------------------------- main --------------------------------------

if __name__ == "__main__":
    key = jax.random.PRNGKey(0)
    k_param, k_data = jax.random.split(key)

    cfg = dict(dim_in_node=5, dim_in_edge=6, dim_in_u=7,
               hidden_dim=32, hidden_dim2=32,
               dim_mid=8, dim_out=8, dim_lstm_out=8, act_dims=4)

    # Batched graph: 2 fully-connected directed graphs of 3 nodes each.
    num_graphs, n_per = 2, 3
    e_per = n_per * (n_per - 1)
    N, E = num_graphs * n_per, num_graphs * e_per
    graph = build_graph(num_graphs, n_per)

    params = init_params(k_param, cfg)
    prepped, wlayout = prep_params(params, cfg, graph)

    ks = jax.random.split(k_data, 9)
    L = cfg['dim_lstm_out']
    edge_feat = jax.random.normal(ks[0], (E, cfg['dim_in_edge']), jnp.float32)
    node_feat = jax.random.normal(ks[1], (N, cfg['dim_in_node']), jnp.float32)
    u_obs = jax.random.normal(ks[2], (num_graphs, 3, 25, 25), jnp.float32)   # NCHW
    hidden_e = (jax.random.normal(ks[3], (1, E, L), jnp.float32),
                jax.random.normal(ks[4], (1, E, L), jnp.float32))
    hidden_n = (jax.random.normal(ks[5], (1, N, L), jnp.float32),
                jax.random.normal(ks[6], (1, N, L), jnp.float32))
    hidden_u = (jax.random.normal(ks[7], (1, num_graphs, L), jnp.float32),
                jax.random.normal(ks[8], (1, num_graphs, L), jnp.float32))

    fwd = jax.jit(build_forward(wlayout))
    out, e_hid, n_hid, u_hid = fwd(prepped, edge_feat, node_feat, u_obs,
                                   hidden_e, hidden_n, hidden_u)
    jax.block_until_ready((out, e_hid, n_hid, u_hid))

    assert out.shape == (num_graphs, cfg['act_dims'])
    assert e_hid[0].shape == (1, E, L) and e_hid[1].shape == (1, E, L)
    assert n_hid[0].shape == (1, N, L) and n_hid[1].shape == (1, N, L)
    assert u_hid[0].shape == (1, num_graphs, L) and u_hid[1].shape == (1, num_graphs, L)
    assert bool(jnp.all(jnp.isfinite(out)))
    print("KERNEL_OK")
</pallas_src>

<mosaic_0001>
module attributes {stable_mosaic.version = 11 : i64} {
  func.func @fused_forward_kernel(%arg0: memref<2x25x75xf32, #tpu.memory_space<vmem>>, %arg1: memref<4x75x352xf32, #tpu.memory_space<vmem>>, %arg2: memref<1x352xf32, #tpu.memory_space<vmem>>, %arg3: memref<2x320x608xf32, #tpu.memory_space<any>>, %arg4: memref<1x608xf32, #tpu.memory_space<vmem>>, %arg5: memref<7x18x576xf32, #tpu.memory_space<vmem>>, %arg6: memref<519x128xf32, #tpu.memory_space<vmem>>, %arg7: memref<58x128xf32, #tpu.memory_space<vmem>>, %arg8: memref<20x128xf32, #tpu.memory_space<vmem>>, %arg9: memref<2x320x608xf32, #tpu.memory_space<vmem>>, %arg10: memref<1x!tpu.dma_semaphore, #tpu.memory_space<semaphore_mem>>) attributes {dimension_semantics = [], scalar_prefetch = 0 : i64, scratch_operands = 2 : i64, tpu.core_type = #tpu.core_type<tc>} {
    %c0_i32 = arith.constant 0 : i32
    %0 = tpu.memref_slice %arg10[%c0_i32] : memref<1x!tpu.dma_semaphore, #tpu.memory_space<semaphore_mem>> -> memref<1x!tpu.dma_semaphore, #tpu.memory_space<semaphore_mem>>
    %1 = tpu.memref_squeeze %0 : memref<1x!tpu.dma_semaphore, #tpu.memory_space<semaphore_mem>> -> memref<!tpu.dma_semaphore, #tpu.memory_space<semaphore_mem>>
    tpu.enqueue_dma source(%arg3 : memref<2x320x608xf32, #tpu.memory_space<any>>) target(%arg9 : memref<2x320x608xf32, #tpu.memory_space<vmem>>) target_semaphore(%1 : memref<!tpu.dma_semaphore, #tpu.memory_space<semaphore_mem>>)
    %c0 = arith.constant 0 : index
    %c0_0 = arith.constant 0 : index
    %2 = vector.load %arg2[%c0, %c0_0] : memref<1x352xf32, #tpu.memory_space<vmem>>, vector<1x352xf32>
    %c0_1 = arith.constant 0 : index
    %c0_2 = arith.constant 0 : index
    %c0_3 = arith.constant 0 : index
    %3 = vector.load %arg0[%c0_1, %c0_2, %c0_3] : memref<2x25x75xf32, #tpu.memory_space<vmem>>, vector<1x25x75xf32>
    %4 = vector.shape_cast %3 : vector<1x25x75xf32> to vector<25x75xf32>
    %5 = vector.extract_strided_slice %4 {offsets = [0, 0], sizes = [22, 75], strides = [1, 1]} : vector<25x75xf32> to vector<22x75xf32>
    %c0_4 = arith.constant 0 : index
    %c0_5 = arith.constant 0 : index
    %c0_6 = arith.constant 0 : index
    %6 = vector.load %arg1[%c0_4, %c0_5, %c0_6] : memref<4x75x352xf32, #tpu.memory_space<vmem>>, vector<1x75x352xf32>
    %7 = vector.shape_cast %6 : vector<1x75x352xf32> to vector<75x352xf32>
    %cst = arith.constant dense<0.000000e+00> : vector<22x352xf32>
    %8 = tpu.matmul %5, %7, %cst {dimension_numbers = #tpu.dot_dimension_numbers<[1], [0], [0], [1], [0, 0, 1, 1], [], []>} : vector<22x75xf32>, vector<75x352xf32>, vector<22x352xf32> -> vector<22x352xf32>
    %9 = vector.broadcast %2 : vector<1x352xf32> to vector<22x352xf32>
    %10 = arith.addf %9, %8 : vector<22x352xf32>
    %11 = vector.extract_strided_slice %4 {offsets = [1, 0], sizes = [22, 75], strides = [1, 1]} : vector<25x75xf32> to vector<22x75xf32>
    %c1 = arith.constant 1 : index
    %c0_7 = arith.constant 0 : index
    %c0_8 = arith.constant 0 : index
    %12 = vector.load %arg1[%c1, %c0_7, %c0_8] : memref<4x75x352xf32, #tpu.memory_space<vmem>>, vector<1x75x352xf32>
    %13 = vector.shape_cast %12 : vector<1x75x352xf32> to vector<75x352xf32>
    %cst_9 = arith.constant dense<0.000000e+00> : vector<22x352xf32>
    %14 = tpu.matmul %11, %13, %cst_9 {dimension_numbers = #tpu.dot_dimension_numbers<[1], [0], [0], [1], [0, 0, 1, 1], [], []>} : vector<22x75xf32>, vector<75x352xf32>, vector<22x352xf32> -> vector<22x352xf32>
    %15 = arith.addf %10, %14 : vector<22x352xf32>
    %16 = vector.extract_strided_slice %4 {offsets = [2, 0], sizes = [22, 75], strides = [1, 1]} : vector<25x75xf32> to vector<22x75xf32>
    %c2 = arith.constant 2 : index
    %c0_10 = arith.constant 0 : index
    %c0_11 = arith.constant 0 : index
    %17 = vector.load %arg1[%c2, %c0_10, %c0_11] : memref<4x75x352xf32, #tpu.memory_space<vmem>>, vector<1x75x352xf32>
    %18 = vector.shape_cast %17 : vector<1x75x352xf32> to vector<75x352xf32>
    %cst_12 = arith.constant dense<0.000000e+00> : vector<22x352xf32>
    %19 = tpu.matmul %16, %18, %cst_12 {dimension_numbers = #tpu.dot_dimension_numbers<[1], [0], [0], [1], [0, 0, 1, 1], [], []>} : vector<22x75xf32>, vector<75x352xf32>, vector<22x352xf32> -> vector<22x352xf32>
    %20 = arith.addf %15, %19 : vector<22x352xf32>
    %21 = vector.extract_strided_slice %4 {offsets = [3, 0], sizes = [22, 75], strides = [1, 1]} : vector<25x75xf32> to vector<22x75xf32>
    %c3 = arith.constant 3 : index
    %c0_13 = arith.constant 0 : index
    %c0_14 = arith.constant 0 : index
    %22 = vector.load %arg1[%c3, %c0_13, %c0_14] : memref<4x75x352xf32, #tpu.memory_space<vmem>>, vector<1x75x352xf32>
    %23 = vector.shape_cast %22 : vector<1x75x352xf32> to vector<75x352xf32>
    %cst_15 = arith.constant dense<0.000000e+00> : vector<22x352xf32>
    %24 = tpu.matmul %21, %23, %cst_15 {dimension_numbers = #tpu.dot_dimension_numbers<[1], [0], [0], [1], [0, 0, 1, 1], [], []>} : vector<22x75xf32>, vector<75x352xf32>, vector<22x352xf32> -> vector<22x352xf32>
    %25 = arith.addf %20, %24 : vector<22x352xf32>
    %cst_16 = arith.constant 0.000000e+00 : f32
    %26 = vector.broadcast %cst_16 : f32 to vector<22x352xf32>
    %27 = arith.maximumf %25, %26 : vector<22x352xf32>
    %28 = vector.extract_strided_slice %27 {offsets = [0, 0], sizes = [20, 320], strides = [1, 1]} : vector<22x352xf32> to vector<20x320xf32>
    %29 = vector.extract_strided_slice %27 {offsets = [0, 16], sizes = [20, 320], strides = [1, 1]} : vector<22x352xf32> to vector<20x320xf32>
    %30 = arith.maximumf %28, %29 : vector<20x320xf32>
    %31 = vector.extract_strided_slice %27 {offsets = [0, 32], sizes = [20, 320], strides = [1, 1]} : vector<22x352xf32> to vector<20x320xf32>
    %32 = arith.maximumf %30, %31 : vector<20x320xf32>
    %33 = vector.extract_strided_slice %27 {offsets = [1, 0], sizes = [20, 320], strides = [1, 1]} : vector<22x352xf32> to vector<20x320xf32>
    %34 = arith.maximumf %32, %33 : vector<20x320xf32>
    %35 = vector.extract_strided_slice %27 {offsets = [1, 16], sizes = [20, 320], strides = [1, 1]} : vector<22x352xf32> to vector<20x320xf32>
    %36 = arith.maximumf %34, %35 : vector<20x320xf32>
    %37 = vector.extract_strided_slice %27 {offsets = [1, 32], sizes = [20, 320], strides = [1, 1]} : vector<22x352xf32> to vector<20x320xf32>
    %38 = arith.maximumf %36, %37 : vector<20x320xf32>
    %39 = vector.extract_strided_slice %27 {offsets = [2, 0], sizes = [20, 320], strides = [1, 1]} : vector<22x352xf32> to vector<20x320xf32>
    %40 = arith.maximumf %38, %39 : vector<20x320xf32>
    %41 = vector.extract_strided_slice %27 {offsets = [2, 16], sizes = [20, 320], strides = [1, 1]} : vector<22x352xf32> to vector<20x320xf32>
    %42 = arith.maximumf %40, %41 : vector<20x320xf32>
    %43 = vector.extract_strided_slice %27 {offsets = [2, 32], sizes = [20, 320], strides = [1, 1]} : vector<22x352xf32> to vector<20x320xf32>
    %44 = arith.maximumf %42, %43 : vector<20x320xf32>
    %c1_17 = arith.constant 1 : index
    %c0_18 = arith.constant 0 : index
    %c0_19 = arith.constant 0 : index
    %45 = vector.load %arg0[%c1_17, %c0_18, %c0_19] : memref<2x25x75xf32, #tpu.memory_space<vmem>>, vector<1x25x75xf32>
    %46 = vector.shape_cast %45 : vector<1x25x75xf32> to vector<25x75xf32>
    %47 = vector.extract_strided_slice %46 {offsets = [0, 0], sizes = [22, 75], strides = [1, 1]} : vector<25x75xf32> to vector<22x75xf32>
    %c0_20 = arith.constant 0 : index
    %c0_21 = arith.constant 0 : index
    %c0_22 = arith.constant 0 : index
    %48 = vector.load %arg1[%c0_20, %c0_21, %c0_22] : memref<4x75x352xf32, #tpu.memory_space<vmem>>, vector<1x75x352xf32>
    %49 = vector.shape_cast %48 : vector<1x75x352xf32> to vector<75x352xf32>
    %cst_23 = arith.constant dense<0.000000e+00> : vector<22x352xf32>
    %50 = tpu.matmul %47, %49, %cst_23 {dimension_numbers = #tpu.dot_dimension_numbers<[1], [0], [0], [1], [0, 0, 1, 1], [], []>} : vector<22x75xf32>, vector<75x352xf32>, vector<22x352xf32> -> vector<22x352xf32>
    %51 = vector.broadcast %2 : vector<1x352xf32> to vector<22x352xf32>
    %52 = arith.addf %51, %50 : vector<22x352xf32>
    %53 = vector.extract_strided_slice %46 {offsets = [1, 0], sizes = [22, 75], strides = [1, 1]} : vector<25x75xf32> to vector<22x75xf32>
    %c1_24 = arith.constant 1 : index
    %c0_25 = arith.constant 0 : index
    %c0_26 = arith.constant 0 : index
    %54 = vector.load %arg1[%c1_24, %c0_25, %c0_26] : memref<4x75x352xf32, #tpu.memory_space<vmem>>, vector<1x75x352xf32>
    %55 = vector.shape_cast %54 : vector<1x75x352xf32> to vector<75x352xf32>
    %cst_27 = arith.constant dense<0.000000e+00> : vector<22x352xf32>
    %56 = tpu.matmul %53, %55, %cst_27 {dimension_numbers = #tpu.dot_dimension_numbers<[1], [0], [0], [1], [0, 0, 1, 1], [], []>} : vector<22x75xf32>, vector<75x352xf32>, vector<22x352xf32> -> vector<22x352xf32>
    %57 = arith.addf %52, %56 : vector<22x352xf32>
    %58 = vector.extract_strided_slice %46 {offsets = [2, 0], sizes = [22, 75], strides = [1, 1]} : vector<25x75xf32> to vector<22x75xf32>
    %c2_28 = arith.constant 2 : index
    %c0_29 = arith.constant 0 : index
    %c0_30 = arith.constant 0 : index
    %59 = vector.load %arg1[%c2_28, %c0_29, %c0_30] : memref<4x75x352xf32, #tpu.memory_space<vmem>>, vector<1x75x352xf32>
    %60 = vector.shape_cast %59 : vector<1x75x352xf32> to vector<75x352xf32>
    %cst_31 = arith.constant dense<0.000000e+00> : vector<22x352xf32>
    %61 = tpu.matmul %58, %60, %cst_31 {dimension_numbers = #tpu.dot_dimension_numbers<[1], [0], [0], [1], [0, 0, 1, 1], [], []>} : vector<22x75xf32>, vector<75x352xf32>, vector<22x352xf32> -> vector<22x352xf32>
    %62 = arith.addf %57, %61 : vector<22x352xf32>
    %63 = vector.extract_strided_slice %46 {offsets = [3, 0], sizes = [22, 75], strides = [1, 1]} : vector<25x75xf32> to vector<22x75xf32>
    %c3_32 = arith.constant 3 : index
    %c0_33 = arith.constant 0 : index
    %c0_34 = arith.constant 0 : index
    %64 = vector.load %arg1[%c3_32, %c0_33, %c0_34] : memref<4x75x352xf32, #tpu.memory_space<vmem>>, vector<1x75x352xf32>
    %65 = vector.shape_cast %64 : vector<1x75x352xf32> to vector<75x352xf32>
    %cst_35 = arith.constant dense<0.000000e+00> : vector<22x352xf32>
    %66 = tpu.matmul %63, %65, %cst_35 {dimension_numbers = #tpu.dot_dimension_numbers<[1], [0], [0], [1], [0, 0, 1, 1], [], []>} : vector<22x75xf32>, vector<75x352xf32>, vector<22x352xf32> -> vector<22x352xf32>
    %67 = arith.addf %62, %66 : vector<22x352xf32>
    %cst_36 = arith.constant 0.000000e+00 : f32
    %68 = vector.broadcast %cst_36 : f32 to vector<22x352xf32>
    %69 = arith.maximumf %67, %68 : vector<22x352xf32>
    %70 = vector.extract_strided_slice %69 {offsets = [0, 0], sizes = [20, 320], strides = [1, 1]} : vector<22x352xf32> to vector<20x320xf32>
    %71 = vector.extract_strided_slice %69 {offsets = [0, 16], sizes = [20, 320], strides = [1, 1]} : vector<22x352xf32> to vector<20x320xf32>
    %72 = arith.maximumf %70, %71 : vector<20x320xf32>
    %73 = vector.extract_strided_slice %69 {offsets = [0, 32], sizes = [20, 320], strides = [1, 1]} : vector<22x352xf32> to vector<20x320xf32>
    %74 = arith.maximumf %72, %73 : vector<20x320xf32>
    %75 = vector.extract_strided_slice %69 {offsets = [1, 0], sizes = [20, 320], strides = [1, 1]} : vector<22x352xf32> to vector<20x320xf32>
    %76 = arith.maximumf %74, %75 : vector<20x320xf32>
    %77 = vector.extract_strided_slice %69 {offsets = [1, 16], sizes = [20, 320], strides = [1, 1]} : vector<22x352xf32> to vector<20x320xf32>
    %78 = arith.maximumf %76, %77 : vector<20x320xf32>
    %79 = vector.extract_strided_slice %69 {offsets = [1, 32], sizes = [20, 320], strides = [1, 1]} : vector<22x352xf32> to vector<20x320xf32>
    %80 = arith.maximumf %78, %79 : vector<20x320xf32>
    %81 = vector.extract_strided_slice %69 {offsets = [2, 0], sizes = [20, 320], strides = [1, 1]} : vector<22x352xf32> to vector<20x320xf32>
    %82 = arith.maximumf %80, %81 : vector<20x320xf32>
    %83 = vector.extract_strided_slice %69 {offsets = [2, 16], sizes = [20, 320], strides = [1, 1]} : vector<22x352xf32> to vector<20x320xf32>
    %84 = arith.maximumf %82, %83 : vector<20x320xf32>
    %85 = vector.extract_strided_slice %69 {offsets = [2, 32], sizes = [20, 320], strides = [1, 1]} : vector<22x352xf32> to vector<20x320xf32>
    %86 = arith.maximumf %84, %85 : vector<20x320xf32>
    %c0_i32_37 = arith.constant 0 : i32
    %87 = tpu.memref_slice %arg10[%c0_i32_37] : memref<1x!tpu.dma_semaphore, #tpu.memory_space<semaphore_mem>> -> memref<1x!tpu.dma_semaphore, #tpu.memory_space<semaphore_mem>>
    %88 = tpu.memref_squeeze %87 : memref<1x!tpu.dma_semaphore, #tpu.memory_space<semaphore_mem>> -> memref<!tpu.dma_semaphore, #tpu.memory_space<semaphore_mem>>
    tpu.wait_dma2 semaphore(%88 : memref<!tpu.dma_semaphore, #tpu.memory_space<semaphore_mem>>) src(%arg3 : memref<2x320x608xf32, #tpu.memory_space<any>>) dst(%arg9 : memref<2x320x608xf32, #tpu.memory_space<vmem>>)
    %c0_38 = arith.constant 0 : index
    %c0_39 = arith.constant 0 : index
    %89 = vector.load %arg4[%c0_38, %c0_39] : memref<1x608xf32, #tpu.memory_space<vmem>>, vector<1x608xf32>
    %c0_40 = arith.constant 0 : index
    %c0_41 = arith.constant 0 : index
    %90 = vector.load %arg6[%c0_40, %c0_41] : memref<519x128xf32, #tpu.memory_space<vmem>>, vector<1x7xf32>
    %91 = vector.extract_strided_slice %44 {offsets = [0, 0], sizes = [19, 320], strides = [1, 1]} : vector<20x320xf32> to vector<19x320xf32>
    %c0_42 = arith.constant 0 : index
    %c0_43 = arith.constant 0 : index
    %c0_44 = arith.constant 0 : index
    %92 = vector.load %arg9[%c0_42, %c0_43, %c0_44] : memref<2x320x608xf32, #tpu.memory_space<vmem>>, vector<1x320x608xf32>
    %93 = vector.shape_cast %92 : vector<1x320x608xf32> to vector<320x608xf32>
    %cst_45 = arith.constant dense<0.000000e+00> : vector<19x608xf32>
    %94 = tpu.matmul %91, %93, %cst_45 {dimension_numbers = #tpu.dot_dimension_numbers<[1], [0], [0], [1], [0, 0, 1, 1], [], []>} : vector<19x320xf32>, vector<320x608xf32>, vector<19x608xf32> -> vector<19x608xf32>
    %95 = vector.extract_strided_slice %44 {offsets = [1, 0], sizes = [19, 320], strides = [1, 1]} : vector<20x320xf32> to vector<19x320xf32>
    %c1_46 = arith.constant 1 : index
    %c0_47 = arith.constant 0 : index
    %c0_48 = arith.constant 0 : index
    %96 = vector.load %arg9[%c1_46, %c0_47, %c0_48] : memref<2x320x608xf32, #tpu.memory_space<vmem>>, vector<1x320x608xf32>
    %97 = vector.shape_cast %96 : vector<1x320x608xf32> to vector<320x608xf32>
    %cst_49 = arith.constant dense<0.000000e+00> : vector<19x608xf32>
    %98 = tpu.matmul %95, %97, %cst_49 {dimension_numbers = #tpu.dot_dimension_numbers<[1], [0], [0], [1], [0, 0, 1, 1], [], []>} : vector<19x320xf32>, vector<320x608xf32>, vector<19x608xf32> -> vector<19x608xf32>
    %99 = arith.addf %94, %98 : vector<19x608xf32>
    %100 = vector.broadcast %89 : vector<1x608xf32> to vector<19x608xf32>
    %101 = arith.addf %99, %100 : vector<19x608xf32>
    %cst_50 = arith.constant 0.000000e+00 : f32
    %102 = vector.broadcast %cst_50 : f32 to vector<19x608xf32>
    %103 = arith.maximumf %101, %102 : vector<19x608xf32>
    %104 = vector.extract_strided_slice %103 {offsets = [0, 0], sizes = [18, 576], strides = [1, 1]} : vector<19x608xf32> to vector<18x576xf32>
    %105 = vector.extract_strided_slice %103 {offsets = [0, 32], sizes = [18, 576], strides = [1, 1]} : vector<19x608xf32> to vector<18x576xf32>
    %106 = arith.maximumf %104, %105 : vector<18x576xf32>
    %107 = vector.extract_strided_slice %103 {offsets = [1, 0], sizes = [18, 576], strides = [1, 1]} : vector<19x608xf32> to vector<18x576xf32>
    %108 = arith.maximumf %106, %107 : vector<18x576xf32>
    %109 = vector.extract_strided_slice %103 {offsets = [1, 32], sizes = [18, 576], strides = [1, 1]} : vector<19x608xf32> to vector<18x576xf32>
    %110 = arith.maximumf %108, %109 : vector<18x576xf32>
    %c0_51 = arith.constant 0 : index
    %c0_52 = arith.constant 0 : index
    %c0_53 = arith.constant 0 : index
    %111 = vector.load %arg5[%c0_51, %c0_52, %c0_53] : memref<7x18x576xf32, #tpu.memory_space<vmem>>, vector<1x18x576xf32>
    %112 = vector.shape_cast %111 : vector<1x18x576xf32> to vector<18x576xf32>
    %113 = arith.mulf %110, %112 : vector<18x576xf32>
    %cst_54 = arith.constant dense<0.000000e+00> : vector<18xf32>
    %114 = vector.multi_reduction <add>, %113, %cst_54 [1] : vector<18x576xf32> to vector<18xf32>
    %115 = vector.shape_cast %114 : vector<18xf32> to vector<18x1xf32>
    %c1_55 = arith.constant 1 : index
    %c0_56 = arith.constant 0 : index
    %c0_57 = arith.constant 0 : index
    %116 = vector.load %arg5[%c1_55, %c0_56, %c0_57] : memref<7x18x576xf32, #tpu.memory_space<vmem>>, vector<1x18x576xf32>
    %117 = vector.shape_cast %116 : vector<1x18x576xf32> to vector<18x576xf32>
    %118 = arith.mulf %110, %117 : vector<18x576xf32>
    %cst_58 = arith.constant dense<0.000000e+00> : vector<18xf32>
    %119 = vector.multi_reduction <add>, %118, %cst_58 [1] : vector<18x576xf32> to vector<18xf32>
    %120 = vector.shape_cast %119 : vector<18xf32> to vector<18x1xf32>
    %c2_59 = arith.constant 2 : index
    %c0_60 = arith.constant 0 : index
    %c0_61 = arith.constant 0 : index
    %121 = vector.load %arg5[%c2_59, %c0_60, %c0_61] : memref<7x18x576xf32, #tpu.memory_space<vmem>>, vector<1x18x576xf32>
    %122 = vector.shape_cast %121 : vector<1x18x576xf32> to vector<18x576xf32>
    %123 = arith.mulf %110, %122 : vector<18x576xf32>
    %cst_62 = arith.constant dense<0.000000e+00> : vector<18xf32>
    %124 = vector.multi_reduction <add>, %123, %cst_62 [1] : vector<18x576xf32> to vector<18xf32>
    %125 = vector.shape_cast %124 : vector<18xf32> to vector<18x1xf32>
    %c3_63 = arith.constant 3 : index
    %c0_64 = arith.constant 0 : index
    %c0_65 = arith.constant 0 : index
    %126 = vector.load %arg5[%c3_63, %c0_64, %c0_65] : memref<7x18x576xf32, #tpu.memory_space<vmem>>, vector<1x18x576xf32>
    %127 = vector.shape_cast %126 : vector<1x18x576xf32> to vector<18x576xf32>
    %128 = arith.mulf %110, %127 : vector<18x576xf32>
    %cst_66 = arith.constant dense<0.000000e+00> : vector<18xf32>
    %129 = vector.multi_reduction <add>, %128, %cst_66 [1] : vector<18x576xf32> to vector<18xf32>
    %130 = vector.shape_cast %129 : vector<18xf32> to vector<18x1xf32>
    %c4 = arith.constant 4 : index
    %c0_67 = arith.constant 0 : index
    %c0_68 = arith.constant 0 : index
    %131 = vector.load %arg5[%c4, %c0_67, %c0_68] : memref<7x18x576xf32, #tpu.memory_space<vmem>>, vector<1x18x576xf32>
    %132 = vector.shape_cast %131 : vector<1x18x576xf32> to vector<18x576xf32>
    %133 = arith.mulf %110, %132 : vector<18x576xf32>
    %cst_69 = arith.constant dense<0.000000e+00> : vector<18xf32>
    %134 = vector.multi_reduction <add>, %133, %cst_69 [1] : vector<18x576xf32> to vector<18xf32>
    %135 = vector.shape_cast %134 : vector<18xf32> to vector<18x1xf32>
    %c5 = arith.constant 5 : index
    %c0_70 = arith.constant 0 : index
    %c0_71 = arith.constant 0 : index
    %136 = vector.load %arg5[%c5, %c0_70, %c0_71] : memref<7x18x576xf32, #tpu.memory_space<vmem>>, vector<1x18x576xf32>
    %137 = vector.shape_cast %136 : vector<1x18x576xf32> to vector<18x576xf32>
    %138 = arith.mulf %110, %137 : vector<18x576xf32>
    %cst_72 = arith.constant dense<0.000000e+00> : vector<18xf32>
    %139 = vector.multi_reduction <add>, %138, %cst_72 [1] : vector<18x576xf32> to vector<18xf32>
    %140 = vector.shape_cast %139 : vector<18xf32> to vector<18x1xf32>
    %c6 = arith.constant 6 : index
    %c0_73 = arith.constant 0 : index
    %c0_74 = arith.constant 0 : index
    %141 = vector.load %arg5[%c6, %c0_73, %c0_74] : memref<7x18x576xf32, #tpu.memory_space<vmem>>, vector<1x18x576xf32>
    %142 = vector.shape_cast %141 : vector<1x18x576xf32> to vector<18x576xf32>
    %143 = arith.mulf %110, %142 : vector<18x576xf32>
    %cst_75 = arith.constant dense<0.000000e+00> : vector<18xf32>
    %144 = vector.multi_reduction <add>, %143, %cst_75 [1] : vector<18x576xf32> to vector<18xf32>
    %145 = vector.shape_cast %144 : vector<18xf32> to vector<18x1xf32>
    %146 = tpu.concatenate %115, %120, %125, %130, %135, %140, %145 in 1 : vector<18x1xf32>, vector<18x1xf32>, vector<18x1xf32>, vector<18x1xf32>, vector<18x1xf32>, vector<18x1xf32>, vector<18x1xf32> -> vector<18x7xf32>
    %cst_76 = arith.constant dense<0.000000e+00> : vector<7xf32>
    %147 = vector.multi_reduction <add>, %146, %cst_76 [0] : vector<18x7xf32> to vector<7xf32>
    %148 = vector.shape_cast %147 : vector<7xf32> to vector<1x7xf32>
    %149 = vector.extract_strided_slice %86 {offsets = [0, 0], sizes = [19, 320], strides = [1, 1]} : vector<20x320xf32> to vector<19x320xf32>
    %c0_77 = arith.constant 0 : index
    %c0_78 = arith.constant 0 : index
    %c0_79 = arith.constant 0 : index
    %150 = vector.load %arg9[%c0_77, %c0_78, %c0_79] : memref<2x320x608xf32, #tpu.memory_space<vmem>>, vector<1x320x608xf32>
    %151 = vector.shape_cast %150 : vector<1x320x608xf32> to vector<320x608xf32>
    %cst_80 = arith.constant dense<0.000000e+00> : vector<19x608xf32>
    %152 = tpu.matmul %149, %151, %cst_80 {dimension_numbers = #tpu.dot_dimension_numbers<[1], [0], [0], [1], [0, 0, 1, 1], [], []>} : vector<19x320xf32>, vector<320x608xf32>, vector<19x608xf32> -> vector<19x608xf32>
    %153 = vector.extract_strided_slice %86 {offsets = [1, 0], sizes = [19, 320], strides = [1, 1]} : vector<20x320xf32> to vector<19x320xf32>
    %c1_81 = arith.constant 1 : index
    %c0_82 = arith.constant 0 : index
    %c0_83 = arith.constant 0 : index
    %154 = vector.load %arg9[%c1_81, %c0_82, %c0_83] : memref<2x320x608xf32, #tpu.memory_space<vmem>>, vector<1x320x608xf32>
    %155 = vector.shape_cast %154 : vector<1x320x608xf32> to vector<320x608xf32>
    %cst_84 = arith.constant dense<0.000000e+00> : vector<19x608xf32>
    %156 = tpu.matmul %153, %155, %cst_84 {dimension_numbers = #tpu.dot_dimension_numbers<[1], [0], [0], [1], [0, 0, 1, 1], [], []>} : vector<19x320xf32>, vector<320x608xf32>, vector<19x608xf32> -> vector<19x608xf32>
    %157 = arith.addf %152, %156 : vector<19x608xf32>
    %158 = vector.broadcast %89 : vector<1x608xf32> to vector<19x608xf32>
    %159 = arith.addf %157, %158 : vector<19x608xf32>
    %cst_85 = arith.constant 0.000000e+00 : f32
    %160 = vector.broadcast %cst_85 : f32 to vector<19x608xf32>
    %161 = arith.maximumf %159, %160 : vector<19x608xf32>
    %162 = vector.extract_strided_slice %161 {offsets = [0, 0], sizes = [18, 576], strides = [1, 1]} : vector<19x608xf32> to vector<18x576xf32>
    %163 = vector.extract_strided_slice %161 {offsets = [0, 32], sizes = [18, 576], strides = [1, 1]} : vector<19x608xf32> to vector<18x576xf32>
    %164 = arith.maximumf %162, %163 : vector<18x576xf32>
    %165 = vector.extract_strided_slice %161 {offsets = [1, 0], sizes = [18, 576], strides = [1, 1]} : vector<19x608xf32> to vector<18x576xf32>
    %166 = arith.maximumf %164, %165 : vector<18x576xf32>
    %167 = vector.extract_strided_slice %161 {offsets = [1, 32], sizes = [18, 576], strides = [1, 1]} : vector<19x608xf32> to vector<18x576xf32>
    %168 = arith.maximumf %166, %167 : vector<18x576xf32>
    %c0_86 = arith.constant 0 : index
    %c0_87 = arith.constant 0 : index
    %c0_88 = arith.constant 0 : index
    %169 = vector.load %arg5[%c0_86, %c0_87, %c0_88] : memref<7x18x576xf32, #tpu.memory_space<vmem>>, vector<1x18x576xf32>
    %170 = vector.shape_cast %169 : vector<1x18x576xf32> to vector<18x576xf32>
    %171 = arith.mulf %168, %170 : vector<18x576xf32>
    %cst_89 = arith.constant dense<0.000000e+00> : vector<18xf32>
    %172 = vector.multi_reduction <add>, %171, %cst_89 [1] : vector<18x576xf32> to vector<18xf32>
    %173 = vector.shape_cast %172 : vector<18xf32> to vector<18x1xf32>
    %c1_90 = arith.constant 1 : index
    %c0_91 = arith.constant 0 : index
    %c0_92 = arith.constant 0 : index
    %174 = vector.load %arg5[%c1_90, %c0_91, %c0_92] : memref<7x18x576xf32, #tpu.memory_space<vmem>>, vector<1x18x576xf32>
    %175 = vector.shape_cast %174 : vector<1x18x576xf32> to vector<18x576xf32>
    %176 = arith.mulf %168, %175 : vector<18x576xf32>
    %cst_93 = arith.constant dense<0.000000e+00> : vector<18xf32>
    %177 = vector.multi_reduction <add>, %176, %cst_93 [1] : vector<18x576xf32> to vector<18xf32>
    %178 = vector.shape_cast %177 : vector<18xf32> to vector<18x1xf32>
    %c2_94 = arith.constant 2 : index
    %c0_95 = arith.constant 0 : index
    %c0_96 = arith.constant 0 : index
    %179 = vector.load %arg5[%c2_94, %c0_95, %c0_96] : memref<7x18x576xf32, #tpu.memory_space<vmem>>, vector<1x18x576xf32>
    %180 = vector.shape_cast %179 : vector<1x18x576xf32> to vector<18x576xf32>
    %181 = arith.mulf %168, %180 : vector<18x576xf32>
    %cst_97 = arith.constant dense<0.000000e+00> : vector<18xf32>
    %182 = vector.multi_reduction <add>, %181, %cst_97 [1] : vector<18x576xf32> to vector<18xf32>
    %183 = vector.shape_cast %182 : vector<18xf32> to vector<18x1xf32>
    %c3_98 = arith.constant 3 : index
    %c0_99 = arith.constant 0 : index
    %c0_100 = arith.constant 0 : index
    %184 = vector.load %arg5[%c3_98, %c0_99, %c0_100] : memref<7x18x576xf32, #tpu.memory_space<vmem>>, vector<1x18x576xf32>
    %185 = vector.shape_cast %184 : vector<1x18x576xf32> to vector<18x576xf32>
    %186 = arith.mulf %168, %185 : vector<18x576xf32>
    %cst_101 = arith.constant dense<0.000000e+00> : vector<18xf32>
    %187 = vector.multi_reduction <add>, %186, %cst_101 [1] : vector<18x576xf32> to vector<18xf32>
    %188 = vector.shape_cast %187 : vector<18xf32> to vector<18x1xf32>
    %c4_102 = arith.constant 4 : index
    %c0_103 = arith.constant 0 : index
    %c0_104 = arith.constant 0 : index
    %189 = vector.load %arg5[%c4_102, %c0_103, %c0_104] : memref<7x18x576xf32, #tpu.memory_space<vmem>>, vector<1x18x576xf32>
    %190 = vector.shape_cast %189 : vector<1x18x576xf32> to vector<18x576xf32>
    %191 = arith.mulf %168, %190 : vector<18x576xf32>
    %cst_105 = arith.constant dense<0.000000e+00> : vector<18xf32>
    %192 = vector.multi_reduction <add>, %191, %cst_105 [1] : vector<18x576xf32> to vector<18xf32>
    %193 = vector.shape_cast %192 : vector<18xf32> to vector<18x1xf32>
    %c5_106 = arith.constant 5 : index
    %c0_107 = arith.constant 0 : index
    %c0_108 = arith.constant 0 : index
    %194 = vector.load %arg5[%c5_106, %c0_107, %c0_108] : memref<7x18x576xf32, #tpu.memory_space<vmem>>, vector<1x18x576xf32>
    %195 = vector.shape_cast %194 : vector<1x18x576xf32> to vector<18x576xf32>
    %196 = arith.mulf %168, %195 : vector<18x576xf32>
    %cst_109 = arith.constant dense<0.000000e+00> : vector<18xf32>
    %197 = vector.multi_reduction <add>, %196, %cst_109 [1] : vector<18x576xf32> to vector<18xf32>
    %198 = vector.shape_cast %197 : vector<18xf32> to vector<18x1xf32>
    %c6_110 = arith.constant 6 : index
    %c0_111 = arith.constant 0 : index
    %c0_112 = arith.constant 0 : index
    %199 = vector.load %arg5[%c6_110, %c0_111, %c0_112] : memref<7x18x576xf32, #tpu.memory_space<vmem>>, vector<1x18x576xf32>
    %200 = vector.shape_cast %199 : vector<1x18x576xf32> to vector<18x576xf32>
    %201 = arith.mulf %168, %200 : vector<18x576xf32>
    %cst_113 = arith.constant dense<0.000000e+00> : vector<18xf32>
    %202 = vector.multi_reduction <add>, %201, %cst_113 [1] : vector<18x576xf32> to vector<18xf32>
    %203 = vector.shape_cast %202 : vector<18xf32> to vector<18x1xf32>
    %204 = tpu.concatenate %173, %178, %183, %188, %193, %198, %203 in 1 : vector<18x1xf32>, vector<18x1xf32>, vector<18x1xf32>, vector<18x1xf32>, vector<18x1xf32>, vector<18x1xf32>, vector<18x1xf32> -> vector<18x7xf32>
    %cst_114 = arith.constant dense<0.000000e+00> : vector<7xf32>
    %205 = vector.multi_reduction <add>, %204, %cst_114 [0] : vector<18x7xf32> to vector<7xf32>
    %206 = vector.shape_cast %205 : vector<7xf32> to vector<1x7xf32>
    %207 = tpu.concatenate %148, %206 in 0 : vector<1x7xf32>, vector<1x7xf32> -> vector<2x7xf32>
    %208 = vector.broadcast %90 : vector<1x7xf32> to vector<2x7xf32>
    %209 = arith.addf %207, %208 : vector<2x7xf32>
    %cst_115 = arith.constant 0.000000e+00 : f32
    %210 = vector.broadcast %cst_115 : f32 to vector<2x7xf32>
    %211 = arith.maximumf %209, %210 : vector<2x7xf32>
    %c0_116 = arith.constant 0 : index
    %c0_117 = arith.constant 0 : index
    %212 = vector.load %arg7[%c0_116, %c0_117] : memref<58x128xf32, #tpu.memory_space<vmem>>, vector<12x6xf32>
    %c12 = arith.constant 12 : index
    %c0_118 = arith.constant 0 : index
    %213 = vector.load %arg7[%c12, %c0_118] : memref<58x128xf32, #tpu.memory_space<vmem>>, vector<6x5xf32>
    %c501 = arith.constant 501 : index
    %c0_119 = arith.constant 0 : index
    %214 = vector.load %arg6[%c501, %c0_119] : memref<519x128xf32, #tpu.memory_space<vmem>>, vector<12x2xf32>
    %cst_120 = arith.constant dense<0.000000e+00> : vector<12x7xf32>
    %215 = tpu.matmul %214, %211, %cst_120 {dimension_numbers = #tpu.dot_dimension_numbers<[1], [0], [0], [1], [0, 0, 1, 1], [], []>} : vector<12x2xf32>, vector<2x7xf32>, vector<12x7xf32> -> vector<12x7xf32>
    %c513 = arith.constant 513 : index
    %c0_121 = arith.constant 0 : index
    %216 = vector.load %arg6[%c513, %c0_121] : memref<519x128xf32, #tpu.memory_space<vmem>>, vector<6x2xf32>
    %cst_122 = arith.constant dense<0.000000e+00> : vector<6x7xf32>
    %217 = tpu.matmul %216, %211, %cst_122 {dimension_numbers = #tpu.dot_dimension_numbers<[1], [0], [0], [1], [0, 0, 1, 1], [], []>} : vector<6x2xf32>, vector<2x7xf32>, vector<6x7xf32> -> vector<6x7xf32>
    %c467 = arith.constant 467 : index
    %c0_123 = arith.constant 0 : index
    %218 = vector.load %arg6[%c467, %c0_123] : memref<519x128xf32, #tpu.memory_space<vmem>>, vector<12x6xf32>
    %cst_124 = arith.constant dense<0.000000e+00> : vector<12x5xf32>
    %219 = tpu.matmul %218, %213, %cst_124 {dimension_numbers = #tpu.dot_dimension_numbers<[1], [0], [0], [1], [0, 0, 1, 1], [], []>} : vector<12x6xf32>, vector<6x5xf32>, vector<12x5xf32> -> vector<12x5xf32>
    %c479 = arith.constant 479 : index
    %c0_125 = arith.constant 0 : index
    %220 = vector.load %arg6[%c479, %c0_125] : memref<519x128xf32, #tpu.memory_space<vmem>>, vector<12x6xf32>
    %cst_126 = arith.constant dense<0.000000e+00> : vector<12x5xf32>
    %221 = tpu.matmul %220, %213, %cst_126 {dimension_numbers = #tpu.dot_dimension_numbers<[1], [0], [0], [1], [0, 0, 1, 1], [], []>} : vector<12x6xf32>, vector<6x5xf32>, vector<12x5xf32> -> vector<12x5xf32>
    %c24 = arith.constant 24 : index
    %c0_127 = arith.constant 0 : index
    %222 = vector.load %arg6[%c24, %c0_127] : memref<519x128xf32, #tpu.memory_space<vmem>>, vector<1x32xf32>
    %c1_128 = arith.constant 1 : index
    %c0_129 = arith.constant 0 : index
    %223 = vector.load %arg6[%c1_128, %c0_129] : memref<519x128xf32, #tpu.memory_space<vmem>>, vector<6x32xf32>
    %cst_130 = arith.constant dense<0.000000e+00> : vector<12x32xf32>
    %224 = tpu.matmul %212, %223, %cst_130 {dimension_numbers = #tpu.dot_dimension_numbers<[1], [0], [0], [1], [0, 0, 1, 1], [], []>} : vector<12x6xf32>, vector<6x32xf32>, vector<12x32xf32> -> vector<12x32xf32>
    %225 = vector.broadcast %222 : vector<1x32xf32> to vector<12x32xf32>
    %226 = arith.addf %225, %224 : vector<12x32xf32>
    %c7 = arith.constant 7 : index
    %c0_131 = arith.constant 0 : index
    %227 = vector.load %arg6[%c7, %c0_131] : memref<519x128xf32, #tpu.memory_space<vmem>>, vector<5x32xf32>
    %cst_132 = arith.constant dense<0.000000e+00> : vector<12x32xf32>
    %228 = tpu.matmul %219, %227, %cst_132 {dimension_numbers = #tpu.dot_dimension_numbers<[1], [0], [0], [1], [0, 0, 1, 1], [], []>} : vector<12x5xf32>, vector<5x32xf32>, vector<12x32xf32> -> vector<12x32xf32>
    %229 = arith.addf %226, %228 : vector<12x32xf32>
    %c12_133 = arith.constant 12 : index
    %c0_134 = arith.constant 0 : index
    %230 = vector.load %arg6[%c12_133, %c0_134] : memref<519x128xf32, #tpu.memory_space<vmem>>, vector<5x32xf32>
    %cst_135 = arith.constant dense<0.000000e+00> : vector<12x32xf32>
    %231 = tpu.matmul %221, %230, %cst_135 {dimension_numbers = #tpu.dot_dimension_numbers<[1], [0], [0], [1], [0, 0, 1, 1], [], []>} : vector<12x5xf32>, vector<5x32xf32>, vector<12x32xf32> -> vector<12x32xf32>
    %232 = arith.addf %229, %231 : vector<12x32xf32>
    %c17 = arith.constant 17 : index
    %c0_136 = arith.constant 0 : index
    %233 = vector.load %arg6[%c17, %c0_136] : memref<519x128xf32, #tpu.memory_space<vmem>>, vector<7x32xf32>
    %cst_137 = arith.constant dense<0.000000e+00> : vector<12x32xf32>
    %234 = tpu.matmul %215, %233, %cst_137 {dimension_numbers = #tpu.dot_dimension_numbers<[1], [0], [0], [1], [0, 0, 1, 1], [], []>} : vector<12x7xf32>, vector<7x32xf32>, vector<12x32xf32> -> vector<12x32xf32>
    %235 = arith.addf %232, %234 : vector<12x32xf32>
    %cst_138 = arith.constant 0.000000e+00 : f32
    %236 = vector.broadcast %cst_138 : f32 to vector<12x32xf32>
    %237 = arith.maximumf %235, %236 : vector<12x32xf32>
    %c25 = arith.constant 25 : index
    %c0_139 = arith.constant 0 : index
    %238 = vector.load %arg6[%c25, %c0_139] : memref<519x128xf32, #tpu.memory_space<vmem>>, vector<32x8xf32>
    %cst_140 = arith.constant dense<0.000000e+00> : vector<12x8xf32>
    %239 = tpu.matmul %237, %238, %cst_140 {dimension_numbers = #tpu.dot_dimension_numbers<[1], [0], [0], [1], [0, 0, 1, 1], [], []>} : vector<12x32xf32>, vector<32x8xf32>, vector<12x8xf32> -> vector<12x8xf32>
    %c57 = arith.constant 57 : index
    %c0_141 = arith.constant 0 : index
    %240 = vector.load %arg6[%c57, %c0_141] : memref<519x128xf32, #tpu.memory_space<vmem>>, vector<1x8xf32>
    %241 = vector.broadcast %240 : vector<1x8xf32> to vector<12x8xf32>
    %242 = arith.addf %239, %241 : vector<12x8xf32>
    %c491 = arith.constant 491 : index
    %c0_142 = arith.constant 0 : index
    %243 = vector.load %arg6[%c491, %c0_142] : memref<519x128xf32, #tpu.memory_space<vmem>>, vector<6x12xf32>
    %cst_143 = arith.constant dense<0.000000e+00> : vector<6x8xf32>
    %244 = tpu.matmul %243, %242, %cst_143 {dimension_numbers = #tpu.dot_dimension_numbers<[1], [0], [0], [1], [0, 0, 1, 1], [], []>} : vector<6x12xf32>, vector<12x8xf32>, vector<6x8xf32> -> vector<6x8xf32>
    %c78 = arith.constant 78 : index
    %c0_144 = arith.constant 0 : index
    %245 = vector.load %arg6[%c78, %c0_144] : memref<519x128xf32, #tpu.memory_space<vmem>>, vector<1x32xf32>
    %c58 = arith.constant 58 : index
    %c0_145 = arith.constant 0 : index
    %246 = vector.load %arg6[%c58, %c0_145] : memref<519x128xf32, #tpu.memory_space<vmem>>, vector<5x32xf32>
    %cst_146 = arith.constant dense<0.000000e+00> : vector<6x32xf32>
    %247 = tpu.matmul %213, %246, %cst_146 {dimension_numbers = #tpu.dot_dimension_numbers<[1], [0], [0], [1], [0, 0, 1, 1], [], []>} : vector<6x5xf32>, vector<5x32xf32>, vector<6x32xf32> -> vector<6x32xf32>
    %248 = vector.broadcast %245 : vector<1x32xf32> to vector<6x32xf32>
    %249 = arith.addf %248, %247 : vector<6x32xf32>
    %c63 = arith.constant 63 : index
    %c0_147 = arith.constant 0 : index
    %250 = vector.load %arg6[%c63, %c0_147] : memref<519x128xf32, #tpu.memory_space<vmem>>, vector<8x32xf32>
    %cst_148 = arith.constant dense<0.000000e+00> : vector<6x32xf32>
    %251 = tpu.matmul %244, %250, %cst_148 {dimension_numbers = #tpu.dot_dimension_numbers<[1], [0], [0], [1], [0, 0, 1, 1], [], []>} : vector<6x8xf32>, vector<8x32xf32>, vector<6x32xf32> -> vector<6x32xf32>
    %252 = arith.addf %249, %251 : vector<6x32xf32>
    %c71 = arith.constant 71 : index
    %c0_149 = arith.constant 0 : index
    %253 = vector.load %arg6[%c71, %c0_149] : memref<519x128xf32, #tpu.memory_space<vmem>>, vector<7x32xf32>
    %cst_150 = arith.constant dense<0.000000e+00> : vector<6x32xf32>
    %254 = tpu.matmul %217, %253, %cst_150 {dimension_numbers = #tpu.dot_dimension_numbers<[1], [0], [0], [1], [0, 0, 1, 1], [], []>} : vector<6x7xf32>, vector<7x32xf32>, vector<6x32xf32> -> vector<6x32xf32>
    %255 = arith.addf %252, %254 : vector<6x32xf32>
    %cst_151 = arith.constant 0.000000e+00 : f32
    %256 = vector.broadcast %cst_151 : f32 to vector<6x32xf32>
    %257 = arith.maximumf %255, %256 : vector<6x32xf32>
    %c79 = arith.constant 79 : index
    %c0_152 = arith.constant 0 : index
    %258 = vector.load %arg6[%c79, %c0_152] : memref<519x128xf32, #tpu.memory_space<vmem>>, vector<32x8xf32>
    %cst_153 = arith.constant dense<0.000000e+00> : vector<6x8xf32>
    %259 = tpu.matmul %257, %258, %cst_153 {dimension_numbers = #tpu.dot_dimension_numbers<[1], [0], [0], [1], [0, 0, 1, 1], [], []>} : vector<6x32xf32>, vector<32x8xf32>, vector<6x8xf32> -> vector<6x8xf32>
    %c111 = arith.constant 111 : index
    %c0_154 = arith.constant 0 : index
    %260 = vector.load %arg6[%c111, %c0_154] : memref<519x128xf32, #tpu.memory_space<vmem>>, vector<1x8xf32>
    %261 = vector.broadcast %260 : vector<1x8xf32> to vector<6x8xf32>
    %262 = arith.addf %259, %261 : vector<6x8xf32>
    %c497 = arith.constant 497 : index
    %c0_155 = arith.constant 0 : index
    %263 = vector.load %arg6[%c497, %c0_155] : memref<519x128xf32, #tpu.memory_space<vmem>>, vector<2x12xf32>
    %cst_156 = arith.constant dense<0.000000e+00> : vector<2x8xf32>
    %264 = tpu.matmul %263, %242, %cst_156 {dimension_numbers = #tpu.dot_dimension_numbers<[1], [0], [0], [1], [0, 0, 1, 1], [], []>} : vector<2x12xf32>, vector<12x8xf32>, vector<2x8xf32> -> vector<2x8xf32>
    %c499 = arith.constant 499 : index
    %c0_157 = arith.constant 0 : index
    %265 = vector.load %arg6[%c499, %c0_157] : memref<519x128xf32, #tpu.memory_space<vmem>>, vector<2x6xf32>
    %cst_158 = arith.constant dense<0.000000e+00> : vector<2x8xf32>
    %266 = tpu.matmul %265, %262, %cst_158 {dimension_numbers = #tpu.dot_dimension_numbers<[1], [0], [0], [1], [0, 0, 1, 1], [], []>} : vector<2x6xf32>, vector<6x8xf32>, vector<2x8xf32> -> vector<2x8xf32>
    %c135 = arith.constant 135 : index
    %c0_159 = arith.constant 0 : index
    %267 = vector.load %arg6[%c135, %c0_159] : memref<519x128xf32, #tpu.memory_space<vmem>>, vector<1x32xf32>
    %c112 = arith.constant 112 : index
    %c0_160 = arith.constant 0 : index
    %268 = vector.load %arg6[%c112, %c0_160] : memref<519x128xf32, #tpu.memory_space<vmem>>, vector<8x32xf32>
    %cst_161 = arith.constant dense<0.000000e+00> : vector<2x32xf32>
    %269 = tpu.matmul %266, %268, %cst_161 {dimension_numbers = #tpu.dot_dimension_numbers<[1], [0], [0], [1], [0, 0, 1, 1], [], []>} : vector<2x8xf32>, vector<8x32xf32>, vector<2x32xf32> -> vector<2x32xf32>
    %270 = vector.broadcast %267 : vector<1x32xf32> to vector<2x32xf32>
    %271 = arith.addf %270, %269 : vector<2x32xf32>
    %c120 = arith.constant 120 : index
    %c0_162 = arith.constant 0 : index
    %272 = vector.load %arg6[%c120, %c0_162] : memref<519x128xf32, #tpu.memory_space<vmem>>, vector<8x32xf32>
    %cst_163 = arith.constant dense<0.000000e+00> : vector<2x32xf32>
    %273 = tpu.matmul %264, %272, %cst_163 {dimension_numbers = #tpu.dot_dimension_numbers<[1], [0], [0], [1], [0, 0, 1, 1], [], []>} : vector<2x8xf32>, vector<8x32xf32>, vector<2x32xf32> -> vector<2x32xf32>
    %274 = arith.addf %271, %273 : vector<2x32xf32>
    %c128 = arith.constant 128 : index
    %c0_164 = arith.constant 0 : index
    %275 = vector.load %arg6[%c128, %c0_164] : memref<519x128xf32, #tpu.memory_space<vmem>>, vector<7x32xf32>
    %cst_165 = arith.constant dense<0.000000e+00> : vector<2x32xf32>
    %276 = tpu.matmul %211, %275, %cst_165 {dimension_numbers = #tpu.dot_dimension_numbers<[1], [0], [0], [1], [0, 0, 1, 1], [], []>} : vector<2x7xf32>, vector<7x32xf32>, vector<2x32xf32> -> vector<2x32xf32>
    %277 = arith.addf %274, %276 : vector<2x32xf32>
    %cst_166 = arith.constant 0.000000e+00 : f32
    %278 = vector.broadcast %cst_166 : f32 to vector<2x32xf32>
    %279 = arith.maximumf %277, %278 : vector<2x32xf32>
    %c136 = arith.constant 136 : index
    %c0_167 = arith.constant 0 : index
    %280 = vector.load %arg6[%c136, %c0_167] : memref<519x128xf32, #tpu.memory_space<vmem>>, vector<32x8xf32>
    %cst_168 = arith.constant dense<0.000000e+00> : vector<2x8xf32>
    %281 = tpu.matmul %279, %280, %cst_168 {dimension_numbers = #tpu.dot_dimension_numbers<[1], [0], [0], [1], [0, 0, 1, 1], [], []>} : vector<2x32xf32>, vector<32x8xf32>, vector<2x8xf32> -> vector<2x8xf32>
    %c168 = arith.constant 168 : index
    %c0_169 = arith.constant 0 : index
    %282 = vector.load %arg6[%c168, %c0_169] : memref<519x128xf32, #tpu.memory_space<vmem>>, vector<1x8xf32>
    %283 = vector.broadcast %282 : vector<1x8xf32> to vector<2x8xf32>
    %284 = arith.addf %281, %283 : vector<2x8xf32>
    %c501_170 = arith.constant 501 : index
    %c0_171 = arith.constant 0 : index
    %285 = vector.load %arg6[%c501_170, %c0_171] : memref<519x128xf32, #tpu.memory_space<vmem>>, vector<12x2xf32>
    %cst_172 = arith.constant dense<0.000000e+00> : vector<12x8xf32>
    %286 = tpu.matmul %285, %284, %cst_172 {dimension_numbers = #tpu.dot_dimension_numbers<[1], [0], [0], [1], [0, 0, 1, 1], [], []>} : vector<12x2xf32>, vector<2x8xf32>, vector<12x8xf32> -> vector<12x8xf32>
    %c513_173 = arith.constant 513 : index
    %c0_174 = arith.constant 0 : index
    %287 = vector.load %arg6[%c513_173, %c0_174] : memref<519x128xf32, #tpu.memory_space<vmem>>, vector<6x2xf32>
    %cst_175 = arith.constant dense<0.000000e+00> : vector<6x8xf32>
    %288 = tpu.matmul %287, %284, %cst_175 {dimension_numbers = #tpu.dot_dimension_numbers<[1], [0], [0], [1], [0, 0, 1, 1], [], []>} : vector<6x2xf32>, vector<2x8xf32>, vector<6x8xf32> -> vector<6x8xf32>
    %c467_176 = arith.constant 467 : index
    %c0_177 = arith.constant 0 : index
    %289 = vector.load %arg6[%c467_176, %c0_177] : memref<519x128xf32, #tpu.memory_space<vmem>>, vector<12x6xf32>
    %cst_178 = arith.constant dense<0.000000e+00> : vector<12x8xf32>
    %290 = tpu.matmul %289, %262, %cst_178 {dimension_numbers = #tpu.dot_dimension_numbers<[1], [0], [0], [1], [0, 0, 1, 1], [], []>} : vector<12x6xf32>, vector<6x8xf32>, vector<12x8xf32> -> vector<12x8xf32>
    %c479_179 = arith.constant 479 : index
    %c0_180 = arith.constant 0 : index
    %291 = vector.load %arg6[%c479_179, %c0_180] : memref<519x128xf32, #tpu.memory_space<vmem>>, vector<12x6xf32>
    %cst_181 = arith.constant dense<0.000000e+00> : vector<12x8xf32>
    %292 = tpu.matmul %291, %262, %cst_181 {dimension_numbers = #tpu.dot_dimension_numbers<[1], [0], [0], [1], [0, 0, 1, 1], [], []>} : vector<12x6xf32>, vector<6x8xf32>, vector<12x8xf32> -> vector<12x8xf32>
    %c201 = arith.constant 201 : index
    %c0_182 = arith.constant 0 : index
    %293 = vector.load %arg6[%c201, %c0_182] : memref<519x128xf32, #tpu.memory_space<vmem>>, vector<1x32xf32>
    %c169 = arith.constant 169 : index
    %c0_183 = arith.constant 0 : index
    %294 = vector.load %arg6[%c169, %c0_183] : memref<519x128xf32, #tpu.memory_space<vmem>>, vector<8x32xf32>
    %cst_184 = arith.constant dense<0.000000e+00> : vector<12x32xf32>
    %295 = tpu.matmul %242, %294, %cst_184 {dimension_numbers = #tpu.dot_dimension_numbers<[1], [0], [0], [1], [0, 0, 1, 1], [], []>} : vector<12x8xf32>, vector<8x32xf32>, vector<12x32xf32> -> vector<12x32xf32>
    %296 = vector.broadcast %293 : vector<1x32xf32> to vector<12x32xf32>
    %297 = arith.addf %296, %295 : vector<12x32xf32>
    %c177 = arith.constant 177 : index
    %c0_185 = arith.constant 0 : index
    %298 = vector.load %arg6[%c177, %c0_185] : memref<519x128xf32, #tpu.memory_space<vmem>>, vector<8x32xf32>
    %cst_186 = arith.constant dense<0.000000e+00> : vector<12x32xf32>
    %299 = tpu.matmul %290, %298, %cst_186 {dimension_numbers = #tpu.dot_dimension_numbers<[1], [0], [0], [1], [0, 0, 1, 1], [], []>} : vector<12x8xf32>, vector<8x32xf32>, vector<12x32xf32> -> vector<12x32xf32>
    %300 = arith.addf %297, %299 : vector<12x32xf32>
    %c185 = arith.constant 185 : index
    %c0_187 = arith.constant 0 : index
    %301 = vector.load %arg6[%c185, %c0_187] : memref<519x128xf32, #tpu.memory_space<vmem>>, vector<8x32xf32>
    %cst_188 = arith.constant dense<0.000000e+00> : vector<12x32xf32>
    %302 = tpu.matmul %292, %301, %cst_188 {dimension_numbers = #tpu.dot_dimension_numbers<[1], [0], [0], [1], [0, 0, 1, 1], [], []>} : vector<12x8xf32>, vector<8x32xf32>, vector<12x32xf32> -> vector<12x32xf32>
    %303 = arith.addf %300, %302 : vector<12x32xf32>
    %c193 = arith.constant 193 : index
    %c0_189 = arith.constant 0 : index
    %304 = vector.load %arg6[%c193, %c0_189] : memref<519x128xf32, #tpu.memory_space<vmem>>, vector<8x32xf32>
    %cst_190 = arith.constant dense<0.000000e+00> : vector<12x32xf32>
    %305 = tpu.matmul %286, %304, %cst_190 {dimension_numbers = #tpu.dot_dimension_numbers<[1], [0], [0], [1], [0, 0, 1, 1], [], []>} : vector<12x8xf32>, vector<8x32xf32>, vector<12x32xf32> -> vector<12x32xf32>
    %306 = arith.addf %303, %305 : vector<12x32xf32>
    %cst_191 = arith.constant 0.000000e+00 : f32
    %307 = vector.broadcast %cst_191 : f32 to vector<12x32xf32>
    %308 = arith.maximumf %306, %307 : vector<12x32xf32>
    %c202 = arith.constant 202 : index
    %c0_192 = arith.constant 0 : index
    %309 = vector.load %arg6[%c202, %c0_192] : memref<519x128xf32, #tpu.memory_space<vmem>>, vector<32x8xf32>
    %cst_193 = arith.constant dense<0.000000e+00> : vector<12x8xf32>
    %310 = tpu.matmul %308, %309, %cst_193 {dimension_numbers = #tpu.dot_dimension_numbers<[1], [0], [0], [1], [0, 0, 1, 1], [], []>} : vector<12x32xf32>, vector<32x8xf32>, vector<12x8xf32> -> vector<12x8xf32>
    %c234 = arith.constant 234 : index
    %c0_194 = arith.constant 0 : index
    %311 = vector.load %arg6[%c234, %c0_194] : memref<519x128xf32, #tpu.memory_space<vmem>>, vector<1x8xf32>
    %312 = vector.broadcast %311 : vector<1x8xf32> to vector<12x8xf32>
    %313 = arith.addf %310, %312 : vector<12x8xf32>
    %c491_195 = arith.constant 491 : index
    %c0_196 = arith.constant 0 : index
    %314 = vector.load %arg6[%c491_195, %c0_196] : memref<519x128xf32, #tpu.memory_space<vmem>>, vector<6x12xf32>
    %cst_197 = arith.constant dense<0.000000e+00> : vector<6x8xf32>
    %315 = tpu.matmul %314, %313, %cst_197 {dimension_numbers = #tpu.dot_dimension_numbers<[1], [0], [0], [1], [0, 0, 1, 1], [], []>} : vector<6x12xf32>, vector<12x8xf32>, vector<6x8xf32> -> vector<6x8xf32>
    %c259 = arith.constant 259 : index
    %c0_198 = arith.constant 0 : index
    %316 = vector.load %arg6[%c259, %c0_198] : memref<519x128xf32, #tpu.memory_space<vmem>>, vector<1x32xf32>
    %c235 = arith.constant 235 : index
    %c0_199 = arith.constant 0 : index
    %317 = vector.load %arg6[%c235, %c0_199] : memref<519x128xf32, #tpu.memory_space<vmem>>, vector<8x32xf32>
    %cst_200 = arith.constant dense<0.000000e+00> : vector<6x32xf32>
    %318 = tpu.matmul %262, %317, %cst_200 {dimension_numbers = #tpu.dot_dimension_numbers<[1], [0], [0], [1], [0, 0, 1, 1], [], []>} : vector<6x8xf32>, vector<8x32xf32>, vector<6x32xf32> -> vector<6x32xf32>
    %319 = vector.broadcast %316 : vector<1x32xf32> to vector<6x32xf32>
    %320 = arith.addf %319, %318 : vector<6x32xf32>
    %c243 = arith.constant 243 : index
    %c0_201 = arith.constant 0 : index
    %321 = vector.load %arg6[%c243, %c0_201] : memref<519x128xf32, #tpu.memory_space<vmem>>, vector<8x32xf32>
    %cst_202 = arith.constant dense<0.000000e+00> : vector<6x32xf32>
    %322 = tpu.matmul %315, %321, %cst_202 {dimension_numbers = #tpu.dot_dimension_numbers<[1], [0], [0], [1], [0, 0, 1, 1], [], []>} : vector<6x8xf32>, vector<8x32xf32>, vector<6x32xf32> -> vector<6x32xf32>
    %323 = arith.addf %320, %322 : vector<6x32xf32>
    %c251 = arith.constant 251 : index
    %c0_203 = arith.constant 0 : index
    %324 = vector.load %arg6[%c251, %c0_203] : memref<519x128xf32, #tpu.memory_space<vmem>>, vector<8x32xf32>
    %cst_204 = arith.constant dense<0.000000e+00> : vector<6x32xf32>
    %325 = tpu.matmul %288, %324, %cst_204 {dimension_numbers = #tpu.dot_dimension_numbers<[1], [0], [0], [1], [0, 0, 1, 1], [], []>} : vector<6x8xf32>, vector<8x32xf32>, vector<6x32xf32> -> vector<6x32xf32>
    %326 = arith.addf %323, %325 : vector<6x32xf32>
    %cst_205 = arith.constant 0.000000e+00 : f32
    %327 = vector.broadcast %cst_205 : f32 to vector<6x32xf32>
    %328 = arith.maximumf %326, %327 : vector<6x32xf32>
    %c260 = arith.constant 260 : index
    %c0_206 = arith.constant 0 : index
    %329 = vector.load %arg6[%c260, %c0_206] : memref<519x128xf32, #tpu.memory_space<vmem>>, vector<32x8xf32>
    %cst_207 = arith.constant dense<0.000000e+00> : vector<6x8xf32>
    %330 = tpu.matmul %328, %329, %cst_207 {dimension_numbers = #tpu.dot_dimension_numbers<[1], [0], [0], [1], [0, 0, 1, 1], [], []>} : vector<6x32xf32>, vector<32x8xf32>, vector<6x8xf32> -> vector<6x8xf32>
    %c292 = arith.constant 292 : index
    %c0_208 = arith.constant 0 : index
    %331 = vector.load %arg6[%c292, %c0_208] : memref<519x128xf32, #tpu.memory_space<vmem>>, vector<1x8xf32>
    %332 = vector.broadcast %331 : vector<1x8xf32> to vector<6x8xf32>
    %333 = arith.addf %330, %332 : vector<6x8xf32>
    %c497_209 = arith.constant 497 : index
    %c0_210 = arith.constant 0 : index
    %334 = vector.load %arg6[%c497_209, %c0_210] : memref<519x128xf32, #tpu.memory_space<vmem>>, vector<2x12xf32>
    %cst_211 = arith.constant dense<0.000000e+00> : vector<2x8xf32>
    %335 = tpu.matmul %334, %313, %cst_211 {dimension_numbers = #tpu.dot_dimension_numbers<[1], [0], [0], [1], [0, 0, 1, 1], [], []>} : vector<2x12xf32>, vector<12x8xf32>, vector<2x8xf32> -> vector<2x8xf32>
    %c499_212 = arith.constant 499 : index
    %c0_213 = arith.constant 0 : index
    %336 = vector.load %arg6[%c499_212, %c0_213] : memref<519x128xf32, #tpu.memory_space<vmem>>, vector<2x6xf32>
    %cst_214 = arith.constant dense<0.000000e+00> : vector<2x8xf32>
    %337 = tpu.matmul %336, %333, %cst_214 {dimension_numbers = #tpu.dot_dimension_numbers<[1], [0], [0], [1], [0, 0, 1, 1], [], []>} : vector<2x6xf32>, vector<6x8xf32>, vector<2x8xf32> -> vector<2x8xf32>
    %c317 = arith.constant 317 : index
    %c0_215 = arith.constant 0 : index
    %338 = vector.load %arg6[%c317, %c0_215] : memref<519x128xf32, #tpu.memory_space<vmem>>, vector<1x32xf32>
    %c293 = arith.constant 293 : index
    %c0_216 = arith.constant 0 : index
    %339 = vector.load %arg6[%c293, %c0_216] : memref<519x128xf32, #tpu.memory_space<vmem>>, vector<8x32xf32>
    %cst_217 = arith.constant dense<0.000000e+00> : vector<2x32xf32>
    %340 = tpu.matmul %337, %339, %cst_217 {dimension_numbers = #tpu.dot_dimension_numbers<[1], [0], [0], [1], [0, 0, 1, 1], [], []>} : vector<2x8xf32>, vector<8x32xf32>, vector<2x32xf32> -> vector<2x32xf32>
    %341 = vector.broadcast %338 : vector<1x32xf32> to vector<2x32xf32>
    %342 = arith.addf %341, %340 : vector<2x32xf32>
    %c301 = arith.constant 301 : index
    %c0_218 = arith.constant 0 : index
    %343 = vector.load %arg6[%c301, %c0_218] : memref<519x128xf32, #tpu.memory_space<vmem>>, vector<8x32xf32>
    %cst_219 = arith.constant dense<0.000000e+00> : vector<2x32xf32>
    %344 = tpu.matmul %335, %343, %cst_219 {dimension_numbers = #tpu.dot_dimension_numbers<[1], [0], [0], [1], [0, 0, 1, 1], [], []>} : vector<2x8xf32>, vector<8x32xf32>, vector<2x32xf32> -> vector<2x32xf32>
    %345 = arith.addf %342, %344 : vector<2x32xf32>
    %c309 = arith.constant 309 : index
    %c0_220 = arith.constant 0 : index
    %346 = vector.load %arg6[%c309, %c0_220] : memref<519x128xf32, #tpu.memory_space<vmem>>, vector<8x32xf32>
    %cst_221 = arith.constant dense<0.000000e+00> : vector<2x32xf32>
    %347 = tpu.matmul %284, %346, %cst_221 {dimension_numbers = #tpu.dot_dimension_numbers<[1], [0], [0], [1], [0, 0, 1, 1], [], []>} : vector<2x8xf32>, vector<8x32xf32>, vector<2x32xf32> -> vector<2x32xf32>
    %348 = arith.addf %345, %347 : vector<2x32xf32>
    %cst_222 = arith.constant 0.000000e+00 : f32
    %349 = vector.broadcast %cst_222 : f32 to vector<2x32xf32>
    %350 = arith.maximumf %348, %349 : vector<2x32xf32>
    %c318 = arith.constant 318 : index
    %c0_223 = arith.constant 0 : index
    %351 = vector.load %arg6[%c318, %c0_223] : memref<519x128xf32, #tpu.memory_space<vmem>>, vector<32x8xf32>
    %cst_224 = arith.constant dense<0.000000e+00> : vector<2x8xf32>
    %352 = tpu.matmul %350, %351, %cst_224 {dimension_numbers = #tpu.dot_dimension_numbers<[1], [0], [0], [1], [0, 0, 1, 1], [], []>} : vector<2x32xf32>, vector<32x8xf32>, vector<2x8xf32> -> vector<2x8xf32>
    %c350 = arith.constant 350 : index
    %c0_225 = arith.constant 0 : index
    %353 = vector.load %arg6[%c350, %c0_225] : memref<519x128xf32, #tpu.memory_space<vmem>>, vector<1x8xf32>
    %354 = vector.broadcast %353 : vector<1x8xf32> to vector<2x8xf32>
    %355 = arith.addf %352, %354 : vector<2x8xf32>
    %c501_226 = arith.constant 501 : index
    %c0_227 = arith.constant 0 : index
    %356 = vector.load %arg6[%c501_226, %c0_227] : memref<519x128xf32, #tpu.memory_space<vmem>>, vector<12x2xf32>
    %cst_228 = arith.constant dense<0.000000e+00> : vector<12x8xf32>
    %357 = tpu.matmul %356, %355, %cst_228 {dimension_numbers = #tpu.dot_dimension_numbers<[1], [0], [0], [1], [0, 0, 1, 1], [], []>} : vector<12x2xf32>, vector<2x8xf32>, vector<12x8xf32> -> vector<12x8xf32>
    %c513_229 = arith.constant 513 : index
    %c0_230 = arith.constant 0 : index
    %358 = vector.load %arg6[%c513_229, %c0_230] : memref<519x128xf32, #tpu.memory_space<vmem>>, vector<6x2xf32>
    %cst_231 = arith.constant dense<0.000000e+00> : vector<6x8xf32>
    %359 = tpu.matmul %358, %355, %cst_231 {dimension_numbers = #tpu.dot_dimension_numbers<[1], [0], [0], [1], [0, 0, 1, 1], [], []>} : vector<6x2xf32>, vector<2x8xf32>, vector<6x8xf32> -> vector<6x8xf32>
    %c467_232 = arith.constant 467 : index
    %c0_233 = arith.constant 0 : index
    %360 = vector.load %arg6[%c467_232, %c0_233] : memref<519x128xf32, #tpu.memory_space<vmem>>, vector<12x6xf32>
    %cst_234 = arith.constant dense<0.000000e+00> : vector<12x8xf32>
    %361 = tpu.matmul %360, %333, %cst_234 {dimension_numbers = #tpu.dot_dimension_numbers<[1], [0], [0], [1], [0, 0, 1, 1], [], []>} : vector<12x6xf32>, vector<6x8xf32>, vector<12x8xf32> -> vector<12x8xf32>
    %c479_235 = arith.constant 479 : index
    %c0_236 = arith.constant 0 : index
    %362 = vector.load %arg6[%c479_235, %c0_236] : memref<519x128xf32, #tpu.memory_space<vmem>>, vector<12x6xf32>
    %cst_237 = arith.constant dense<0.000000e+00> : vector<12x8xf32>
    %363 = tpu.matmul %362, %333, %cst_237 {dimension_numbers = #tpu.dot_dimension_numbers<[1], [0], [0], [1], [0, 0, 1, 1], [], []>} : vector<12x6xf32>, vector<6x8xf32>, vector<12x8xf32> -> vector<12x8xf32>
    %c18 = arith.constant 18 : index
    %c0_238 = arith.constant 0 : index
    %364 = vector.load %arg7[%c18, %c0_238] : memref<58x128xf32, #tpu.memory_space<vmem>>, vector<12x8xf32>
    %c30 = arith.constant 30 : index
    %c0_239 = arith.constant 0 : index
    %365 = vector.load %arg7[%c30, %c0_239] : memref<58x128xf32, #tpu.memory_space<vmem>>, vector<12x8xf32>
    %c391 = arith.constant 391 : index
    %c0_240 = arith.constant 0 : index
    %366 = vector.load %arg6[%c391, %c0_240] : memref<519x128xf32, #tpu.memory_space<vmem>>, vector<1x32xf32>
    %c383 = arith.constant 383 : index
    %c0_241 = arith.constant 0 : index
    %367 = vector.load %arg6[%c383, %c0_241] : memref<519x128xf32, #tpu.memory_space<vmem>>, vector<8x32xf32>
    %cst_242 = arith.constant dense<0.000000e+00> : vector<12x32xf32>
    %368 = tpu.matmul %364, %367, %cst_242 {dimension_numbers = #tpu.dot_dimension_numbers<[1], [0], [0], [1], [0, 0, 1, 1], [], []>} : vector<12x8xf32>, vector<8x32xf32>, vector<12x32xf32> -> vector<12x32xf32>
    %369 = vector.broadcast %366 : vector<1x32xf32> to vector<12x32xf32>
    %370 = arith.addf %369, %368 : vector<12x32xf32>
    %c351 = arith.constant 351 : index
    %c0_243 = arith.constant 0 : index
    %371 = vector.load %arg6[%c351, %c0_243] : memref<519x128xf32, #tpu.memory_space<vmem>>, vector<8x32xf32>
    %cst_244 = arith.constant dense<0.000000e+00> : vector<12x32xf32>
    %372 = tpu.matmul %313, %371, %cst_244 {dimension_numbers = #tpu.dot_dimension_numbers<[1], [0], [0], [1], [0, 0, 1, 1], [], []>} : vector<12x8xf32>, vector<8x32xf32>, vector<12x32xf32> -> vector<12x32xf32>
    %373 = arith.addf %370, %372 : vector<12x32xf32>
    %c359 = arith.constant 359 : index
    %c0_245 = arith.constant 0 : index
    %374 = vector.load %arg6[%c359, %c0_245] : memref<519x128xf32, #tpu.memory_space<vmem>>, vector<8x32xf32>
    %cst_246 = arith.constant dense<0.000000e+00> : vector<12x32xf32>
    %375 = tpu.matmul %361, %374, %cst_246 {dimension_numbers = #tpu.dot_dimension_numbers<[1], [0], [0], [1], [0, 0, 1, 1], [], []>} : vector<12x8xf32>, vector<8x32xf32>, vector<12x32xf32> -> vector<12x32xf32>
    %376 = arith.addf %373, %375 : vector<12x32xf32>
    %c367 = arith.constant 367 : index
    %c0_247 = arith.constant 0 : index
    %377 = vector.load %arg6[%c367, %c0_247] : memref<519x128xf32, #tpu.memory_space<vmem>>, vector<8x32xf32>
    %cst_248 = arith.constant dense<0.000000e+00> : vector<12x32xf32>
    %378 = tpu.matmul %363, %377, %cst_248 {dimension_numbers = #tpu.dot_dimension_numbers<[1], [0], [0], [1], [0, 0, 1, 1], [], []>} : vector<12x8xf32>, vector<8x32xf32>, vector<12x32xf32> -> vector<12x32xf32>
    %379 = arith.addf %376, %378 : vector<12x32xf32>
    %c375 = arith.constant 375 : index
    %c0_249 = arith.constant 0 : index
    %380 = vector.load %arg6[%c375, %c0_249] : memref<519x128xf32, #tpu.memory_space<vmem>>, vector<8x32xf32>
    %cst_250 = arith.constant dense<0.000000e+00> : vector<12x32xf32>
    %381 = tpu.matmul %357, %380, %cst_250 {dimension_numbers = #tpu.dot_dimension_numbers<[1], [0], [0], [1], [0, 0, 1, 1], [], []>} : vector<12x8xf32>, vector<8x32xf32>, vector<12x32xf32> -> vector<12x32xf32>
    %382 = arith.addf %379, %381 : vector<12x32xf32>
    %383 = vector.extract_strided_slice %382 {offsets = [0, 0], sizes = [12, 8], strides = [1, 1]} : vector<12x32xf32> to vector<12x8xf32>
    %384 = arith.negf %383 : vector<12x8xf32>
    %385 = math.exp %384 : vector<12x8xf32>
    %cst_251 = arith.constant 1.000000e+00 : f32
    %386 = vector.broadcast %cst_251 : f32 to vector<12x8xf32>
    %387 = arith.addf %386, %385 : vector<12x8xf32>
    %388 = arith.divf %386, %387 : vector<12x8xf32>
    %389 = vector.extract_strided_slice %382 {offsets = [0, 8], sizes = [12, 8], strides = [1, 1]} : vector<12x32xf32> to vector<12x8xf32>
    %390 = arith.negf %389 : vector<12x8xf32>
    %391 = math.exp %390 : vector<12x8xf32>
    %cst_252 = arith.constant 1.000000e+00 : f32
    %392 = vector.broadcast %cst_252 : f32 to vector<12x8xf32>
    %393 = arith.addf %392, %391 : vector<12x8xf32>
    %394 = arith.divf %392, %393 : vector<12x8xf32>
    %395 = vector.extract_strided_slice %382 {offsets = [0, 16], sizes = [12, 8], strides = [1, 1]} : vector<12x32xf32> to vector<12x8xf32>
    %396 = math.tanh %395 : vector<12x8xf32>
    %397 = vector.extract_strided_slice %382 {offsets = [0, 24], sizes = [12, 8], strides = [1, 1]} : vector<12x32xf32> to vector<12x8xf32>
    %398 = arith.negf %397 : vector<12x8xf32>
    %399 = math.exp %398 : vector<12x8xf32>
    %cst_253 = arith.constant 1.000000e+00 : f32
    %400 = vector.broadcast %cst_253 : f32 to vector<12x8xf32>
    %401 = arith.addf %400, %399 : vector<12x8xf32>
    %402 = arith.divf %400, %401 : vector<12x8xf32>
    %403 = arith.mulf %394, %365 : vector<12x8xf32>
    %404 = arith.mulf %388, %396 : vector<12x8xf32>
    %405 = arith.addf %403, %404 : vector<12x8xf32>
    %406 = math.tanh %405 : vector<12x8xf32>
    %407 = arith.mulf %402, %406 : vector<12x8xf32>
    %c491_254 = arith.constant 491 : index
    %c0_255 = arith.constant 0 : index
    %408 = vector.load %arg6[%c491_254, %c0_255] : memref<519x128xf32, #tpu.memory_space<vmem>>, vector<6x12xf32>
    %cst_256 = arith.constant dense<0.000000e+00> : vector<6x8xf32>
    %409 = tpu.matmul %408, %407, %cst_256 {dimension_numbers = #tpu.dot_dimension_numbers<[1], [0], [0], [1], [0, 0, 1, 1], [], []>} : vector<6x12xf32>, vector<12x8xf32>, vector<6x8xf32> -> vector<6x8xf32>
    %c42 = arith.constant 42 : index
    %c0_257 = arith.constant 0 : index
    %410 = vector.load %arg7[%c42, %c0_257] : memref<58x128xf32, #tpu.memory_space<vmem>>, vector<6x8xf32>
    %c48 = arith.constant 48 : index
    %c0_258 = arith.constant 0 : index
    %411 = vector.load %arg7[%c48, %c0_258] : memref<58x128xf32, #tpu.memory_space<vmem>>, vector<6x8xf32>
    %c424 = arith.constant 424 : index
    %c0_259 = arith.constant 0 : index
    %412 = vector.load %arg6[%c424, %c0_259] : memref<519x128xf32, #tpu.memory_space<vmem>>, vector<1x32xf32>
    %c416 = arith.constant 416 : index
    %c0_260 = arith.constant 0 : index
    %413 = vector.load %arg6[%c416, %c0_260] : memref<519x128xf32, #tpu.memory_space<vmem>>, vector<8x32xf32>
    %cst_261 = arith.constant dense<0.000000e+00> : vector<6x32xf32>
    %414 = tpu.matmul %410, %413, %cst_261 {dimension_numbers = #tpu.dot_dimension_numbers<[1], [0], [0], [1], [0, 0, 1, 1], [], []>} : vector<6x8xf32>, vector<8x32xf32>, vector<6x32xf32> -> vector<6x32xf32>
    %415 = vector.broadcast %412 : vector<1x32xf32> to vector<6x32xf32>
    %416 = arith.addf %415, %414 : vector<6x32xf32>
    %c392 = arith.constant 392 : index
    %c0_262 = arith.constant 0 : index
    %417 = vector.load %arg6[%c392, %c0_262] : memref<519x128xf32, #tpu.memory_space<vmem>>, vector<8x32xf32>
    %cst_263 = arith.constant dense<0.000000e+00> : vector<6x32xf32>
    %418 = tpu.matmul %333, %417, %cst_263 {dimension_numbers = #tpu.dot_dimension_numbers<[1], [0], [0], [1], [0, 0, 1, 1], [], []>} : vector<6x8xf32>, vector<8x32xf32>, vector<6x32xf32> -> vector<6x32xf32>
    %419 = arith.addf %416, %418 : vector<6x32xf32>
    %c400 = arith.constant 400 : index
    %c0_264 = arith.constant 0 : index
    %420 = vector.load %arg6[%c400, %c0_264] : memref<519x128xf32, #tpu.memory_space<vmem>>, vector<8x32xf32>
    %cst_265 = arith.constant dense<0.000000e+00> : vector<6x32xf32>
    %421 = tpu.matmul %409, %420, %cst_265 {dimension_numbers = #tpu.dot_dimension_numbers<[1], [0], [0], [1], [0, 0, 1, 1], [], []>} : vector<6x8xf32>, vector<8x32xf32>, vector<6x32xf32> -> vector<6x32xf32>
    %422 = arith.addf %419, %421 : vector<6x32xf32>
    %c408 = arith.constant 408 : index
    %c0_266 = arith.constant 0 : index
    %423 = vector.load %arg6[%c408, %c0_266] : memref<519x128xf32, #tpu.memory_space<vmem>>, vector<8x32xf32>
    %cst_267 = arith.constant dense<0.000000e+00> : vector<6x32xf32>
    %424 = tpu.matmul %359, %423, %cst_267 {dimension_numbers = #tpu.dot_dimension_numbers<[1], [0], [0], [1], [0, 0, 1, 1], [], []>} : vector<6x8xf32>, vector<8x32xf32>, vector<6x32xf32> -> vector<6x32xf32>
    %425 = arith.addf %422, %424 : vector<6x32xf32>
    %426 = vector.extract_strided_slice %425 {offsets = [0, 0], sizes = [6, 8], strides = [1, 1]} : vector<6x32xf32> to vector<6x8xf32>
    %427 = arith.negf %426 : vector<6x8xf32>
    %428 = math.exp %427 : vector<6x8xf32>
    %cst_268 = arith.constant 1.000000e+00 : f32
    %429 = vector.broadcast %cst_268 : f32 to vector<6x8xf32>
    %430 = arith.addf %429, %428 : vector<6x8xf32>
    %431 = arith.divf %429, %430 : vector<6x8xf32>
    %432 = vector.extract_strided_slice %425 {offsets = [0, 8], sizes = [6, 8], strides = [1, 1]} : vector<6x32xf32> to vector<6x8xf32>
    %433 = arith.negf %432 : vector<6x8xf32>
    %434 = math.exp %433 : vector<6x8xf32>
    %cst_269 = arith.constant 1.000000e+00 : f32
    %435 = vector.broadcast %cst_269 : f32 to vector<6x8xf32>
    %436 = arith.addf %435, %434 : vector<6x8xf32>
    %437 = arith.divf %435, %436 : vector<6x8xf32>
    %438 = vector.extract_strided_slice %425 {offsets = [0, 16], sizes = [6, 8], strides = [1, 1]} : vector<6x32xf32> to vector<6x8xf32>
    %439 = math.tanh %438 : vector<6x8xf32>
    %440 = vector.extract_strided_slice %425 {offsets = [0, 24], sizes = [6, 8], strides = [1, 1]} : vector<6x32xf32> to vector<6x8xf32>
    %441 = arith.negf %440 : vector<6x8xf32>
    %442 = math.exp %441 : vector<6x8xf32>
    %cst_270 = arith.constant 1.000000e+00 : f32
    %443 = vector.broadcast %cst_270 : f32 to vector<6x8xf32>
    %444 = arith.addf %443, %442 : vector<6x8xf32>
    %445 = arith.divf %443, %444 : vector<6x8xf32>
    %446 = arith.mulf %437, %411 : vector<6x8xf32>
    %447 = arith.mulf %431, %439 : vector<6x8xf32>
    %448 = arith.addf %446, %447 : vector<6x8xf32>
    %449 = math.tanh %448 : vector<6x8xf32>
    %450 = arith.mulf %445, %449 : vector<6x8xf32>
    %c497_271 = arith.constant 497 : index
    %c0_272 = arith.constant 0 : index
    %451 = vector.load %arg6[%c497_271, %c0_272] : memref<519x128xf32, #tpu.memory_space<vmem>>, vector<2x12xf32>
    %cst_273 = arith.constant dense<0.000000e+00> : vector<2x8xf32>
    %452 = tpu.matmul %451, %407, %cst_273 {dimension_numbers = #tpu.dot_dimension_numbers<[1], [0], [0], [1], [0, 0, 1, 1], [], []>} : vector<2x12xf32>, vector<12x8xf32>, vector<2x8xf32> -> vector<2x8xf32>
    %c499_274 = arith.constant 499 : index
    %c0_275 = arith.constant 0 : index
    %453 = vector.load %arg6[%c499_274, %c0_275] : memref<519x128xf32, #tpu.memory_space<vmem>>, vector<2x6xf32>
    %cst_276 = arith.constant dense<0.000000e+00> : vector<2x8xf32>
    %454 = tpu.matmul %453, %450, %cst_276 {dimension_numbers = #tpu.dot_dimension_numbers<[1], [0], [0], [1], [0, 0, 1, 1], [], []>} : vector<2x6xf32>, vector<6x8xf32>, vector<2x8xf32> -> vector<2x8xf32>
    %c54 = arith.constant 54 : index
    %c0_277 = arith.constant 0 : index
    %455 = vector.load %arg7[%c54, %c0_277] : memref<58x128xf32, #tpu.memory_space<vmem>>, vector<2x8xf32>
    %c56 = arith.constant 56 : index
    %c0_278 = arith.constant 0 : index
    %456 = vector.load %arg7[%c56, %c0_278] : memref<58x128xf32, #tpu.memory_space<vmem>>, vector<2x8xf32>
    %c457 = arith.constant 457 : index
    %c0_279 = arith.constant 0 : index
    %457 = vector.load %arg6[%c457, %c0_279] : memref<519x128xf32, #tpu.memory_space<vmem>>, vector<1x32xf32>
    %c449 = arith.constant 449 : index
    %c0_280 = arith.constant 0 : index
    %458 = vector.load %arg6[%c449, %c0_280] : memref<519x128xf32, #tpu.memory_space<vmem>>, vector<8x32xf32>
    %cst_281 = arith.constant dense<0.000000e+00> : vector<2x32xf32>
    %459 = tpu.matmul %455, %458, %cst_281 {dimension_numbers = #tpu.dot_dimension_numbers<[1], [0], [0], [1], [0, 0, 1, 1], [], []>} : vector<2x8xf32>, vector<8x32xf32>, vector<2x32xf32> -> vector<2x32xf32>
    %460 = vector.broadcast %457 : vector<1x32xf32> to vector<2x32xf32>
    %461 = arith.addf %460, %459 : vector<2x32xf32>
    %c425 = arith.constant 425 : index
    %c0_282 = arith.constant 0 : index
    %462 = vector.load %arg6[%c425, %c0_282] : memref<519x128xf32, #tpu.memory_space<vmem>>, vector<8x32xf32>
    %cst_283 = arith.constant dense<0.000000e+00> : vector<2x32xf32>
    %463 = tpu.matmul %454, %462, %cst_283 {dimension_numbers = #tpu.dot_dimension_numbers<[1], [0], [0], [1], [0, 0, 1, 1], [], []>} : vector<2x8xf32>, vector<8x32xf32>, vector<2x32xf32> -> vector<2x32xf32>
    %464 = arith.addf %461, %463 : vector<2x32xf32>
    %c433 = arith.constant 433 : index
    %c0_284 = arith.constant 0 : index
    %465 = vector.load %arg6[%c433, %c0_284] : memref<519x128xf32, #tpu.memory_space<vmem>>, vector<8x32xf32>
    %cst_285 = arith.constant dense<0.000000e+00> : vector<2x32xf32>
    %466 = tpu.matmul %452, %465, %cst_285 {dimension_numbers = #tpu.dot_dimension_numbers<[1], [0], [0], [1], [0, 0, 1, 1], [], []>} : vector<2x8xf32>, vector<8x32xf32>, vector<2x32xf32> -> vector<2x32xf32>
    %467 = arith.addf %464, %466 : vector<2x32xf32>
    %c441 = arith.constant 441 : index
    %c0_286 = arith.constant 0 : index
    %468 = vector.load %arg6[%c441, %c0_286] : memref<519x128xf32, #tpu.memory_space<vmem>>, vector<8x32xf32>
    %cst_287 = arith.constant dense<0.000000e+00> : vector<2x32xf32>
    %469 = tpu.matmul %355, %468, %cst_287 {dimension_numbers = #tpu.dot_dimension_numbers<[1], [0], [0], [1], [0, 0, 1, 1], [], []>} : vector<2x8xf32>, vector<8x32xf32>, vector<2x32xf32> -> vector<2x32xf32>
    %470 = arith.addf %467, %469 : vector<2x32xf32>
    %471 = vector.extract_strided_slice %470 {offsets = [0, 0], sizes = [2, 8], strides = [1, 1]} : vector<2x32xf32> to vector<2x8xf32>
    %472 = arith.negf %471 : vector<2x8xf32>
    %473 = math.exp %472 : vector<2x8xf32>
    %cst_288 = arith.constant 1.000000e+00 : f32
    %474 = vector.broadcast %cst_288 : f32 to vector<2x8xf32>
    %475 = arith.addf %474, %473 : vector<2x8xf32>
    %476 = arith.divf %474, %475 : vector<2x8xf32>
    %477 = vector.extract_strided_slice %470 {offsets = [0, 8], sizes = [2, 8], strides = [1, 1]} : vector<2x32xf32> to vector<2x8xf32>
    %478 = arith.negf %477 : vector<2x8xf32>
    %479 = math.exp %478 : vector<2x8xf32>
    %cst_289 = arith.constant 1.000000e+00 : f32
    %480 = vector.broadcast %cst_289 : f32 to vector<2x8xf32>
    %481 = arith.addf %480, %479 : vector<2x8xf32>
    %482 = arith.divf %480, %481 : vector<2x8xf32>
    %483 = vector.extract_strided_slice %470 {offsets = [0, 16], sizes = [2, 8], strides = [1, 1]} : vector<2x32xf32> to vector<2x8xf32>
    %484 = math.tanh %483 : vector<2x8xf32>
    %485 = vector.extract_strided_slice %470 {offsets = [0, 24], sizes = [2, 8], strides = [1, 1]} : vector<2x32xf32> to vector<2x8xf32>
    %486 = arith.negf %485 : vector<2x8xf32>
    %487 = math.exp %486 : vector<2x8xf32>
    %cst_290 = arith.constant 1.000000e+00 : f32
    %488 = vector.broadcast %cst_290 : f32 to vector<2x8xf32>
    %489 = arith.addf %488, %487 : vector<2x8xf32>
    %490 = arith.divf %488, %489 : vector<2x8xf32>
    %491 = arith.mulf %482, %456 : vector<2x8xf32>
    %492 = arith.mulf %476, %484 : vector<2x8xf32>
    %493 = arith.addf %491, %492 : vector<2x8xf32>
    %494 = math.tanh %493 : vector<2x8xf32>
    %495 = arith.mulf %490, %494 : vector<2x8xf32>
    %c458 = arith.constant 458 : index
    %c0_291 = arith.constant 0 : index
    %496 = vector.load %arg6[%c458, %c0_291] : memref<519x128xf32, #tpu.memory_space<vmem>>, vector<8x4xf32>
    %cst_292 = arith.constant dense<0.000000e+00> : vector<2x4xf32>
    %497 = tpu.matmul %495, %496, %cst_292 {dimension_numbers = #tpu.dot_dimension_numbers<[1], [0], [0], [1], [0, 0, 1, 1], [], []>} : vector<2x8xf32>, vector<8x4xf32>, vector<2x4xf32> -> vector<2x4xf32>
    %c466 = arith.constant 466 : index
    %c0_293 = arith.constant 0 : index
    %498 = vector.load %arg6[%c466, %c0_293] : memref<519x128xf32, #tpu.memory_space<vmem>>, vector<1x4xf32>
    %499 = vector.broadcast %498 : vector<1x4xf32> to vector<2x4xf32>
    %500 = arith.addf %497, %499 : vector<2x4xf32>
    %501 = tpu.concatenate %407, %405 in 1 : vector<12x8xf32>, vector<12x8xf32> -> vector<12x16xf32>
    %c0_294 = arith.constant 0 : index
    %c0_295 = arith.constant 0 : index
    %502 = vector.load %arg8[%c0_294, %c0_295] : memref<20x128xf32, #tpu.memory_space<vmem>>, vector<12x16xf32>
    tpu.vector_store %arg8[%c0_294, %c0_295], %501 {strides = array<i32>} : memref<20x128xf32, #tpu.memory_space<vmem>>, vector<12x16xf32>,
    %503 = tpu.concatenate %450, %448 in 1 : vector<6x8xf32>, vector<6x8xf32> -> vector<6x16xf32>
    %c12_296 = arith.constant 12 : index
    %c0_297 = arith.constant 0 : index
    %504 = vector.load %arg8[%c12_296, %c0_297] : memref<20x128xf32, #tpu.memory_space<vmem>>, vector<6x16xf32>
    tpu.vector_store %arg8[%c12_296, %c0_297], %503 {strides = array<i32>} : memref<20x128xf32, #tpu.memory_space<vmem>>, vector<6x16xf32>,
    %505 = tpu.concatenate %495, %493, %500 in 1 : vector<2x8xf32>, vector<2x8xf32>, vector<2x4xf32> -> vector<2x20xf32>
    %c18_298 = arith.constant 18 : index
    %c0_299 = arith.constant 0 : index
    %506 = vector.load %arg8[%c18_298, %c0_299] : memref<20x128xf32, #tpu.memory_space<vmem>>, vector<2x20xf32>
    tpu.vector_store %arg8[%c18_298, %c0_299], %505 {strides = array<i32>} : memref<20x128xf32, #tpu.memory_space<vmem>>, vector<2x20xf32>,
    return
  }
}

</mosaic_0001>

<bundles_post_ra>
// kernel: forward.1
= control target key start
LH: loop header
LB: loop body
LE: loop exit
PB: predicated region body
PF: predicated region fallthrough
CT: control target
= control target key end

     0   :  { %s22727_s0 = inlined_call_operand.vmem [shape: f32[2,25,75], index: 0, kind: input, shape index: {}]   ;;  %s22728_s1 = inlined_call_operand.vmem [shape: f32[4,75,352], index: 1, kind: input, shape index: {}]   ;;  %s22729_s2 = inlined_call_operand.vmem [shape: f32[1,352], index: 2, kind: input, shape index: {}]   ;;  %s22730_s3 = inlined_call_operand.vmem [shape: f32[2,320,608], index: 3, kind: input, shape index: {}]   ;;  %s22731_s4 = inlined_call_operand.vmem [shape: f32[1,608], index: 4, kind: input, shape index: {}]   ;;  %s22732_s5 = inlined_call_operand.vmem [shape: f32[7,18,576], index: 5, kind: input, shape index: {}]   ;;  %s22733_s6 = inlined_call_operand.vmem [shape: f32[519,128], index: 6, kind: input, shape index: {}]   ;;  %s22734_s7 = inlined_call_operand.vmem [shape: f32[58,128], index: 7, kind: input, shape index: {}]   ;;  %s22735_s8 = inlined_call_operand.vmem [shape: f32[20,128], index: 8, kind: output, shape index: {}]  }
   0x1   :  { %v15111_v0 = vld [vmem:[%s22730_s3] sm:$0xff]  ;;  %v15116_v1 = vld [vmem:[%s22730_s3 + $0x8] sm:$0xff]  ;;  %v15121_v2 = vld [vmem:[%s22730_s3 + $0x10] sm:$0xff] }
   0x2   :  { %22970 = vst [vmem:[#allocation6_spill] sm:$0xff] %v15111_v0  ;;  %22971 = vst [vmem:[#allocation7_spill] sm:$0xff] %v15116_v1  ;;  %v15126_v3 = vld [vmem:[%s22730_s3 + $0x18] sm:$0xff]  ;;  %v15131_v4 = vld [vmem:[%s22730_s3 + $0x20] sm:$0xff] }
   0x3   :  { %22972 = vst [vmem:[#allocation8_spill] sm:$0xff] %v15121_v2  ;;  %22973 = vst [vmem:[#allocation9_spill] sm:$0xff] %v15126_v3  ;;  %v15136_v5 = vld [vmem:[%s22730_s3 + $0x28] sm:$0xff]  ;;  %v15141_v6 = vld [vmem:[%s22730_s3 + $0x30] sm:$0xff] }
   0x4   :  { %22974 = vst [vmem:[#allocation10_spill] sm:$0xff] %v15131_v4  ;;  %22975 = vst [vmem:[#allocation11_spill] sm:$0xff] %v15136_v5  ;;  %v15146_v7 = vld [vmem:[%s22730_s3 + $0x38] sm:$0xff]  ;;  %v15151_v8 = vld [vmem:[%s22730_s3 + $0x40] sm:$0xff] }
   0x5   :  { %22976 = vst [vmem:[#allocation12_spill] sm:$0xff] %v15141_v6  ;;  %22977 = vst [vmem:[#allocation13_spill] sm:$0xff] %v15146_v7  ;;  %v15156_v9 = vld [vmem:[%s22730_s3 + $0x48] sm:$0xff]  ;;  %v15161_v10 = vld [vmem:[%s22730_s3 + $0x50] sm:$0xff] }
   0x6   :  { %22978 = vst [vmem:[#allocation14_spill] sm:$0xff] %v15151_v8  ;;  %22979 = vst [vmem:[#allocation15_spill] sm:$0xff] %v15156_v9  ;;  %v15166_v11 = vld [vmem:[%s22730_s3 + $0x58] sm:$0xff]  ;;  %v15171_v12 = vld [vmem:[%s22730_s3 + $0x60] sm:$0xff] }
   0x7   :  { %22980 = vst [vmem:[#allocation16_spill] sm:$0xff] %v15161_v10  ;;  %22981 = vst [vmem:[#allocation17_spill] sm:$0xff] %v15166_v11  ;;  %v15176_v13 = vld [vmem:[%s22730_s3 + $0x68] sm:$0xff]  ;;  %v15181_v14 = vld [vmem:[%s22730_s3 + $0x70] sm:$0xff] }
   0x8   :  { %22982 = vst [vmem:[#allocation18_spill] sm:$0xff] %v15171_v12  ;;  %22983 = vst [vmem:[#allocation19_spill] sm:$0xff] %v15176_v13  ;;  %v15186_v15 = vld [vmem:[%s22730_s3 + $0x78] sm:$0xff]  ;;  %v15191_v16 = vld [vmem:[%s22730_s3 + $0x80] sm:$0xff] }
   0x9   :  { %22984 = vst [vmem:[#allocation20_spill] sm:$0xff] %v15181_v14  ;;  %22985 = vst [vmem:[#allocation21_spill] sm:$0xff] %v15186_v15  ;;  %v15196_v17 = vld [vmem:[%s22730_s3 + $0x88] sm:$0xff]  ;;  %v15201_v18 = vld [vmem:[%s22730_s3 + $0x90] sm:$0xff] }
   0xa   :  { %22986 = vst [vmem:[#allocation22_spill] sm:$0xff] %v15191_v16  ;;  %22987 = vst [vmem:[#allocation23_spill] sm:$0xff] %v15196_v17  ;;  %v15206_v19 = vld [vmem:[%s22730_s3 + $0x98] sm:$0xff]  ;;  %v15211_v20 = vld [vmem:[%s22730_s3 + $0xa0] sm:$0xff] }
   0xb   :  { %22988 = vst [vmem:[#allocation24_spill] sm:$0xff] %v15201_v18  ;;  %22989 = vst [vmem:[#allocation25_spill] sm:$0xff] %v15206_v19  ;;  %v15216_v21 = vld [vmem:[%s22730_s3 + $0xa8] sm:$0xff]  ;;  %v15221_v22 = vld [vmem:[%s22730_s3 + $0xb0] sm:$0xff] }
   0xc   :  { %22990 = vst [vmem:[#allocation26_spill] sm:$0xff] %v15211_v20  ;;  %22991 = vst [vmem:[#allocation27_spill] sm:$0xff] %v15216_v21  ;;  %v15226_v23 = vld [vmem:[%s22730_s3 + $0xb8] sm:$0xff]  ;;  %v15231_v24 = vld [vmem:[%s22730_s3 + $0xc0] sm:$0xff] }
   0xd   :  { %22992 = vst [vmem:[#allocation28_spill] sm:$0xff] %v15221_v22  ;;  %22993 = vst [vmem:[#allocation29_spill] sm:$0xff] %v15226_v23  ;;  %v15236_v25 = vld [vmem:[%s22730_s3 + $0xc8] sm:$0xff]  ;;  %v15241_v26 = vld [vmem:[%s22730_s3 + $0xd0] sm:$0xff] }
   0xe   :  { %22994 = vst [vmem:[#allocation30_spill] sm:$0xff] %v15231_v24  ;;  %22995 = vst [vmem:[#allocation31_spill] sm:$0xff] %v15236_v25  ;;  %v15246_v27 = vld [vmem:[%s22730_s3 + $0xd8] sm:$0xff]  ;;  %v15251_v28 = vld [vmem:[%s22730_s3 + $0xe0] sm:$0xff] }
   0xf   :  { %22996 = vst [vmem:[#allocation32_spill] sm:$0xff] %v15241_v26  ;;  %22997 = vst [vmem:[#allocation33_spill] sm:$0xff] %v15246_v27  ;;  %v15256_v29 = vld [vmem:[%s22730_s3 + $0xe8] sm:$0xff]  ;;  %v15261_v30 = vld [vmem:[%s22730_s3 + $0xf0] sm:$0xff] }
  0x10   :  { %22998 = vst [vmem:[#allocation34_spill] sm:$0xff] %v15251_v28  ;;  %22999 = vst [vmem:[#allocation35_spill] sm:$0xff] %v15256_v29  ;;  %v15266_v31 = vld [vmem:[%s22730_s3 + $0xf8] sm:$0xff]  ;;  %v15271_v32 = vld [vmem:[%s22730_s3 + $0x100] sm:$0xff] }
  0x11   :  { %23000 = vst [vmem:[#allocation36_spill] sm:$0xff] %v15261_v30  ;;  %23001 = vst [vmem:[#allocation37_spill] sm:$0xff] %v15266_v31  ;;  %v15276_v33 = vld [vmem:[%s22730_s3 + $0x108] sm:$0xff]  ;;  %v15281_v34 = vld [vmem:[%s22730_s3 + $0x110] sm:$0xff] }
  0x12   :  { %23002 = vst [vmem:[#allocation38_spill] sm:$0xff] %v15271_v32  ;;  %23003 = vst [vmem:[#allocation39_spill] sm:$0xff] %v15276_v33  ;;  %v15286_v35 = vld [vmem:[%s22730_s3 + $0x118] sm:$0xff]  ;;  %v15291_v36 = vld [vmem:[%s22730_s3 + $0x120] sm:$0xff] }
  0x13   :  { %23004 = vst [vmem:[#allocation40_spill] sm:$0xff] %v15281_v34  ;;  %23005 = vst [vmem:[#allocation41_spill] sm:$0xff] %v15286_v35  ;;  %v15296_v37 = vld [vmem:[%s22730_s3 + $0x128] sm:$0xff]  ;;  %v15301_v38 = vld [vmem:[%s22730_s3 + $0x130] sm:$0xff] }
  0x14   :  { %23006 = vst [vmem:[#allocation42_spill] sm:$0xff] %v15291_v36  ;;  %23007 = vst [vmem:[#allocation43_spill] sm:$0xff] %v15296_v37  ;;  %v15306_v39 = vld [vmem:[%s22730_s3 + $0x138] sm:$0xff]  ;;  %v15311_v40 = vld [vmem:[%s22730_s3 + $0x140] sm:$0xff] }
  0x15   :  { %23008 = vst [vmem:[#allocation44_spill] sm:$0xff] %v15301_v38  ;;  %23009 = vst [vmem:[#allocation45_spill] sm:$0xff] %v15306_v39  ;;  %v15316_v41 = vld [vmem:[%s22730_s3 + $0x148] sm:$0xff]  ;;  %v15321_v42 = vld [vmem:[%s22730_s3 + $0x150] sm:$0xff] }
  0x16   :  { %23010 = vst [vmem:[#allocation46_spill] sm:$0xff] %v15311_v40  ;;  %23011 = vst [vmem:[#allocation47_spill] sm:$0xff] %v15316_v41  ;;  %v15326_v43 = vld [vmem:[%s22730_s3 + $0x158] sm:$0xff]  ;;  %v15331_v44 = vld [vmem:[%s22730_s3 + $0x160] sm:$0xff] }
  0x17   :  { %23012 = vst [vmem:[#allocation48_spill] sm:$0xff] %v15321_v42  ;;  %23013 = vst [vmem:[#allocation49_spill] sm:$0xff] %v15326_v43  ;;  %v15336_v45 = vld [vmem:[%s22730_s3 + $0x168] sm:$0xff]  ;;  %v15341_v46 = vld [vmem:[%s22730_s3 + $0x170] sm:$0xff] }
  0x18   :  { %23014 = vst [vmem:[#allocation50_spill] sm:$0xff] %v15331_v44  ;;  %23015 = vst [vmem:[#allocation51_spill] sm:$0xff] %v15336_v45  ;;  %v15346_v47 = vld [vmem:[%s22730_s3 + $0x178] sm:$0xff]  ;;  %v15351_v48 = vld [vmem:[%s22730_s3 + $0x180] sm:$0xff] }
  0x19   :  { %23016 = vst [vmem:[#allocation52_spill] sm:$0xff] %v15341_v46  ;;  %23017 = vst [vmem:[#allocation53_spill] sm:$0xff] %v15346_v47  ;;  %v15356_v49 = vld [vmem:[%s22730_s3 + $0x188] sm:$0xff]  ;;  %v15361_v50 = vld [vmem:[%s22730_s3 + $0x190] sm:$0xff] }
  0x1a   :  { %23018 = vst [vmem:[#allocation54_spill] sm:$0xff] %v15351_v48  ;;  %23019 = vst [vmem:[#allocation55_spill] sm:$0xff] %v15356_v49  ;;  %v15366_v51 = vld [vmem:[%s22730_s3 + $0x198] sm:$0xff]  ;;  %v15371_v52 = vld [vmem:[%s22730_s3 + $0x1a0] sm:$0xff] }
  0x1b   :  { %23020 = vst [vmem:[#allocation56_spill] sm:$0xff] %v15361_v50  ;;  %23021 = vst [vmem:[#allocation57_spill] sm:$0xff] %v15366_v51  ;;  %v15376_v53 = vld [vmem:[%s22730_s3 + $0x1a8] sm:$0xff]  ;;  %v15381_v54 = vld [vmem:[%s22730_s3 + $0x1b0] sm:$0xff] }
  0x1c   :  { %23022 = vst [vmem:[#allocation58_spill] sm:$0xff] %v15371_v52  ;;  %23023 = vst [vmem:[#allocation59_spill] sm:$0xff] %v15376_v53  ;;  %v15386_v55 = vld [vmem:[%s22730_s3 + $0x1b8] sm:$0xff]  ;;  %v15391_v56 = vld [vmem:[%s22730_s3 + $0x1c0] sm:$0xff] }
  0x1d   :  { %23024 = vst [vmem:[#allocation60_spill] sm:$0xff] %v15381_v54  ;;  %23025 = vst [vmem:[#allocation61_spill] sm:$0xff] %v15386_v55  ;;  %v15396_v57 = vld [vmem:[%s22730_s3 + $0x1c8] sm:$0xff]  ;;  %v15401_v58 = vld [vmem:[%s22730_s3 + $0x1d0] sm:$0xff] }
  0x1e   :  { %23026 = vst [vmem:[#allocation62_spill] sm:$0xff] %v15391_v56  ;;  %23027 = vst [vmem:[#allocation63_spill] sm:$0xff] %v15396_v57  ;;  %v15406_v59 = vld [vmem:[%s22730_s3 + $0x1d8] sm:$0xff]  ;;  %v15411_v60 = vld [vmem:[%s22730_s3 + $0x1e0] sm:$0xff] }
  0x1f   :  { %23028 = vst [vmem:[#allocation64_spill] sm:$0xff] %v15401_v58  ;;  %23029 = vst [vmem:[#allocation65_spill] sm:$0xff] %v15406_v59  ;;  %v15416_v61 = vld [vmem:[%s22730_s3 + $0x1e8] sm:$0xff]  ;;  %v15421_v62 = vld [vmem:[%s22730_s3 + $0x1f0] sm:$0xff] }
  0x20   :  { %23030 = vst [vmem:[#allocation66_spill] sm:$0xff] %v15411_v60  ;;  %23031 = vst [vmem:[#allocation67_spill] sm:$0xff] %v15416_v61  ;;  %v15426_v63 = vld [vmem:[%s22730_s3 + $0x1f8] sm:$0xff]  ;;  %v15431_v59 = vld [vmem:[%s22730_s3 + $0x200] sm:$0xff] }
  0x21   :  { %23032 = vst [vmem:[#allocation68_spill] sm:$0xff] %v15421_v62  ;;  %23033 = vst [vmem:[#allocation69_spill] sm:$0xff] %v15426_v63  ;;  %v15436_v54 = vld [vmem:[%s22730_s3 + $0x208] sm:$0xff]  ;;  %v15441_v49 = vld [vmem:[%s22730_s3 + $0x210] sm:$0xff] }
  0x22   :  { %23034 = vst [vmem:[#allocation70_spill] sm:$0xff] %v15431_v59  ;;  %23035 = vst [vmem:[#allocation71_spill] sm:$0xff] %v15436_v54  ;;  %v15446_v44 = vld [vmem:[%s22730_s3 + $0x218] sm:$0xff]  ;;  %v15451_v39 = vld [vmem:[%s22730_s3 + $0x220] sm:$0xff] }
  0x23   :  { %23036 = vst [vmem:[#allocation72_spill] sm:$0xff] %v15441_v49  ;;  %23037 = vst [vmem:[#allocation73_spill] sm:$0xff] %v15446_v44  ;;  %v15456_v59 = vld [vmem:[%s22730_s3 + $0x228] sm:$0xff]  ;;  %v15461_v34 = vld [vmem:[%s22730_s3 + $0x230] sm:$0xff] }
  0x24   :  { %23038 = vst [vmem:[#allocation74_spill] sm:$0xff] %v15451_v39  ;;  %23039 = vst [vmem:[#allocation75_spill] sm:$0xff] %v15456_v59  ;;  %v15466_v29 = vld [vmem:[%s22730_s3 + $0x238] sm:$0xff]  ;;  %v15471_v24 = vld [vmem:[%s22730_s3 + $0x240] sm:$0xff] }
  0x25   :  { %23040 = vst [vmem:[#allocation76_spill] sm:$0xff] %v15461_v34  ;;  %23041 = vst [vmem:[#allocation77_spill] sm:$0xff] %v15466_v29  ;;  %v15476_v19 = vld [vmem:[%s22730_s3 + $0x248] sm:$0xff]  ;;  %v15481_v59 = vld [vmem:[%s22730_s3 + $0x250] sm:$0xff] }
  0x26   :  { %23042 = vst [vmem:[#allocation78_spill] sm:$0xff] %v15471_v24  ;;  %23043 = vst [vmem:[#allocation79_spill] sm:$0xff] %v15476_v19  ;;  %v15486_v14 = vld [vmem:[%s22730_s3 + $0x258] sm:$0xff]  ;;  %v15491_v9 = vld [vmem:[%s22730_s3 + $0x260] sm:$0xff] }
  0x27   :  { %23044 = vst [vmem:[#allocation80_spill] sm:$0xff] %v15481_v59  ;;  %23045 = vst [vmem:[#allocation81_spill] sm:$0xff] %v15486_v14  ;;  %v15496_v4 = vld [vmem:[%s22730_s3 + $0x268] sm:$0xff]  ;;  %v15501_v34 = vld [vmem:[%s22730_s3 + $0x270] sm:$0xff] }
  0x28   :  { %23046 = vst [vmem:[#allocation82_spill] sm:$0xff] %v15491_v9  ;;  %23047 = vst [vmem:[#allocation83_spill] sm:$0xff] %v15496_v4  ;;  %v15506_v59 = vld [vmem:[%s22730_s3 + $0x278] sm:$0xff]  ;;  %v15511_v14 = vld [vmem:[%s22730_s3 + $0x280] sm:$0xff] }
  0x29   :  { %23048 = vst [vmem:[#allocation84_spill] sm:$0xff] %v15501_v34  ;;  %23049 = vst [vmem:[#allocation85_spill] sm:$0xff] %v15506_v59  ;;  %v15516_v9 = vld [vmem:[%s22730_s3 + $0x288] sm:$0xff]  ;;  %v15521_v29 = vld [vmem:[%s22730_s3 + $0x290] sm:$0xff] }
  0x2a   :  { %23050 = vst [vmem:[#allocation86_spill] sm:$0xff] %v15511_v14  ;;  %23051 = vst [vmem:[#allocation87_spill] sm:$0xff] %v15516_v9  ;;  %v15526_v54 = vld [vmem:[%s22730_s3 + $0x298] sm:$0xff]  ;;  %v15531_v59 = vld [vmem:[%s22730_s3 + $0x2a0] sm:$0xff] }
  0x2b   :  { %23052 = vst [vmem:[#allocation88_spill] sm:$0xff] %v15521_v29  ;;  %23053 = vst [vmem:[#allocation89_spill] sm:$0xff] %v15526_v54  ;;  %v15536_v14 = vld [vmem:[%s22730_s3 + $0x2a8] sm:$0xff]  ;;  %v15541_v9 = vld [vmem:[%s22730_s3 + $0x2b0] sm:$0xff] }
  0x2c   :  { %23054 = vst [vmem:[#allocation90_spill] sm:$0xff] %v15531_v59  ;;  %23055 = vst [vmem:[#allocation91_spill] sm:$0xff] %v15536_v14  ;;  %v15546_v60 = vld [vmem:[%s22730_s3 + $0x2b8] sm:$0xff]  ;;  %v15551_v49 = vld [vmem:[%s22730_s3 + $0x2c0] sm:$0xff] }
  0x2d   :  { %23056 = vst [vmem:[#allocation92_spill] sm:$0xff] %v15541_v9  ;;  %23057 = vst [vmem:[#allocation93_spill] sm:$0xff] %v15546_v60  ;;  %v15556_v59 = vld [vmem:[%s22730_s3 + $0x2c8] sm:$0xff]  ;;  %v15561_v14 = vld [vmem:[%s22730_s3 + $0x2d0] sm:$0xff] }
  0x2e   :  { %23058 = vst [vmem:[#allocation94_spill] sm:$0xff] %v15551_v49  ;;  %23059 = vst [vmem:[#allocation95_spill] sm:$0xff] %v15556_v59  ;;  %v15566_v9 = vld [vmem:[%s22730_s3 + $0x2d8] sm:$0xff]  ;;  %v15571_v61 = vld [vmem:[%s22730_s3 + $0x2e0] sm:$0xff] }
  0x2f   :  { %23060 = vst [vmem:[#allocation96_spill] sm:$0xff] %v15561_v14  ;;  %23061 = vst [vmem:[#allocation97_spill] sm:$0xff] %v15566_v9  ;;  %v15576_v55 = vld [vmem:[%s22730_s3 + $0x2e8] sm:$0xff]  ;;  %v15581_v59 = vld [vmem:[%s22730_s3 + $0x2f0] sm:$0xff] }
  0x30   :  { %23062 = vst [vmem:[#allocation98_spill] sm:$0xff] %v15571_v61  ;;  %23063 = vst [vmem:[#allocation99_spill] sm:$0xff] %v15576_v55  ;;  %v15586_v14 = vld [vmem:[%s22730_s3 + $0x2f8] sm:$0xff]  ;;  %v15591_v9 = vld [vmem:[%s22730_s3 + $0x300] sm:$0xff] }
  0x31   :  { %23064 = vst [vmem:[#allocation100_spill] sm:$0xff] %v15581_v59  ;;  %23065 = vst [vmem:[#allocation101_spill] sm:$0xff] %v15586_v14  ;;  %v15596_v61 = vld [vmem:[%s22730_s3 + $0x308] sm:$0xff]  ;;  %v15601_v50 = vld [vmem:[%s22730_s3 + $0x310] sm:$0xff] }
  0x32   :  { %23066 = vst [vmem:[#allocation102_spill] sm:$0xff] %v15591_v9  ;;  %23067 = vst [vmem:[#allocation103_spill] sm:$0xff] %v15596_v61  ;;  %v15606_v59 = vld [vmem:[%s22730_s3 + $0x318] sm:$0xff]  ;;  %v15611_v14 = vld [vmem:[%s22730_s3 + $0x320] sm:$0xff] }
  0x33   :  { %23068 = vst [vmem:[#allocation104_spill] sm:$0xff] %v15601_v50  ;;  %23069 = vst [vmem:[#allocation105_spill] sm:$0xff] %v15606_v59  ;;  %v15616_v9 = vld [vmem:[%s22730_s3 + $0x328] sm:$0xff]  ;;  %v15621_v61 = vld [vmem:[%s22730_s3 + $0x330] sm:$0xff] }
  0x34   :  { %23070 = vst [vmem:[#allocation106_spill] sm:$0xff] %v15611_v14  ;;  %23071 = vst [vmem:[#allocation107_spill] sm:$0xff] %v15616_v9  ;;  %v15626_v50 = vld [vmem:[%s22730_s3 + $0x338] sm:$0xff]  ;;  %v15631_v59 = vld [vmem:[%s22730_s3 + $0x340] sm:$0xff] }
  0x35   :  { %23072 = vst [vmem:[#allocation108_spill] sm:$0xff] %v15621_v61  ;;  %23073 = vst [vmem:[#allocation109_spill] sm:$0xff] %v15626_v50  ;;  %v15636_v14 = vld [vmem:[%s22730_s3 + $0x348] sm:$0xff]  ;;  %v15641_v9 = vld [vmem:[%s22730_s3 + $0x350] sm:$0xff] }
  0x36   :  { %23074 = vst [vmem:[#allocation110_spill] sm:$0xff] %v15631_v59  ;;  %23075 = vst [vmem:[#allocation111_spill] sm:$0xff] %v15636_v14  ;;  %v15646_v61 = vld [vmem:[%s22730_s3 + $0x358] sm:$0xff]  ;;  %v15651_v50 = vld [vmem:[%s22730_s3 + $0x360] sm:$0xff] }
  0x37   :  { %23076 = vst [vmem:[#allocation112_spill] sm:$0xff] %v15641_v9  ;;  %23077 = vst [vmem:[#allocation113_spill] sm:$0xff] %v15646_v61  ;;  %v15656_v59 = vld [vmem:[%s22730_s3 + $0x368] sm:$0xff]  ;;  %v15661_v14 = vld [vmem:[%s22730_s3 + $0x370] sm:$0xff] }
  0x38   :  { %23078 = vst [vmem:[#allocation114_spill] sm:$0xff] %v15651_v50  ;;  %23079 = vst [vmem:[#allocation115_spill] sm:$0xff] %v15656_v59  ;;  %v15666_v9 = vld [vmem:[%s22730_s3 + $0x378] sm:$0xff]  ;;  %v15671_v61 = vld [vmem:[%s22730_s3 + $0x380] sm:$0xff] }
  0x39   :  { %23080 = vst [vmem:[#allocation116_spill] sm:$0xff] %v15661_v14  ;;  %23081 = vst [vmem:[#allocation117_spill] sm:$0xff] %v15666_v9  ;;  %v15676_v50 = vld [vmem:[%s22730_s3 + $0x388] sm:$0xff]  ;;  %v15681_v59 = vld [vmem:[%s22730_s3 + $0x390] sm:$0xff] }
  0x3a   :  { %23082 = vst [vmem:[#allocation118_spill] sm:$0xff] %v15671_v61  ;;  %23083 = vst [vmem:[#allocation119_spill] sm:$0xff] %v15676_v50  ;;  %v15686_v14 = vld [vmem:[%s22730_s3 + $0x398] sm:$0xff]  ;;  %v15691_v9 = vld [vmem:[%s22730_s3 + $0x3a0] sm:$0xff] }
  0x3b   :  { %23084 = vst [vmem:[#allocation120_spill] sm:$0xff] %v15681_v59  ;;  %23085 = vst [vmem:[#allocation121_spill] sm:$0xff] %v15686_v14  ;;  %v15696_v61 = vld [vmem:[%s22730_s3 + $0x3a8] sm:$0xff]  ;;  %v15701_v50 = vld [vmem:[%s22730_s3 + $0x3b0] sm:$0xff] }
  0x3c   :  { %23086 = vst [vmem:[#allocation122_spill] sm:$0xff] %v15691_v9  ;;  %23087 = vst [vmem:[#allocation123_spill] sm:$0xff] %v15696_v61  ;;  %v15706_v59 = vld [vmem:[%s22730_s3 + $0x3b8] sm:$0xff]  ;;  %v15711_v14 = vld [vmem:[%s22730_s3 + $0x3c0] sm:$0xff] }
  0x3d   :  { %23088 = vst [vmem:[#allocation124_spill] sm:$0xff] %v15701_v50  ;;  %23089 = vst [vmem:[#allocation125_spill] sm:$0xff] %v15706_v59  ;;  %v15716_v9 = vld [vmem:[%s22730_s3 + $0x3c8] sm:$0xff]  ;;  %v15721_v61 = vld [vmem:[%s22730_s3 + $0x3d0] sm:$0xff] }
  0x3e   :  { %23090 = vst [vmem:[#allocation126_spill] sm:$0xff] %v15711_v14  ;;  %23091 = vst [vmem:[#allocation127_spill] sm:$0xff] %v15716_v9  ;;  %v15726_v50 = vld [vmem:[%s22730_s3 + $0x3d8] sm:$0xff]  ;;  %v15731_v59 = vld [vmem:[%s22730_s3 + $0x3e0] sm:$0xff] }
  0x3f   :  { %23092 = vst [vmem:[#allocation128_spill] sm:$0xff] %v15721_v61  ;;  %23093 = vst [vmem:[#allocation129_spill] sm:$0xff] %v15726_v50  ;;  %v15736_v14 = vld [vmem:[%s22730_s3 + $0x3e8] sm:$0xff]  ;;  %v15741_v9 = vld [vmem:[%s22730_s3 + $0x3f0] sm:$0xff] }
  0x40   :  { %23094 = vst [vmem:[#allocation130_spill] sm:$0xff] %v15731_v59  ;;  %23095 = vst [vmem:[#allocation131_spill] sm:$0xff] %v15736_v14  ;;  %v15746_v61 = vld [vmem:[%s22730_s3 + $0x3f8] sm:$0xff]  ;;  %v15751_v50 = vld [vmem:[%s22730_s3 + $0x400] sm:$0xff] }
  0x41   :  { %23096 = vst [vmem:[#allocation132_spill] sm:$0xff] %v15741_v9  ;;  %23097 = vst [vmem:[#allocation133_spill] sm:$0xff] %v15746_v61  ;;  %v15756_v59 = vld [vmem:[%s22730_s3 + $0x408] sm:$0xff]  ;;  %v15761_v14 = vld [vmem:[%s22730_s3 + $0x410] sm:$0xff] }
  0x42   :  { %23098 = vst [vmem:[#allocation134_spill] sm:$0xff] %v15751_v50  ;;  %23099 = vst [vmem:[#allocation135_spill] sm:$0xff] %v15756_v59  ;;  %v15766_v9 = vld [vmem:[%s22730_s3 + $0x418] sm:$0xff]  ;;  %v15771_v61 = vld [vmem:[%s22730_s3 + $0x420] sm:$0xff] }
  0x43   :  { %23100 = vst [vmem:[#allocation136_spill] sm:$0xff] %v15761_v14  ;;  %23101 = vst [vmem:[#allocation137_spill] sm:$0xff] %v15766_v9  ;;  %v15776_v50 = vld [vmem:[%s22730_s3 + $0x428] sm:$0xff]  ;;  %v15781_v59 = vld [vmem:[%s22730_s3 + $0x430] sm:$0xff] }
  0x44   :  { %23102 = vst [vmem:[#allocation138_spill] sm:$0xff] %v15771_v61  ;;  %23103 = vst [vmem:[#allocation139_spill] sm:$0xff] %v15776_v50  ;;  %v15786_v14 = vld [vmem:[%s22730_s3 + $0x438] sm:$0xff]  ;;  %v15791_v9 = vld [vmem:[%s22730_s3 + $0x440] sm:$0xff] }
  0x45   :  { %23104 = vst [vmem:[#allocation140_spill] sm:$0xff] %v15781_v59  ;;  %23105 = vst [vmem:[#allocation141_spill] sm:$0xff] %v15786_v14  ;;  %v15796_v61 = vld [vmem:[%s22730_s3 + $0x448] sm:$0xff]  ;;  %v15801_v50 = vld [vmem:[%s22730_s3 + $0x450] sm:$0xff] }
  0x46   :  { %23106 = vst [vmem:[#allocation142_spill] sm:$0xff] %v15791_v9  ;;  %23107 = vst [vmem:[#allocation143_spill] sm:$0xff] %v15796_v61  ;;  %v15806_v59 = vld [vmem:[%s22730_s3 + $0x458] sm:$0xff]  ;;  %v15811_v14 = vld [vmem:[%s22730_s3 + $0x460] sm:$0xff] }
  0x47   :  { %23108 = vst [vmem:[#allocation144_spill] sm:$0xff] %v15801_v50  ;;  %23109 = vst [vmem:[#allocation145_spill] sm:$0xff] %v15806_v59  ;;  %v15816_v9 = vld [vmem:[%s22730_s3 + $0x468] sm:$0xff]  ;;  %v15821_v61 = vld [vmem:[%s22730_s3 + $0x470] sm:$0xff] }
  0x48   :  { %23110 = vst [vmem:[#allocation146_spill] sm:$0xff] %v15811_v14  ;;  %23111 = vst [vmem:[#allocation147_spill] sm:$0xff] %v15816_v9  ;;  %v15826_v50 = vld [vmem:[%s22730_s3 + $0x478] sm:$0xff]  ;;  %v15831_v59 = vld [vmem:[%s22730_s3 + $0x480] sm:$0xff] }
  0x49   :  { %23112 = vst [vmem:[#allocation148_spill] sm:$0xff] %v15821_v61  ;;  %23113 = vst [vmem:[#allocation149_spill] sm:$0xff] %v15826_v50  ;;  %v15836_v14 = vld [vmem:[%s22730_s3 + $0x488] sm:$0xff]  ;;  %v15841_v9 = vld [vmem:[%s22730_s3 + $0x490] sm:$0xff] }
  0x4a   :  { %23114 = vst [vmem:[#allocation150_spill] sm:$0xff] %v15831_v59  ;;  %23115 = vst [vmem:[#allocation151_spill] sm:$0xff] %v15836_v14  ;;  %v15846_v61 = vld [vmem:[%s22730_s3 + $0x498] sm:$0xff]  ;;  %v15851_v50 = vld [vmem:[%s22730_s3 + $0x4a0] sm:$0xff] }
  0x4b   :  { %23116 = vst [vmem:[#allocation152_spill] sm:$0xff] %v15841_v9  ;;  %23117 = vst [vmem:[#allocation153_spill] sm:$0xff] %v15846_v61  ;;  %v15856_v59 = vld [vmem:[%s22730_s3 + $0x4a8] sm:$0xff]  ;;  %v15861_v14 = vld [vmem:[%s22730_s3 + $0x4b0] sm:$0xff] }
  0x4c   :  { %23118 = vst [vmem:[#allocation154_spill] sm:$0xff] %v15851_v50  ;;  %23119 = vst [vmem:[#allocation155_spill] sm:$0xff] %v15856_v59  ;;  %v15866_v9 = vld [vmem:[%s22730_s3 + $0x4b8] sm:$0xff]  ;;  %v15871_v61 = vld [vmem:[%s22730_s3 + $0x4c0] sm:$0xff] }
  0x4d   :  { %23120 = vst [vmem:[#allocation156_spill] sm:$0xff] %v15861_v14  ;;  %23121 = vst [vmem:[#allocation157_spill] sm:$0xff] %v15866_v9  ;;  %v15876_v50 = vld [vmem:[%s22730_s3 + $0x4c8] sm:$0xff]  ;;  %v15881_v59 = vld [vmem:[%s22730_s3 + $0x4d0] sm:$0xff] }
  0x4e   :  { %23122 = vst [vmem:[#allocation158_spill] sm:$0xff] %v15871_v61  ;;  %23123 = vst [vmem:[#allocation159_spill] sm:$0xff] %v15876_v50  ;;  %v15886_v14 = vld [vmem:[%s22730_s3 + $0x4d8] sm:$0xff]  ;;  %v15891_v9 = vld [vmem:[%s22730_s3 + $0x4e0] sm:$0xff] }
  0x4f   :  { %23124 = vst [vmem:[#allocation160_spill] sm:$0xff] %v15881_v59  ;;  %23125 = vst [vmem:[#allocation161_spill] sm:$0xff] %v15886_v14  ;;  %v15896_v61 = vld [vmem:[%s22730_s3 + $0x4e8] sm:$0xff]  ;;  %v15901_v50 = vld [vmem:[%s22730_s3 + $0x4f0] sm:$0xff] }
  0x50   :  { %23126 = vst [vmem:[#allocation162_spill] sm:$0xff] %v15891_v9  ;;  %23127 = vst [vmem:[#allocation163_spill] sm:$0xff] %v15896_v61  ;;  %v15906_v59 = vld [vmem:[%s22730_s3 + $0x4f8] sm:$0xff]  ;;  %v15911_v14 = vld [vmem:[%s22730_s3 + $0x500] sm:$0xff] }
  0x51   :  { %23128 = vst [vmem:[#allocation164_spill] sm:$0xff] %v15901_v50  ;;  %23129 = vst [vmem:[#allocation165_spill] sm:$0xff] %v15906_v59  ;;  %v15916_v9 = vld [vmem:[%s22730_s3 + $0x508] sm:$0xff]  ;;  %v15921_v61 = vld [vmem:[%s22730_s3 + $0x510] sm:$0xff] }
  0x52   :  { %23130 = vst [vmem:[#allocation166_spill] sm:$0xff] %v15911_v14  ;;  %23131 = vst [vmem:[#allocation167_spill] sm:$0xff] %v15916_v9  ;;  %v15926_v50 = vld [vmem:[%s22730_s3 + $0x518] sm:$0xff]  ;;  %v15931_v59 = vld [vmem:[%s22730_s3 + $0x520] sm:$0xff] }
  0x53   :  { %23132 = vst [vmem:[#allocation168_spill] sm:$0xff] %v15921_v61  ;;  %23133 = vst [vmem:[#allocation169_spill] sm:$0xff] %v15926_v50  ;;  %v15936_v14 = vld [vmem:[%s22730_s3 + $0x528] sm:$0xff]  ;;  %v15941_v9 = vld [vmem:[%s22730_s3 + $0x530] sm:$0xff] }
  0x54   :  { %23134 = vst [vmem:[#allocation170_spill] sm:$0xff] %v15931_v59  ;;  %23135 = vst [vmem:[#allocation171_spill] sm:$0xff] %v15936_v14  ;;  %v15946_v61 = vld [vmem:[%s22730_s3 + $0x538] sm:$0xff]  ;;  %v15951_v50 = vld [vmem:[%s22730_s3 + $0x540] sm:$0xff] }
  0x55   :  { %23136 = vst [vmem:[#allocation172_spill] sm:$0xff] %v15941_v9  ;;  %23137 = vst [vmem:[#allocation173_spill] sm:$0xff] %v15946_v61  ;;  %v15956_v59 = vld [vmem:[%s22730_s3 + $0x548] sm:$0xff]  ;;  %v15961_v14 = vld [vmem:[%s22730_s3 + $0x550] sm:$0xff] }
  0x56   :  { %23138 = vst [vmem:[#allocation174_spill] sm:$0xff] %v15951_v50  ;;  %23139 = vst [vmem:[#allocation175_spill] sm:$0xff] %v15956_v59  ;;  %v15966_v9 = vld [vmem:[%s22730_s3 + $0x558] sm:$0xff]  ;;  %v15971_v61 = vld [vmem:[%s22730_s3 + $0x560] sm:$0xff] }
  0x57   :  { %23140 = vst [vmem:[#allocation176_spill] sm:$0xff] %v15961_v14  ;;  %23141 = vst [vmem:[#allocation177_spill] sm:$0xff] %v15966_v9  ;;  %v15976_v50 = vld [vmem:[%s22730_s3 + $0x568] sm:$0xff]  ;;  %v15981_v59 = vld [vmem:[%s22730_s3 + $0x570] sm:$0xff] }
  0x58   :  { %23142 = vst [vmem:[#allocation178_spill] sm:$0xff] %v15971_v61  ;;  %23143 = vst [vmem:[#allocation179_spill] sm:$0xff] %v15976_v50  ;;  %v15986_v14 = vld [vmem:[%s22730_s3 + $0x578] sm:$0xff]  ;;  %v15991_v9 = vld [vmem:[%s22730_s3 + $0x580] sm:$0xff] }
  0x59   :  { %23144 = vst [vmem:[#allocation180_spill] sm:$0xff] %v15981_v59  ;;  %23145 = vst [vmem:[#allocation181_spill] sm:$0xff] %v15986_v14  ;;  %v15996_v61 = vld [vmem:[%s22730_s3 + $0x588] sm:$0xff]  ;;  %v16001_v50 = vld [vmem:[%s22730_s3 + $0x590] sm:$0xff] }
  0x5a   :  { %23146 = vst [vmem:[#allocation182_spill] sm:$0xff] %v15991_v9  ;;  %23147 = vst [vmem:[#allocation183_spill] sm:$0xff] %v15996_v61  ;;  %v16006_v59 = vld [vmem:[%s22730_s3 + $0x598] sm:$0xff]  ;;  %v16011_v14 = vld [vmem:[%s22730_s3 + $0x5a0] sm:$0xff] }
  0x5b   :  { %23148 = vst [vmem:[#allocation184_spill] sm:$0xff] %v16001_v50  ;;  %23149 = vst [vmem:[#allocation185_spill] sm:$0xff] %v16006_v59  ;;  %v16016_v9 = vld [vmem:[%s22730_s3 + $0x5a8] sm:$0xff]  ;;  %v16021_v61 = vld [vmem:[%s22730_s3 + $0x5b0] sm:$0xff] }
  0x5c   :  { %23150 = vst [vmem:[#allocation186_spill] sm:$0xff] %v16011_v14  ;;  %23151 = vst [vmem:[#allocation187_spill] sm:$0xff] %v16016_v9  ;;  %v16026_v50 = vld [vmem:[%s22730_s3 + $0x5b8] sm:$0xff]  ;;  %v16031_v59 = vld [vmem:[%s22730_s3 + $0x5c0] sm:$0xff] }
  0x5d   :  { %23152 = vst [vmem:[#allocation188_spill] sm:$0xff] %v16021_v61  ;;  %23153 = vst [vmem:[#allocation189_spill] sm:$0xff] %v16026_v50  ;;  %v16036_v14 = vld [vmem:[%s22730_s3 + $0x5c8] sm:$0xff]  ;;  %v16041_v9 = vld [vmem:[%s22730_s3 + $0x5d0] sm:$0xff] }
  0x5e   :  { %23154 = vst [vmem:[#allocation190_spill] sm:$0xff] %v16031_v59  ;;  %23155 = vst [vmem:[#allocation191_spill] sm:$0xff] %v16036_v14  ;;  %v16046_v61 = vld [vmem:[%s22730_s3 + $0x5d8] sm:$0xff]  ;;  %v16051_v50 = vld [vmem:[%s22730_s3 + $0x5e0] sm:$0xff] }
  0x5f   :  { %23156 = vst [vmem:[#allocation192_spill] sm:$0xff] %v16041_v9  ;;  %23157 = vst [vmem:[#allocation193_spill] sm:$0xff] %v16046_v61  ;;  %v16056_v59 = vld [vmem:[%s22730_s3 + $0x5e8] sm:$0xff]  ;;  %v16061_v14 = vld [vmem:[%s22730_s3 + $0x5f0] sm:$0xff] }
  0x60   :  { %23158 = vst [vmem:[#allocation194_spill] sm:$0xff] %v16051_v50  ;;  %23159 = vst [vmem:[#allocation195_spill] sm:$0xff] %v16056_v59  ;;  %v16066_v9 = vld [vmem:[%s22730_s3 + $0x5f8] sm:$0xff]  ;;  %v16071_v61 = vld [vmem:[%s22730_s3 + $0x600] sm:$0xff] }
  0x61   :  { %23160 = vst [vmem:[#allocation196_spill] sm:$0xff] %v16061_v14  ;;  %23161 = vst [vmem:[#allocation197_spill] sm:$0xff] %v16066_v9  ;;  %v16076_v50 = vld [vmem:[%s22730_s3 + $0x608] sm:$0xff]  ;;  %v16081_v59 = vld [vmem:[%s22730_s3 + $0x610] sm:$0xff] }
  0x62   :  { %23162 = vst [vmem:[#allocation198_spill] sm:$0xff] %v16071_v61  ;;  %23163 = vst [vmem:[#allocation199_spill] sm:$0xff] %v16076_v50  ;;  %v16086_v14 = vld [vmem:[%s22730_s3 + $0x618] sm:$0xff]  ;;  %v16091_v9 = vld [vmem:[%s22730_s3 + $0x620] sm:$0xff] }
  0x63   :  { %23164 = vst [vmem:[#allocation200_spill] sm:$0xff] %v16081_v59  ;;  %23165 = vst [vmem:[#allocation201_spill] sm:$0xff] %v16086_v14  ;;  %v16096_v61 = vld [vmem:[%s22730_s3 + $0x628] sm:$0xff]  ;;  %v16101_v50 = vld [vmem:[%s22730_s3 + $0x630] sm:$0xff] }
  0x64   :  { %23166 = vst [vmem:[#allocation202_spill] sm:$0xff] %v16091_v9  ;;  %23167 = vst [vmem:[#allocation203_spill] sm:$0xff] %v16096_v61  ;;  %v16106_v59 = vld [vmem:[%s22730_s3 + $0x638] sm:$0xff]  ;;  %v16111_v14 = vld [vmem:[%s22730_s3 + $0x640] sm:$0xff] }
  0x65   :  { %23168 = vst [vmem:[#allocation204_spill] sm:$0xff] %v16101_v50  ;;  %23169 = vst [vmem:[#allocation205_spill] sm:$0xff] %v16106_v59  ;;  %v16116_v9 = vld [vmem:[%s22730_s3 + $0x648] sm:$0xff]  ;;  %v16121_v61 = vld [vmem:[%s22730_s3 + $0x650] sm:$0xff] }
  0x66   :  { %23170 = vst [vmem:[#allocation206_spill] sm:$0xff] %v16111_v14  ;;  %23171 = vst [vmem:[#allocation207_spill] sm:$0xff] %v16116_v9  ;;  %v16126_v50 = vld [vmem:[%s22730_s3 + $0x658] sm:$0xff]  ;;  %v16131_v59 = vld [vmem:[%s22730_s3 + $0x660] sm:$0xff] }
  0x67   :  { %23172 = vst [vmem:[#allocation208_spill] sm:$0xff] %v16121_v61  ;;  %23173 = vst [vmem:[#allocation209_spill] sm:$0xff] %v16126_v50  ;;  %v16136_v55 = vld [vmem:[%s22730_s3 + $0x668] sm:$0xff]  ;;  %v16141_v56 = vld [vmem:[%s22730_s3 + $0x670] sm:$0xff] }
  0x68   :  { %23174 = vst [vmem:[#allocation210_spill] sm:$0xff] %v16131_v59  ;;  %23175 = vst [vmem:[#allocation211_spill] sm:$0xff] %v16136_v55  ;;  %v16146_v51 = vld [vmem:[%s22730_s3 + $0x678] sm:$0xff]  ;;  %v16151_v60 = vld [vmem:[%s22730_s3 + $0x680] sm:$0xff] }
  0x69   :  { %23176 = vst [vmem:[#allocation212_spill] sm:$0xff] %v16141_v56  ;;  %23177 = vst [vmem:[#allocation213_spill] sm:$0xff] %v16146_v51  ;;  %v16156_v29 = vld [vmem:[%s22730_s3 + $0x688] sm:$0xff]  ;;  %v16161_v45 = vld [vmem:[%s22730_s3 + $0x690] sm:$0xff] }
  0x6a   :  { %23178 = vst [vmem:[#allocation214_spill] sm:$0xff] %v16151_v60  ;;  %23179 = vst [vmem:[#allocation215_spill] sm:$0xff] %v16156_v29  ;;  %v16166_v40 = vld [vmem:[%s22730_s3 + $0x698] sm:$0xff]  ;;  %v16171_v49 = vld [vmem:[%s22730_s3 + $0x6a0] sm:$0xff] }
  0x6b   :  { %23180 = vst [vmem:[#allocation216_spill] sm:$0xff] %v16161_v45  ;;  %23181 = vst [vmem:[#allocation217_spill] sm:$0xff] %v16166_v40  ;;  %v16176_v54 = vld [vmem:[%s22730_s3 + $0x6a8] sm:$0xff]  ;;  %v16181_v46 = vld [vmem:[%s22730_s3 + $0x6b0] sm:$0xff] }
  0x6c   :  { %23182 = vst [vmem:[#allocation218_spill] sm:$0xff] %v16171_v49  ;;  %23183 = vst [vmem:[#allocation219_spill] sm:$0xff] %v16176_v54  ;;  %v16186_v41 = vld [vmem:[%s22730_s3 + $0x6b8] sm:$0xff]  ;;  %v16191_v4 = vld [vmem:[%s22730_s3 + $0x6c0] sm:$0xff] }
  0x6d   :  { %23184 = vst [vmem:[#allocation220_spill] sm:$0xff] %v16181_v46  ;;  %23185 = vst [vmem:[#allocation221_spill] sm:$0xff] %v16186_v41  ;;  %v16196_v24 = vld [vmem:[%s22730_s3 + $0x6c8] sm:$0xff]  ;;  %v16201_v35 = vld [vmem:[%s22730_s3 + $0x6d0] sm:$0xff] }
  0x6e   :  { %23186 = vst [vmem:[#allocation222_spill] sm:$0xff] %v16191_v4  ;;  %23187 = vst [vmem:[#allocation223_spill] sm:$0xff] %v16196_v24  ;;  %v16206_v30 = vld [vmem:[%s22730_s3 + $0x6d8] sm:$0xff]  ;;  %v16211_v34 = vld [vmem:[%s22730_s3 + $0x6e0] sm:$0xff] }
  0x6f   :  { %23188 = vst [vmem:[#allocation224_spill] sm:$0xff] %v16201_v35  ;;  %23189 = vst [vmem:[#allocation225_spill] sm:$0xff] %v16206_v30  ;;  %v16216_v19 = vld [vmem:[%s22730_s3 + $0x6e8] sm:$0xff]  ;;  %v16221_v36 = vld [vmem:[%s22730_s3 + $0x6f0] sm:$0xff] }
  0x70   :  { %23190 = vst [vmem:[#allocation226_spill] sm:$0xff] %v16211_v34  ;;  %23191 = vst [vmem:[#allocation227_spill] sm:$0xff] %v16216_v19  ;;  %v16226_v31 = vld [vmem:[%s22730_s3 + $0x6f8] sm:$0xff]  ;;  %v16231_v44 = vld [vmem:[%s22730_s3 + $0x700] sm:$0xff] }
  0x71   :  { %23192 = vst [vmem:[#allocation228_spill] sm:$0xff] %v16221_v36  ;;  %23193 = vst [vmem:[#allocation229_spill] sm:$0xff] %v16226_v31  ;;  %v16236_v62 = vld [vmem:[%s22730_s3 + $0x708] sm:$0xff]  ;;  %v16241_v25 = vld [vmem:[%s22730_s3 + $0x710] sm:$0xff] }
  0x72   :  { %23194 = vst [vmem:[#allocation230_spill] sm:$0xff] %v16231_v44  ;;  %23195 = vst [vmem:[#allocation231_spill] sm:$0xff] %v16236_v62  ;;  %v16246_v20 = vld [vmem:[%s22730_s3 + $0x718] sm:$0xff]  ;;  %v16251_v39 = vld [vmem:[%s22730_s3 + $0x720] sm:$0xff] }
  0x73   :  { %23196 = vst [vmem:[#allocation232_spill] sm:$0xff] %v16241_v25  ;;  %23197 = vst [vmem:[#allocation233_spill] sm:$0xff] %v16246_v20  ;;  %v16256_v63 = vld [vmem:[%s22730_s3 + $0x728] sm:$0xff]  ;;  %v16261_v26 = vld [vmem:[%s22730_s3 + $0x730] sm:$0xff] }
  0x74   :  { %23198 = vst [vmem:[#allocation234_spill] sm:$0xff] %v16251_v39  ;;  %23199 = vst [vmem:[#allocation235_spill] sm:$0xff] %v16256_v63  ;;  %v16266_v21 = vld [vmem:[%s22730_s3 + $0x738] sm:$0xff]  ;;  %v16271_v57 = vld [vmem:[%s22730_s3 + $0x740] sm:$0xff] }
  0x75   :  { %23200 = vst [vmem:[#allocation236_spill] sm:$0xff] %v16261_v26  ;;  %23201 = vst [vmem:[#allocation237_spill] sm:$0xff] %v16266_v21  ;;  %v16276_v52 = vld [vmem:[%s22730_s3 + $0x748] sm:$0xff]  ;;  %v16281_v15 = vld [vmem:[%s22730_s3 + $0x750] sm:$0xff] }
  0x76   :  { %23202 = vst [vmem:[#allocation238_spill] sm:$0xff] %v16271_v57  ;;  %23203 = vst [vmem:[#allocation239_spill] sm:$0xff] %v16276_v52  ;;  %v16286_v10 = vld [vmem:[%s22730_s3 + $0x758] sm:$0xff]  ;;  %v16291_v58 = vld [vmem:[%s22730_s3 + $0x760] sm:$0xff] }
  0x77   :  { %23204 = vst [vmem:[#allocation240_spill] sm:$0xff] %v16281_v15  ;;  %23205 = vst [vmem:[#allocation241_spill] sm:$0xff] %v16286_v10  ;;  %v16296_v53 = vld [vmem:[%s22730_s3 + $0x768] sm:$0xff]  ;;  %v16301_v16 = vld [vmem:[%s22730_s3 + $0x770] sm:$0xff] }
  0x78   :  { %23206 = vst [vmem:[#allocation242_spill] sm:$0xff] %v16291_v58  ;;  %23207 = vst [vmem:[#allocation243_spill] sm:$0xff] %v16296_v53  ;;  %v16306_v11 = vld [vmem:[%s22730_s3 + $0x778] sm:$0xff]  ;;  %v16311_v47 = vld [vmem:[%s22730_s3 + $0x780] sm:$0xff] }
  0x79   :  { %23208 = vst [vmem:[#allocation244_spill] sm:$0xff] %v16301_v16  ;;  %23209 = vst [vmem:[#allocation245_spill] sm:$0xff] %v16306_v11  ;;  %v16316_v42 = vld [vmem:[%s22730_s3 + $0x788] sm:$0xff]  ;;  %v16321_v5 = vld [vmem:[%s22730_s3 + $0x790] sm:$0xff] }
  0x7a   :  { %23210 = vst [vmem:[#allocation246_spill] sm:$0xff] %v16311_v47  ;;  %23211 = vst [vmem:[#allocation247_spill] sm:$0xff] %v16316_v42  ;;  %v16326_v0 = vld [vmem:[%s22730_s3 + $0x798] sm:$0xff]  ;;  %v16331_v48 = vld [vmem:[%s22730_s3 + $0x7a0] sm:$0xff] }
  0x7b   :  { %23212 = vst [vmem:[#allocation248_spill] sm:$0xff] %v16321_v5  ;;  %23213 = vst [vmem:[#allocation249_spill] sm:$0xff] %v16326_v0  ;;  %v16336_v43 = vld [vmem:[%s22730_s3 + $0x7a8] sm:$0xff]  ;;  %v16341_v6 = vld [vmem:[%s22730_s3 + $0x7b0] sm:$0xff] }
  0x7c   :  { %23214 = vst [vmem:[#allocation250_spill] sm:$0xff] %v16331_v48  ;;  %23215 = vst [vmem:[#allocation251_spill] sm:$0xff] %v16336_v43  ;;  %v16346_v1 = vld [vmem:[%s22730_s3 + $0x7b8] sm:$0xff]  ;;  %v16351_v37 = vld [vmem:[%s22730_s3 + $0x7c0] sm:$0xff] }
  0x7d   :  { %23216 = vst [vmem:[#allocation252_spill] sm:$0xff] %v16341_v6  ;;  %23217 = vst [vmem:[#allocation253_spill] sm:$0xff] %v16346_v1  ;;  %v16356_v32 = vld [vmem:[%s22730_s3 + $0x7c8] sm:$0xff]  ;;  %v16361_v38 = vld [vmem:[%s22730_s3 + $0x7d0] sm:$0xff] }
  0x7e   :  { %23218 = vst [vmem:[#allocation254_spill] sm:$0xff] %v16351_v37  ;;  %23219 = vst [vmem:[#allocation255_spill] sm:$0xff] %v16356_v32  ;;  %v16366_v33 = vld [vmem:[%s22730_s3 + $0x7d8] sm:$0xff]  ;;  %v16371_v27 = vld [vmem:[%s22730_s3 + $0x7e0] sm:$0xff] }
  0x7f   :  { %23220 = vst [vmem:[#allocation256_spill] sm:$0xff] %v16361_v38  ;;  %23221 = vst [vmem:[#allocation257_spill] sm:$0xff] %v16366_v33  ;;  %v16376_v22 = vld [vmem:[%s22730_s3 + $0x7e8] sm:$0xff]  ;;  %v16381_v28 = vld [vmem:[%s22730_s3 + $0x7f0] sm:$0xff] }
  0x80   :  { %23222 = vst [vmem:[#allocation258_spill] sm:$0xff] %v16371_v27  ;;  %23223 = vst [vmem:[#allocation259_spill] sm:$0xff] %v16376_v22  ;;  %v16386_v23 = vld [vmem:[%s22730_s3 + $0x7f8] sm:$0xff]  ;;  %v16391_v17 = vld [vmem:[%s22730_s3 + $0x800] sm:$0xff] }
  0x81   :  { %23224 = vst [vmem:[#allocation260_spill] sm:$0xff] %v16381_v28  ;;  %23225 = vst [vmem:[#allocation261_spill] sm:$0xff] %v16386_v23  ;;  %v16396_v12 = vld [vmem:[%s22730_s3 + $0x808] sm:$0xff]  ;;  %v16401_v18 = vld [vmem:[%s22730_s3 + $0x810] sm:$0xff] }
  0x82   :  { %23226 = vst [vmem:[#allocation262_spill] sm:$0xff] %v16391_v17  ;;  %23227 = vst [vmem:[#allocation263_spill] sm:$0xff] %v16396_v12  ;;  %v16406_v28 = vld [vmem:[%s22730_s3 + $0x818] sm:$0xff]  ;;  %v16411_v13 = vld [vmem:[%s22730_s3 + $0x820] sm:$0xff] }
  0x83   :  { %23228 = vst [vmem:[#allocation264_spill] sm:$0xff] %v16401_v18  ;;  %23229 = vst [vmem:[#allocation265_spill] sm:$0xff] %v16406_v28  ;;  %v16416_v7 = vld [vmem:[%s22730_s3 + $0x828] sm:$0xff]  ;;  %v16421_v2 = vld [vmem:[%s22730_s3 + $0x830] sm:$0xff] }
  0x84   :  { %23230 = vst [vmem:[#allocation266_spill] sm:$0xff] %v16411_v13  ;;  %23231 = vst [vmem:[#allocation267_spill] sm:$0xff] %v16416_v7  ;;  %v16426_v32 = vld [vmem:[%s22730_s3 + $0x838] sm:$0xff]  ;;  %v16431_v28 = vld [vmem:[%s22730_s3 + $0x840] sm:$0xff] }
  0x85   :  { %23232 = vst [vmem:[#allocation268_spill] sm:$0xff] %v16421_v2  ;;  %23233 = vst [vmem:[#allocation269_spill] sm:$0xff] %v16426_v32  ;;  %v16436_v48 = vld [vmem:[%s22730_s3 + $0x848] sm:$0xff]  ;;  %v16441_v8 = vld [vmem:[%s22730_s3 + $0x850] sm:$0xff] }
  0x86   :  { %23234 = vst [vmem:[#allocation270_spill] sm:$0xff] %v16431_v28  ;;  %23235 = vst [vmem:[#allocation271_spill] sm:$0xff] %v16436_v48  ;;  %v16446_v3 = vld [vmem:[%s22730_s3 + $0x858] sm:$0xff]  ;;  %v16451_v11 = vld [vmem:[%s22730_s3 + $0x860] sm:$0xff] }
  0x87   :  { %23236 = vst [vmem:[#allocation272_spill] sm:$0xff] %v16441_v8  ;;  %23237 = vst [vmem:[#allocation273_spill] sm:$0xff] %v16446_v3  ;;  %v16456_v28 = vld [vmem:[%s22730_s3 + $0x868] sm:$0xff]  ;;  %v16461_v15 = vld [vmem:[%s22730_s3 + $0x870] sm:$0xff] }
  0x88   :  { %23238 = vst [vmem:[#allocation274_spill] sm:$0xff] %v16451_v11  ;;  %23239 = vst [vmem:[#allocation275_spill] sm:$0xff] %v16456_v28  ;;  %v16466_v63 = vld [vmem:[%s22730_s3 + $0x878] sm:$0xff]  ;;  %v16471_v44 = vld [vmem:[%s22730_s3 + $0x880] sm:$0xff] }
  0x89   :  { %23240 = vst [vmem:[#allocation276_spill] sm:$0xff] %v16461_v15  ;;  %23241 = vst [vmem:[#allocation277_spill] sm:$0xff] %v16466_v63  ;;  %v16476_v30 = vld [vmem:[%s22730_s3 + $0x888] sm:$0xff]  ;;  %v16481_v28 = vld [vmem:[%s22730_s3 + $0x890] sm:$0xff] }
  0x8a   :  { %23242 = vst [vmem:[#allocation278_spill] sm:$0xff] %v16471_v44  ;;  %23243 = vst [vmem:[#allocation279_spill] sm:$0xff] %v16476_v30  ;;  %v16486_v46 = vld [vmem:[%s22730_s3 + $0x898] sm:$0xff]  ;;  %v16491_v29 = vld [vmem:[%s22730_s3 + $0x8a0] sm:$0xff] }
  0x8b   :  { %23244 = vst [vmem:[#allocation280_spill] sm:$0xff] %v16481_v28  ;;  %23245 = vst [vmem:[#allocation281_spill] sm:$0xff] %v16486_v46  ;;  %v16496_v59 = vld [vmem:[%s22730_s3 + $0x8a8] sm:$0xff]  ;;  %v16501_v44 = vld [vmem:[%s22730_s3 + $0x8b0] sm:$0xff] }
  0x8c   :  { %23246 = vst [vmem:[#allocation282_spill] sm:$0xff] %v16491_v29  ;;  %23247 = vst [vmem:[#allocation283_spill] sm:$0xff] %v16496_v59  ;;  %v16506_v28 = vld [vmem:[%s22730_s3 + $0x8b8] sm:$0xff]  ;;  %v16511_v46 = vld [vmem:[%s22730_s3 + $0x8c0] sm:$0xff] }
  0x8d   :  { %23248 = vst [vmem:[#allocation284_spill] sm:$0xff] %v16501_v44  ;;  %23249 = vst [vmem:[#allocation285_spill] sm:$0xff] %v16506_v28  ;;  %v16516_v15 = vld [vmem:[%s22730_s3 + $0x8c8] sm:$0xff]  ;;  %v16521_v59 = vld [vmem:[%s22730_s3 + $0x8d0] sm:$0xff] }
  0x8e   :  { %23250 = vst [vmem:[#allocation286_spill] sm:$0xff] %v16511_v46  ;;  %23251 = vst [vmem:[#allocation287_spill] sm:$0xff] %v16516_v15  ;;  %v16526_v44 = vld [vmem:[%s22730_s3 + $0x8d8] sm:$0xff]  ;;  %v16531_v28 = vld [vmem:[%s22730_s3 + $0x8e0] sm:$0xff] }
  0x8f   :  { %23252 = vst [vmem:[#allocation288_spill] sm:$0xff] %v16521_v59  ;;  %23253 = vst [vmem:[#allocation289_spill] sm:$0xff] %v16526_v44  ;;  %v16536_v46 = vld [vmem:[%s22730_s3 + $0x8e8] sm:$0xff]  ;;  %v16541_v15 = vld [vmem:[%s22730_s3 + $0x8f0] sm:$0xff] }
  0x90   :  { %23254 = vst [vmem:[#allocation290_spill] sm:$0xff] %v16531_v28  ;;  %23255 = vst [vmem:[#allocation291_spill] sm:$0xff] %v16536_v46  ;;  %v16546_v59 = vld [vmem:[%s22730_s3 + $0x8f8] sm:$0xff]  ;;  %v16551_v44 = vld [vmem:[%s22730_s3 + $0x900] sm:$0xff] }
  0x91   :  { %23256 = vst [vmem:[#allocation292_spill] sm:$0xff] %v16541_v15  ;;  %23257 = vst [vmem:[#allocation293_spill] sm:$0xff] %v16546_v59  ;;  %v16556_v28 = vld [vmem:[%s22730_s3 + $0x908] sm:$0xff]  ;;  %v16561_v46 = vld [vmem:[%s22730_s3 + $0x910] sm:$0xff] }
  0x92   :  { %23258 = vst [vmem:[#allocation294_spill] sm:$0xff] %v16551_v44  ;;  %23259 = vst [vmem:[#allocation295_spill] sm:$0xff] %v16556_v28  ;;  %v16566_v15 = vld [vmem:[%s22730_s3 + $0x918] sm:$0xff]  ;;  %v16571_v59 = vld [vmem:[%s22730_s3 + $0x920] sm:$0xff] }
  0x93   :  { %23260 = vst [vmem:[#allocation296_spill] sm:$0xff] %v16561_v46  ;;  %23261 = vst [vmem:[#allocation297_spill] sm:$0xff] %v16566_v15  ;;  %v16576_v44 = vld [vmem:[%s22730_s3 + $0x928] sm:$0xff]  ;;  %v16581_v28 = vld [vmem:[%s22730_s3 + $0x930] sm:$0xff] }
  0x94   :  { %23262 = vst [vmem:[#allocation298_spill] sm:$0xff] %v16571_v59  ;;  %23263 = vst [vmem:[#allocation299_spill] sm:$0xff] %v16576_v44  ;;  %v16586_v46 = vld [vmem:[%s22730_s3 + $0x938] sm:$0xff]  ;;  %v16591_v15 = vld [vmem:[%s22730_s3 + $0x940] sm:$0xff] }
  0x95   :  { %23264 = vst [vmem:[#allocation300_spill] sm:$0xff] %v16581_v28  ;;  %23265 = vst [vmem:[#allocation301_spill] sm:$0xff] %v16586_v46  ;;  %v16596_v59 = vld [vmem:[%s22730_s3 + $0x948] sm:$0xff]  ;;  %v16601_v44 = vld [vmem:[%s22730_s3 + $0x950] sm:$0xff] }
  0x96   :  { %23266 = vst [vmem:[#allocation302_spill] sm:$0xff] %v16591_v15  ;;  %23267 = vst [vmem:[#allocation303_spill] sm:$0xff] %v16596_v59  ;;  %v16606_v28 = vld [vmem:[%s22730_s3 + $0x958] sm:$0xff]  ;;  %v16611_v46 = vld [vmem:[%s22730_s3 + $0x960] sm:$0xff] }
  0x97   :  { %23268 = vst [vmem:[#allocation304_spill] sm:$0xff] %v16601_v44  ;;  %23269 = vst [vmem:[#allocation305_spill] sm:$0xff] %v16606_v28  ;;  %v16616_v15 = vld [vmem:[%s22730_s3 + $0x968] sm:$0xff]  ;;  %v16621_v59 = vld [vmem:[%s22730_s3 + $0x970] sm:$0xff] }
  0x98   :  { %23270 = vst [vmem:[#allocation306_spill] sm:$0xff] %v16611_v46  ;;  %23271 = vst [vmem:[#allocation307_spill] sm:$0xff] %v16616_v15  ;;  %v16626_v44 = vld [vmem:[%s22730_s3 + $0x978] sm:$0xff]  ;;  %v16631_v28 = vld [vmem:[%s22730_s3 + $0x980] sm:$0xff] }
  0x99   :  { %23272 = vst [vmem:[#allocation308_spill] sm:$0xff] %v16621_v59  ;;  %23273 = vst [vmem:[#allocation309_spill] sm:$0xff] %v16626_v44  ;;  %v16636_v46 = vld [vmem:[%s22730_s3 + $0x988] sm:$0xff]  ;;  %v16641_v15 = vld [vmem:[%s22730_s3 + $0x990] sm:$0xff] }
  0x9a   :  { %23274 = vst [vmem:[#allocation310_spill] sm:$0xff] %v16631_v28  ;;  %23275 = vst [vmem:[#allocation311_spill] sm:$0xff] %v16636_v46  ;;  %v16646_v59 = vld [vmem:[%s22730_s3 + $0x998] sm:$0xff]  ;;  %v16651_v44 = vld [vmem:[%s22730_s3 + $0x9a0] sm:$0xff] }
  0x9b   :  { %23276 = vst [vmem:[#allocation312_spill] sm:$0xff] %v16641_v15  ;;  %23277 = vst [vmem:[#allocation313_spill] sm:$0xff] %v16646_v59  ;;  %v16656_v28 = vld [vmem:[%s22730_s3 + $0x9a8] sm:$0xff]  ;;  %v16661_v46 = vld [vmem:[%s22730_s3 + $0x9b0] sm:$0xff] }
  0x9c   :  { %23278 = vst [vmem:[#allocation314_spill] sm:$0xff] %v16651_v44  ;;  %23279 = vst [vmem:[#allocation315_spill] sm:$0xff] %v16656_v28  ;;  %v16666_v15 = vld [vmem:[%s22730_s3 + $0x9b8] sm:$0xff]  ;;  %v16671_v59 = vld [vmem:[%s22730_s3 + $0x9c0] sm:$0xff] }
  0x9d   :  { %23280 = vst [vmem:[#allocation316_spill] sm:$0xff] %v16661_v46  ;;  %23281 = vst [vmem:[#allocation317_spill] sm:$0xff] %v16666_v15  ;;  %v16676_v44 = vld [vmem:[%s22730_s3 + $0x9c8] sm:$0xff]  ;;  %v16681_v28 = vld [vmem:[%s22730_s3 + $0x9d0] sm:$0xff] }
  0x9e   :  { %23282 = vst [vmem:[#allocation318_spill] sm:$0xff] %v16671_v59  ;;  %23283 = vst [vmem:[#allocation319_spill] sm:$0xff] %v16676_v44  ;;  %v16686_v46 = vld [vmem:[%s22730_s3 + $0x9d8] sm:$0xff]  ;;  %v16691_v15 = vld [vmem:[%s22730_s3 + $0x9e0] sm:$0xff] }
  0x9f   :  { %23284 = vst [vmem:[#allocation320_spill] sm:$0xff] %v16681_v28  ;;  %23285 = vst [vmem:[#allocation321_spill] sm:$0xff] %v16686_v46  ;;  %v16696_v59 = vld [vmem:[%s22730_s3 + $0x9e8] sm:$0xff]  ;;  %v16701_v44 = vld [vmem:[%s22730_s3 + $0x9f0] sm:$0xff] }
  0xa0   :  { %23286 = vst [vmem:[#allocation322_spill] sm:$0xff] %v16691_v15  ;;  %23287 = vst [vmem:[#allocation323_spill] sm:$0xff] %v16696_v59  ;;  %v16706_v28 = vld [vmem:[%s22730_s3 + $0x9f8] sm:$0xff]  ;;  %v16711_v46 = vld [vmem:[%s22730_s3 + $0xa00] sm:$0xff] }
  0xa1   :  { %23288 = vst [vmem:[#allocation324_spill] sm:$0xff] %v16701_v44  ;;  %23289 = vst [vmem:[#allocation325_spill] sm:$0xff] %v16706_v28  ;;  %v16716_v15 = vld [vmem:[%s22730_s3 + $0xa08] sm:$0xff]  ;;  %v16721_v59 = vld [vmem:[%s22730_s3 + $0xa10] sm:$0xff] }
  0xa2   :  { %23290 = vst [vmem:[#allocation326_spill] sm:$0xff] %v16711_v46  ;;  %23291 = vst [vmem:[#allocation327_spill] sm:$0xff] %v16716_v15  ;;  %v16726_v44 = vld [vmem:[%s22730_s3 + $0xa18] sm:$0xff]  ;;  %v16731_v28 = vld [vmem:[%s22730_s3 + $0xa20] sm:$0xff] }
  0xa3   :  { %23292 = vst [vmem:[#allocation328_spill] sm:$0xff] %v16721_v59  ;;  %23293 = vst [vmem:[#allocation329_spill] sm:$0xff] %v16726_v44  ;;  %v16736_v46 = vld [vmem:[%s22730_s3 + $0xa28] sm:$0xff]  ;;  %v16741_v15 = vld [vmem:[%s22730_s3 + $0xa30] sm:$0xff] }
  0xa4   :  { %23294 = vst [vmem:[#allocation330_spill] sm:$0xff] %v16731_v28  ;;  %23295 = vst [vmem:[#allocation331_spill] sm:$0xff] %v16736_v46  ;;  %v16746_v59 = vld [vmem:[%s22730_s3 + $0xa38] sm:$0xff]  ;;  %v16751_v44 = vld [vmem:[%s22730_s3 + $0xa40] sm:$0xff] }
  0xa5   :  { %23296 = vst [vmem:[#allocation332_spill] sm:$0xff] %v16741_v15  ;;  %23297 = vst [vmem:[#allocation333_spill] sm:$0xff] %v16746_v59  ;;  %v16756_v28 = vld [vmem:[%s22730_s3 + $0xa48] sm:$0xff]  ;;  %v16761_v46 = vld [vmem:[%s22730_s3 + $0xa50] sm:$0xff] }
  0xa6   :  { %23298 = vst [vmem:[#allocation334_spill] sm:$0xff] %v16751_v44  ;;  %23299 = vst [vmem:[#allocation335_spill] sm:$0xff] %v16756_v28  ;;  %v16766_v15 = vld [vmem:[%s22730_s3 + $0xa58] sm:$0xff]  ;;  %v16771_v59 = vld [vmem:[%s22730_s3 + $0xa60] sm:$0xff] }
  0xa7   :  { %23300 = vst [vmem:[#allocation336_spill] sm:$0xff] %v16761_v46  ;;  %23301 = vst [vmem:[#allocation337_spill] sm:$0xff] %v16766_v15  ;;  %v16776_v44 = vld [vmem:[%s22730_s3 + $0xa68] sm:$0xff]  ;;  %v16781_v28 = vld [vmem:[%s22730_s3 + $0xa70] sm:$0xff] }
  0xa8   :  { %23302 = vst [vmem:[#allocation338_spill] sm:$0xff] %v16771_v59  ;;  %23303 = vst [vmem:[#allocation339_spill] sm:$0xff] %v16776_v44  ;;  %v16786_v46 = vld [vmem:[%s22730_s3 + $0xa78] sm:$0xff]  ;;  %v16791_v15 = vld [vmem:[%s22730_s3 + $0xa80] sm:$0xff] }
  0xa9   :  { %23304 = vst [vmem:[#allocation340_spill] sm:$0xff] %v16781_v28  ;;  %23305 = vst [vmem:[#allocation341_spill] sm:$0xff] %v16786_v46  ;;  %v16796_v59 = vld [vmem:[%s22730_s3 + $0xa88] sm:$0xff]  ;;  %v16801_v44 = vld [vmem:[%s22730_s3 + $0xa90] sm:$0xff] }
  0xaa   :  { %23306 = vst [vmem:[#allocation342_spill] sm:$0xff] %v16791_v15  ;;  %23307 = vst [vmem:[#allocation343_spill] sm:$0xff] %v16796_v59  ;;  %v16806_v28 = vld [vmem:[%s22730_s3 + $0xa98] sm:$0xff]  ;;  %v16811_v46 = vld [vmem:[%s22730_s3 + $0xaa0] sm:$0xff] }
  0xab   :  { %23308 = vst [vmem:[#allocation344_spill] sm:$0xff] %v16801_v44  ;;  %23309 = vst [vmem:[#allocation345_spill] sm:$0xff] %v16806_v28  ;;  %v16816_v15 = vld [vmem:[%s22730_s3 + $0xaa8] sm:$0xff]  ;;  %v16821_v59 = vld [vmem:[%s22730_s3 + $0xab0] sm:$0xff] }
  0xac   :  { %23310 = vst [vmem:[#allocation346_spill] sm:$0xff] %v16811_v46  ;;  %23311 = vst [vmem:[#allocation347_spill] sm:$0xff] %v16816_v15  ;;  %v16826_v44 = vld [vmem:[%s22730_s3 + $0xab8] sm:$0xff]  ;;  %v16831_v28 = vld [vmem:[%s22730_s3 + $0xac0] sm:$0xff] }
  0xad   :  { %23312 = vst [vmem:[#allocation348_spill] sm:$0xff] %v16821_v59  ;;  %23313 = vst [vmem:[#allocation349_spill] sm:$0xff] %v16826_v44  ;;  %v16836_v46 = vld [vmem:[%s22730_s3 + $0xac8] sm:$0xff]  ;;  %v16841_v15 = vld [vmem:[%s22730_s3 + $0xad0] sm:$0xff] }
  0xae   :  { %23314 = vst [vmem:[#allocation350_spill] sm:$0xff] %v16831_v28  ;;  %23315 = vst [vmem:[#allocation351_spill] sm:$0xff] %v16836_v46  ;;  %v16846_v59 = vld [vmem:[%s22730_s3 + $0xad8] sm:$0xff]  ;;  %v16851_v44 = vld [vmem:[%s22730_s3 + $0xae0] sm:$0xff] }
  0xaf   :  { %23316 = vst [vmem:[#allocation352_spill] sm:$0xff] %v16841_v15  ;;  %23317 = vst [vmem:[#allocation353_spill] sm:$0xff] %v16846_v59  ;;  %v16856_v28 = vld [vmem:[%s22730_s3 + $0xae8] sm:$0xff]  ;;  %v16861_v46 = vld [vmem:[%s22730_s3 + $0xaf0] sm:$0xff] }
  0xb0   :  { %23318 = vst [vmem:[#allocation354_spill] sm:$0xff] %v16851_v44  ;;  %23319 = vst [vmem:[#allocation355_spill] sm:$0xff] %v16856_v28  ;;  %v16866_v15 = vld [vmem:[%s22730_s3 + $0xaf8] sm:$0xff]  ;;  %v16871_v59 = vld [vmem:[%s22730_s3 + $0xb00] sm:$0xff] }
  0xb1   :  { %23320 = vst [vmem:[#allocation356_spill] sm:$0xff] %v16861_v46  ;;  %23321 = vst [vmem:[#allocation357_spill] sm:$0xff] %v16866_v15  ;;  %v16876_v44 = vld [vmem:[%s22730_s3 + $0xb08] sm:$0xff]  ;;  %v16881_v28 = vld [vmem:[%s22730_s3 + $0xb10] sm:$0xff] }
  0xb2   :  { %23322 = vst [vmem:[#allocation358_spill] sm:$0xff] %v16871_v59  ;;  %23323 = vst [vmem:[#allocation359_spill] sm:$0xff] %v16876_v44  ;;  %v16886_v46 = vld [vmem:[%s22730_s3 + $0xb18] sm:$0xff]  ;;  %v16891_v15 = vld [vmem:[%s22730_s3 + $0xb20] sm:$0xff] }
  0xb3   :  { %23324 = vst [vmem:[#allocation360_spill] sm:$0xff] %v16881_v28  ;;  %23325 = vst [vmem:[#allocation361_spill] sm:$0xff] %v16886_v46  ;;  %v16896_v59 = vld [vmem:[%s22730_s3 + $0xb28] sm:$0xff]  ;;  %v16901_v44 = vld [vmem:[%s22730_s3 + $0xb30] sm:$0xff] }
  0xb4   :  { %23326 = vst [vmem:[#allocation362_spill] sm:$0xff] %v16891_v15  ;;  %23327 = vst [vmem:[#allocation363_spill] sm:$0xff] %v16896_v59  ;;  %v16906_v28 = vld [vmem:[%s22730_s3 + $0xb38] sm:$0xff]  ;;  %v16911_v46 = vld [vmem:[%s22730_s3 + $0xb40] sm:$0xff] }
  0xb5   :  { %23328 = vst [vmem:[#allocation364_spill] sm:$0xff] %v16901_v44  ;;  %23329 = vst [vmem:[#allocation365_spill] sm:$0xff] %v16906_v28  ;;  %v16916_v15 = vld [vmem:[%s22730_s3 + $0xb48] sm:$0xff]  ;;  %v16921_v59 = vld [vmem:[%s22730_s3 + $0xb50] sm:$0xff] }
  0xb6   :  { %23330 = vst [vmem:[#allocation366_spill] sm:$0xff] %v16911_v46  ;;  %23331 = vst [vmem:[#allocation367_spill] sm:$0xff] %v16916_v15  ;;  %v16926_v44 = vld [vmem:[%s22730_s3 + $0xb58] sm:$0xff]  ;;  %v16931_v28 = vld [vmem:[%s22730_s3 + $0xb60] sm:$0xff] }
  0xb7   :  { %23332 = vst [vmem:[#allocation368_spill] sm:$0xff] %v16921_v59  ;;  %23333 = vst [vmem:[#allocation369_spill] sm:$0xff] %v16926_v44  ;;  %v16936_v46 = vld [vmem:[%s22730_s3 + $0xb68] sm:$0xff]  ;;  %v16941_v15 = vld [vmem:[%s22730_s3 + $0xb70] sm:$0xff] }
  0xb8   :  { %23334 = vst [vmem:[#allocation370_spill] sm:$0xff] %v16931_v28  ;;  %23335 = vst [vmem:[#allocation371_spill] sm:$0xff] %v16936_v46  ;;  %v16946_v59 = vld [vmem:[%s22730_s3 + $0xb78] sm:$0xff]  ;;  %v16951_v44 = vld [vmem:[%s22730_s3 + $0xb80] sm:$0xff] }
  0xb9   :  { %23336 = vst [vmem:[#allocation372_spill] sm:$0xff] %v16941_v15  ;;  %23337 = vst [vmem:[#allocation373_spill] sm:$0xff] %v16946_v59  ;;  %v16956_v28 = vld [vmem:[%s22730_s3 + $0xb88] sm:$0xff]  ;;  %v16961_v46 = vld [vmem:[%s22730_s3 + $0xb90] sm:$0xff] }
  0xba   :  { %23338 = vst [vmem:[#allocation374_spill] sm:$0xff] %v16951_v44  ;;  %23339 = vst [vmem:[#allocation375_spill] sm:$0xff] %v16956_v28  ;;  %v16966_v15 = vld [vmem:[%s22730_s3 + $0xb98] sm:$0xff]  ;;  %v16971_v59 = vld [vmem:[%s22730_s3 + $0xba0] sm:$0xff] }
  0xbb   :  { %23340 = vst [vmem:[#allocation376_spill] sm:$0xff] %v16961_v46  ;;  %23341 = vst [vmem:[#allocation377_spill] sm:$0xff] %v16966_v15  ;;  %v16976_v44 = vld [vmem:[%s22730_s3 + $0xba8] sm:$0xff]  ;;  %v16981_v28 = vld [vmem:[%s22730_s3 + $0xbb0] sm:$0xff] }
  0xbc   :  { %23342 = vst [vmem:[#allocation378_spill] sm:$0xff] %v16971_v59  ;;  %23343 = vst [vmem:[#allocation379_spill] sm:$0xff] %v16976_v44  ;;  %v16986_v46 = vld [vmem:[%s22730_s3 + $0xbb8] sm:$0xff]  ;;  %v16991_v15 = vld [vmem:[%s22730_s3 + $0xbc0] sm:$0xff] }
  0xbd   :  { %23344 = vst [vmem:[#allocation380_spill] sm:$0xff] %v16981_v28  ;;  %23345 = vst [vmem:[#allocation381_spill] sm:$0xff] %v16986_v46  ;;  %v16996_v59 = vld [vmem:[%s22730_s3 + $0xbc8] sm:$0xff]  ;;  %v17001_v44 = vld [vmem:[%s22730_s3 + $0xbd0] sm:$0xff] }
  0xbe   :  { %23346 = vst [vmem:[#allocation382_spill] sm:$0xff] %v16991_v15  ;;  %23347 = vst [vmem:[#allocation383_spill] sm:$0xff] %v16996_v59  ;;  %v17006_v28 = vld [vmem:[%s22730_s3 + $0xbd8] sm:$0xff]  ;;  %v17011_v46 = vld [vmem:[%s22730_s3 + $0xbe0] sm:$0xff] }
  0xbf   :  { %23348 = vst [vmem:[#allocation384_spill] sm:$0xff] %v17001_v44  ;;  %23349 = vst [vmem:[#allocation385_spill] sm:$0xff] %v17006_v28  ;;  %v17016_v15 = vld [vmem:[%s22730_s3 + $0xbe8] sm:$0xff]  ;;  %v17021_v59 = vld [vmem:[%s22730_s3 + $0xbf0] sm:$0xff] }
  0xc0   :  { %23350 = vst [vmem:[#allocation386_spill] sm:$0xff] %v17011_v46  ;;  %23351 = vst [vmem:[#allocation387_spill] sm:$0xff] %v17016_v15  ;;  %v17026_v44 = vld [vmem:[%s22730_s3 + $0xbf8] sm:$0xff]  ;;  %v17031_v28 = vld [vmem:[%s22730_s3 + $0xc00] sm:$0xff] }
  0xc1   :  { %23352 = vst [vmem:[#allocation388_spill] sm:$0xff] %v17021_v59  ;;  %23353 = vst [vmem:[#allocation389_spill] sm:$0xff] %v17026_v44  ;;  %v17036_v46 = vld [vmem:[%s22730_s3 + $0xc08] sm:$0xff]  ;;  %v17041_v15 = vld [vmem:[%s22730_s3 + $0xc10] sm:$0xff] }
  0xc2   :  { %23354 = vst [vmem:[#allocation390_spill] sm:$0xff] %v17031_v28  ;;  %23355 = vst [vmem:[#allocation391_spill] sm:$0xff] %v17036_v46  ;;  %v17046_v59 = vld [vmem:[%s22730_s3 + $0xc18] sm:$0xff]  ;;  %v17051_v44 = vld [vmem:[%s22730_s3 + $0xc20] sm:$0xff] }
  0xc3   :  { %23356 = vst [vmem:[#allocation392_spill] sm:$0xff] %v17041_v15  ;;  %23357 = vst [vmem:[#allocation393_spill] sm:$0xff] %v17046_v59  ;;  %v17056_v28 = vld [vmem:[%s22730_s3 + $0xc28] sm:$0xff]  ;;  %v17061_v46 = vld [vmem:[%s22730_s3 + $0xc30] sm:$0xff] }
  0xc4   :  { %23358 = vst [vmem:[#allocation394_spill] sm:$0xff] %v17051_v44  ;;  %23359 = vst [vmem:[#allocation395_spill] sm:$0xff] %v17056_v28  ;;  %v17066_v15 = vld [vmem:[%s22730_s3 + $0xc38] sm:$0xff]  ;;  %v17071_v59 = vld [vmem:[%s22730_s3 + $0xc40] sm:$0xff] }
  0xc5   :  { %23360 = vst [vmem:[#allocation396_spill] sm:$0xff] %v17061_v46  ;;  %23361 = vst [vmem:[#allocation397_spill] sm:$0xff] %v17066_v15  ;;  %v17076_v44 = vld [vmem:[%s22730_s3 + $0xc48] sm:$0xff]  ;;  %v17081_v28 = vld [vmem:[%s22730_s3 + $0xc50] sm:$0xff] }
  0xc6   :  { %23362 = vst [vmem:[#allocation398_spill] sm:$0xff] %v17071_v59  ;;  %23363 = vst [vmem:[#allocation399_spill] sm:$0xff] %v17076_v44  ;;  %v17086_v46 = vld [vmem:[%s22730_s3 + $0xc58] sm:$0xff]  ;;  %v17091_v15 = vld [vmem:[%s22730_s3 + $0xc60] sm:$0xff] }
  0xc7   :  { %23364 = vst [vmem:[#allocation400_spill] sm:$0xff] %v17081_v28  ;;  %23365 = vst [vmem:[#allocation401_spill] sm:$0xff] %v17086_v46  ;;  %v17096_v59 = vld [vmem:[%s22730_s3 + $0xc68] sm:$0xff]  ;;  %v17101_v44 = vld [vmem:[%s22730_s3 + $0xc70] sm:$0xff] }
  0xc8   :  { %23366 = vst [vmem:[#allocation402_spill] sm:$0xff] %v17091_v15  ;;  %23367 = vst [vmem:[#allocation403_spill] sm:$0xff] %v17096_v59  ;;  %v17106_v28 = vld [vmem:[%s22730_s3 + $0xc78] sm:$0xff] }
  0xc9   :  { %23368 = vst [vmem:[#allocation404_spill] sm:$0xff] %v17101_v44  ;;  %23369 = vst [vmem:[#allocation405_spill] sm:$0xff] %v17106_v28 }
  0xca   :  { %866 = vsyncadd [#allocation3], 51200  ;;  %v873_v46 = vld [vmem:[%s22728_s1 + $0x8] sm:$0xff]  ;;  %v876_v15 = vld [vmem:[%s22728_s1 + $0x20] sm:$0xff]  ;;  %v22736_v59 = vmov 0.0|0.0   ;;  %vm15055_vm0 = vmmov 0  }
  0xcb   :  { %13540 = vmatprep.subr.bf16.mxu1 %v22736_v59  ;;  %v17115_v30 = vpack.c.bf16 %v876_v15, %v873_v46  ;;  %v874_v44 = vld [vmem:[%s22728_s1 + $0x10] sm:$0xff]  ;;  %v877_v28 = vld [vmem:[%s22728_s1 + $0x28] sm:$0xff]  ;;  %v872_v29 = vld [vmem:[%s22728_s1] sm:$0xff]  ;;  %v22738_v3 = vmov 0.0   ;;  %vm912_vm1 = vcmask 1042432   ;;  %vm15057_vm2 = vmmov 1  }
  0xcc   :  { %v17126_v63 = vpack.c.bf16 %v877_v28, %v874_v44  ;;  %v875_v59 = vld [vmem:[%s22728_s1 + $0x18] sm:$0xff]  ;;  %v882_v46 = vld [vmem:[%s22728_s1 + $0x50] sm:$0xff]  ;;  %12853 = vmatprep.mubr.msk.f32.mxu1 %vm15055_vm0, %v22738_v3  ;;  %986 = vmatprep.mubr.f32.mxu0 %v22738_v3  ;;  %v880_v2 = vld [vmem:[%s22728_s1 + $0x40] sm:$0xff]  ;;  %vm902_vm4 = vcmask 613376   ;;  %vm1141_vm5 = vcmask 1046528   ;;  %vm1365_vm6 = vcmask 1045504  }
  0xcd   :  { %v879_v15 = vld [vmem:[%s22728_s1 + $0x38] sm:$0xff]  ;;  %13519 = vmatprep.subr.bf16.mxu0 %v17115_v30  ;;  %v17141_v28 = vpack.c.bf16 %v875_v59, %v872_v29  ;;  %v878_v13 = vld [vmem:[%s22728_s1 + $0x30] sm:$0xff]  ;;  %v881_v29 = vld [vmem:[%s22728_s1 + $0x48] sm:$0xff]  ;;  %vm1590_vm7 = vcmask 1044480   ;;  %s15059_s16 = smov 96   ;;  %vm1821_vm8 = vcmask 916480  }
  0xce   :  { %v17143_v44 = vpack.c.bf16 %v882_v46, %v879_v15  ;;  %v883_v48 = vld [vmem:[%s22728_s1 + $0x58] sm:$0xff]  ;;  %13542 = vmatpush3.bf16.msra.mxu1 %v17126_v63  ;;  %v885_v59 = vld [vmem:[%s22728_s1 + $0x68] sm:$0xff]  ;;  %v888_v15 = vld [vmem:[%s22728_s1 + $0x80] sm:$0xff]  ;;  %v23370_v46 = vmov 0.0|0.0   ;;  %v17168_v11 = vpack.c.bf16 %v881_v29, %v878_v13  ;;  %vm1864_vm9 = vcmask 785408  }
  0xcf   :  { %v17155_v3 = vpack.c.bf16 %v883_v48, %v880_v2  ;;  %13521 = vmatpush1.bf16.msra.mxu0 %v17141_v28  ;;  %13543 = vmatprep.subr.bf16.mxu1 %v23370_v46  ;;  %v886_v2 = vld [vmem:[%s22728_s1 + $0x70] sm:$0xff]  ;;  %v889_v48 = vld [vmem:[%s22728_s1 + $0x88] sm:$0xff]  ;;  %v17177_v32 = vpack.c.bf16 %v888_v15, %v885_v59  ;;  %v884_v8 = vld [vmem:[%s22728_s1 + $0x60] sm:$0xff] }
  0xd0   :  { %13523 = vmatprep.subr.bf16.mxu0 %v17143_v44  ;;  %v887_v13 = vld [vmem:[%s22728_s1 + $0x78] sm:$0xff]  ;;  %v894_v7 = vld [vmem:[%s22728_s1 + $0xb0] sm:$0xff]  ;;  %v17192_v59 = vpack.c.bf16 %v889_v48, %v886_v2  ;;  %v892_v12 = vld [vmem:[%s22728_s1 + $0xa0] sm:$0xff] }
  0xd1   :  { %v891_v29 = vld [vmem:[%s22728_s1 + $0x98] sm:$0xff]  ;;  %v17196_v15 = vpack.c.bf16 %v887_v13, %v884_v8  ;;  %v890_v2 = vld [vmem:[%s22728_s1 + $0x90] sm:$0xff]  ;;  %v893_v8 = vld [vmem:[%s22728_s1 + $0xa8] sm:$0xff] }
  0xd2   :  { %13545 = vmatpush3.bf16.msra.mxu1 %v17155_v3  ;;  %v895_v27 = vld [vmem:[%s22728_s1 + $0xb8] sm:$0xff]  ;;  %v17205_v23 = vpack.c.bf16 %v894_v7, %v891_v29  ;;  %v897_v48 = vld [vmem:[%s22728_s1 + $0xc8] sm:$0xff]  ;;  %v900_v13 = vld [vmem:[%s22728_s1 + $0xe0] sm:$0x7]  ;;  %v17224_v29 = vpack.c.bf16 %v893_v8, %v890_v2 }
  0xd3   :  { %13525 = vmatpush1.bf16.msra.mxu0 %v17168_v11  ;;  %13546 = vmatprep.subr.bf16.mxu1 %v23370_v46  ;;  %v17220_v7 = vpack.c.bf16 %v895_v27, %v892_v12  ;;  %v898_v38 = vld [vmem:[%s22728_s1 + $0xd0] sm:$0xff]  ;;  %v901_v18 = vld [vmem:[%s22728_s1 + $0xe8] sm:$0x7]  ;;  %v17233_v22 = vpack.c.bf16 %v900_v13, %v897_v48  ;;  %v896_v12 = vld [vmem:[%s22728_s1 + $0xc0] sm:$0xff] }
  0xd4   :  { %13527 = vmatprep.subr.bf16.mxu0 %v17177_v32  ;;  %v899_v27 = vld [vmem:[%s22728_s1 + $0xd8] sm:$0x7]  ;;  %vm17242_vm3 = vmpackc.low %vm912_vm1, %vm15057_vm2  ;;  %v11937_v48 = vld [vmem:[%s22728_s1 + $0x110] sm:$0xff]  ;;  %v17253_v13 = vpack.c.bf16 %v901_v18, %v898_v38 }
  0xd5   :  { %v11934_v8 = vld [vmem:[%s22728_s1 + $0xf8] sm:$0xff]  ;;  %v17257_v17 = vpack.c.bf16 %v899_v27, %v896_v12  ;;  %v11935_v33 = vld [vmem:[%s22728_s1 + $0x100] sm:$0xff]  ;;  %v11933_v38 = vld [vmem:[%s22728_s1 + $0xf0] sm:$0xff] }
  0xd6   :  { %13548 = vmatpush3.bf16.msra.mxu1 %v17192_v59  ;;  %v11938_v1 = vld [vmem:[%s22728_s1 + $0x118] sm:$0xff]  ;;  %v17268_v18 = vpack.c.bf16 %v11937_v48, %v11934_v8  ;;  %v11936_v12 = vld [vmem:[%s22728_s1 + $0x108] sm:$0xff]  ;;  %v11943_v5 = vld [vmem:[%s22728_s1 + $0x140] sm:$0xff] }
  0xd7   :  { %13529 = vmatpush1.bf16.msra.mxu0 %v17196_v15  ;;  %13549 = vmatprep.subr.bf16.mxu1 %v23370_v46  ;;  %v11940_v27 = vld [vmem:[%s22728_s1 + $0x128] sm:$0xff]  ;;  %v17288_v8 = vld [vmem:[%s22727_s0] sm:$0xff]  ;;  %v17290_v48 = vpack.c.bf16 %v11938_v1, %v11935_v33  ;;  %v17296_v43 = vpack.c.bf16 %v11936_v12, %v11933_v38  ;;  %v11941_v47 = vld [vmem:[%s22728_s1 + $0x130] sm:$0xff] }
  0xd8   :  { %13531 = vmatprep.subr.bf16.mxu0 %v17205_v23  ;;  %v11944_v37 = vld [vmem:[%s22728_s1 + $0x148] sm:$0xff]  ;;  %v17305_v1 = vpack.c.bf16 %v11943_v5, %v11940_v27  ;;  %v11939_v33 = vld [vmem:[%s22728_s1 + $0x120] sm:$0xff]  ;;  %v11942_v38 = vld [vmem:[%s22728_s1 + $0x138] sm:$0xff] }
  0xd9   :  { %v11946_v12 = vld [vmem:[%s22728_s1 + $0x158] sm:$0xff]  ;;  %v11949_v5 = vld [vmem:[%s22728_s1 + $0x170] sm:$0xff]  ;;  %v17324_v27 = vpack.c.bf16 %v11944_v37, %v11941_v47  ;;  %v17329_v0 = vld [vmem:[%s22727_s0 + $0x8] sm:$0xff]  ;;  %v17333_v6 = vpack.c.bf16 %v11942_v38, %v11939_v33  ;;  %v23373_v38 = vmov 0.0  }
  0xda   :  { %13551 = vmatpush3.bf16.msra.mxu1 %v17220_v7  ;;  %v11947_v42 = vld [vmem:[%s22728_s1 + $0x160] sm:$0xff]  ;;  %v11950_v37 = vld [vmem:[%s22728_s1 + $0x178] sm:$0xff]  ;;  %v17342_v47 = vpack.c.bf16 %v11949_v5, %v11946_v12  ;;  %v11945_v53 = vld [vmem:[%s22728_s1 + $0x150] sm:$0xff]  ;;  %v1143_v36 = vrot.slane %v17329_v0, 1 }
  0xdb   :  { %13533 = vmatpush1.bf16.msra.mxu0 %v17224_v29  ;;  %13552 = vmatprep.subr.bf16.mxu1 %v23370_v46  ;;  %v11948_v33 = vld [vmem:[%s22728_s1 + $0x168] sm:$0xff]  ;;  %v11955_v5 = vld [vmem:[%s22728_s1 + $0x1a0] sm:$0xff]  ;;  %v17362_v57 = vpack.c.bf16 %v11950_v37, %v11947_v42  ;;  %v17369_v10 = vld [vmem:[%s22727_s0 + $0x10] sm:$0xff] }
  0xdc   :  { %13536 = vmatprep.subr.msk.bf16.mxu0 %vm17242_vm3, %v17233_v22  ;;  %v11952_v12 = vld [vmem:[%s22728_s1 + $0x188] sm:$0xff]  ;;  %v17373_v26 = vpack.c.bf16 %v11948_v33, %v11945_v53  ;;  %v11953_v16 = vld [vmem:[%s22728_s1 + $0x190] sm:$0xff]  ;;  %v11951_v52 = vld [vmem:[%s22728_s1 + $0x180] sm:$0xff]  ;;  %v1145_v19 = vrot.slane %v17369_v10, 1  ;;  %v1369_v56 = vrot.slane %v17369_v10, 2 }
  0xdd   :  { %v11956_v42 = vld [vmem:[%s22728_s1 + $0x1a8] sm:$0xff]  ;;  %v17382_v37 = vpack.c.bf16 %v11955_v5, %v11952_v12  ;;  %v11954_v53 = vld [vmem:[%s22728_s1 + $0x198] sm:$0xff]  ;;  %v11961_v12 = vld [vmem:[%s22728_s1 + $0x1d0] sm:$0x7] }
  0xde   :  { %13555 = vmatpush3.bf16.msk.msra.mxu1 %vm17242_vm3, %v17253_v13  ;;  %v11958_v33 = vld [vmem:[%s22728_s1 + $0x1b8] sm:$0xff]  ;;  %v17402_v5 = vpack.c.bf16 %v11956_v42, %v11953_v16  ;;  %v17408_v58 = vpack.c.bf16 %v11954_v53, %v11951_v52  ;;  %v11959_v21 = vld [vmem:[%s22728_s1 + $0x1c0] sm:$0xff]  ;;  %v11957_v42 = vld [vmem:[%s22728_s1 + $0x1b0] sm:$0xff] }
  0xdf   :  { %13539 = vmatpush1.bf16.msk.msra.mxu0 %vm17242_vm3, %v17257_v17  ;;  %13578 = vmatprep.subr.bf16.mxu1 %v23370_v46  ;;  %v11962_v20 = vld [vmem:[%s22728_s1 + $0x1d8] sm:$0x7]  ;;  %v17417_v16 = vpack.c.bf16 %v11961_v12, %v11958_v33  ;;  %v11960_v52 = vld [vmem:[%s22728_s1 + $0x1c8] sm:$0x7]  ;;  %v11976_v33 = vld [vmem:[%s22728_s1 + $0x200] sm:$0xff]  ;;  %v1142_v12 = vrot.slane %v17288_v8, 1 }
  0xe0   :  { %13557 = vmatprep.subr.bf16.mxu0 %v17268_v18  ;;  %v11973_v53 = vld [vmem:[%s22728_s1 + $0x1e8] sm:$0xff]  ;;  %v17437_v62 = vpack.c.bf16 %v11962_v20, %v11959_v21  ;;  %v17441_v34 = vpack.c.bf16 %v11960_v52, %v11957_v42  ;;  %v11974_v39 = vld [vmem:[%s22728_s1 + $0x1f0] sm:$0xff]  ;;  %v11972_v21 = vld [vmem:[%s22728_s1 + $0x1e0] sm:$0xff] }
  0xe1   :  { %12854 = vmatmul.mubr.msk.f32.vlgmr.msra.gmra.mrb[0].mxu1 %vm902_vm4, %v17288_v8  ;;  %v11977_v31 = vld [vmem:[%s22728_s1 + $0x208] sm:$0xff]  ;;  %v17452_v20 = vpack.c.bf16 %v11976_v33, %v11973_v53  ;;  %v11975_v42 = vld [vmem:[%s22728_s1 + $0x1f8] sm:$0xff]  ;;  %v11982_v25 = vld [vmem:[%s22728_s1 + $0x230] sm:$0xff]  ;;  %v1144_v53 = vsel %vm1141_vm5, %v1142_v12, %v1143_v36 }
  0xe2   :  { %13580 = vmatpush3.bf16.msra.mxu1 %v17290_v48  ;;  %11926 = vmatmul.mubr.msk.f32.vlgmr.msra.gmra.mrb[0].mxu0 %vm902_vm4, %v17288_v8  ;;  %v11979_v52 = vld [vmem:[%s22728_s1 + $0x218] sm:$0xff]  ;;  %v17470_v33 = vpack.c.bf16 %v11977_v31, %v11974_v39  ;;  %v17477_v24 = vpack.c.bf16 %v11975_v42, %v11972_v21  ;;  %v11980_v49 = vld [vmem:[%s22728_s1 + $0x220] sm:$0xff]  ;;  %v11978_v39 = vld [vmem:[%s22728_s1 + $0x210] sm:$0xff] }
  0xe3   :  { %13559 = vmatpush1.bf16.msra.mxu0 %v17296_v43  ;;  %13581 = vmatprep.subr.bf16.mxu1 %v23370_v46  ;;  %v11983_v12 = vld [vmem:[%s22728_s1 + $0x238] sm:$0xff]  ;;  %v17486_v31 = vpack.c.bf16 %v11982_v25, %v11979_v52  ;;  %v11981_v21 = vld [vmem:[%s22728_s1 + $0x228] sm:$0xff]  ;;  %v11988_v41 = vld [vmem:[%s22728_s1 + $0x260] sm:$0xff]  ;;  %v1146_v52 = vsel %vm1141_vm5, %v1143_v36, %v1145_v19 }
  0xe4   :  { %13561 = vmatprep.subr.bf16.mxu0 %v17305_v1  ;;  %12856 = vmatprep.mubr.msk.f32.mxu1 %vm15055_vm0, %v23373_v38  ;;  %v11985_v42 = vld [vmem:[%s22728_s1 + $0x248] sm:$0xff]  ;;  %v17503_v25 = vpack.c.bf16 %v11983_v12, %v11980_v49  ;;  %v17508_v45 = vpack.c.bf16 %v11981_v21, %v11978_v39  ;;  %v11986_v35 = vld [vmem:[%s22728_s1 + $0x250] sm:$0xff]  ;;  %v11984_v36 = vld [vmem:[%s22728_s1 + $0x240] sm:$0xff] }
  0xe5   :  { %992 = vmatprep.mubr.f32.mxu0 %v23373_v38  ;;  %12857 = vmatmul.mubr.msk.f32.gmra.mrb[2].mxu1 %vm902_vm4, %v17329_v0  ;;  %v11989_v54 = vld [vmem:[%s22728_s1 + $0x268] sm:$0xff]  ;;  %v17517_v49 = vpack.c.bf16 %v11988_v41, %v11985_v42  ;;  %v11991_v41 = vld [vmem:[%s22728_s1 + $0x278] sm:$0xff]  ;;  %v11994_v12 = vld [vmem:[%s22728_s1 + $0x290] sm:$0xff] }
  0xe6   :  { %13583 = vmatpush3.bf16.msra.mxu1 %v17324_v27  ;;  %11927 = vmatmul.mubr.msk.f32.gmra.mrb[2].mxu0 %vm902_vm4, %v17329_v0  ;;  %v17536_v39 = vpack.c.bf16 %v11989_v54, %v11986_v35  ;;  %v11992_v42 = vld [vmem:[%s22728_s1 + $0x280] sm:$0xff]  ;;  %v11995_v4 = vld [vmem:[%s22728_s1 + $0x298] sm:$0xff]  ;;  %v17550_v35 = vpack.c.bf16 %v11994_v12, %v11991_v41  ;;  %v11990_v54 = vld [vmem:[%s22728_s1 + $0x270] sm:$0xff] }
  0xe7   :  { %13563 = vmatpush1.bf16.msra.mxu0 %v17333_v6  ;;  %13584 = vmatprep.subr.bf16.mxu1 %v23370_v46  ;;  %v17569_v41 = vpack.c.bf16 %v11995_v4, %v11992_v42  ;;  %v11998_v40 = vld [vmem:[%s22728_s1 + $0x2b0] sm:$0xff]  ;;  %v12001_v51 = vld [vmem:[%s22728_s1 + $0x2c8] sm:$0x7]  ;;  %v11999_v42 = vld [vmem:[%s22728_s1 + $0x2b8] sm:$0x7] }
  0xe8   :  { %13565 = vmatprep.subr.bf16.mxu0 %v17342_v47  ;;  %12859 = vmatprep.mubr.msk.f32.mxu1 %vm15055_vm0, %v23373_v38  ;;  %v17603_v61 = vpack.c.bf16 %v12001_v51, %v11998_v40  ;;  %v12013_v14 = vld [vmem:[%s22728_s1 + $0x2e0] sm:$0xff]  ;;  %v12016_v60 = vld [vmem:[%s22728_s1 + $0x2f8] sm:$0xff]  ;;  %v12011_v51 = vld [vmem:[%s22728_s1 + $0x2d0] sm:$0xff] }
  0xe9   :  { %998 = vmatprep.mubr.f32.mxu0 %v23373_v38  ;;  %12860 = vmatmul.mubr.msk.f32.gmra.mrb[4].mxu1 %vm902_vm4, %v17369_v10  ;;  %v12021_v50 = vld [vmem:[%s22728_s1 + $0x320] sm:$0xff] }
  0xea   :  { %13586 = vmatpush3.bf16.msra.mxu1 %v17362_v57  ;;  %11928 = vmatmul.mubr.msk.f32.gmra.mrb[4].mxu0 %vm902_vm4, %v17369_v10  ;;  %23375 = vst [vmem:[#allocation407_spill] sm:$0xff] %v17603_v61 }
  0xeb   :  { %13567 = vmatpush1.bf16.msra.mxu0 %v17373_v26  ;;  %13587 = vmatprep.subr.bf16.mxu1 %v23370_v46 }
  0xec   :  { %13569 = vmatprep.subr.bf16.mxu0 %v17382_v37  ;;  %12882 = vmatprep.mubr.msk.f32.mxu1 %vm15055_vm0, %v23373_v38 }
  0xed   :  { %1226 = vmatprep.mubr.f32.mxu0 %v23373_v38 }
  0xee   :  { %13589 = vmatpush3.bf16.msra.mxu1 %v17402_v5 }
  0xef   :  { %13571 = vmatpush1.bf16.msra.mxu0 %v17408_v58  ;;  %13590 = vmatprep.subr.bf16.mxu1 %v23370_v46 }
  0xf0   :  { %13574 = vmatprep.subr.msk.bf16.mxu0 %vm17242_vm3, %v17417_v16 }
  0xf2   :  { %13593 = vmatpush3.bf16.msk.msra.mxu1 %vm17242_vm3, %v17437_v62 }
  0xf3   :  { %13577 = vmatpush1.bf16.msk.msra.mxu0 %vm17242_vm3, %v17441_v34  ;;  %13616 = vmatprep.subr.bf16.mxu1 %v23370_v46 }
  0xf4   :  { %13595 = vmatprep.subr.bf16.mxu0 %v17452_v20 }
  0xf5   :  { %12883 = vmatmul.mubr.msk.f32.vlgmr.msra.gmra.mrb[0].mxu1 %vm902_vm4, %v1144_v53 }
  0xf6   :  { %13618 = vmatpush3.bf16.msra.mxu1 %v17470_v33  ;;  %11965 = vmatmul.mubr.msk.f32.vlgmr.msra.gmra.mrb[0].mxu0 %vm902_vm4, %v1144_v53  ;;  %v11987_v53 = vld [vmem:[%s22728_s1 + $0x258] sm:$0xff] }
  0xf7   :  { %13597 = vmatpush1.bf16.msra.mxu0 %v17477_v24  ;;  %13619 = vmatprep.subr.bf16.mxu1 %v23370_v46  ;;  %v17541_v21 = vpack.c.bf16 %v11987_v53, %v11984_v36  ;;  %v11997_v36 = vld [vmem:[%s22728_s1 + $0x2a8] sm:$0xff]  ;;  %v12000_v53 = vld [vmem:[%s22728_s1 + $0x2c0] sm:$0x7] }
  0xf8   :  { %13599 = vmatprep.subr.bf16.mxu0 %v17486_v31  ;;  %12885 = vmatprep.mubr.msk.f32.mxu1 %vm15055_vm0, %v23373_v38  ;;  %v17583_v4 = vpack.c.bf16 %v12000_v53, %v11997_v36  ;;  %v1366_v36 = vrot.slane %v17288_v8, 2  ;;  %v1367_v53 = vrot.slane %v17329_v0, 2 }
  0xf9   :  { %1232 = vmatprep.mubr.f32.mxu0 %v23373_v38  ;;  %12886 = vmatmul.mubr.msk.f32.gmra.mrb[2].mxu1 %vm902_vm4, %v1146_v52 }
  0xfa   :  { %13621 = vmatpush3.bf16.msra.mxu1 %v17503_v25  ;;  %11966 = vmatmul.mubr.msk.f32.gmra.mrb[2].mxu0 %vm902_vm4, %v1146_v52  ;;  %v11993_v52 = vld [vmem:[%s22728_s1 + $0x288] sm:$0xff]  ;;  %23374 = vst [vmem:[#allocation406_spill] sm:$0xff] %v17583_v4 }
  0xfb   :  { %13601 = vmatpush1.bf16.msra.mxu0 %v17508_v45  ;;  %13622 = vmatprep.subr.bf16.mxu1 %v23370_v46  ;;  %v17574_v12 = vpack.c.bf16 %v11993_v52, %v11990_v54  ;;  %v12012_v54 = vld [vmem:[%s22728_s1 + $0x2d8] sm:$0xff]  ;;  %v12015_v52 = vld [vmem:[%s22728_s1 + $0x2f0] sm:$0xff] }
  0xfc   :  { %13603 = vmatprep.subr.bf16.mxu0 %v17517_v49  ;;  %12888 = vmatprep.mubr.msk.f32.mxu1 %vm15055_vm0, %v23373_v38  ;;  %v17618_v40 = vpack.c.bf16 %v12015_v52, %v12012_v54  ;;  %v1368_v54 = vsel %vm1365_vm6, %v1366_v36, %v1367_v53  ;;  %v17636_v52 = vpack.c.bf16 %v12016_v60, %v12013_v14  ;;  %v12022_v36 = vld [vmem:[%s22728_s1 + $0x328] sm:$0xff]  ;;  %v12017_v60 = vld [vmem:[%s22728_s1 + $0x300] sm:$0xff] }
  0xfd   :  { %1238 = vmatprep.mubr.f32.mxu0 %v23373_v38  ;;  %12889 = vmatmul.mubr.msk.f32.gmra.mrb[4].mxu1 %vm902_vm4, %v1145_v19 }
  0xfe   :  { %13624 = vmatpush3.bf16.msra.mxu1 %v17536_v39  ;;  %11967 = vmatmul.mubr.msk.f32.gmra.mrb[4].mxu0 %vm902_vm4, %v1145_v19  ;;  %v11996_v19 = vld [vmem:[%s22728_s1 + $0x2a0] sm:$0xff]  ;;  %23377 = vst [vmem:[#allocation409_spill] sm:$0xff] %v17618_v40  ;;  %23378 = vst [vmem:[#allocation410_spill] sm:$0xff] %v17636_v52 }
  0xff   :  { %13605 = vmatpush1.bf16.msra.mxu0 %v17541_v21  ;;  %13625 = vmatprep.subr.bf16.mxu1 %v23370_v46  ;;  %v17607_v55 = vpack.c.bf16 %v11999_v42, %v11996_v19  ;;  %v12014_v19 = vld [vmem:[%s22728_s1 + $0x2e8] sm:$0xff] }
 0x100   :  { %13607 = vmatprep.subr.bf16.mxu0 %v17550_v35  ;;  %12911 = vmatprep.mubr.msk.f32.mxu1 %vm15055_vm0, %v23373_v38  ;;  %v12018_v42 = vld [vmem:[%s22728_s1 + $0x308] sm:$0xff]  ;;  %v17643_v9 = vpack.c.bf16 %v12014_v19, %v12011_v51  ;;  %v12020_v51 = vld [vmem:[%s22728_s1 + $0x318] sm:$0xff] }
 0x101   :  { %1450 = vmatprep.mubr.f32.mxu0 %v23373_v38  ;;  %23376 = vst [vmem:[#allocation408_spill] sm:$0xff] %v17607_v55  ;;  %v17652_v14 = vpack.c.bf16 %v12021_v50, %v12018_v42  ;;  %v12024_v19 = vld [vmem:[%s22728_s1 + $0x338] sm:$0xff]  ;;  %v1370_v42 = vsel %vm1365_vm6, %v1367_v53, %v1369_v56  ;;  %v12023_v53 = vld [vmem:[%s22728_s1 + $0x330] sm:$0xff] }
 0x102   :  { %13627 = vmatpush3.bf16.msra.mxu1 %v17569_v41 }
 0x103   :  { %13609 = vmatpush1.bf16.msra.mxu0 %v17574_v12  ;;  %13628 = vmatprep.subr.bf16.mxu1 %v23370_v46  ;;  %23379 = vst [vmem:[#allocation411_spill] sm:$0xff] %v17652_v14 }
 0x104   :  { %13612 = vmatprep.subr.msk.bf16.mxu0 %vm17242_vm3, %v17583_v4  ;;  %v12019_v4 = vld [vmem:[%s22728_s1 + $0x310] sm:$0xff] }
 0x105   :  { %v17669_v50 = vpack.c.bf16 %v12022_v36, %v12019_v4  ;;  %v12033_v36 = vld [vmem:[%s22728_s1 + $0x380] sm:$0xff] }
 0x106   :  { %13631 = vmatpush3.bf16.msk.msra.mxu1 %vm17242_vm3, %v17603_v61  ;;  %v12025_v61 = vld [vmem:[%s22728_s1 + $0x340] sm:$0xff] }
 0x107   :  { %13615 = vmatpush1.bf16.msk.msra.mxu0 %vm17242_vm3, %v17607_v55  ;;  %13654 = vmatprep.subr.bf16.mxu1 %v23370_v46  ;;  %v17674_v55 = vpack.c.bf16 %v12020_v51, %v12017_v60 }
 0x108   :  { %13633 = vmatprep.subr.bf16.mxu0 %v17618_v40  ;;  %v12027_v40 = vld [vmem:[%s22728_s1 + $0x350] sm:$0xff] }
 0x109   :  { %12912 = vmatmul.mubr.msk.f32.vlgmr.msra.gmra.mrb[0].mxu1 %vm902_vm4, %v1368_v54  ;;  %23380 = vst [vmem:[#allocation412_spill] sm:$0xff] %v17674_v55  ;;  %v17683_v4 = vpack.c.bf16 %v12027_v40, %v12024_v19  ;;  %v12030_v40 = vld [vmem:[%s22728_s1 + $0x368] sm:$0xff]  ;;  %v12031_v19 = vld [vmem:[%s22728_s1 + $0x370] sm:$0xff] }
 0x10a   :  { %13656 = vmatpush3.bf16.msra.mxu1 %v17636_v52  ;;  %12004 = vmatmul.mubr.msk.f32.vlgmr.msra.gmra.mrb[0].mxu0 %vm902_vm4, %v1368_v54  ;;  %v12028_v52 = vld [vmem:[%s22728_s1 + $0x358] sm:$0xff]  ;;  %v12026_v54 = vld [vmem:[%s22728_s1 + $0x348] sm:$0xff] }
 0x10b   :  { %13635 = vmatpush1.bf16.msra.mxu0 %v17643_v9  ;;  %13657 = vmatprep.subr.bf16.mxu1 %v23370_v46  ;;  %23381 = vst [vmem:[#allocation413_spill] sm:$0xff] %v17683_v4  ;;  %v17702_v60 = vpack.c.bf16 %v12028_v52, %v12025_v61  ;;  %v17707_v51 = vpack.c.bf16 %v12026_v54, %v12023_v53  ;;  %v12029_v52 = vld [vmem:[%s22728_s1 + $0x360] sm:$0xff]  ;;  %v12036_v53 = vld [vmem:[%s22728_s1 + $0x398] sm:$0xff]  ;;  %v12039_v54 = vld [vmem:[%s22728_s1 + $0x3b0] sm:$0x7] }
 0x10c   :  { %13637 = vmatprep.subr.bf16.mxu0 %v17652_v14  ;;  %12914 = vmatprep.mubr.msk.f32.mxu1 %vm15055_vm0, %v23373_v38  ;;  %v12034_v14 = vld [vmem:[%s22728_s1 + $0x388] sm:$0xff]  ;;  %v17716_v61 = vpack.c.bf16 %v12033_v36, %v12030_v40 }
 0x10d   :  { %1456 = vmatprep.mubr.f32.mxu0 %v23373_v38  ;;  %12915 = vmatmul.mubr.msk.f32.gmra.mrb[2].mxu1 %vm902_vm4, %v1370_v42  ;;  %v17735_v40 = vpack.c.bf16 %v12034_v14, %v12031_v19  ;;  %v17749_v14 = vpack.c.bf16 %v12039_v54, %v12036_v53  ;;  %v12038_v19 = vld [vmem:[%s22728_s1 + $0x3a8] sm:$0x7] }
 0x10e   :  { %13659 = vmatpush3.bf16.msra.mxu1 %v17669_v50  ;;  %12005 = vmatmul.mubr.msk.f32.gmra.mrb[2].mxu0 %vm902_vm4, %v1370_v42  ;;  %v12032_v42 = vld [vmem:[%s22728_s1 + $0x378] sm:$0xff] }
 0x10f   :  { %13639 = vmatpush1.bf16.msra.mxu0 %v17674_v55  ;;  %13660 = vmatprep.subr.bf16.mxu1 %v23370_v46  ;;  %v17740_v36 = vpack.c.bf16 %v12032_v42, %v12029_v52  ;;  %v12040_v55 = vld [vmem:[%s22728_s1 + $0x3b8] sm:$0x7]  ;;  %v1591_v52 = vrot.slane %v17288_v8, 3  ;;  %v1592_v42 = vrot.slane %v17329_v0, 3 }
 0x110   :  { %13641 = vmatprep.subr.bf16.mxu0 %v17683_v4  ;;  %12917 = vmatprep.mubr.msk.f32.mxu1 %vm15055_vm0, %v23373_v38  ;;  %v12037_v4 = vld [vmem:[%s22728_s1 + $0x3a0] sm:$0xff]  ;;  %v871_v8 = vld [vmem:[%s22727_s0 + $0x18] sm:$0x1] }
 0x111   :  { %1462 = vmatprep.mubr.f32.mxu0 %v23373_v38  ;;  %12918 = vmatmul.mubr.msk.f32.gmra.mrb[4].mxu1 %vm902_vm4, %v1369_v56  ;;  %v17763_v53 = vpack.c.bf16 %v12040_v55, %v12037_v4  ;;  %v1593_v0 = vsel %vm1590_vm7, %v1591_v52, %v1592_v42  ;;  %v1594_v55 = vrot.slane %v17369_v10, 3  ;;  %v1596_v4 = vrot.slane %v871_v8, 3 }
 0x112   :  { %13662 = vmatpush3.bf16.msra.mxu1 %v17702_v60  ;;  %12006 = vmatmul.mubr.msk.f32.gmra.mrb[4].mxu0 %vm902_vm4, %v1369_v56  ;;  %v12035_v56 = vld [vmem:[%s22728_s1 + $0x390] sm:$0xff] }
 0x113   :  { %13643 = vmatpush1.bf16.msra.mxu0 %v17707_v51  ;;  %13663 = vmatprep.subr.bf16.mxu1 %v23370_v46  ;;  %v17767_v54 = vpack.c.bf16 %v12038_v19, %v12035_v56  ;;  %v1595_v10 = vsel %vm1590_vm7, %v1592_v42, %v1594_v55 }
 0x114   :  { %13645 = vmatprep.subr.bf16.mxu0 %v17716_v61  ;;  %12940 = vmatprep.mubr.msk.f32.mxu1 %vm15055_vm0, %v23373_v38 }
 0x115   :  { %1677 = vmatprep.mubr.f32.mxu0 %v23373_v38 }
 0x116   :  { %13665 = vmatpush3.bf16.msra.mxu1 %v17735_v40 }
 0x117   :  { %13647 = vmatpush1.bf16.msra.mxu0 %v17740_v36  ;;  %13666 = vmatprep.subr.bf16.mxu1 %v23370_v46 }
 0x118   :  { %13650 = vmatprep.subr.msk.bf16.mxu0 %vm17242_vm3, %v17749_v14 }
 0x11a   :  { %13669 = vmatpush3.bf16.msk.msra.mxu1 %vm17242_vm3, %v17763_v53 }
 0x11b   :  { %13653 = vmatpush1.bf16.msk.msra.mxu0 %vm17242_vm3, %v17767_v54  ;;  %13692 = vmatprep.subr.bf16.mxu1 %v23370_v46 }
 0x11c   :  { %13671 = vmatprep.subr.bf16.mxu0 %v17115_v30  ;;  %v1597_v30 = vsel %vm1590_vm7, %v1594_v55, %v1596_v4 }
 0x11d   :  { %12941 = vmatmul.mubr.msk.f32.vlgmr.msra.gmra.mrb[0].mxu1 %vm902_vm4, %v1593_v0 }
 0x11e   :  { %12043 = vmatmul.mubr.msk.f32.vlgmr.msra.gmra.mrb[0].mxu0 %vm902_vm4, %v1593_v0  ;;  %13694 = vmatpush3.bf16.msra.mxu1 %v17126_v63  ;;  %v23385_v63 = vld [vmem:[#allocation409_spill] sm:$0xff] }
 0x11f   :  { %13673 = vmatpush1.bf16.msra.mxu0 %v17141_v28  ;;  %12943 = vmatprep.mubr.msk.f32.mxu1 %vm15055_vm0, %v23373_v38  ;;  %v23386_v28 = vld [vmem:[#allocation410_spill] sm:$0xff] }
 0x120   :  { %1683 = vmatprep.mubr.f32.mxu0 %v23373_v38  ;;  %13695 = vmatprep.subr.bf16.mxu1 %v23370_v46 }
 0x121   :  { %12944 = vmatmul.mubr.msk.f32.gmra.mrb[2].mxu1 %vm902_vm4, %v1595_v10  ;;  %13675 = vmatprep.subr.bf16.mxu0 %v17143_v44 }
 0x122   :  { %12044 = vmatmul.mubr.msk.f32.gmra.mrb[2].mxu0 %vm902_vm4, %v1595_v10  ;;  %13697 = vmatpush3.bf16.msra.mxu1 %v17155_v3  ;;  %v17826_v3 = vld [vmem:[%s22727_s0 + $0x20] sm:$0xff] }
 0x123   :  { %13677 = vmatpush1.bf16.msra.mxu0 %v17168_v11  ;;  %12946 = vmatprep.mubr.msk.f32.mxu1 %vm15055_vm0, %v23373_v38  ;;  %v17841_v11 = vld [vmem:[%s22727_s0 + $0x28] sm:$0xff] }
 0x124   :  { %1689 = vmatprep.mubr.f32.mxu0 %v23373_v38  ;;  %13698 = vmatprep.subr.bf16.mxu1 %v23370_v46 }
 0x125   :  { %12947 = vmatmul.mubr.msk.f32.gmra.mrb[4].mxu1 %vm902_vm4, %v1597_v30  ;;  %13679 = vmatprep.subr.bf16.mxu0 %v17177_v32 }
 0x126   :  { %12045 = vmatmul.mubr.msk.f32.gmra.mrb[4].mxu0 %vm902_vm4, %v1597_v30  ;;  %13700 = vmatpush3.bf16.msra.mxu1 %v17192_v59  ;;  %v23387_v59 = vld [vmem:[#allocation411_spill] sm:$0xff] }
 0x127   :  { %13681 = vmatpush1.bf16.msra.mxu0 %v17196_v15  ;;  %13701 = vmatprep.subr.bf16.mxu1 %v23370_v46  ;;  %v23388_v15 = vld [vmem:[#allocation412_spill] sm:$0xff] }
 0x128   :  { %13683 = vmatprep.subr.bf16.mxu0 %v17205_v23  ;;  %12969 = vmatprep.mubr.msk.f32.mxu1 %vm15055_vm0, %v23373_v38 }
 0x129   :  { %2201 = vmatprep.mubr.f32.mxu0 %v23373_v38 }
 0x12a   :  { %13703 = vmatpush3.bf16.msra.mxu1 %v17220_v7  ;;  %v2677_v7 = vrot.slane %v17841_v11, 3 }
 0x12b   :  { %13685 = vmatpush1.bf16.msra.mxu0 %v17224_v29  ;;  %13704 = vmatprep.subr.bf16.mxu1 %v23370_v46  ;;  %v2676_v29 = vrot.slane %v17826_v3, 3 }
 0x12c   :  { %13688 = vmatprep.subr.msk.bf16.mxu0 %vm17242_vm3, %v17233_v22  ;;  %v2309_v22 = vrot.slane %v17826_v3, 1 }
 0x12e   :  { %13707 = vmatpush3.bf16.msk.msra.mxu1 %vm17242_vm3, %v17253_v13  ;;  %v2678_v13 = vsel %vm1590_vm7, %v2676_v29, %v2677_v7 }
 0x12f   :  { %13691 = vmatpush1.bf16.msk.msra.mxu0 %vm17242_vm3, %v17257_v17  ;;  %13730 = vmatprep.subr.bf16.mxu1 %v23370_v46  ;;  %v17857_v17 = vld [vmem:[%s22727_s0 + $0x30] sm:$0xff] }
 0x130   :  { %13709 = vmatprep.subr.bf16.mxu0 %v17268_v18  ;;  %v2679_v18 = vrot.slane %v17857_v17, 3 }
 0x131   :  { %12970 = vmatmul.mubr.msk.f32.vlgmr.msra.gmra.mrb[6].mxu1 %vm902_vm4, %v17826_v3 }
 0x132   :  { %13732 = vmatpush3.bf16.msra.mxu1 %v17290_v48  ;;  %12056 = vmatmul.mubr.msk.f32.vlgmr.msra.gmra.mrb[6].mxu0 %vm902_vm4, %v17826_v3  ;;  %v12053_v48 = vld [vmem:[%s22727_s0 + $0x38] sm:$0x1] }
 0x133   :  { %13711 = vmatpush1.bf16.msra.mxu0 %v17296_v43  ;;  %13733 = vmatprep.subr.bf16.mxu1 %v23370_v46  ;;  %v23382_v43 = vld [vmem:[#allocation406_spill] sm:$0xff] }
 0x134   :  { %13713 = vmatprep.subr.bf16.mxu0 %v17305_v1  ;;  %12972 = vmatprep.mubr.msk.f32.mxu1 %vm15055_vm0, %v23373_v38  ;;  %v2680_v1 = vsel %vm1590_vm7, %v2677_v7, %v2679_v18 }
 0x135   :  { %2207 = vmatprep.mubr.f32.mxu0 %v23373_v38  ;;  %12973 = vmatmul.mubr.msk.f32.gmra.mrb[8].mxu1 %vm902_vm4, %v17841_v11 }
 0x136   :  { %13735 = vmatpush3.bf16.msra.mxu1 %v17324_v27  ;;  %12057 = vmatmul.mubr.msk.f32.gmra.mrb[8].mxu0 %vm902_vm4, %v17841_v11  ;;  %v2681_v27 = vrot.slane %v12053_v48, 3 }
 0x137   :  { %13715 = vmatpush1.bf16.msra.mxu0 %v17333_v6  ;;  %13736 = vmatprep.subr.bf16.mxu1 %v23370_v46  ;;  %v2310_v6 = vrot.slane %v17841_v11, 1 }
 0x138   :  { %13717 = vmatprep.subr.bf16.mxu0 %v17342_v47  ;;  %12975 = vmatprep.mubr.msk.f32.mxu1 %vm15055_vm0, %v23373_v38  ;;  %v2682_v2 = vsel %vm1590_vm7, %v2679_v18, %v2681_v27  ;;  %v1086_v47 = vlaneseq }
 0x139   :  { %2213 = vmatprep.mubr.f32.mxu0 %v23373_v38  ;;  %12976 = vmatmul.mubr.msk.f32.gmra.mrb[10].mxu1 %vm902_vm4, %v17857_v17  ;;  %v2311_v23 = vsel %vm1141_vm5, %v2309_v22, %v2310_v6 }
 0x13a   :  { %13738 = vmatpush3.bf16.msra.mxu1 %v17362_v57  ;;  %12058 = vmatmul.mubr.msk.f32.gmra.mrb[10].mxu0 %vm902_vm4, %v17857_v17 }
 0x13b   :  { %13719 = vmatpush1.bf16.msra.mxu0 %v17373_v26  ;;  %13739 = vmatprep.subr.bf16.mxu1 %v23370_v46  ;;  %v2312_v26 = vrot.slane %v17857_v17, 1 }
 0x13c   :  { %13721 = vmatprep.subr.bf16.mxu0 %v17382_v37  ;;  %12998 = vmatprep.mubr.msk.f32.mxu1 %vm15055_vm0, %v23373_v38  ;;  %v18001_v37 = vshrl.u32 %v1086_v47, 7 }
 0x13d   :  { %2384 = vmatprep.mubr.f32.mxu0 %v23373_v38  ;;  %v2313_v32 = vsel %vm1141_vm5, %v2310_v6, %v2312_v26 }
 0x13e   :  { %13741 = vmatpush3.bf16.msra.mxu1 %v17402_v5  ;;  %23390 = vst [vmem:[#allocation406_spill] sm:$0xff] %v18001_v37  ;;  %v22750_v5 = vsub.s32 2, %v18001_v37 }
 0x13f   :  { %13723 = vmatpush1.bf16.msra.mxu0 %v17408_v58  ;;  %13742 = vmatprep.subr.bf16.mxu1 %v23370_v46  ;;  %v2495_v58 = vrot.slane %v17857_v17, 2 }
 0x140   :  { %13726 = vmatprep.subr.msk.bf16.mxu0 %vm17242_vm3, %v17417_v16  ;;  %v867_v16 = vld [vmem:[%s22729_s2] sm:$0x7]  ;;  %s15058_s2 = smov 112  }
 0x142   :  { %13745 = vmatpush3.bf16.msk.msra.mxu1 %vm17242_vm3, %v17437_v62  ;;  %v23384_v62 = vld [vmem:[#allocation408_spill] sm:$0xff] }
 0x143   :  { %13729 = vmatpush1.bf16.msk.msra.mxu0 %vm17242_vm3, %v17441_v34  ;;  %13768 = vmatprep.subr.bf16.mxu1 %v23370_v46  ;;  %v2492_v34 = vrot.slane %v17826_v3, 2 }
 0x144   :  { %13747 = vmatprep.subr.bf16.mxu0 %v17452_v20  ;;  %v22748_v20 = vsub.s32 0, %v18001_v37 }
 0x145   :  { %12999 = vmatmul.mubr.msk.f32.vlgmr.msra.gmra.mrb[6].mxu1 %vm902_vm4, %v2311_v23 }
 0x146   :  { %13770 = vmatpush3.bf16.msra.mxu1 %v17470_v33  ;;  %12065 = vmatmul.mubr.msk.f32.vlgmr.msra.gmra.mrb[6].mxu0 %vm902_vm4, %v2311_v23  ;;  %v22749_v33 = vsub.s32 1, %v18001_v37 }
 0x147   :  { %13749 = vmatpush1.bf16.msra.mxu0 %v17477_v24  ;;  %13771 = vmatprep.subr.bf16.mxu1 %v23370_v46  ;;  %v2493_v24 = vrot.slane %v17841_v11, 2 }
 0x148   :  { %13751 = vmatprep.subr.bf16.mxu0 %v17486_v31  ;;  %13001 = vmatprep.mubr.msk.f32.mxu1 %vm15055_vm0, %v23373_v38  ;;  %v18011_v31 = vrot.slane %v867_v16, %v22750_v5 }
 0x149   :  { %2390 = vmatprep.mubr.f32.mxu0 %v23373_v38  ;;  %13002 = vmatmul.mubr.msk.f32.gmra.mrb[8].mxu1 %vm902_vm4, %v2313_v32  ;;  %v2494_v57 = vsel %vm1365_vm6, %v2492_v34, %v2493_v24  ;;  %v2496_v44 = vsel %vm1365_vm6, %v2493_v24, %v2495_v58 }
 0x14a   :  { %13773 = vmatpush3.bf16.msra.mxu1 %v17503_v25  ;;  %12066 = vmatmul.mubr.msk.f32.gmra.mrb[8].mxu0 %vm902_vm4, %v2313_v32  ;;  %v18015_v25 = vrot.slane %v867_v16, %v22748_v20 }
 0x14b   :  { %13753 = vmatpush1.bf16.msra.mxu0 %v17508_v45  ;;  %13774 = vmatprep.subr.bf16.mxu1 %v23370_v46  ;;  %v23383_v45 = vld [vmem:[#allocation407_spill] sm:$0xff] }
 0x14c   :  { %13755 = vmatprep.subr.bf16.mxu0 %v17517_v49  ;;  %13004 = vmatprep.mubr.msk.f32.mxu1 %vm15055_vm0, %v23373_v38 }
 0x14d   :  { %2396 = vmatprep.mubr.f32.mxu0 %v23373_v38  ;;  %13005 = vmatmul.mubr.msk.f32.gmra.mrb[10].mxu1 %vm902_vm4, %v2312_v26 }
 0x14e   :  { %13776 = vmatpush3.bf16.msra.mxu1 %v17536_v39  ;;  %12067 = vmatmul.mubr.msk.f32.gmra.mrb[10].mxu0 %vm902_vm4, %v2312_v26  ;;  %v18019_v39 = vrot.slane %v867_v16, %v22749_v33 }
 0x14f   :  { %13757 = vmatpush1.bf16.msra.mxu0 %v17541_v21  ;;  %13777 = vmatprep.subr.bf16.mxu1 %v23370_v46 }
 0x150   :  { %13759 = vmatprep.subr.bf16.mxu0 %v17550_v35  ;;  %13027 = vmatprep.mubr.msk.f32.mxu1 %vm15055_vm0, %v23373_v38 }
 0x151   :  { %2567 = vmatprep.mubr.f32.mxu0 %v23373_v38 }
 0x152   :  { %13779 = vmatpush3.bf16.msra.mxu1 %v17569_v41 }
 0x153   :  { %13761 = vmatpush1.bf16.msra.mxu0 %v17574_v12  ;;  %13780 = vmatprep.subr.bf16.mxu1 %v23370_v46 }
 0x154   :  { %13764 = vmatprep.subr.msk.bf16.mxu0 %vm17242_vm3, %v23382_v43 }
 0x156   :  { %13783 = vmatpush3.bf16.msk.msra.mxu1 %vm17242_vm3, %v23383_v45 }
 0x157   :  { %13767 = vmatpush1.bf16.msk.msra.mxu0 %vm17242_vm3, %v23384_v62  ;;  %13806 = vmatprep.subr.bf16.mxu1 %v23370_v46 }
 0x158   :  { %13785 = vmatprep.subr.bf16.mxu0 %v23385_v63 }
 0x159   :  { %13028 = vmatmul.mubr.msk.f32.vlgmr.msra.gmra.mrb[6].mxu1 %vm902_vm4, %v2494_v57 }
 0x15a   :  { %13808 = vmatpush3.bf16.msra.mxu1 %v23386_v28  ;;  %12074 = vmatmul.mubr.msk.f32.vlgmr.msra.gmra.mrb[6].mxu0 %vm902_vm4, %v2494_v57 }
 0x15b   :  { %13787 = vmatpush1.bf16.msra.mxu0 %v17643_v9  ;;  %13809 = vmatprep.subr.bf16.mxu1 %v23370_v46  ;;  %v23389_v9 = vld [vmem:[#allocation413_spill] sm:$0xff] }
 0x15c   :  { %13789 = vmatprep.subr.bf16.mxu0 %v23387_v59  ;;  %13030 = vmatprep.mubr.msk.f32.mxu1 %vm15055_vm0, %v23373_v38 }
 0x15d   :  { %2573 = vmatprep.mubr.f32.mxu0 %v23373_v38  ;;  %13031 = vmatmul.mubr.msk.f32.gmra.mrb[8].mxu1 %vm902_vm4, %v2496_v44 }
 0x15e   :  { %13811 = vmatpush3.bf16.msra.mxu1 %v17669_v50  ;;  %12075 = vmatmul.mubr.msk.f32.gmra.mrb[8].mxu0 %vm902_vm4, %v2496_v44 }
 0x15f   :  { %13791 = vmatpush1.bf16.msra.mxu0 %v23388_v15  ;;  %13812 = vmatprep.subr.bf16.mxu1 %v23370_v46 }
 0x160   :  { %13793 = vmatprep.subr.bf16.mxu0 %v23389_v9  ;;  %13033 = vmatprep.mubr.msk.f32.mxu1 %vm15055_vm0, %v23373_v38 }
 0x161   :  { %2579 = vmatprep.mubr.f32.mxu0 %v23373_v38  ;;  %13034 = vmatmul.mubr.msk.f32.gmra.mrb[10].mxu1 %vm902_vm4, %v2495_v58 }
 0x162   :  { %13814 = vmatpush3.bf16.msra.mxu1 %v17702_v60  ;;  %12076 = vmatmul.mubr.msk.f32.gmra.mrb[10].mxu0 %vm902_vm4, %v2495_v58 }
 0x163   :  { %13795 = vmatpush1.bf16.msra.mxu0 %v17707_v51  ;;  %13815 = vmatprep.subr.bf16.mxu1 %v23370_v46 }
 0x164   :  { %13797 = vmatprep.subr.bf16.mxu0 %v17716_v61  ;;  %13056 = vmatprep.mubr.msk.f32.mxu1 %vm15055_vm0, %v23373_v38 }
 0x165   :  { %2753 = vmatprep.mubr.f32.mxu0 %v23373_v38 }
 0x166   :  { %13817 = vmatpush3.bf16.msra.mxu1 %v17735_v40 }
 0x167   :  { %13799 = vmatpush1.bf16.msra.mxu0 %v17740_v36  ;;  %13818 = vmatprep.subr.bf16.mxu1 %v23370_v46 }
 0x168   :  { %13802 = vmatprep.subr.msk.bf16.mxu0 %vm17242_vm3, %v17749_v14 }
 0x16a   :  { %13821 = vmatpush3.bf16.msk.msra.mxu1 %vm17242_vm3, %v17763_v53 }
 0x16b   :  { %13805 = vmatpush1.bf16.msk.msra.mxu0 %vm17242_vm3, %v17767_v54 }
 0x16d   :  { %13057 = vmatmul.mubr.msk.f32.vlgmr.msra.gmra.mrb[6].mxu1 %vm902_vm4, %v2678_v13 }
 0x16e   :  { %12083 = vmatmul.mubr.msk.f32.vlgmr.msra.gmra.mrb[6].mxu0 %vm902_vm4, %v2678_v13  ;;  %13059 = vmatprep.mubr.msk.f32.mxu1 %vm15055_vm0, %v23373_v38 }
 0x16f   :  { %2759 = vmatprep.mubr.f32.mxu0 %v23373_v38 }
 0x171   :  { %13060 = vmatmul.mubr.msk.f32.gmra.mrb[8].mxu1 %vm902_vm4, %v2680_v1 }
 0x172   :  { %12084 = vmatmul.mubr.msk.f32.gmra.mrb[8].mxu0 %vm902_vm4, %v2680_v1  ;;  %13062 = vmatprep.mubr.msk.f32.mxu1 %vm15055_vm0, %v23373_v38 }
 0x173   :  { %2765 = vmatprep.mubr.f32.mxu0 %v23373_v38 }
 0x175   :  { %13063 = vmatmul.mubr.msk.f32.gmra.mrb[10].mxu1 %vm902_vm4, %v2682_v2 }
 0x176   :  { %12085 = vmatmul.mubr.msk.f32.gmra.mrb[10].mxu0 %vm902_vm4, %v2682_v2 }
 0x1f0   :  { %v1762_v49 = vpop.f32.mrb[0].mxu1 }
 0x1f1   :  { %v14716_v21 = vadd.f32 %v1762_v49, %v18011_v31  ;;  %v1679_v35 = vpop.f32.mrb[0].mxu0  ;;  %v12942_v41 = vpop.f32.mrb[1].mxu1 }
 0x1f2   :  { %v14710_v12 = vadd.f32 %v1679_v35, %v18015_v25  ;;  %v1681_v50 = vpop.f32.mrb[1].mxu0 }
 0x1f3   :  { %v18023_v60 = vmax.f32 %v14716_v21, 0.0  ;;  %v14711_v61 = vadd.f32 %v1681_v50, %v18019_v39 }
 0x1f4   :  { %v18025_v51 = vmax.f32 %v14710_v12, 0.0  ;;  %v1767_v40 = vpop.f32.mrb[2].mxu1 }
 0x1f5   :  { %v1685_v36 = vpop.f32.mrb[2].mxu0  ;;  %v12945_v14 = vpop.f32.mrb[3].mxu1  ;;  %1807 = vrot.lane.b32.xlu1 %v18023_v60, %s15058_s2  ;;  %v18032_v19 = vmax.f32 %v14711_v61, 0.0  ;;  %v14717_v0 = vadd.f32 %v1767_v40, %v18011_v31  ;;  %v1895_v11 = vrot.slane %v18023_v60, 1  ;;  %v2012_v22 = vrot.slane %v18023_v60, 2 }
 0x1f6   :  { %v1687_v56 = vpop.f32.mrb[3].mxu0  ;;  %1803 = vrot.lane.b32.xlu0 %v18025_v51, %s15058_s2  ;;  %v14712_v8 = vadd.f32 %v1685_v36, %v18015_v25  ;;  %v1889_v34 = vrot.slane %v18025_v51, 1  ;;  %v2006_v57 = vrot.slane %v18025_v51, 2 }
 0x1f7   :  { %v18043_v55 = vmax.f32 %v14717_v0, 0.0  ;;  %v14713_v4 = vadd.f32 %v1687_v56, %v18019_v39  ;;  %v1892_v44 = vrot.slane %v18032_v19, 1  ;;  %v2009_v9 = vrot.slane %v18032_v19, 2 }
 0x1f8   :  { %v1772_v52 = vpop.f32.mrb[4].mxu1  ;;  %v18050_v10 = vmax.f32 %v14712_v8, 0.0 }
 0x1f9   :  { %v1691_v42 = vpop.f32.mrb[4].mxu0  ;;  %v12948_v53 = vpop.f32.mrb[5].mxu1  ;;  %1850 = vrot.lane.b32.xlu1 %v18023_v60, %s15059_s16  ;;  %v18057_v30 = vmax.f32 %v14713_v4, 0.0  ;;  %v1896_v3 = vrot.slane %v18043_v55, 1  ;;  %v2013_v6 = vrot.slane %v18043_v55, 2  ;;  %v14718_v23 = vadd.f32 %v1772_v52, %v18011_v31 }
 0x1fa   :  { %v1693_v54 = vpop.f32.mrb[5].mxu0  ;;  %1805 = vrot.lane.b32.xlu0 %v18032_v19, %s15058_s2  ;;  %v1890_v24 = vrot.slane %v18050_v10, 1  ;;  %v2007_v45 = vrot.slane %v18050_v10, 2  ;;  %v14714_v58 = vadd.f32 %v1691_v42, %v18015_v25 }
 0x1fb   :  { %v18066_v17 = vsel %vm1141_vm5, %v1895_v11, %v1896_v3  ;;  %v18076_v26 = vsel %vm1365_vm6, %v2012_v22, %v2013_v6  ;;  %v18082_v32 = vmax.f32 %v14718_v23, 0.0  ;;  %v1893_v28 = vrot.slane %v18057_v30, 1 }
 0x1fc   :  { %v18091_v43 = vsel %vm1141_vm5, %v1889_v34, %v1890_v24  ;;  %v18101_v62 = vsel %vm1365_vm6, %v2006_v57, %v2007_v45  ;;  %v18107_v63 = vmax.f32 %v14714_v58, 0.0  ;;  %v2010_v15 = vrot.slane %v18057_v30, 2 }
 0x1fd   :  { %1846 = vrot.lane.b32.xlu1 %v18025_v51, %s15059_s16  ;;  %v18116_v59 = vsel %vm1141_vm5, %v1892_v44, %v1893_v28  ;;  %v14715_v7 = vadd.f32 %v1693_v54, %v18019_v39  ;;  %v18139_v18 = vrot.slane %v18082_v32, 1  ;;  %v18146_v48 = vrot.slane %v18082_v32, 2 }
 0x1fe   :  { %1848 = vrot.lane.b32.xlu0 %v18032_v19, %s15059_s16  ;;  %v18126_v29 = vsel %vm1365_vm6, %v2009_v9, %v2010_v15  ;;  %v18157_v27 = vrot.slane %v18107_v63, 1  ;;  %v18172_v16 = vrot.slane %v18107_v63, 2 }
 0x1ff   :  { %v18132_v13 = vmax.f32 %v14715_v7, 0.0  ;;  %v18154_v1 = vsel %vm1141_vm5, %v1896_v3, %v18139_v18  ;;  %v18169_v47 = vsel %vm1365_vm6, %v2013_v6, %v18146_v48 }
 0x200   :  { %v18186_v36 = vsel %vm1141_vm5, %v1890_v24, %v18157_v27  ;;  %v18205_v53 = vsel %vm1365_vm6, %v2007_v45, %v18172_v16 }
 0x201   :  { %1813 = vrot.lane.b32.xlu1 %v18043_v55, %s15058_s2  ;;  %v18197_v42 = vrot.slane %v18132_v13, 1  ;;  %v18212_v54 = vrot.slane %v18132_v13, 2 }
 0x202   :  { %1856 = vrot.lane.b32.xlu0 %v18043_v55, %s15059_s16 }
 0x203   :  { %v18220_v0 = vsel %vm1141_vm5, %v1893_v28, %v18197_v42  ;;  %v18229_v4 = vsel %vm1365_vm6, %v2010_v15, %v18212_v54 }
 0x205   :  { %1809 = vrot.lane.b32.xlu1 %v18050_v10, %s15058_s2 }
 0x206   :  { %1852 = vrot.lane.b32.xlu0 %v18050_v10, %s15059_s16 }
 0x209   :  { %1854 = vrot.lane.b32.xlu1 %v18057_v30, %s15059_s16 }
 0x20a   :  { %1811 = vrot.lane.b32.xlu0 %v18057_v30, %s15058_s2 }
 0x20d   :  { %1968 = vrot.lane.b32.xlu1 %v18066_v17, %s15059_s16 }
 0x20e   :  { %1926 = vrot.lane.b32.xlu0 %v18066_v17, %s15058_s2 }
 0x211   :  { %2085 = vrot.lane.b32.xlu1 %v18076_v26, %s15059_s16 }
 0x212   :  { %2043 = vrot.lane.b32.xlu0 %v18076_v26, %s15058_s2 }
 0x215   :  { %1862 = vrot.lane.b32.xlu1 %v18082_v32, %s15059_s16 }
 0x216   :  { %1819 = vrot.lane.b32.xlu0 %v18082_v32, %s15058_s2 }
 0x219   :  { %1964 = vrot.lane.b32.xlu1 %v18091_v43, %s15059_s16 }
 0x21a   :  { %1922 = vrot.lane.b32.xlu0 %v18091_v43, %s15058_s2 }
 0x21d   :  { %2081 = vrot.lane.b32.xlu1 %v18101_v62, %s15059_s16 }
 0x21e   :  { %2039 = vrot.lane.b32.xlu0 %v18101_v62, %s15058_s2 }
 0x221   :  { %1858 = vrot.lane.b32.xlu1 %v18107_v63, %s15059_s16 }
 0x222   :  { %1815 = vrot.lane.b32.xlu0 %v18107_v63, %s15058_s2 }
 0x225   :  { %1924 = vrot.lane.b32.xlu1 %v18116_v59, %s15058_s2 }
 0x226   :  { %1966 = vrot.lane.b32.xlu0 %v18116_v59, %s15059_s16 }
 0x229   :  { %2041 = vrot.lane.b32.xlu1 %v18126_v29, %s15058_s2 }
 0x22a   :  { %2083 = vrot.lane.b32.xlu0 %v18126_v29, %s15059_s16 }
 0x22d   :  { %1817 = vrot.lane.b32.xlu1 %v18132_v13, %s15058_s2 }
 0x22e   :  { %1860 = vrot.lane.b32.xlu0 %v18132_v13, %s15059_s16 }
 0x231   :  { %1980 = vrot.lane.b32.xlu1 %v18139_v18, %s15059_s16 }
 0x232   :  { %1938 = vrot.lane.b32.xlu0 %v18139_v18, %s15058_s2 }
 0x235   :  { %2097 = vrot.lane.b32.xlu1 %v18146_v48, %s15059_s16 }
 0x236   :  { %2055 = vrot.lane.b32.xlu0 %v18146_v48, %s15058_s2 }
 0x239   :  { %1932 = vrot.lane.b32.xlu1 %v18154_v1, %s15058_s2 }
 0x23a   :  { %1934 = vrot.lane.b32.xlu0 %v18157_v27, %s15058_s2 }
 0x23d   :  { %1976 = vrot.lane.b32.xlu1 %v18157_v27, %s15059_s16 }
 0x23e   :  { %1974 = vrot.lane.b32.xlu0 %v18154_v1, %s15059_s16 }
 0x240   :  { %v2838_v2 = vpop.f32.mrb[6].mxu1 }
 0x241   :  { %v2755_v49 = vpop.f32.mrb[6].mxu0  ;;  %v13058_v21 = vpop.f32.mrb[7].mxu1  ;;  %2049 = vrot.lane.b32.xlu1 %v18169_v47, %s15058_s2  ;;  %v14725_v8 = vadd.f32 %v2838_v2, %v18011_v31 }
 0x242   :  { %v2757_v35 = vpop.f32.mrb[7].mxu0  ;;  %2051 = vrot.lane.b32.xlu0 %v18172_v16, %s15058_s2  ;;  %v14719_v11 = vadd.f32 %v2755_v49, %v18015_v25 }
 0x243   :  { %v18235_v3 = vmax.f32 %v14725_v8, 0.0  ;;  %v14720_v22 = vadd.f32 %v2757_v35, %v18019_v39 }
 0x244   :  { %v2843_v41 = vpop.f32.mrb[8].mxu1  ;;  %v18242_v6 = vmax.f32 %v14719_v11, 0.0 }
 0x245   :  { %v2761_v12 = vpop.f32.mrb[8].mxu0  ;;  %v13061_v50 = vpop.f32.mrb[9].mxu1  ;;  %2093 = vrot.lane.b32.xlu1 %v18172_v16, %s15059_s16  ;;  %v18249_v23 = vmax.f32 %v14720_v22, 0.0  ;;  %v14726_v24 = vadd.f32 %v2843_v41, %v18011_v31  ;;  %v3086_v22 = vrot.slane %v18235_v3, 2 }
 0x246   :  { %v2763_v61 = vpop.f32.mrb[9].mxu0  ;;  %2091 = vrot.lane.b32.xlu0 %v18169_v47, %s15059_s16  ;;  %v14721_v58 = vadd.f32 %v2761_v12, %v18015_v25  ;;  %v2969_v12 = vrot.slane %v18235_v3, 1 }
 0x247   :  { %v18260_v57 = vmax.f32 %v14726_v24, 0.0  ;;  %v14722_v9 = vadd.f32 %v2763_v61, %v18019_v39 }
 0x248   :  { %v18182_v40 = vpop.f32.mrb[10].mxu1  ;;  %v18271_v15 = vmax.f32 %v14721_v58, 0.0 }
 0x249   :  { %v18188_v14 = vpop.f32.mrb[10].mxu0  ;;  %v13064_v56 = vpop.f32.mrb[11].mxu1  ;;  %1928 = vrot.lane.b32.xlu1 %v18186_v36, %s15058_s2  ;;  %v18282_v49 = vmax.f32 %v14722_v9, 0.0  ;;  %v22752_v41 = vrot.slane %v18260_v57, 1  ;;  %v22751_v8 = vrot.slane %v18260_v57, 2  ;;  %v14727_v24 = vadd.f32 %v18182_v40, %v18011_v31 }
 0x24a   :  { %v18192_v52 = vpop.f32.mrb[11].mxu0  ;;  %1970 = vrot.lane.b32.xlu0 %v18186_v36, %s15059_s16 }
 0x24b   :  { %v18297_v56 = vsel %vm1141_vm5, %v2969_v12, %v22752_v41 }
 0x24d   :  { %1936 = vrot.lane.b32.xlu1 %v18197_v42, %s15058_s2 }
 0x24e   :  { %1978 = vrot.lane.b32.xlu0 %v18197_v42, %s15059_s16 }
 0x251   :  { %2045 = vrot.lane.b32.xlu1 %v18205_v53, %s15058_s2 }
 0x252   :  { %2087 = vrot.lane.b32.xlu0 %v18205_v53, %s15059_s16 }
 0x255   :  { %2053 = vrot.lane.b32.xlu1 %v18212_v54, %s15058_s2 }
 0x256   :  { %2095 = vrot.lane.b32.xlu0 %v18212_v54, %s15059_s16 }
 0x259   :  { %1972 = vrot.lane.b32.xlu1 %v18220_v0, %s15059_s16 }
 0x25a   :  { %1930 = vrot.lane.b32.xlu0 %v18220_v0, %s15058_s2 }
 0x25d   :  { %2089 = vrot.lane.b32.xlu1 %v18229_v4, %s15059_s16 }
 0x25e   :  { %2047 = vrot.lane.b32.xlu0 %v18229_v4, %s15058_s2 }
 0x261   :  { %2925 = vrot.lane.b32.xlu1 %v18235_v3, %s15059_s16 }
 0x262   :  { %2883 = vrot.lane.b32.xlu0 %v18235_v3, %s15058_s2 }
 0x265   :  { %2921 = vrot.lane.b32.xlu1 %v18242_v6, %s15059_s16 }
 0x266   :  { %2879 = vrot.lane.b32.xlu0 %v18242_v6, %s15058_s2 }
 0x267   :  { %v18252_v34 = vpop.permute.xlu1 %1807 }
 0x268   :  { %v18254_v45 = vpop.permute.xlu0 %1803  ;;  %v1839_v11 = vmax.f32 %v18023_v60, %v18252_v34  ;;  %v18313_v60 = vsel %vm1365_vm6, %v3086_v22, %v22751_v8 }
 0x269   :  { %2881 = vrot.lane.b32.xlu1 %v18249_v23, %s15058_s2 }
 0x26a   :  { %2923 = vrot.lane.b32.xlu0 %v18249_v23, %s15059_s16 }
 0x26b   :  { %v18263_v28 = vpop.permute.xlu1 %1850 }
 0x26c   :  { %v18265_v44 = vpop.permute.xlu0 %1805  ;;  %v1882_v58 = vmax.f32 %v1839_v11, %v18263_v28  ;;  %v18324_v11 = vmax.f32 %v14727_v24, 0.0 }
 0x26d   :  { %2889 = vrot.lane.b32.xlu1 %v18260_v57, %s15058_s2 }
 0x26e   :  { %2931 = vrot.lane.b32.xlu0 %v18260_v57, %s15059_s16 }
 0x26f   :  { %v18274_v7 = vpop.permute.xlu1 %1846 }
 0x270   :  { %v18276_v2 = vpop.permute.xlu0 %1848 }
 0x271   :  { %2885 = vrot.lane.b32.xlu1 %v18271_v15, %s15058_s2 }
 0x272   :  { %2927 = vrot.lane.b32.xlu0 %v18271_v15, %s15059_s16 }
 0x273   :  { %v18284_v21 = vpop.permute.xlu1 %1813 }
 0x274   :  { %v18286_v35 = vpop.permute.xlu0 %1856 }
 0x275   :  { %2929 = vrot.lane.b32.xlu1 %v18282_v49, %s15059_s16 }
 0x276   :  { %2887 = vrot.lane.b32.xlu0 %v18282_v49, %s15058_s2 }
 0x277   :  { %v1810_v50 = vpop.permute.xlu1 %1809 }
 0x278   :  { %v1853_v61 = vpop.permute.xlu0 %1852 }
 0x279   :  { %3042 = vrot.lane.b32.xlu1 %v18297_v56, %s15059_s16 }
 0x27a   :  { %3000 = vrot.lane.b32.xlu0 %v18297_v56, %s15058_s2 }
 0x27b   :  { %v1855_v9 = vpop.permute.xlu1 %1854 }
 0x27c   :  { %v1812_v12 = vpop.permute.xlu0 %1811  ;;  %v1867_v22 = vsel %vm1864_vm9, %v1853_v61, %v1855_v9 }
 0x27d   :  { %v1824_v20 = vsel %vm1821_vm8, %v1810_v50, %v1812_v12  ;;  %v1825_v33 = vsel %vm1821_vm8, %v1812_v12, %v18284_v21  ;;  %3159 = vrot.lane.b32.xlu1 %v18313_v60, %s15059_s16  ;;  %v1868_v50 = vsel %vm1864_vm9, %v1855_v9, %v18286_v35  ;;  %v1915_v12 = vmax.f32 %v1882_v58, %v18066_v17 }
 0x27e   :  { %v1840_v31 = vmax.f32 %v18050_v10, %v1824_v20  ;;  %v1841_v40 = vmax.f32 %v18057_v30, %v1825_v33  ;;  %3117 = vrot.lane.b32.xlu0 %v18313_v60, %s15058_s2  ;;  %v22754_v33 = vrot.slane %v18271_v15, 1  ;;  %v2963_v30 = vrot.slane %v18242_v6, 1 }
 0x27f   :  { %v18329_v5 = vpop.permute.xlu1 %1968 }
 0x280   :  { %v18332_v8 = vmax.f32 %v1840_v31, %v1867_v22  ;;  %v18334_v41 = vmax.f32 %v1841_v40, %v1868_v50  ;;  %v1927_v20 = vpop.permute.xlu0 %1926  ;;  %v18354_v31 = vsel %vm1141_vm5, %v2963_v30, %v22754_v33  ;;  %v22753_v40 = vrot.slane %v18271_v15, 2 }
 0x281   :  { %v1957_v10 = vmax.f32 %v1915_v12, %v1927_v20  ;;  %2937 = vrot.lane.b32.xlu1 %v18324_v11, %s15059_s16  ;;  %v3080_v50 = vrot.slane %v18242_v6, 2  ;;  %v14723_v12 = vadd.f32 %v18188_v14, %v18015_v25  ;;  %v1865_v33 = vsel %vm1864_vm9, %v18274_v7, %v18276_v2 }
 0x282   :  { %2895 = vrot.lane.b32.xlu0 %v18324_v11, %s15058_s2  ;;  %v14724_v7 = vadd.f32 %v18192_v52, %v18019_v39 }
 0x283   :  { %v1999_v24 = vmax.f32 %v1957_v10, %v18329_v5  ;;  %v18347_v58 = vpop.permute.xlu1 %2085  ;;  %v18384_v25 = vmax.f32 %v14723_v12, 0.0 }
 0x284   :  { %v18349_v9 = vpop.permute.xlu0 %2043 }
 0x285   :  { %v2032_v22 = vmax.f32 %v1999_v24, %v18076_v26  ;;  %3038 = vrot.lane.b32.xlu1 %v18354_v31, %s15059_s16  ;;  %v18373_v26 = vsel %vm1365_vm6, %v3080_v50, %v22753_v40  ;;  %v1866_v40 = vsel %vm1864_vm9, %v18276_v2, %v18263_v28  ;;  %v3083_v28 = vrot.slane %v18249_v23, 2 }
 0x286   :  { %2996 = vrot.lane.b32.xlu0 %v18354_v31, %s15058_s2 }
 0x287   :  { %v2074_v10 = vmax.f32 %v2032_v22, %v18349_v9  ;;  %v18366_v17 = vpop.permute.xlu1 %1862 }
 0x288   :  { %v18368_v30 = vpop.permute.xlu0 %1819 }
 0x289   :  { %v18376_v24 = vmax.f32 %v2074_v10, %v18347_v58  ;;  %v1845_v61 = vmax.f32 %v18082_v32, %v18368_v30  ;;  %3155 = vrot.lane.b32.xlu1 %v18373_v26, %s15059_s16  ;;  %v1822_v32 = vsel %vm1821_vm8, %v18254_v45, %v18265_v44  ;;  %v1823_v10 = vsel %vm1821_vm8, %v18265_v44, %v18252_v34 }
 0x28a   :  { %3113 = vrot.lane.b32.xlu0 %v18373_v26, %s15058_s2  ;;  %v23392_v45 = vrot.slane %v18282_v49, 1  ;;  %v22760_v34 = vrot.slane %v18282_v49, 2  ;;  %v1837_v44 = vmax.f32 %v18025_v51, %v1822_v32  ;;  %v1838_v38 = vmax.f32 %v18032_v19, %v1823_v10 }
 0x28b   :  { %23391 = vst [vmem:[#allocation407_spill] sm:$0xff] %v18376_v24  ;;  %v18387_v14 = vmax.f32 %v1845_v61, %v18366_v17  ;;  %v1965_v22 = vpop.permute.xlu1 %1964  ;;  %v2966_v61 = vrot.slane %v18249_v23, 1  ;;  %v18431_v19 = vmax.f32 %v14724_v7, 0.0 }
 0x28c   :  { %v1923_v50 = vpop.permute.xlu0 %1922  ;;  %v1880_v2 = vmax.f32 %v1837_v44, %v1865_v33  ;;  %v18425_v51 = vsel %vm1365_vm6, %v3083_v28, %v22760_v34 }
 0x28d   :  { %2933 = vrot.lane.b32.xlu1 %v18384_v25, %s15059_s16  ;;  %v18410_v46 = vsel %vm1141_vm5, %v2966_v61, %v23392_v45  ;;  %v1881_v61 = vmax.f32 %v1838_v38, %v1866_v40 }
 0x28e   :  { %2891 = vrot.lane.b32.xlu0 %v18384_v25, %s15058_s2  ;;  %v1913_v38 = vmax.f32 %v1880_v2, %v18091_v43 }
 0x28f   :  { %v2082_v12 = vpop.permute.xlu1 %2081  ;;  %v1914_v32 = vmax.f32 %v1881_v61, %v18116_v59 }
 0x290   :  { %v2040_v37 = vpop.permute.xlu0 %2039 }
 0x291   :  { %2998 = vrot.lane.b32.xlu1 %v18410_v46, %s15058_s2 }
 0x292   :  { %3040 = vrot.lane.b32.xlu0 %v18410_v46, %s15059_s16 }
 0x293   :  { %v1859_v45 = vpop.permute.xlu1 %1858 }
 0x294   :  { %v1816_v24 = vpop.permute.xlu0 %1815 }
 0x295   :  { %3115 = vrot.lane.b32.xlu1 %v18425_v51, %s15058_s2 }
 0x296   :  { %3157 = vrot.lane.b32.xlu0 %v18425_v51, %s15059_s16 }
 0x297   :  { %v1925_v39 = vpop.permute.xlu1 %1924 }
 0x298   :  { %v1940_v52 = vsel %vm1821_vm8, %v1923_v50, %v1925_v39  ;;  %v1941_v33 = vsel %vm1821_vm8, %v1925_v39, %v1927_v20  ;;  %v1967_v40 = vpop.permute.xlu0 %1966  ;;  %v18445_v50 = vrot.slane %v18324_v11, 1 }
 0x299   :  { %v1955_v10 = vmax.f32 %v1913_v38, %v1940_v52  ;;  %v1956_v44 = vmax.f32 %v1914_v32, %v1941_v33  ;;  %v1982_v28 = vsel %vm1864_vm9, %v1965_v22, %v1967_v40  ;;  %v1983_v34 = vsel %vm1864_vm9, %v1967_v40, %v18329_v5  ;;  %2893 = vrot.lane.b32.xlu1 %v18431_v19, %s15058_s2 }
 0x29a   :  { %2935 = vrot.lane.b32.xlu0 %v18431_v19, %s15059_s16  ;;  %v18469_v52 = vrot.slane %v18324_v11, 2 }
 0x29b   :  { %v1997_v59 = vmax.f32 %v1955_v10, %v1982_v28  ;;  %v1998_v43 = vmax.f32 %v1956_v44, %v1983_v34  ;;  %v2042_v7 = vpop.permute.xlu1 %2041 }
 0x29c   :  { %v2057_v20 = vsel %vm1821_vm8, %v2040_v37, %v2042_v7  ;;  %v2058_v22 = vsel %vm1821_vm8, %v2042_v7, %v18349_v9  ;;  %v2084_v2 = vpop.permute.xlu0 %2083 }
 0x29d   :  { %v2030_v5 = vmax.f32 %v1997_v59, %v18101_v62  ;;  %v2031_v61 = vmax.f32 %v1998_v43, %v18126_v29  ;;  %v2099_v32 = vsel %vm1864_vm9, %v2082_v12, %v2084_v2  ;;  %v2100_v39 = vsel %vm1864_vm9, %v2084_v2, %v18347_v58  ;;  %3054 = vrot.lane.b32.xlu1 %v18445_v50, %s15059_s16 }
 0x29e   :  { %3012 = vrot.lane.b32.xlu0 %v18445_v50, %s15058_s2  ;;  %v23393_v12 = vrot.slane %v18260_v57, 1 }
 0x29f   :  { %v2072_v37 = vmax.f32 %v2030_v5, %v2057_v20  ;;  %v2073_v34 = vmax.f32 %v2031_v61, %v2058_v22  ;;  %v1818_v38 = vpop.permute.xlu1 %1817 }
 0x2a0   :  { %v1826_v9 = vsel %vm1821_vm8, %v1816_v24, %v1818_v38  ;;  %v1827_v62 = vsel %vm1821_vm8, %v1818_v38, %v18368_v30  ;;  %v1861_v29 = vpop.permute.xlu0 %1860  ;;  %v18466_v58 = vsel %vm1141_vm5, %v23393_v12, %v18445_v50  ;;  %v1842_v30 = vmax.f32 %v18043_v55, %v18284_v21 }
 0x2a1   :  { %v18471_v33 = vmax.f32 %v2072_v37, %v2099_v32  ;;  %v18473_v40 = vmax.f32 %v2073_v34, %v2100_v39  ;;  %v1843_v10 = vmax.f32 %v18107_v63, %v1826_v9  ;;  %v1844_v24 = vmax.f32 %v18132_v13, %v1827_v62  ;;  %3006 = vrot.lane.b32.xlu1 %v18466_v58, %s15058_s2 }
 0x2a2   :  { %v1869_v44 = vsel %vm1864_vm9, %v1859_v45, %v1861_v29  ;;  %v1870_v28 = vsel %vm1864_vm9, %v1861_v29, %v18366_v17  ;;  %3129 = vrot.lane.b32.xlu0 %v18469_v52, %s15058_s2  ;;  %v1921_v63 = vmax.f32 %v18387_v14, %v18139_v18  ;;  %v18489_v13 = vrot.slane %v18384_v25, 1 }
 0x2a3   :  { %23394 = vst [vmem:[#allocation408_spill] sm:$0xff] %v18471_v33  ;;  %v1886_v59 = vmax.f32 %v1843_v10, %v1869_v44  ;;  %v1887_v43 = vmax.f32 %v1844_v24, %v1870_v28  ;;  %v1981_v7 = vpop.permute.xlu1 %1980  ;;  %v1885_v55 = vmax.f32 %v1842_v30, %v18286_v35  ;;  %v23395_v18 = vrot.slane %v18260_v57, 2 }
 0x2a4   :  { %v1939_v20 = vpop.permute.xlu0 %1938  ;;  %v18516_v32 = vrot.slane %v18384_v25, 2  ;;  %v23397_v38 = vrot.slane %v18271_v15, 1  ;;  %v18540_v10 = vrot.slane %v18431_v19, 1 }
 0x2a5   :  { %v1963_v22 = vmax.f32 %v1921_v63, %v1939_v20  ;;  %3050 = vrot.lane.b32.xlu1 %v18489_v13, %s15059_s16  ;;  %v18504_v14 = vsel %vm1365_vm6, %v23395_v18, %v18469_v52  ;;  %v1918_v35 = vmax.f32 %v1885_v55, %v18154_v1  ;;  %v23398_v63 = vrot.slane %v18271_v15, 2 }
 0x2a6   :  { %3008 = vrot.lane.b32.xlu0 %v18489_v13, %s15058_s2  ;;  %v18530_v9 = vsel %vm1141_vm5, %v23397_v38, %v18489_v13 }
 0x2a7   :  { %v2005_v21 = vmax.f32 %v1963_v22, %v1981_v7  ;;  %v18496_v17 = vpop.permute.xlu1 %2097  ;;  %v18551_v22 = vsel %vm1365_vm6, %v23398_v63, %v18516_v32 }
 0x2a8   :  { %v18498_v45 = vpop.permute.xlu0 %2055 }
 0x2a9   :  { %v2038_v2 = vmax.f32 %v2005_v21, %v18146_v48  ;;  %3123 = vrot.lane.b32.xlu1 %v18504_v14, %s15058_s2  ;;  %v18560_v21 = vrot.slane %v18431_v19, 2 }
 0x2aa   :  { %3048 = vrot.lane.b32.xlu0 %v18466_v58, %s15059_s16 }
 0x2ab   :  { %v2080_v5 = vmax.f32 %v2038_v2, %v18498_v45  ;;  %v18513_v61 = vpop.permute.xlu1 %1932 }
 0x2ac   :  { %v1960_v39 = vmax.f32 %v1918_v35, %v18513_v61  ;;  %v1935_v37 = vpop.permute.xlu0 %1934  ;;  %v1919_v35 = vmax.f32 %v1886_v59, %v18157_v27 }
 0x2ad   :  { %v18520_v48 = vmax.f32 %v2080_v5, %v18496_v17  ;;  %3167 = vrot.lane.b32.xlu1 %v18516_v32, %s15059_s16  ;;  %v1920_v5 = vmax.f32 %v1887_v43, %v18197_v42 }
 0x2ae   :  { %3125 = vrot.lane.b32.xlu0 %v18516_v32, %s15058_s2 }
 0x2af   :  { %23396 = vst [vmem:[#allocation409_spill] sm:$0xff] %v18520_v48  ;;  %v1977_v1 = vpop.permute.xlu1 %1976 }
 0x2b0   :  { %v1975_v34 = vpop.permute.xlu0 %1974 }
 0x2b1   :  { %v2002_v62 = vmax.f32 %v1960_v39, %v1975_v34  ;;  %3002 = vrot.lane.b32.xlu1 %v18530_v9, %s15058_s2 }
 0x2b2   :  { %3165 = vrot.lane.b32.xlu0 %v18504_v14, %s15059_s16 }
 0x2b3   :  { %v18536_v29 = vpop.permute.xlu1 %2049  ;;  %v2035_v12 = vmax.f32 %v2002_v62, %v18169_v47 }
 0x2b4   :  { %v2052_v24 = vpop.permute.xlu0 %2051 }
 0x2b5   :  { %v2077_v30 = vmax.f32 %v2035_v12, %v18536_v29  ;;  %3010 = vrot.lane.b32.xlu1 %v18540_v10, %s15058_s2  ;;  %v23400_v12 = vrot.slane %v18282_v49, 1 }
 0x2b6   :  { %3044 = vrot.lane.b32.xlu0 %v18530_v9, %s15059_s16 }
 0x2b7   :  { %v2094_v44 = vpop.permute.xlu1 %2093 }
 0x2b8   :  { %v2092_v28 = vpop.permute.xlu0 %2091 }
 0x2b9   :  { %v18553_v47 = vmax.f32 %v2077_v30, %v2092_v28  ;;  %3119 = vrot.lane.b32.xlu1 %v18551_v22, %s15058_s2  ;;  %v18574_v30 = vsel %vm1141_vm5, %v23400_v12, %v18540_v10 }
 0x2ba   :  { %3052 = vrot.lane.b32.xlu0 %v18540_v10, %s15059_s16 }
 0x2bb   :  { %23399 = vst [vmem:[#allocation410_spill] sm:$0xff] %v18553_v47  ;;  %v1929_v55 = vpop.permute.xlu1 %1928 }
 0x2bc   :  { %v1971_v18 = vpop.permute.xlu0 %1970 }
 0x2bd   :  { %3127 = vrot.lane.b32.xlu1 %v18560_v21, %s15058_s2 }
 0x2be   :  { %3161 = vrot.lane.b32.xlu0 %v18551_v22, %s15059_s16 }
 0x2bf   :  { %v1937_v2 = vpop.permute.xlu1 %1936 }
 0x2c0   :  { %v1944_v39 = vsel %vm1821_vm8, %v1935_v37, %v1937_v2  ;;  %v1945_v38 = vsel %vm1821_vm8, %v1937_v2, %v1939_v20  ;;  %v1979_v62 = vpop.permute.xlu0 %1978  ;;  %v23401_v20 = vrot.slane %v18282_v49, 2 }
 0x2c1   :  { %v1961_v63 = vmax.f32 %v1919_v35, %v1944_v39  ;;  %v1962_v48 = vmax.f32 %v1920_v5, %v1945_v38  ;;  %v1986_v47 = vsel %vm1864_vm9, %v1977_v1, %v1979_v62  ;;  %v1987_v33 = vsel %vm1864_vm9, %v1979_v62, %v1981_v7  ;;  %3046 = vrot.lane.b32.xlu1 %v18574_v30, %s15059_s16 }
 0x2c2   :  { %3004 = vrot.lane.b32.xlu0 %v18574_v30, %s15058_s2  ;;  %v18586_v37 = vsel %vm1365_vm6, %v23401_v20, %v18560_v21 }
 0x2c3   :  { %v2003_v27 = vmax.f32 %v1961_v63, %v1986_v47  ;;  %v2004_v42 = vmax.f32 %v1962_v48, %v1987_v33  ;;  %v2046_v59 = vpop.permute.xlu1 %2045  ;;  %v23402_v63 = vmax.f32 %v18332_v8, %v18186_v36 }
 0x2c4   :  { %v2088_v43 = vpop.permute.xlu0 %2087 }
 0x2c5   :  { %3163 = vrot.lane.b32.xlu1 %v18586_v37, %s15059_s16  ;;  %v2036_v1 = vmax.f32 %v2003_v27, %v18172_v16  ;;  %v2037_v47 = vmax.f32 %v2004_v42, %v18212_v54  ;;  %v23403_v42 = vmax.f32 %v18334_v41, %v18220_v0 }
 0x2c6   :  { %3121 = vrot.lane.b32.xlu0 %v18586_v37, %s15058_s2 }
 0x2c7   :  { %v2054_v7 = vpop.permute.xlu1 %2053 }
 0x2c8   :  { %v2061_v33 = vsel %vm1821_vm8, %v2052_v24, %v2054_v7  ;;  %v2062_v48 = vsel %vm1821_vm8, %v2054_v7, %v18498_v45  ;;  %v2096_v2 = vpop.permute.xlu0 %2095 }
 0x2c9   :  { %v2078_v35 = vmax.f32 %v2036_v1, %v2061_v33  ;;  %v2079_v5 = vmax.f32 %v2037_v47, %v2062_v48  ;;  %v2103_v39 = vsel %vm1864_vm9, %v2094_v44, %v2096_v2  ;;  %v2104_v38 = vsel %vm1864_vm9, %v2096_v2, %v18496_v17  ;;  %3171 = vrot.lane.b32.xlu1 %v18469_v52, %s15059_s16 }
 0x2ca   :  { %3169 = vrot.lane.b32.xlu0 %v18560_v21, %s15059_s16 }
 0x2cb   :  { %v18604_v16 = vmax.f32 %v2078_v35, %v2103_v39  ;;  %v18606_v54 = vmax.f32 %v2079_v5, %v2104_v38  ;;  %v1973_v24 = vpop.permute.xlu1 %1972 }
 0x2cc   :  { %v1984_v45 = vsel %vm1864_vm9, %v1971_v18, %v1973_v24  ;;  %v1985_v62 = vsel %vm1864_vm9, %v1973_v24, %v1975_v34  ;;  %v1931_v12 = vpop.permute.xlu0 %1930 }
 0x2cd   :  { %v1942_v44 = vsel %vm1821_vm8, %v1929_v55, %v1931_v12  ;;  %v1943_v17 = vsel %vm1821_vm8, %v1931_v12, %v18513_v61 }
 0x2ce   :  { %v1958_v27 = vmax.f32 %v23402_v63, %v1942_v44  ;;  %v1959_v20 = vmax.f32 %v23403_v42, %v1943_v17 }
 0x2cf   :  { %v2090_v7 = vpop.permute.xlu1 %2089 }
 0x2d0   :  { %v2000_v1 = vmax.f32 %v1958_v27, %v1984_v45  ;;  %v2001_v47 = vmax.f32 %v1959_v20, %v1985_v62  ;;  %v2101_v18 = vsel %vm1864_vm9, %v2088_v43, %v2090_v7  ;;  %v2102_v34 = vsel %vm1864_vm9, %v2090_v7, %v2092_v28  ;;  %v2048_v33 = vpop.permute.xlu0 %2047 }
 0x2d1   :  { %v2059_v55 = vsel %vm1821_vm8, %v2046_v59, %v2048_v33  ;;  %v2060_v61 = vsel %vm1821_vm8, %v2048_v33, %v18536_v29 }
 0x2d2   :  { %v2033_v36 = vmax.f32 %v2000_v1, %v18205_v53  ;;  %v2034_v8 = vmax.f32 %v2001_v47, %v18229_v4 }
 0x2d3   :  { %v2926_v48 = vpop.permute.xlu1 %2925 }
 0x2d4   :  { %v2075_v0 = vmax.f32 %v2033_v36, %v2059_v55  ;;  %v2076_v41 = vmax.f32 %v2034_v8, %v2060_v61  ;;  %v2884_v2 = vpop.permute.xlu0 %2883 }
 0x2d5   :  { %v2914_v35 = vmax.f32 %v18235_v3, %v2884_v2 }
 0x2d6   :  { %v18627_v5 = vmax.f32 %v2075_v0, %v2101_v18  ;;  %v18629_v43 = vmax.f32 %v2076_v41, %v2102_v34 }
 0x2d7   :  { %v2956_v28 = vmax.f32 %v2914_v35, %v2926_v48  ;;  %v2922_v39 = vpop.permute.xlu1 %2921 }
 0x2d8   :  { %v2880_v59 = vpop.permute.xlu0 %2879 }
 0x2d9   :  { %v2989_v61 = vmax.f32 %v2956_v28, %v18297_v56 }
 0x2db   :  { %v2882_v38 = vpop.permute.xlu1 %2881 }
 0x2dc   :  { %v2897_v29 = vsel %vm1821_vm8, %v2880_v59, %v2882_v38  ;;  %v2898_v53 = vsel %vm1821_vm8, %v2882_v38, %v2884_v2  ;;  %v2924_v24 = vpop.permute.xlu0 %2923 }
 0x2dd   :  { %v2912_v4 = vmax.f32 %v18242_v6, %v2897_v29  ;;  %v2913_v45 = vmax.f32 %v18249_v23, %v2898_v53  ;;  %v2939_v62 = vsel %vm1864_vm9, %v2922_v39, %v2924_v24  ;;  %v2940_v3 = vsel %vm1864_vm9, %v2924_v24, %v2926_v48 }
 0x2df   :  { %v2954_v12 = vmax.f32 %v2912_v4, %v2939_v62  ;;  %v2955_v44 = vmax.f32 %v2913_v45, %v2940_v3  ;;  %v2890_v17 = vpop.permute.xlu1 %2889 }
 0x2e0   :  { %v2917_v63 = vmax.f32 %v18260_v57, %v2890_v17  ;;  %v2932_v27 = vpop.permute.xlu0 %2931 }
 0x2e2   :  { %v18638_v42 = vmax.f32 %v2917_v63, %v2932_v27  ;;  %v2988_v63 = vmax.f32 %v2955_v44, %v18410_v46 }
 0x2e3   :  { %v2886_v20 = vpop.permute.xlu1 %2885 }
 0x2e4   :  { %v2928_v7 = vpop.permute.xlu0 %2927 }
 0x2e7   :  { %v2930_v1 = vpop.permute.xlu1 %2929 }
 0x2e8   :  { %v2941_v47 = vsel %vm1864_vm9, %v2928_v7, %v2930_v1  ;;  %v2942_v6 = vsel %vm1864_vm9, %v2930_v1, %v2932_v27  ;;  %v2888_v23 = vpop.permute.xlu0 %2887 }
 0x2e9   :  { %v2899_v18 = vsel %vm1821_vm8, %v2886_v20, %v2888_v23  ;;  %v2900_v34 = vsel %vm1821_vm8, %v2888_v23, %v2890_v17  ;;  %v2987_v17 = vmax.f32 %v2954_v12, %v18354_v31 }
 0x2ea   :  { %v2915_v33 = vmax.f32 %v18271_v15, %v2899_v18  ;;  %v2916_v55 = vmax.f32 %v18282_v49, %v2900_v34 }
 0x2eb   :  { %v3043_v57 = vpop.permute.xlu1 %3042 }
 0x2ec   :  { %v18647_v36 = vmax.f32 %v2915_v33, %v2941_v47  ;;  %v18649_v8 = vmax.f32 %v2916_v55, %v2942_v6  ;;  %v3001_v48 = vpop.permute.xlu0 %3000 }
 0x2ed   :  { %v3031_v0 = vmax.f32 %v2989_v61, %v3001_v48 }
 0x2ee   :  { %v2990_v41 = vmax.f32 %v18647_v36, %v18530_v9  ;;  %v2991_v2 = vmax.f32 %v18649_v8, %v18574_v30 }
 0x2ef   :  { %v3073_v35 = vmax.f32 %v3031_v0, %v3043_v57  ;;  %v3160_v39 = vpop.permute.xlu1 %3159 }
 0x2f0   :  { %v3118_v15 = vpop.permute.xlu0 %3117 }
 0x2f1   :  { %v3106_v49 = vmax.f32 %v3073_v35, %v18313_v60 }
 0x2f3   :  { %v3148_v59 = vmax.f32 %v3106_v49, %v3118_v15  ;;  %v18656_v38 = vpop.permute.xlu1 %2937 }
 0x2f4   :  { %v2896_v56 = vpop.permute.xlu0 %2895 }
 0x2f5   :  { %v18658_v28 = vmax.f32 %v3148_v59, %v3160_v39 }
 0x2f7   :  { %23404 = vst [vmem:[#allocation411_spill] sm:$0xff] %v18658_v28  ;;  %v3039_v29 = vpop.permute.xlu1 %3038 }
 0x2f8   :  { %v2997_v53 = vpop.permute.xlu0 %2996 }
 0x2fb   :  { %v3156_v24 = vpop.permute.xlu1 %3155 }
 0x2fc   :  { %v3114_v4 = vpop.permute.xlu0 %3113 }
 0x2ff   :  { %v2934_v45 = vpop.permute.xlu1 %2933 }
 0x300   :  { %v2892_v62 = vpop.permute.xlu0 %2891 }
 0x303   :  { %v2999_v3 = vpop.permute.xlu1 %2998 }
 0x304   :  { %v3014_v27 = vsel %vm1821_vm8, %v2997_v53, %v2999_v3  ;;  %v3015_v60 = vsel %vm1821_vm8, %v2999_v3, %v3001_v48  ;;  %v3041_v20 = vpop.permute.xlu0 %3040 }
 0x305   :  { %v3029_v7 = vmax.f32 %v2987_v17, %v3014_v27  ;;  %v3030_v1 = vmax.f32 %v2988_v63, %v3015_v60  ;;  %v3056_v47 = vsel %vm1864_vm9, %v3039_v29, %v3041_v20  ;;  %v3057_v6 = vsel %vm1864_vm9, %v3041_v20, %v3043_v57 }
 0x307   :  { %v3071_v23 = vmax.f32 %v3029_v7, %v3056_v47  ;;  %v3072_v18 = vmax.f32 %v3030_v1, %v3057_v6  ;;  %v3116_v34 = vpop.permute.xlu1 %3115  ;;  %v2920_v47 = vmax.f32 %v18324_v11, %v2896_v56 }
 0x308   :  { %v3158_v33 = vpop.permute.xlu0 %3157  ;;  %v3131_v46 = vsel %vm1821_vm8, %v3114_v4, %v3116_v34  ;;  %v3132_v12 = vsel %vm1821_vm8, %v3116_v34, %v3118_v15  ;;  %v2992_v15 = vmax.f32 %v18638_v42, %v18466_v58 }
 0x309   :  { %v3104_v55 = vmax.f32 %v3071_v23, %v18373_v26  ;;  %v3105_v31 = vmax.f32 %v3072_v18, %v18425_v51  ;;  %v3173_v0 = vsel %vm1864_vm9, %v3156_v24, %v3158_v33  ;;  %v3174_v35 = vsel %vm1864_vm9, %v3158_v33, %v3160_v39 }
 0x30a   :  { %v2962_v33 = vmax.f32 %v2920_v47, %v18656_v38 }
 0x30b   :  { %v3146_v44 = vmax.f32 %v3104_v55, %v3131_v46  ;;  %v3147_v61 = vmax.f32 %v3105_v31, %v3132_v12  ;;  %v2894_v48 = vpop.permute.xlu1 %2893 }
 0x30c   :  { %v2936_v57 = vpop.permute.xlu0 %2935  ;;  %v2901_v6 = vsel %vm1821_vm8, %v2892_v62, %v2894_v48  ;;  %v2902_v18 = vsel %vm1821_vm8, %v2894_v48, %v2896_v56  ;;  %v2995_v56 = vmax.f32 %v2962_v33, %v18445_v50 }
 0x30d   :  { %v18672_v49 = vmax.f32 %v3146_v44, %v3173_v0  ;;  %v18674_v59 = vmax.f32 %v3147_v61, %v3174_v35  ;;  %v2918_v58 = vmax.f32 %v18384_v25, %v2901_v6  ;;  %v2943_v55 = vsel %vm1864_vm9, %v2934_v45, %v2936_v57 }
 0x30e   :  { %v2944_v11 = vsel %vm1864_vm9, %v2936_v57, %v18656_v38 }
 0x30f   :  { %23405 = vst [vmem:[#allocation412_spill] sm:$0xff] %v18672_v49  ;;  %v3055_v29 = vpop.permute.xlu1 %3054  ;;  %v2960_v46 = vmax.f32 %v2918_v58, %v2943_v55 }
 0x310   :  { %v3013_v26 = vpop.permute.xlu0 %3012 }
 0x311   :  { %v3037_v61 = vmax.f32 %v2995_v56, %v3013_v26  ;;  %v2993_v48 = vmax.f32 %v2960_v46, %v18489_v13  ;;  %v23411_v56 = vld [vmem:[#allocation207_spill] sm:$0xff] }
 0x313   :  { %v3007_v53 = vpop.permute.xlu1 %3006 }
 0x314   :  { %v18676_v51 = vpop.permute.xlu0 %3129  ;;  %v3034_v17 = vmax.f32 %v2992_v15, %v3007_v53 }
 0x317   :  { %v3051_v4 = vpop.permute.xlu1 %3050 }
 0x318   :  { %v3009_v3 = vpop.permute.xlu0 %3008 }
 0x31b   :  { %v3124_v63 = vpop.permute.xlu1 %3123 }
 0x31c   :  { %v3049_v24 = vpop.permute.xlu0 %3048 }
 0x31d   :  { %v3076_v27 = vmax.f32 %v3034_v17, %v3049_v24  ;;  %v3079_v17 = vmax.f32 %v3037_v61, %v3055_v29 }
 0x31f   :  { %v3109_v39 = vmax.f32 %v3076_v27, %v18504_v14  ;;  %v18681_v60 = vpop.permute.xlu1 %3167  ;;  %v2919_v14 = vmax.f32 %v18431_v19, %v2902_v18 }
 0x320   :  { %v3126_v20 = vpop.permute.xlu0 %3125 }
 0x321   :  { %v3151_v1 = vmax.f32 %v3109_v39, %v3124_v63  ;;  %v2961_v12 = vmax.f32 %v2919_v14, %v2944_v11 }
 0x323   :  { %v3003_v7 = vpop.permute.xlu1 %3002  ;;  %v2994_v45 = vmax.f32 %v2961_v12, %v18540_v10 }
 0x324   :  { %v3166_v23 = vpop.permute.xlu0 %3165 }
 0x325   :  { %v18686_v34 = vmax.f32 %v3151_v1, %v3166_v23 }
 0x327   :  { %23406 = vst [vmem:[#allocation413_spill] sm:$0xff] %v18686_v34  ;;  %v3011_v42 = vpop.permute.xlu1 %3010 }
 0x328   :  { %v3045_v31 = vpop.permute.xlu0 %3044  ;;  %v3018_v25 = vsel %vm1821_vm8, %v3009_v3, %v3011_v42  ;;  %v3019_v0 = vsel %vm1821_vm8, %v3011_v42, %v3013_v26  ;;  %v3112_v26 = vmax.f32 %v3079_v17, %v18469_v52 }
 0x329   :  { %v3035_v38 = vmax.f32 %v2993_v48, %v3018_v25  ;;  %v3036_v27 = vmax.f32 %v2994_v45, %v3019_v0  ;;  %v23413_v25 = vld [vmem:[#allocation209_spill] sm:$0xff]  ;;  %v23414_v48 = vld [vmem:[#allocation214_spill] sm:$0xff]  ;;  %v23417_v45 = vld [vmem:[#allocation208_spill] sm:$0xff] }
 0x32a   :  { %v3154_v30 = vmax.f32 %v3112_v26, %v18676_v51  ;;  %v23415_v0 = vld [vmem:[#allocation206_spill] sm:$0xff] }
 0x32b   :  { %v3120_v62 = vpop.permute.xlu1 %3119 }
 0x32c   :  { %v3053_v44 = vpop.permute.xlu0 %3052 }
 0x32d   :  { %v3060_v35 = vsel %vm1864_vm9, %v3051_v4, %v3053_v44  ;;  %v3061_v57 = vsel %vm1864_vm9, %v3053_v44, %v3055_v29  ;;  %v23412_v44 = vld [vmem:[#allocation212_spill] sm:$0xff] }
 0x32e   :  { %v3077_v50 = vmax.f32 %v3035_v38, %v3060_v35  ;;  %v3078_v1 = vmax.f32 %v3036_v27, %v3061_v57  ;;  %v18739_v61 = vpack.c.bf16 %v23412_v44, %v23411_v56  ;;  %v23418_v35 = vld [vmem:[#allocation213_spill] sm:$0xff] }
 0x32f   :  { %v3128_v19 = vpop.permute.xlu1 %3127 }
 0x330   :  { %v3162_v15 = vpop.permute.xlu0 %3161  ;;  %v3110_v29 = vmax.f32 %v3077_v50, %v18516_v32  ;;  %v3136_v9 = vsel %vm1821_vm8, %v3128_v19, %v18676_v51 }
 0x333   :  { %v3047_v39 = vpop.permute.xlu1 %3046 }
 0x334   :  { %v3005_v47 = vpop.permute.xlu0 %3004  ;;  %v3058_v6 = vsel %vm1864_vm9, %v3045_v31, %v3047_v39  ;;  %v3059_v18 = vsel %vm1864_vm9, %v3047_v39, %v3049_v24 }
 0x335   :  { %v3016_v3 = vsel %vm1821_vm8, %v3003_v7, %v3005_v47  ;;  %v3017_v13 = vsel %vm1821_vm8, %v3005_v47, %v3007_v53  ;;  %v3111_v7 = vmax.f32 %v3078_v1, %v18560_v21  ;;  %v3135_v53 = vsel %vm1821_vm8, %v3126_v20, %v3128_v19 }
 0x336   :  { %v3032_v10 = vmax.f32 %v2990_v41, %v3016_v3  ;;  %v3033_v4 = vmax.f32 %v2991_v2, %v3017_v13  ;;  %v3152_v8 = vmax.f32 %v3110_v29, %v3135_v53 }
 0x337   :  { %v3164_v58 = vpop.permute.xlu1 %3163  ;;  %v3153_v24 = vmax.f32 %v3111_v7, %v3136_v9 }
 0x338   :  { %v3074_v52 = vmax.f32 %v3032_v10, %v3058_v6  ;;  %v3075_v42 = vmax.f32 %v3033_v4, %v3059_v18  ;;  %v3122_v33 = vpop.permute.xlu0 %3121  ;;  %v3175_v11 = vsel %vm1864_vm9, %v3162_v15, %v3164_v58  ;;  %v3176_v51 = vsel %vm1864_vm9, %v3164_v58, %v3166_v23 }
 0x339   :  { %v3133_v41 = vsel %vm1821_vm8, %v3120_v62, %v3122_v33  ;;  %v3134_v2 = vsel %vm1821_vm8, %v3122_v33, %v3124_v63  ;;  %v18743_v23 = vpack.c.bf16 %v23414_v48, %v23413_v25  ;;  %v18751_v15 = vpack.c.bf16 %v23418_v35, %v23417_v45 }
 0x33a   :  { %v3107_v36 = vmax.f32 %v3074_v52, %v18551_v22  ;;  %v3108_v32 = vmax.f32 %v3075_v42, %v18586_v37 }
 0x33b   :  { %v3172_v21 = vpop.permute.xlu1 %3171 }
 0x33c   :  { %v3149_v20 = vmax.f32 %v3107_v36, %v3133_v41  ;;  %v3150_v14 = vmax.f32 %v3108_v32, %v3134_v2  ;;  %v18722_v55 = vmax.f32 %v3154_v30, %v3172_v21  ;;  %v3170_v31 = vpop.permute.xlu0 %3169 }
 0x33d   :  { %v3177_v22 = vsel %vm1864_vm9, %v18681_v60, %v3170_v31  ;;  %v3178_v37 = vsel %vm1864_vm9, %v3170_v31, %v3172_v21  ;;  %v23416_v60 = vld [vmem:[#allocation211_spill] sm:$0xff] }
 0x33e   :  { %23407 = vst [vmem:[#allocation414_spill] sm:$0xff] %v18722_v55  ;;  %v18729_v46 = vmax.f32 %v3149_v20, %v3175_v11  ;;  %v18731_v62 = vmax.f32 %v3150_v14, %v3176_v51  ;;  %v18733_v63 = vmax.f32 %v3152_v8, %v3177_v22  ;;  %v18735_v12 = vmax.f32 %v3153_v24, %v3178_v37 }
 0x33f   :  { %v18747_v19 = vpack.c.bf16 %v23416_v60, %v23415_v0 }
 0x340   :  { %23408 = vst [vmem:[#allocation415_spill] sm:$0xff] %v18729_v46  ;;  %23409 = vst [vmem:[#allocation416_spill] sm:$0xff] %v18733_v63 }
 0x341   :  { %23410 = vst [vmem:[#allocation417_spill] sm:$0xff] %v18735_v12 }
 0x342   :  { %15052 = dma.done.wait [#allocation3], 51200 }
 0x343   :  { %15053 = vsyncadd [#allocation3], 4294916096  ;;  %v23419_v38 = vld [vmem:[#allocation217_spill] sm:$0xff]  ;;  %v23420_v57 = vld [vmem:[#allocation222_spill] sm:$0xff]  ;;  %13823 = vmatprep.subr.bf16.mxu0 %v18739_v61  ;;  %13903 = vmatprep.subr.bf16.mxu1 %v18743_v23  ;;  %v3617_v0 = vrot.slane %v18473_v40, 1  ;;  %v22764_v60 = vrot.slane %v18629_v43, 1 }
 0x344   :  { %v18755_v17 = vpack.c.bf16 %v23420_v57, %v23419_v38  ;;  %v23421_v27 = vld [vmem:[#allocation219_spill] sm:$0xff]  ;;  %v23422_v50 = vld [vmem:[#allocation224_spill] sm:$0xff]  ;;  %13825 = vmatpush1.bf16.msra.mxu0 %v18747_v19  ;;  %13905 = vmatpush1.bf16.msra.mxu1 %v18751_v15  ;;  %v23424_v47 = vld [vmem:[#allocation221_spill] sm:$0xff]  ;;  %vm3635_vm10 = vcmask 523264   ;;  %vm4946_vm11 = vcmask 1041408   ;;  %vm4954_vm12 = vcmask 517120  }
 0x345   :  { %v18759_v39 = vpack.c.bf16 %v23422_v50, %v23421_v27  ;;  %v23423_v1 = vld [vmem:[#allocation216_spill] sm:$0xff]  ;;  %v23425_v13 = vld [vmem:[#allocation218_spill] sm:$0xff]  ;;  %v23426_v26 = vld [vmem:[#allocation223_spill] sm:$0xff]  ;;  %vm5295_vm13 = vcmask 7168   ;;  %vm5299_vm14 = vcmask 15360   ;;  %vm5303_vm15 = vcmask 23552  }
 0x346   :  { %v18767_v3 = vpack.c.bf16 %v23424_v47, %v23423_v1  ;;  %v18771_v10 = vpack.c.bf16 %v23426_v26, %v23425_v13  ;;  %13827 = vmatprep.subr.bf16.mxu0 %v18755_v17  ;;  %v23427_v4 = vld [vmem:[#allocation227_spill] sm:$0xff]  ;;  %v23428_v29 = vld [vmem:[#allocation232_spill] sm:$0xff]  ;;  %v23429_v18 = vld [vmem:[#allocation229_spill] sm:$0xff]  ;;  %vm5307_vm1 = vcmask 31744   ;;  %vm5311_vm3 = vcmask 39936   ;;  %s15060_s25 = smov 8  }
 0x347   :  { %13907 = vmatprep.subr.bf16.mxu1 %v18759_v39  ;;  %v18777_v6 = vpack.c.bf16 %v23428_v29, %v23427_v4  ;;  %v23430_v58 = vld [vmem:[#allocation234_spill] sm:$0xff]  ;;  %v23432_v52 = vld [vmem:[#allocation231_spill] sm:$0xff]  ;;  %v23433_v33 = vld [vmem:[#allocation228_spill] sm:$0xff]  ;;  %vm5315_vm4 = vcmask 48128   ;;  %vm5319_vm8 = vcmask 56320   ;;  %s15061_s27 = smov 16  }
 0x348   :  { %v18781_v7 = vpack.c.bf16 %v23430_v58, %v23429_v18  ;;  %13829 = vmatpush1.bf16.msra.mxu0 %v18767_v3  ;;  %13909 = vmatpush1.bf16.msra.mxu1 %v18771_v10  ;;  %v23431_v53 = vld [vmem:[#allocation226_spill] sm:$0xff]  ;;  %v23434_v9 = vld [vmem:[#allocation233_spill] sm:$0xff]  ;;  %v23437_v41 = vld [vmem:[#allocation239_spill] sm:$0xff]  ;;  %v18848_v18 = vsel %vm1141_vm5, %v3617_v0, %v22764_v60 }
 0x349   :  { %v18787_v42 = vpack.c.bf16 %v23432_v52, %v23431_v53  ;;  %v18791_v30 = vpack.c.bf16 %v23434_v9, %v23433_v33  ;;  %13831 = vmatprep.subr.bf16.mxu0 %v18777_v6  ;;  %v23435_v36 = vld [vmem:[#allocation237_spill] sm:$0xff]  ;;  %v23436_v32 = vld [vmem:[#allocation242_spill] sm:$0xff]  ;;  %v23438_v2 = vld [vmem:[#allocation244_spill] sm:$0xff]  ;;  %3706 = vmatprep.mubr.f32.mxu0 %v18848_v18 }
 0x34a   :  { %13911 = vmatprep.subr.bf16.mxu1 %v18781_v7  ;;  %v18797_v8 = vpack.c.bf16 %v23436_v32, %v23435_v36  ;;  %v18801_v21 = vpack.c.bf16 %v23438_v2, %v23437_v41  ;;  %v23439_v24 = vld [vmem:[#allocation236_spill] sm:$0xff]  ;;  %v23440_v20 = vld [vmem:[#allocation241_spill] sm:$0xff]  ;;  %v23441_v31 = vld [vmem:[#allocation238_spill] sm:$0xff]  ;;  %3872 = vmatprep.mubr.f32.mxu1 %v18848_v18 }
 0x34b   :  { %v18807_v14 = vpack.c.bf16 %v23440_v20, %v23439_v24  ;;  %v23442_v11 = vld [vmem:[#allocation243_spill] sm:$0xff]  ;;  %v23444_v37 = vld [vmem:[#allocation252_spill] sm:$0xff]  ;;  %v23445_v44 = vld [vmem:[#allocation249_spill] sm:$0xff] }
 0x34c   :  { %13833 = vmatpush1.bf16.msra.mxu0 %v18787_v42  ;;  %13913 = vmatpush1.bf16.msra.mxu1 %v18791_v30  ;;  %v18811_v51 = vpack.c.bf16 %v23442_v11, %v23441_v31  ;;  %v23443_v22 = vld [vmem:[#allocation247_spill] sm:$0xff]  ;;  %v23446_v25 = vld [vmem:[#allocation254_spill] sm:$0xff]  ;;  %v23449_v57 = vld [vmem:[#allocation248_spill] sm:$0xff] }
 0x34d   :  { %13835 = vmatprep.subr.bf16.mxu0 %v18797_v8  ;;  %13915 = vmatprep.subr.bf16.mxu1 %v18801_v21  ;;  %v18817_v56 = vpack.c.bf16 %v23444_v37, %v23443_v22  ;;  %v18821_v48 = vpack.c.bf16 %v23446_v25, %v23445_v44  ;;  %v23447_v45 = vld [vmem:[#allocation246_spill] sm:$0xff]  ;;  %v23448_v35 = vld [vmem:[#allocation251_spill] sm:$0xff]  ;;  %v23450_v27 = vld [vmem:[#allocation253_spill] sm:$0xff] }
 0x34e   :  { %v18829_v38 = vpack.c.bf16 %v23448_v35, %v23447_v45  ;;  %v18833_v50 = vpack.c.bf16 %v23450_v27, %v23449_v57  ;;  %v23451_v1 = vld [vmem:[#allocation257_spill] sm:$0xff]  ;;  %v23452_v47 = vld [vmem:[#allocation262_spill] sm:$0xff]  ;;  %v23453_v26 = vld [vmem:[#allocation259_spill] sm:$0xff] }
 0x34f   :  { %v18839_v13 = vpack.c.bf16 %v23452_v47, %v23451_v1  ;;  %v23454_v4 = vld [vmem:[#allocation264_spill] sm:$0xff]  ;;  %v23456_v53 = vld [vmem:[#allocation261_spill] sm:$0xff]  ;;  %v23457_v33 = vld [vmem:[#allocation258_spill] sm:$0xff] }
 0x350   :  { %13837 = vmatpush1.bf16.msra.mxu0 %v18807_v14  ;;  %13917 = vmatpush1.bf16.msra.mxu1 %v18811_v51  ;;  %v18843_v29 = vpack.c.bf16 %v23454_v4, %v23453_v26  ;;  %v23455_v58 = vld [vmem:[#allocation256_spill] sm:$0xff]  ;;  %v23458_v9 = vld [vmem:[#allocation263_spill] sm:$0xff]  ;;  %v23461_v24 = vld [vmem:[#allocation269_spill] sm:$0xff] }
 0x351   :  { %13839 = vmatprep.subr.bf16.mxu0 %v18817_v56  ;;  %13919 = vmatprep.subr.bf16.mxu1 %v18821_v48  ;;  %v18854_v52 = vpack.c.bf16 %v23456_v53, %v23455_v58  ;;  %v18858_v36 = vpack.c.bf16 %v23458_v9, %v23457_v33  ;;  %v23459_v32 = vld [vmem:[#allocation267_spill] sm:$0xff]  ;;  %v23460_v41 = vld [vmem:[#allocation272_spill] sm:$0xff]  ;;  %v23462_v20 = vld [vmem:[#allocation274_spill] sm:$0xff] }
 0x352   :  { %v18864_v2 = vpack.c.bf16 %v23460_v41, %v23459_v32  ;;  %v18868_v31 = vpack.c.bf16 %v23462_v20, %v23461_v24  ;;  %v23463_v11 = vld [vmem:[#allocation266_spill] sm:$0xff]  ;;  %v23464_v22 = vld [vmem:[#allocation271_spill] sm:$0xff]  ;;  %v23465_v44 = vld [vmem:[#allocation268_spill] sm:$0xff] }
 0x353   :  { %v18876_v37 = vpack.c.bf16 %v23464_v22, %v23463_v11  ;;  %v23466_v25 = vld [vmem:[#allocation273_spill] sm:$0xff]  ;;  %v23468_v35 = vld [vmem:[#allocation282_spill] sm:$0xff]  ;;  %v23470_v27 = vld [vmem:[#allocation279_spill] sm:$0xff] }
 0x354   :  { %13841 = vmatpush1.bf16.msra.mxu0 %v18829_v38  ;;  %13921 = vmatpush1.bf16.msra.mxu1 %v18833_v50  ;;  %v18880_v0 = vpack.c.bf16 %v23466_v25, %v23465_v44  ;;  %v23467_v45 = vld [vmem:[#allocation277_spill] sm:$0xff]  ;;  %v23471_v1 = vld [vmem:[#allocation284_spill] sm:$0xff]  ;;  %v23476_v53 = vld [vmem:[#allocation278_spill] sm:$0xff] }
 0x355   :  { %13843 = vmatprep.subr.bf16.mxu0 %v18839_v13  ;;  %13923 = vmatprep.subr.bf16.mxu1 %v18843_v29  ;;  %v18886_v57 = vpack.c.bf16 %v23468_v35, %v23467_v45  ;;  %v18890_v47 = vpack.c.bf16 %v23471_v1, %v23470_v27  ;;  %v23473_v26 = vld [vmem:[#allocation276_spill] sm:$0xff]  ;;  %v23474_v4 = vld [vmem:[#allocation281_spill] sm:$0xff]  ;;  %v23477_v33 = vld [vmem:[#allocation283_spill] sm:$0xff] }
 0x356   :  { %v18896_v58 = vpack.c.bf16 %v23474_v4, %v23473_v26  ;;  %v18900_v9 = vpack.c.bf16 %v23477_v33, %v23476_v53  ;;  %v23479_v32 = vld [vmem:[#allocation287_spill] sm:$0xff]  ;;  %v23480_v41 = vld [vmem:[#allocation292_spill] sm:$0xff]  ;;  %v23482_v20 = vld [vmem:[#allocation289_spill] sm:$0xff] }
 0x357   :  { %23469 = vst [vmem:[#allocation207_spill] sm:$0xff] %v18886_v57  ;;  %23472 = vst [vmem:[#allocation212_spill] sm:$0xff] %v18890_v47  ;;  %v18906_v24 = vpack.c.bf16 %v23480_v41, %v23479_v32  ;;  %v23483_v11 = vld [vmem:[#allocation294_spill] sm:$0xff]  ;;  %v23486_v25 = vld [vmem:[#allocation291_spill] sm:$0xff] }
 0x358   :  { %13845 = vmatpush1.bf16.msra.mxu0 %v18854_v52  ;;  %13925 = vmatpush1.bf16.msra.mxu1 %v18858_v36  ;;  %23475 = vst [vmem:[#allocation209_spill] sm:$0xff] %v18896_v58  ;;  %23478 = vst [vmem:[#allocation214_spill] sm:$0xff] %v18900_v9  ;;  %v18910_v22 = vpack.c.bf16 %v23483_v11, %v23482_v20  ;;  %v23485_v44 = vld [vmem:[#allocation286_spill] sm:$0xff]  ;;  %v23488_v35 = vld [vmem:[#allocation288_spill] sm:$0xff] }
 0x359   :  { %13847 = vmatprep.subr.bf16.mxu0 %v18864_v2  ;;  %13927 = vmatprep.subr.bf16.mxu1 %v18868_v31  ;;  %23481 = vst [vmem:[#allocation206_spill] sm:$0xff] %v18906_v24  ;;  %v18916_v45 = vpack.c.bf16 %v23486_v25, %v23485_v44  ;;  %v23489_v27 = vld [vmem:[#allocation293_spill] sm:$0xff]  ;;  %v23492_v4 = vld [vmem:[#allocation302_spill] sm:$0xff]  ;;  %v23494_v33 = vld [vmem:[#allocation299_spill] sm:$0xff] }
 0x35a   :  { %23484 = vst [vmem:[#allocation211_spill] sm:$0xff] %v18910_v22  ;;  %v18920_v1 = vpack.c.bf16 %v23489_v27, %v23488_v35  ;;  %v23491_v26 = vld [vmem:[#allocation297_spill] sm:$0xff]  ;;  %v23495_v32 = vld [vmem:[#allocation304_spill] sm:$0xff]  ;;  %v23500_v25 = vld [vmem:[#allocation298_spill] sm:$0xff] }
 0x35b   :  { %23487 = vst [vmem:[#allocation208_spill] sm:$0xff] %v18916_v45  ;;  %v18926_v53 = vpack.c.bf16 %v23492_v4, %v23491_v26  ;;  %v18930_v41 = vpack.c.bf16 %v23495_v32, %v23494_v33  ;;  %v23497_v20 = vld [vmem:[#allocation296_spill] sm:$0xff]  ;;  %v23498_v11 = vld [vmem:[#allocation301_spill] sm:$0xff]  ;;  %v23501_v35 = vld [vmem:[#allocation303_spill] sm:$0xff] }
 0x35c   :  { %13849 = vmatpush1.bf16.msra.mxu0 %v18876_v37  ;;  %13929 = vmatpush1.bf16.msra.mxu1 %v18880_v0  ;;  %23490 = vst [vmem:[#allocation213_spill] sm:$0xff] %v18920_v1  ;;  %v18936_v44 = vpack.c.bf16 %v23498_v11, %v23497_v20  ;;  %v18940_v27 = vpack.c.bf16 %v23501_v35, %v23500_v25  ;;  %v23503_v26 = vld [vmem:[#allocation307_spill] sm:$0xff]  ;;  %v23504_v4 = vld [vmem:[#allocation312_spill] sm:$0xff]  ;;  %v23506_v32 = vld [vmem:[#allocation309_spill] sm:$0xff] }
 0x35d   :  { %13851 = vmatprep.subr.bf16.mxu0 %v18886_v57  ;;  %13931 = vmatprep.subr.bf16.mxu1 %v18890_v47  ;;  %23493 = vst [vmem:[#allocation217_spill] sm:$0xff] %v18926_v53  ;;  %23496 = vst [vmem:[#allocation222_spill] sm:$0xff] %v18930_v41  ;;  %v18946_v33 = vpack.c.bf16 %v23504_v4, %v23503_v26  ;;  %v23507_v60 = vld [vmem:[#allocation314_spill] sm:$0xff]  ;;  %v23510_v11 = vld [vmem:[#allocation311_spill] sm:$0xff] }
 0x35e   :  { %23499 = vst [vmem:[#allocation219_spill] sm:$0xff] %v18936_v44  ;;  %23502 = vst [vmem:[#allocation224_spill] sm:$0xff] %v18940_v27  ;;  %v18950_v55 = vpack.c.bf16 %v23507_v60, %v23506_v32  ;;  %v23509_v20 = vld [vmem:[#allocation306_spill] sm:$0xff]  ;;  %v23512_v35 = vld [vmem:[#allocation308_spill] sm:$0xff] }
 0x35f   :  { %23505 = vst [vmem:[#allocation216_spill] sm:$0xff] %v18946_v33  ;;  %v18956_v25 = vpack.c.bf16 %v23510_v11, %v23509_v20  ;;  %v23513_v34 = vld [vmem:[#allocation313_spill] sm:$0xff]  ;;  %v23516_v4 = vld [vmem:[#allocation322_spill] sm:$0xff]  ;;  %v23518_v32 = vld [vmem:[#allocation319_spill] sm:$0xff] }
 0x360   :  { %13853 = vmatpush1.bf16.msra.mxu0 %v18896_v58  ;;  %13933 = vmatpush1.bf16.msra.mxu1 %v18900_v9  ;;  %23508 = vst [vmem:[#allocation221_spill] sm:$0xff] %v18950_v55  ;;  %v18960_v28 = vpack.c.bf16 %v23513_v34, %v23512_v35  ;;  %v23515_v26 = vld [vmem:[#allocation317_spill] sm:$0xff]  ;;  %v23519_v63 = vld [vmem:[#allocation324_spill] sm:$0xff]  ;;  %v23524_v35 = vld [vmem:[#allocation318_spill] sm:$0xff] }
 0x361   :  { %13855 = vmatprep.subr.bf16.mxu0 %v18906_v24  ;;  %13935 = vmatprep.subr.bf16.mxu1 %v18910_v22  ;;  %23511 = vst [vmem:[#allocation218_spill] sm:$0xff] %v18956_v25  ;;  %v18966_v60 = vpack.c.bf16 %v23516_v4, %v23515_v26  ;;  %v18970_v12 = vpack.c.bf16 %v23519_v63, %v23518_v32  ;;  %v23521_v20 = vld [vmem:[#allocation316_spill] sm:$0xff]  ;;  %v23522_v11 = vld [vmem:[#allocation321_spill] sm:$0xff]  ;;  %v23525_v46 = vld [vmem:[#allocation323_spill] sm:$0xff]  ;;  %v23638_v24 = vmov 0.0|0.0  }
 0x362   :  { %23514 = vst [vmem:[#allocation223_spill] sm:$0xff] %v18960_v28  ;;  %v18976_v34 = vpack.c.bf16 %v23522_v11, %v23521_v20  ;;  %v18980_v49 = vpack.c.bf16 %v23525_v46, %v23524_v35  ;;  %v23527_v26 = vld [vmem:[#allocation327_spill] sm:$0xff]  ;;  %v23528_v4 = vld [vmem:[#allocation332_spill] sm:$0xff]  ;;  %v23530_v32 = vld [vmem:[#allocation329_spill] sm:$0xff] }
 0x363   :  { %23517 = vst [vmem:[#allocation227_spill] sm:$0xff] %v18966_v60  ;;  %23520 = vst [vmem:[#allocation232_spill] sm:$0xff] %v18970_v12  ;;  %v18986_v63 = vpack.c.bf16 %v23528_v4, %v23527_v26  ;;  %v23533_v20 = vld [vmem:[#allocation326_spill] sm:$0xff]  ;;  %v23534_v11 = vld [vmem:[#allocation331_spill] sm:$0xff] }
 0x364   :  { %13857 = vmatpush1.bf16.msra.mxu0 %v18916_v45  ;;  %13937 = vmatpush1.bf16.msra.mxu1 %v18920_v1  ;;  %23523 = vst [vmem:[#allocation229_spill] sm:$0xff] %v18976_v34  ;;  %23526 = vst [vmem:[#allocation234_spill] sm:$0xff] %v18980_v49  ;;  %v18996_v46 = vpack.c.bf16 %v23534_v11, %v23533_v20  ;;  %v23536_v35 = vld [vmem:[#allocation328_spill] sm:$0xff]  ;;  %v23539_v26 = vld [vmem:[#allocation337_spill] sm:$0xff] }
 0x365   :  { %13859 = vmatprep.subr.bf16.mxu0 %v18926_v53  ;;  %13939 = vmatprep.subr.bf16.mxu1 %v18930_v41  ;;  %23529 = vst [vmem:[#allocation226_spill] sm:$0xff] %v18986_v63  ;;  %v23540_v4 = vld [vmem:[#allocation342_spill] sm:$0xff]  ;;  %v23545_v20 = vld [vmem:[#allocation336_spill] sm:$0xff]  ;;  %v23546_v11 = vld [vmem:[#allocation341_spill] sm:$0xff] }
 0x366   :  { %23535 = vst [vmem:[#allocation228_spill] sm:$0xff] %v18996_v46  ;;  %v23605_v53 = vld [vmem:[#allocation394_spill] sm:$0xff]  ;;  %v23640_v9 = vld [vmem:[#allocation305_spill] sm:$0xff]  ;;  %v23649_v58 = vld [vmem:[#allocation315_spill] sm:$0xff] }
 0x367   :  { %v23668_v47 = vld [vmem:[#allocation9_spill] sm:$0xff] }
 0x368   :  { %13861 = vmatpush1.bf16.msra.mxu0 %v18936_v44  ;;  %13941 = vmatpush1.bf16.msra.mxu1 %v18940_v27  ;;  %v23592_v44 = vld [vmem:[#allocation384_spill] sm:$0xff] }
 0x369   :  { %13863 = vmatprep.subr.bf16.mxu0 %v18946_v33  ;;  %13943 = vmatprep.subr.bf16.mxu1 %v18950_v55 }
 0x36c   :  { %13865 = vmatpush1.bf16.msra.mxu0 %v18956_v25  ;;  %13945 = vmatpush1.bf16.msra.mxu1 %v18960_v28  ;;  %v23531_v25 = vld [vmem:[#allocation334_spill] sm:$0xff] }
 0x36d   :  { %13867 = vmatprep.subr.bf16.mxu0 %v18966_v60  ;;  %13947 = vmatprep.subr.bf16.mxu1 %v18970_v12  ;;  %v18990_v55 = vpack.c.bf16 %v23531_v25, %v23530_v32  ;;  %v23537_v60 = vld [vmem:[#allocation333_spill] sm:$0xff]  ;;  %v19006_v25 = vpack.c.bf16 %v23540_v4, %v23539_v26  ;;  %v23542_v32 = vld [vmem:[#allocation339_spill] sm:$0xff]  ;;  %v23552_v4 = vld [vmem:[#allocation352_spill] sm:$0xff] }
 0x36e   :  { %v19000_v28 = vpack.c.bf16 %v23537_v60, %v23536_v35  ;;  %v19016_v60 = vpack.c.bf16 %v23546_v11, %v23545_v20  ;;  %v23548_v35 = vld [vmem:[#allocation338_spill] sm:$0xff]  ;;  %v23551_v26 = vld [vmem:[#allocation347_spill] sm:$0xff] }
 0x36f   :  { %23532 = vst [vmem:[#allocation231_spill] sm:$0xff] %v18990_v55  ;;  %23541 = vst [vmem:[#allocation237_spill] sm:$0xff] %v19006_v25  ;;  %v23557_v20 = vld [vmem:[#allocation346_spill] sm:$0xff]  ;;  %v23558_v11 = vld [vmem:[#allocation351_spill] sm:$0xff] }
 0x370   :  { %13869 = vmatpush1.bf16.msra.mxu0 %v18976_v34  ;;  %13949 = vmatpush1.bf16.msra.mxu1 %v18980_v49  ;;  %23538 = vst [vmem:[#allocation233_spill] sm:$0xff] %v19000_v28  ;;  %v23543_v34 = vld [vmem:[#allocation344_spill] sm:$0xff]  ;;  %23547 = vst [vmem:[#allocation239_spill] sm:$0xff] %v19016_v60 }
 0x371   :  { %13871 = vmatprep.subr.bf16.mxu0 %v18986_v63  ;;  %13951 = vmatprep.subr.bf16.mxu1 %v18990_v55  ;;  %v19010_v12 = vpack.c.bf16 %v23543_v34, %v23542_v32  ;;  %v23549_v63 = vld [vmem:[#allocation343_spill] sm:$0xff]  ;;  %v19026_v34 = vpack.c.bf16 %v23552_v4, %v23551_v26  ;;  %v23554_v32 = vld [vmem:[#allocation349_spill] sm:$0xff]  ;;  %v23564_v4 = vld [vmem:[#allocation362_spill] sm:$0xff] }
 0x372   :  { %v19020_v49 = vpack.c.bf16 %v23549_v63, %v23548_v35  ;;  %v19036_v63 = vpack.c.bf16 %v23558_v11, %v23557_v20  ;;  %v23560_v35 = vld [vmem:[#allocation348_spill] sm:$0xff]  ;;  %v23563_v26 = vld [vmem:[#allocation357_spill] sm:$0xff] }
 0x373   :  { %23544 = vst [vmem:[#allocation242_spill] sm:$0xff] %v19010_v12  ;;  %23553 = vst [vmem:[#allocation236_spill] sm:$0xff] %v19026_v34  ;;  %v23569_v20 = vld [vmem:[#allocation356_spill] sm:$0xff]  ;;  %v23570_v11 = vld [vmem:[#allocation361_spill] sm:$0xff] }
 0x374   :  { %13873 = vmatpush1.bf16.msra.mxu0 %v18996_v46  ;;  %13953 = vmatpush1.bf16.msra.mxu1 %v19000_v28  ;;  %23550 = vst [vmem:[#allocation244_spill] sm:$0xff] %v19020_v49  ;;  %v23555_v46 = vld [vmem:[#allocation354_spill] sm:$0xff]  ;;  %23559 = vst [vmem:[#allocation238_spill] sm:$0xff] %v19036_v63 }
 0x375   :  { %13875 = vmatprep.subr.bf16.mxu0 %v19006_v25  ;;  %13955 = vmatprep.subr.bf16.mxu1 %v19010_v12  ;;  %v19030_v55 = vpack.c.bf16 %v23555_v46, %v23554_v32  ;;  %v23561_v25 = vld [vmem:[#allocation353_spill] sm:$0xff]  ;;  %v19046_v46 = vpack.c.bf16 %v23564_v4, %v23563_v26  ;;  %v23566_v32 = vld [vmem:[#allocation359_spill] sm:$0xff]  ;;  %v3615_v26 = vrot.slane %v18627_v5, 1  ;;  %v23577_v4 = vld [vmem:[#allocation372_spill] sm:$0xff] }
 0x376   :  { %v19040_v28 = vpack.c.bf16 %v23561_v25, %v23560_v35  ;;  %v19056_v25 = vpack.c.bf16 %v23570_v11, %v23569_v20  ;;  %v23572_v35 = vld [vmem:[#allocation358_spill] sm:$0xff]  ;;  %v19075_v11 = vrot.slane %v18606_v54, 1 }
 0x377   :  { %23556 = vst [vmem:[#allocation241_spill] sm:$0xff] %v19030_v55  ;;  %23565 = vst [vmem:[#allocation247_spill] sm:$0xff] %v19046_v46 }
 0x378   :  { %13877 = vmatpush1.bf16.msra.mxu0 %v19016_v60  ;;  %13957 = vmatpush1.bf16.msra.mxu1 %v19020_v49  ;;  %23562 = vst [vmem:[#allocation243_spill] sm:$0xff] %v19040_v28  ;;  %v23567_v60 = vld [vmem:[#allocation364_spill] sm:$0xff]  ;;  %23571 = vst [vmem:[#allocation249_spill] sm:$0xff] %v19056_v25 }
 0x379   :  { %13879 = vmatprep.subr.bf16.mxu0 %v19026_v34  ;;  %13959 = vmatprep.subr.bf16.mxu1 %v19030_v55  ;;  %v19050_v12 = vpack.c.bf16 %v23567_v60, %v23566_v32  ;;  %v23573_v34 = vld [vmem:[#allocation363_spill] sm:$0xff]  ;;  %v23575_v55 = vld [vmem:[#allocation408_spill] sm:$0xff] }
 0x37a   :  { %v19060_v49 = vpack.c.bf16 %v23573_v34, %v23572_v35  ;;  %v3614_v33 = vrot.slane %v23575_v55, 1  ;;  %v23576_v60 = vld [vmem:[#allocation367_spill] sm:$0xff]  ;;  %v23582_v35 = vld [vmem:[#allocation366_spill] sm:$0xff] }
 0x37b   :  { %23568 = vst [vmem:[#allocation252_spill] sm:$0xff] %v19050_v12  ;;  %v19068_v32 = vpack.c.bf16 %v23577_v4, %v23576_v60  ;;  %v23585_v60 = vld [vmem:[#allocation368_spill] sm:$0xff]  ;;  %v23586_v4 = vld [vmem:[#allocation373_spill] sm:$0xff] }
 0x37c   :  { %13881 = vmatpush1.bf16.msra.mxu0 %v19036_v63  ;;  %13961 = vmatpush1.bf16.msra.mxu1 %v19040_v28  ;;  %23574 = vst [vmem:[#allocation254_spill] sm:$0xff] %v19060_v49  ;;  %v23579_v28 = vld [vmem:[#allocation369_spill] sm:$0xff]  ;;  %v23580_v63 = vld [vmem:[#allocation374_spill] sm:$0xff]  ;;  %v19080_v34 = vsel %vm1141_vm5, %v3614_v33, %v3615_v26  ;;  %v19088_v27 = vpack.c.bf16 %v23586_v4, %v23585_v60  ;;  %v23591_v33 = vld [vmem:[#allocation379_spill] sm:$0xff] }
 0x37d   :  { %13883 = vmatprep.subr.bf16.mxu0 %v19046_v46  ;;  %13963 = vmatprep.subr.bf16.mxu1 %v19050_v12  ;;  %23578 = vst [vmem:[#allocation246_spill] sm:$0xff] %v19068_v32  ;;  %v19072_v20 = vpack.c.bf16 %v23580_v63, %v23579_v28  ;;  %v23583_v12 = vld [vmem:[#allocation371_spill] sm:$0xff]  ;;  %v19091_v28 = vrot.slane %v18604_v16, 1  ;;  %v23588_v63 = vld [vmem:[#allocation377_spill] sm:$0xff]  ;;  %v19101_v41 = vpack.c.bf16 %v23592_v44, %v23591_v33  ;;  %v23598_v44 = vld [vmem:[#allocation378_spill] sm:$0xff] }
 0x37e   :  { %v19084_v46 = vpack.c.bf16 %v23583_v12, %v23582_v35  ;;  %23587 = vst [vmem:[#allocation253_spill] sm:$0xff] %v19088_v27  ;;  %v23594_v12 = vrot.slane %v18629_v43, 1  ;;  %v23596_v60 = vld [vmem:[#allocation381_spill] sm:$0xff] }
 0x37f   :  { %23581 = vst [vmem:[#allocation251_spill] sm:$0xff] %v19072_v20  ;;  %23593 = vst [vmem:[#allocation262_spill] sm:$0xff] %v19101_v41 }
 0x380   :  { %13885 = vmatpush1.bf16.msra.mxu0 %v19056_v25  ;;  %13965 = vmatpush1.bf16.msra.mxu1 %v19060_v49  ;;  %23584 = vst [vmem:[#allocation248_spill] sm:$0xff] %v19084_v46  ;;  %v23589_v49 = vld [vmem:[#allocation382_spill] sm:$0xff]  ;;  %v19109_v35 = vsel %vm1141_vm5, %v23594_v12, %v19075_v11  ;;  %v23601_v12 = vld [vmem:[#allocation387_spill] sm:$0xff] }
 0x381   :  { %13887 = vmatprep.subr.bf16.mxu0 %v19068_v32  ;;  %13967 = vmatprep.subr.bf16.mxu1 %v19072_v20  ;;  %v19097_v25 = vpack.c.bf16 %v23589_v49, %v23588_v63  ;;  %v23595_v49 = vld [vmem:[#allocation376_spill] sm:$0xff]  ;;  %v23599_v63 = vld [vmem:[#allocation383_spill] sm:$0xff]  ;;  %v19123_v20 = vsel %vm1141_vm5, %v3615_v26, %v19091_v28  ;;  %v23607_v26 = vld [vmem:[#allocation386_spill] sm:$0xff] }
 0x382   :  { %v19115_v4 = vpack.c.bf16 %v23596_v60, %v23595_v49  ;;  %v19119_v33 = vpack.c.bf16 %v23599_v63, %v23598_v44  ;;  %v23608_v60 = vld [vmem:[#allocation391_spill] sm:$0xff]  ;;  %v23610_v44 = vld [vmem:[#allocation388_spill] sm:$0xff]  ;;  %v23611_v63 = vld [vmem:[#allocation393_spill] sm:$0xff] }
 0x383   :  { %23590 = vst [vmem:[#allocation257_spill] sm:$0xff] %v19097_v25  ;;  %3707 = vmatmul.mubr.f32.vlgmr.msra.gmra.mrb[12].mxu0 %v19080_v34  ;;  %3873 = vmatmul.mubr.f32.vlgmr.msra.gmra.mrb[12].mxu1 %v19080_v34 }
 0x384   :  { %13889 = vmatpush1.bf16.msra.mxu0 %v19084_v46  ;;  %13969 = vmatpush1.bf16.msra.mxu1 %v19088_v27  ;;  %23597 = vst [vmem:[#allocation259_spill] sm:$0xff] %v19115_v4  ;;  %23600 = vst [vmem:[#allocation264_spill] sm:$0xff] %v19119_v33  ;;  %v23602_v46 = vld [vmem:[#allocation392_spill] sm:$0xff]  ;;  %v23604_v27 = vld [vmem:[#allocation389_spill] sm:$0xff] }
 0x385   :  { %13891 = vmatprep.subr.bf16.mxu0 %v19097_v25  ;;  %13971 = vmatprep.subr.bf16.mxu1 %v19101_v41  ;;  %v19129_v32 = vpack.c.bf16 %v23602_v46, %v23601_v12  ;;  %v19133_v49 = vpack.c.bf16 %v23605_v53, %v23604_v27  ;;  %v19143_v46 = vpack.c.bf16 %v23608_v60, %v23607_v26  ;;  %v23613_v27 = vld [vmem:[#allocation397_spill] sm:$0xff]  ;;  %v23614_v12 = vld [vmem:[#allocation402_spill] sm:$0xff]  ;;  %v23616_v25 = vld [vmem:[#allocation399_spill] sm:$0xff] }
 0x386   :  { %3712 = vmatprep.mubr.f32.mxu0 %v19109_v35  ;;  %3878 = vmatprep.mubr.f32.mxu1 %v19109_v35  ;;  %v19147_v53 = vpack.c.bf16 %v23611_v63, %v23610_v44  ;;  %v19153_v41 = vpack.c.bf16 %v23614_v12, %v23613_v27  ;;  %v23619_v26 = vld [vmem:[#allocation396_spill] sm:$0xff]  ;;  %v23620_v60 = vld [vmem:[#allocation401_spill] sm:$0xff]  ;;  %v23622_v63 = vld [vmem:[#allocation398_spill] sm:$0xff] }
 0x387   :  { %23603 = vst [vmem:[#allocation256_spill] sm:$0xff] %v19129_v32  ;;  %23606 = vst [vmem:[#allocation261_spill] sm:$0xff] %v19133_v49  ;;  %3713 = vmatmul.mubr.f32.gmra.mrb[14].mxu0 %v19123_v20  ;;  %3879 = vmatmul.mubr.f32.gmra.mrb[14].mxu1 %v19123_v20  ;;  %v19167_v44 = vpack.c.bf16 %v23620_v60, %v23619_v26  ;;  %v23623_v27 = vld [vmem:[#allocation403_spill] sm:$0xff]  ;;  %v23631_v60 = vld [vmem:[#allocation210_spill] sm:$0xff] }
 0x388   :  { %13893 = vmatpush1.bf16.msra.mxu0 %v19115_v4  ;;  %13973 = vmatpush1.bf16.msra.mxu1 %v19119_v33  ;;  %23609 = vst [vmem:[#allocation258_spill] sm:$0xff] %v19143_v46  ;;  %23612 = vst [vmem:[#allocation263_spill] sm:$0xff] %v19147_v53  ;;  %v23617_v4 = vld [vmem:[#allocation404_spill] sm:$0xff]  ;;  %v23627_v33 = vld [vmem:[#allocation290_spill] sm:$0xff] }
 0x389   :  { %13895 = vmatprep.subr.bf16.mxu0 %v19129_v32  ;;  %13975 = vmatprep.subr.bf16.mxu1 %v19133_v49  ;;  %23615 = vst [vmem:[#allocation267_spill] sm:$0xff] %v19153_v41  ;;  %v19157_v1 = vpack.c.bf16 %v23617_v4, %v23616_v25  ;;  %23621 = vst [vmem:[#allocation269_spill] sm:$0xff] %v19167_v44  ;;  %v19171_v25 = vpack.c.bf16 %v23623_v27, %v23622_v63  ;;  %v23625_v4 = vld [vmem:[#allocation407_spill] sm:$0xff]  ;;  %v23626_v49 = vld [vmem:[#allocation410_spill] sm:$0xff] }
 0x38a   :  { %3718 = vmatprep.mubr.f32.mxu0 %v19075_v11  ;;  %3884 = vmatprep.mubr.f32.mxu1 %v19075_v11  ;;  %v3620_v12 = vrot.slane %v23625_v4, 1  ;;  %v3621_v32 = vrot.slane %v23626_v49, 1  ;;  %v23632_v63 = vld [vmem:[#allocation215_spill] sm:$0xff] }
 0x38b   :  { %23618 = vst [vmem:[#allocation272_spill] sm:$0xff] %v19157_v1  ;;  %3719 = vmatmul.mubr.f32.gmra.mrb[16].mxu0 %v19091_v28  ;;  %3885 = vmatmul.mubr.f32.gmra.mrb[16].mxu1 %v19091_v28  ;;  %23624 = vst [vmem:[#allocation274_spill] sm:$0xff] %v19171_v25  ;;  %v19188_v27 = vpack.c.bf16 %v23632_v63, %v23631_v60  ;;  %v23645_v60 = vld [vmem:[#allocation380_spill] sm:$0xff]  ;;  %v23646_v63 = vld [vmem:[#allocation385_spill] sm:$0xff] }
 0x38c   :  { %13897 = vmatpush1.bf16.msra.mxu0 %v19143_v46  ;;  %13977 = vmatpush1.bf16.msra.mxu1 %v19147_v53  ;;  %v23628_v46 = vld [vmem:[#allocation295_spill] sm:$0xff]  ;;  %v23630_v53 = vmov 0.0   ;;  %v3622_v26 = vsel %vm1141_vm5, %v3620_v12, %v3621_v32 }
 0x38d   :  { %13899 = vmatprep.subr.bf16.mxu0 %v19153_v41  ;;  %13979 = vmatprep.subr.bf16.mxu1 %v19157_v1  ;;  %v19179_v45 = vpack.c.bf16 %v23628_v46, %v23627_v33  ;;  %23633 = vst [vmem:[#allocation271_spill] sm:$0xff] %v19188_v27  ;;  %v23634_v1 = vld [vmem:[#allocation370_spill] sm:$0xff]  ;;  %v23635_v41 = vld [vmem:[#allocation375_spill] sm:$0xff]  ;;  %v23637_v33 = vld [vmem:[#allocation409_spill] sm:$0xff] }
 0x38e   :  { %3789 = vmatprep.mubr.f32.mxu0 %v23630_v53  ;;  %3955 = vmatprep.mubr.f32.mxu1 %v23630_v53  ;;  %v19192_v22 = vpack.c.bf16 %v23635_v41, %v23634_v1  ;;  %v19195_v46 = vrot.slane %v23637_v33, 1  ;;  %v23642_v1 = vld [vmem:[#allocation220_spill] sm:$0xff]  ;;  %v23643_v41 = vld [vmem:[#allocation225_spill] sm:$0xff] }
 0x38f   :  { %23629 = vst [vmem:[#allocation266_spill] sm:$0xff] %v19179_v45  ;;  %v19209_v12 = vpack.c.bf16 %v23643_v41, %v23642_v1  ;;  %v23652_v1 = vld [vmem:[#allocation235_spill] sm:$0xff] }
 0x390   :  { %13901 = vmatpush1.bf16.msra.mxu0 %v19167_v44  ;;  %13981 = vmatpush1.bf16.msra.mxu1 %v19171_v25  ;;  %23636 = vst [vmem:[#allocation268_spill] sm:$0xff] %v19192_v22  ;;  %v23639_v44 = vld [vmem:[#allocation300_spill] sm:$0xff] }
 0x391   :  { %13983 = vmatprep.subr.bf16.mxu0 %v19179_v45  ;;  %14014 = vmatprep.subr.bf16.mxu1 %v23638_v24  ;;  %v19201_v25 = vpack.c.bf16 %v23640_v9, %v23639_v44  ;;  %23644 = vst [vmem:[#allocation277_spill] sm:$0xff] %v19209_v12  ;;  %v19213_v45 = vpack.c.bf16 %v23646_v63, %v23645_v60  ;;  %v23648_v44 = vld [vmem:[#allocation310_spill] sm:$0xff]  ;;  %v23655_v63 = vld [vmem:[#allocation395_spill] sm:$0xff] }
 0x392   :  { %v3628_v9 = vsel %vm1141_vm5, %v3621_v32, %v19195_v46  ;;  %v23651_v32 = vld [vmem:[#allocation230_spill] sm:$0xff] }
 0x393   :  { %23641 = vst [vmem:[#allocation273_spill] sm:$0xff] %v19201_v25  ;;  %12090 = vmatmul.mubr.msk.f32.vlgmr.msra.gmra.mrb[12].mxu0 %vm3635_vm10, %v3622_v26  ;;  %12093 = vmatmul.mubr.msk.f32.vlgmr.msra.gmra.mrb[12].mxu1 %vm3635_vm10, %v3622_v26  ;;  %23647 = vst [vmem:[#allocation282_spill] sm:$0xff] %v19213_v45  ;;  %v19231_v41 = vpack.c.bf16 %v23652_v1, %v23651_v32  ;;  %v23654_v60 = vld [vmem:[#allocation390_spill] sm:$0xff]  ;;  %v23660_v32 = vld [vmem:[#allocation240_spill] sm:$0xff] }
 0x394   :  { %13985 = vmatpush3.bf16.msra.mxu0 %v19188_v27  ;;  %14016 = vmatpush3.bf16.msra.mxu1 %v19192_v22  ;;  %v19221_v27 = vpack.c.bf16 %v23649_v58, %v23648_v44  ;;  %v19235_v58 = vpack.c.bf16 %v23655_v63, %v23654_v60  ;;  %v23657_v44 = vld [vmem:[#allocation320_spill] sm:$0xff]  ;;  %v23661_v1 = vld [vmem:[#allocation245_spill] sm:$0xff] }
 0x395   :  { %13987 = vmatprep.subr.bf16.mxu0 %v19201_v25  ;;  %14017 = vmatprep.subr.bf16.mxu1 %v23638_v24  ;;  %23653 = vst [vmem:[#allocation284_spill] sm:$0xff] %v19231_v41  ;;  %v23658_v25 = vld [vmem:[#allocation325_spill] sm:$0xff]  ;;  %v19253_v60 = vpack.c.bf16 %v23661_v1, %v23660_v32  ;;  %v23671_v32 = vld [vmem:[#allocation250_spill] sm:$0xff]  ;;  %v23672_v1 = vld [vmem:[#allocation255_spill] sm:$0xff] }
 0x396   :  { %23650 = vst [vmem:[#allocation279_spill] sm:$0xff] %v19221_v27  ;;  %3961 = vmatprep.mubr.f32.mxu1 %v23630_v53  ;;  %3795 = vmatprep.mubr.f32.mxu0 %v23630_v53  ;;  %23656 = vst [vmem:[#allocation276_spill] sm:$0xff] %v19235_v58  ;;  %v19241_v22 = vpack.c.bf16 %v23658_v25, %v23657_v44  ;;  %v23663_v25 = vld [vmem:[#allocation400_spill] sm:$0xff]  ;;  %v23664_v63 = vld [vmem:[#allocation405_spill] sm:$0xff] }
 0x397   :  { %12094 = vmatmul.mubr.msk.f32.gmra.mrb[14].mxu1 %vm3635_vm10, %v3628_v9  ;;  %12091 = vmatmul.mubr.msk.f32.gmra.mrb[14].mxu0 %vm3635_vm10, %v3628_v9  ;;  %23662 = vst [vmem:[#allocation278_spill] sm:$0xff] %v19253_v60  ;;  %v19257_v44 = vpack.c.bf16 %v23664_v63, %v23663_v25  ;;  %v19276_v25 = vpack.c.bf16 %v23672_v1, %v23671_v32  ;;  %v23674_v63 = vld [vmem:[#allocation8_spill] sm:$0xff]  ;;  %v23683_v1 = vld [vmem:[#allocation265_spill] sm:$0xff] }
 0x398   :  { %13989 = vmatpush3.bf16.msra.mxu0 %v19209_v12  ;;  %14019 = vmatpush3.bf16.msra.mxu1 %v19213_v45  ;;  %23659 = vst [vmem:[#allocation281_spill] sm:$0xff] %v19241_v22  ;;  %v23666_v45 = vld [vmem:[#allocation335_spill] sm:$0xff]  ;;  %v23682_v32 = vld [vmem:[#allocation260_spill] sm:$0xff] }
 0x399   :  { %13991 = vmatprep.subr.bf16.mxu0 %v19221_v27  ;;  %14020 = vmatprep.subr.bf16.mxu1 %v23638_v24  ;;  %v23665_v27 = vld [vmem:[#allocation330_spill] sm:$0xff]  ;;  %23673 = vst [vmem:[#allocation292_spill] sm:$0xff] %v19276_v25 }
 0x39a   :  { %3967 = vmatprep.mubr.f32.mxu1 %v23630_v53  ;;  %3801 = vmatprep.mubr.f32.mxu0 %v23630_v53  ;;  %v19263_v12 = vpack.c.bf16 %v23666_v45, %v23665_v27  ;;  %v23675_v45 = vld [vmem:[#allocation13_spill] sm:$0xff] }
 0x39b   :  { %12095 = vmatmul.mubr.msk.f32.gmra.mrb[16].mxu1 %vm3635_vm10, %v19195_v46  ;;  %12092 = vmatmul.mubr.msk.f32.gmra.mrb[16].mxu0 %vm3635_vm10, %v19195_v46  ;;  %v19280_v27 = vpack.c.bf16 %v23675_v45, %v23674_v63  ;;  %v19297_v63 = vpack.c.bf16 %v23683_v1, %v23682_v32  ;;  %v23685_v45 = vld [vmem:[#allocation18_spill] sm:$0xff]  ;;  %v23694_v32 = vld [vmem:[#allocation275_spill] sm:$0xff] }
 0x39c   :  { %13993 = vmatpush3.bf16.msra.mxu0 %v19231_v41  ;;  %14022 = vmatpush3.bf16.msra.mxu1 %v19235_v58  ;;  %23667 = vst [vmem:[#allocation283_spill] sm:$0xff] %v19263_v12  ;;  %v23669_v41 = vld [vmem:[#allocation14_spill] sm:$0xff] }
 0x39d   :  { %13995 = vmatprep.subr.bf16.mxu0 %v19241_v22  ;;  %14023 = vmatprep.subr.bf16.mxu1 %v23638_v24  ;;  %v19267_v57 = vpack.c.bf16 %v23669_v41, %v23668_v47  ;;  %v23676_v47 = vld [vmem:[#allocation340_spill] sm:$0xff]  ;;  %v23677_v41 = vld [vmem:[#allocation345_spill] sm:$0xff]  ;;  %23684 = vst [vmem:[#allocation286_spill] sm:$0xff] %v19297_v63 }
 0x39e   :  { %13081 = vmatprep.mubr.msk.f32.mxu1 %vm15055_vm0, %v23630_v53  ;;  %4038 = vmatprep.mubr.f32.mxu0 %v18848_v18  ;;  %v19286_v22 = vpack.c.bf16 %v23677_v41, %v23676_v47  ;;  %v23679_v18 = vld [vmem:[#allocation19_spill] sm:$0xff] }
 0x39f   :  { %23670 = vst [vmem:[#allocation287_spill] sm:$0xff] %v19267_v57  ;;  %v23688_v47 = vld [vmem:[#allocation355_spill] sm:$0xff] }
 0x3a0   :  { %13997 = vmatpush3.bf16.msra.mxu0 %v19253_v60  ;;  %14025 = vmatpush3.bf16.msra.mxu1 %v19257_v44  ;;  %23678 = vst [vmem:[#allocation289_spill] sm:$0xff] %v19286_v22  ;;  %v23680_v60 = vld [vmem:[#allocation24_spill] sm:$0xff] }
 0x3a1   :  { %13999 = vmatprep.subr.bf16.mxu0 %v19263_v12  ;;  %14107 = vmatprep.subr.bf16.mxu1 %v19267_v57  ;;  %v19290_v58 = vpack.c.bf16 %v23680_v60, %v23679_v18  ;;  %v23686_v57 = vld [vmem:[#allocation23_spill] sm:$0xff]  ;;  %v23687_v60 = vld [vmem:[#allocation350_spill] sm:$0xff] }
 0x3a2   :  { %v19301_v12 = vpack.c.bf16 %v23686_v57, %v23685_v45  ;;  %v19307_v41 = vpack.c.bf16 %v23688_v47, %v23687_v60  ;;  %v23691_v18 = vld [vmem:[#allocation34_spill] sm:$0xff]  ;;  %v23696_v45 = vld [vmem:[#allocation28_spill] sm:$0xff]  ;;  %v23697_v60 = vld [vmem:[#allocation33_spill] sm:$0xff] }
 0x3a3   :  { %23681 = vst [vmem:[#allocation294_spill] sm:$0xff] %v19290_v58  ;;  %13082 = vmatmul.mubr.msk.f32.vlgmr.msra.gmra.mrb[18].mxu1 %vm3635_vm10, %v3622_v26  ;;  %v23690_v26 = vld [vmem:[#allocation29_spill] sm:$0xff]  ;;  %v23693_v57 = vld [vmem:[#allocation270_spill] sm:$0xff]  ;;  %v19324_v47 = vpack.c.bf16 %v23697_v60, %v23696_v45 }
 0x3a4   :  { %14001 = vmatpush3.bf16.msra.mxu0 %v19276_v25  ;;  %14109 = vmatpush1.bf16.msra.mxu1 %v19280_v27  ;;  %23689 = vst [vmem:[#allocation291_spill] sm:$0xff] %v19307_v41  ;;  %v19311_v25 = vpack.c.bf16 %v23691_v18, %v23690_v26  ;;  %v19320_v1 = vpack.c.bf16 %v23694_v32, %v23693_v57  ;;  %v23699_v26 = vld [vmem:[#allocation360_spill] sm:$0xff]  ;;  %v23700_v18 = vld [vmem:[#allocation365_spill] sm:$0xff]  ;;  %v23708_v60 = vld [vmem:[#allocation38_spill] sm:$0xff] }
 0x3a5   :  { %14003 = vmatprep.subr.bf16.mxu0 %v19286_v22  ;;  %14111 = vmatprep.subr.bf16.mxu1 %v19290_v58  ;;  %23698 = vst [vmem:[#allocation297_spill] sm:$0xff] %v19324_v47  ;;  %v19330_v58 = vpack.c.bf16 %v23700_v18, %v23699_v26  ;;  %v23705_v57 = vld [vmem:[#allocation280_spill] sm:$0xff]  ;;  %v23706_v32 = vld [vmem:[#allocation285_spill] sm:$0xff]  ;;  %v23709_v26 = vld [vmem:[#allocation43_spill] sm:$0xff] }
 0x3a6   :  { %23692 = vst [vmem:[#allocation288_spill] sm:$0xff] %v19311_v25  ;;  %13084 = vmatprep.mubr.msk.f32.mxu1 %vm15055_vm0, %v23630_v53  ;;  %23695 = vst [vmem:[#allocation293_spill] sm:$0xff] %v19320_v1  ;;  %v19344_v45 = vpack.c.bf16 %v23706_v32, %v23705_v57  ;;  %v19348_v18 = vpack.c.bf16 %v23709_v26, %v23708_v60  ;;  %v23716_v57 = vld [vmem:[#allocation6_spill] sm:$0xff]  ;;  %v23717_v32 = vld [vmem:[#allocation11_spill] sm:$0xff] }
 0x3a7   :  { %13085 = vmatmul.mubr.msk.f32.gmra.mrb[20].mxu1 %vm3635_vm10, %v3628_v9  ;;  %23701 = vst [vmem:[#allocation302_spill] sm:$0xff] %v19330_v58  ;;  %v23702_v9 = vld [vmem:[#allocation39_spill] sm:$0xff]  ;;  %v19365_v60 = vpack.c.bf16 %v23717_v32, %v23716_v57  ;;  %v23719_v26 = vld [vmem:[#allocation48_spill] sm:$0xff]  ;;  %v23727_v57 = vld [vmem:[#allocation21_spill] sm:$0xff] }
 0x3a8   :  { %14005 = vmatpush3.bf16.msra.mxu0 %v19297_v63  ;;  %14113 = vmatpush1.bf16.msra.mxu1 %v19301_v12  ;;  %v23703_v63 = vld [vmem:[#allocation44_spill] sm:$0xff]  ;;  %23707 = vst [vmem:[#allocation304_spill] sm:$0xff] %v19344_v45 }
 0x3a9   :  { %14007 = vmatprep.subr.bf16.mxu0 %v19307_v41  ;;  %14115 = vmatprep.subr.bf16.mxu1 %v19311_v25  ;;  %v19334_v22 = vpack.c.bf16 %v23703_v63, %v23702_v9  ;;  %v23710_v63 = vld [vmem:[#allocation7_spill] sm:$0xff]  ;;  %v23711_v9 = vld [vmem:[#allocation12_spill] sm:$0xff]  ;;  %23718 = vst [vmem:[#allocation298_spill] sm:$0xff] %v19365_v60 }
 0x3aa   :  { %13087 = vmatprep.mubr.msk.f32.mxu1 %vm15055_vm0, %v23630_v53  ;;  %v19354_v25 = vpack.c.bf16 %v23711_v9, %v23710_v63  ;;  %v23722_v63 = vld [vmem:[#allocation22_spill] sm:$0xff] }
 0x3ab   :  { %23704 = vst [vmem:[#allocation299_spill] sm:$0xff] %v19334_v22  ;;  %13088 = vmatmul.mubr.msk.f32.gmra.mrb[22].mxu1 %vm3635_vm10, %v19195_v46  ;;  %v23713_v46 = vld [vmem:[#allocation49_spill] sm:$0xff] }
 0x3ac   :  { %14009 = vmatpush3.bf16.msra.mxu0 %v19320_v1  ;;  %14117 = vmatpush1.bf16.msra.mxu1 %v19324_v47  ;;  %23712 = vst [vmem:[#allocation296_spill] sm:$0xff] %v19354_v25  ;;  %v23714_v1 = vld [vmem:[#allocation54_spill] sm:$0xff] }
 0x3ad   :  { %14011 = vmatprep.subr.bf16.mxu0 %v19330_v58  ;;  %14119 = vmatprep.subr.bf16.mxu1 %v19334_v22  ;;  %v19358_v41 = vpack.c.bf16 %v23714_v1, %v23713_v46  ;;  %v23720_v22 = vld [vmem:[#allocation53_spill] sm:$0xff]  ;;  %v23723_v46 = vld [vmem:[#allocation59_spill] sm:$0xff] }
 0x3ae   :  { %4370 = vmatprep.mubr.f32.mxu1 %v18473_v40  ;;  %v19369_v58 = vpack.c.bf16 %v23720_v22, %v23719_v26  ;;  %v23721_v1 = vld [vmem:[#allocation17_spill] sm:$0xff]  ;;  %v23726_v22 = vld [vmem:[#allocation16_spill] sm:$0xff]  ;;  %v23729_v26 = vld [vmem:[#allocation58_spill] sm:$0xff] }
 0x3af   :  { %23715 = vst [vmem:[#allocation301_spill] sm:$0xff] %v19358_v41  ;;  %v19375_v9 = vpack.c.bf16 %v23722_v63, %v23721_v1  ;;  %v19386_v32 = vpack.c.bf16 %v23727_v57, %v23726_v22  ;;  %v23732_v1 = vld [vmem:[#allocation32_spill] sm:$0xff]  ;;  %v23737_v22 = vld [vmem:[#allocation31_spill] sm:$0xff] }
 0x3b0   :  { %14013 = vmatpush3.bf16.msra.mxu0 %v19344_v45  ;;  %14121 = vmatpush1.bf16.msra.mxu1 %v19348_v18  ;;  %v23724_v45 = vld [vmem:[#allocation64_spill] sm:$0xff] }
 0x3b1   :  { %14027 = vmatprep.subr.bf16.mxu0 %v19354_v25  ;;  %14123 = vmatprep.subr.bf16.mxu1 %v19358_v41  ;;  %v19379_v47 = vpack.c.bf16 %v23724_v45, %v23723_v46  ;;  %23728 = vst [vmem:[#allocation307_spill] sm:$0xff] %v19386_v32  ;;  %v23730_v41 = vld [vmem:[#allocation63_spill] sm:$0xff]  ;;  %v23734_v46 = vld [vmem:[#allocation74_spill] sm:$0xff] }
 0x3b2   :  { %v19390_v25 = vpack.c.bf16 %v23730_v41, %v23729_v26  ;;  %v23731_v45 = vld [vmem:[#allocation27_spill] sm:$0xff]  ;;  %v23736_v41 = vld [vmem:[#allocation26_spill] sm:$0xff]  ;;  %v23739_v26 = vld [vmem:[#allocation68_spill] sm:$0xff] }
 0x3b3   :  { %23725 = vst [vmem:[#allocation303_spill] sm:$0xff] %v19379_v47  ;;  %4039 = vmatmul.mubr.f32.vlgmr.msra.gmra.mrb[18].mxu0 %v19080_v34  ;;  %v19396_v63 = vpack.c.bf16 %v23732_v1, %v23731_v45  ;;  %v23733_v34 = vld [vmem:[#allocation69_spill] sm:$0xff]  ;;  %v19408_v57 = vpack.c.bf16 %v23737_v22, %v23736_v41 }
 0x3b4   :  { %14029 = vmatpush1.bf16.msra.mxu0 %v19365_v60  ;;  %14125 = vmatpush1.bf16.msra.mxu1 %v19369_v58  ;;  %v19400_v60 = vpack.c.bf16 %v23734_v46, %v23733_v34  ;;  %v23742_v1 = vld [vmem:[#allocation37_spill] sm:$0xff]  ;;  %v23746_v46 = vld [vmem:[#allocation84_spill] sm:$0xff] }
 0x3b5   :  { %14031 = vmatprep.subr.bf16.mxu0 %v19375_v9  ;;  %14127 = vmatprep.subr.bf16.mxu1 %v19379_v47  ;;  %23738 = vst [vmem:[#allocation309_spill] sm:$0xff] %v19408_v57  ;;  %v23740_v47 = vld [vmem:[#allocation73_spill] sm:$0xff] }
 0x3b6   :  { %23735 = vst [vmem:[#allocation312_spill] sm:$0xff] %v19400_v60  ;;  %4043 = vmatprep.mubr.f32.mxu0 %v19109_v35  ;;  %v19412_v45 = vpack.c.bf16 %v23740_v47, %v23739_v26  ;;  %v23743_v35 = vld [vmem:[#allocation42_spill] sm:$0xff]  ;;  %v23748_v47 = vld [vmem:[#allocation36_spill] sm:$0xff]  ;;  %v23749_v41 = vld [vmem:[#allocation41_spill] sm:$0xff] }
 0x3b7   :  { %4044 = vmatmul.mubr.f32.gmra.mrb[20].mxu0 %v19123_v20  ;;  %v19418_v34 = vpack.c.bf16 %v23743_v35, %v23742_v1  ;;  %v23745_v20 = vld [vmem:[#allocation79_spill] sm:$0xff]  ;;  %v19430_v22 = vpack.c.bf16 %v23749_v41, %v23748_v47  ;;  %v23751_v26 = vld [vmem:[#allocation78_spill] sm:$0xff] }
 0x3b8   :  { %14033 = vmatpush1.bf16.msra.mxu0 %v19386_v32  ;;  %14129 = vmatpush1.bf16.msra.mxu1 %v19390_v25  ;;  %23741 = vst [vmem:[#allocation314_spill] sm:$0xff] %v19412_v45  ;;  %v19422_v32 = vpack.c.bf16 %v23746_v46, %v23745_v20  ;;  %v23754_v35 = vld [vmem:[#allocation47_spill] sm:$0xff]  ;;  %v23758_v46 = vld [vmem:[#allocation94_spill] sm:$0xff] }
 0x3b9   :  { %14035 = vmatprep.subr.bf16.mxu0 %v19396_v63  ;;  %14131 = vmatprep.subr.bf16.mxu1 %v19400_v60  ;;  %23744 = vst [vmem:[#allocation306_spill] sm:$0xff] %v19418_v34  ;;  %23750 = vst [vmem:[#allocation308_spill] sm:$0xff] %v19430_v22  ;;  %v23752_v60 = vld [vmem:[#allocation83_spill] sm:$0xff] }
 0x3ba   :  { %23747 = vst [vmem:[#allocation311_spill] sm:$0xff] %v19422_v32  ;;  %4048 = vmatprep.mubr.f32.mxu0 %v19075_v11  ;;  %v19434_v1 = vpack.c.bf16 %v23752_v60, %v23751_v26  ;;  %v23755_v11 = vld [vmem:[#allocation52_spill] sm:$0xff]  ;;  %v23760_v60 = vld [vmem:[#allocation46_spill] sm:$0xff]  ;;  %v23761_v47 = vld [vmem:[#allocation51_spill] sm:$0xff] }
 0x3bb   :  { %4049 = vmatmul.mubr.f32.gmra.mrb[22].mxu0 %v19091_v28  ;;  %v19440_v20 = vpack.c.bf16 %v23755_v11, %v23754_v35  ;;  %v23757_v28 = vld [vmem:[#allocation89_spill] sm:$0xff]  ;;  %v19451_v41 = vpack.c.bf16 %v23761_v47, %v23760_v60  ;;  %v23763_v26 = vld [vmem:[#allocation88_spill] sm:$0xff]  ;;  %v23767_v11 = vld [vmem:[#allocation62_spill] sm:$0xff] }
 0x3bc   :  { %14037 = vmatpush1.bf16.msra.mxu0 %v19408_v57  ;;  %14133 = vmatpush1.bf16.msra.mxu1 %v19412_v45  ;;  %23753 = vst [vmem:[#allocation313_spill] sm:$0xff] %v19434_v1  ;;  %v19444_v57 = vpack.c.bf16 %v23758_v46, %v23757_v28  ;;  %v23766_v35 = vld [vmem:[#allocation57_spill] sm:$0xff]  ;;  %v23769_v46 = vld [vmem:[#allocation99_spill] sm:$0xff]  ;;  %v23772_v60 = vld [vmem:[#allocation56_spill] sm:$0xff] }
 0x3bd   :  { %14039 = vmatprep.subr.bf16.mxu0 %v19418_v34  ;;  %14135 = vmatprep.subr.bf16.mxu1 %v19422_v32  ;;  %23756 = vst [vmem:[#allocation317_spill] sm:$0xff] %v19440_v20  ;;  %23762 = vst [vmem:[#allocation319_spill] sm:$0xff] %v19451_v41  ;;  %v23764_v32 = vld [vmem:[#allocation93_spill] sm:$0xff]  ;;  %v19461_v28 = vpack.c.bf16 %v23767_v11, %v23766_v35  ;;  %v23778_v35 = vld [vmem:[#allocation67_spill] sm:$0xff] }
 0x3be   :  { %23759 = vst [vmem:[#allocation322_spill] sm:$0xff] %v19444_v57  ;;  %4204 = vmatprep.mubr.f32.mxu0 %v18473_v40  ;;  %v19455_v34 = vpack.c.bf16 %v23764_v32, %v23763_v26  ;;  %v23773_v47 = vld [vmem:[#allocation61_spill] sm:$0xff]  ;;  %v23775_v26 = vld [vmem:[#allocation98_spill] sm:$0xff]  ;;  %v23779_v11 = vld [vmem:[#allocation72_spill] sm:$0xff] }
 0x3bf   :  { %23768 = vst [vmem:[#allocation316_spill] sm:$0xff] %v19461_v28  ;;  %v19471_v32 = vpack.c.bf16 %v23773_v47, %v23772_v60  ;;  %v23784_v60 = vld [vmem:[#allocation66_spill] sm:$0xff]  ;;  %v23785_v47 = vld [vmem:[#allocation71_spill] sm:$0xff] }
 0x3c0   :  { %14041 = vmatpush1.bf16.msra.mxu0 %v19430_v22  ;;  %14137 = vmatpush1.bf16.msra.mxu1 %v19434_v1  ;;  %23765 = vst [vmem:[#allocation324_spill] sm:$0xff] %v19455_v34  ;;  %v23770_v22 = vld [vmem:[#allocation104_spill] sm:$0xff] }
 0x3c1   :  { %14043 = vmatprep.subr.bf16.mxu0 %v19440_v20  ;;  %14139 = vmatprep.subr.bf16.mxu1 %v19444_v57  ;;  %v19465_v45 = vpack.c.bf16 %v23770_v22, %v23769_v46  ;;  %23774 = vst [vmem:[#allocation318_spill] sm:$0xff] %v19471_v32  ;;  %v23776_v20 = vld [vmem:[#allocation103_spill] sm:$0xff]  ;;  %v19481_v22 = vpack.c.bf16 %v23779_v11, %v23778_v35  ;;  %v23781_v46 = vld [vmem:[#allocation109_spill] sm:$0xff]  ;;  %v23791_v11 = vld [vmem:[#allocation82_spill] sm:$0xff] }
 0x3c2   :  { %v19475_v1 = vpack.c.bf16 %v23776_v20, %v23775_v26  ;;  %v19491_v20 = vpack.c.bf16 %v23785_v47, %v23784_v60  ;;  %v23787_v26 = vld [vmem:[#allocation108_spill] sm:$0xff]  ;;  %v23790_v35 = vld [vmem:[#allocation77_spill] sm:$0xff] }
 0x3c3   :  { %23771 = vst [vmem:[#allocation321_spill] sm:$0xff] %v19465_v45  ;;  %23780 = vst [vmem:[#allocation327_spill] sm:$0xff] %v19481_v22  ;;  %v23796_v60 = vld [vmem:[#allocation76_spill] sm:$0xff]  ;;  %v23797_v47 = vld [vmem:[#allocation81_spill] sm:$0xff] }
 0x3c4   :  { %14045 = vmatpush1.bf16.msra.mxu0 %v19451_v41  ;;  %14141 = vmatpush1.bf16.msra.mxu1 %v19455_v34  ;;  %23777 = vst [vmem:[#allocation323_spill] sm:$0xff] %v19475_v1  ;;  %v23782_v41 = vld [vmem:[#allocation114_spill] sm:$0xff]  ;;  %23786 = vst [vmem:[#allocation329_spill] sm:$0xff] %v19491_v20 }
 0x3c5   :  { %14047 = vmatprep.subr.bf16.mxu0 %v19461_v28  ;;  %14143 = vmatprep.subr.bf16.mxu1 %v19465_v45  ;;  %v19485_v57 = vpack.c.bf16 %v23782_v41, %v23781_v46  ;;  %v23788_v28 = vld [vmem:[#allocation113_spill] sm:$0xff]  ;;  %v19501_v41 = vpack.c.bf16 %v23791_v11, %v23790_v35  ;;  %v23793_v46 = vld [vmem:[#allocation119_spill] sm:$0xff]  ;;  %v23803_v11 = vld [vmem:[#allocation92_spill] sm:$0xff] }
 0x3c6   :  { %v19495_v34 = vpack.c.bf16 %v23788_v28, %v23787_v26  ;;  %v19511_v28 = vpack.c.bf16 %v23797_v47, %v23796_v60  ;;  %v23799_v26 = vld [vmem:[#allocation118_spill] sm:$0xff]  ;;  %v23802_v35 = vld [vmem:[#allocation87_spill] sm:$0xff] }
 0x3c7   :  { %23783 = vst [vmem:[#allocation332_spill] sm:$0xff] %v19485_v57  ;;  %23792 = vst [vmem:[#allocation326_spill] sm:$0xff] %v19501_v41  ;;  %v23808_v60 = vld [vmem:[#allocation86_spill] sm:$0xff]  ;;  %v23809_v47 = vld [vmem:[#allocation91_spill] sm:$0xff] }
 0x3c8   :  { %14049 = vmatpush1.bf16.msra.mxu0 %v19471_v32  ;;  %14145 = vmatpush1.bf16.msra.mxu1 %v19475_v1  ;;  %23789 = vst [vmem:[#allocation334_spill] sm:$0xff] %v19495_v34  ;;  %v23794_v32 = vld [vmem:[#allocation124_spill] sm:$0xff]  ;;  %23798 = vst [vmem:[#allocation328_spill] sm:$0xff] %v19511_v28 }
 0x3c9   :  { %14051 = vmatprep.subr.bf16.mxu0 %v19481_v22  ;;  %14147 = vmatprep.subr.bf16.mxu1 %v19485_v57  ;;  %v19505_v45 = vpack.c.bf16 %v23794_v32, %v23793_v46  ;;  %v23800_v22 = vld [vmem:[#allocation123_spill] sm:$0xff]  ;;  %v19521_v32 = vpack.c.bf16 %v23803_v11, %v23802_v35  ;;  %v23805_v46 = vld [vmem:[#allocation129_spill] sm:$0xff]  ;;  %v23815_v11 = vld [vmem:[#allocation102_spill] sm:$0xff] }
 0x3ca   :  { %v19515_v1 = vpack.c.bf16 %v23800_v22, %v23799_v26  ;;  %v19531_v22 = vpack.c.bf16 %v23809_v47, %v23808_v60  ;;  %v23811_v26 = vld [vmem:[#allocation128_spill] sm:$0xff]  ;;  %v23814_v35 = vld [vmem:[#allocation97_spill] sm:$0xff] }
 0x3cb   :  { %23795 = vst [vmem:[#allocation331_spill] sm:$0xff] %v19505_v45  ;;  %23804 = vst [vmem:[#allocation337_spill] sm:$0xff] %v19521_v32  ;;  %v23820_v60 = vld [vmem:[#allocation96_spill] sm:$0xff]  ;;  %v23821_v47 = vld [vmem:[#allocation101_spill] sm:$0xff] }
 0x3cc   :  { %14053 = vmatpush1.bf16.msra.mxu0 %v19491_v20  ;;  %14149 = vmatpush1.bf16.msra.mxu1 %v19495_v34  ;;  %23801 = vst [vmem:[#allocation333_spill] sm:$0xff] %v19515_v1  ;;  %v23806_v20 = vld [vmem:[#allocation134_spill] sm:$0xff]  ;;  %23810 = vst [vmem:[#allocation339_spill] sm:$0xff] %v19531_v22 }
 0x3cd   :  { %14055 = vmatprep.subr.bf16.mxu0 %v19501_v41  ;;  %14151 = vmatprep.subr.bf16.mxu1 %v19505_v45  ;;  %v19525_v57 = vpack.c.bf16 %v23806_v20, %v23805_v46  ;;  %v23812_v41 = vld [vmem:[#allocation133_spill] sm:$0xff]  ;;  %v19541_v20 = vpack.c.bf16 %v23815_v11, %v23814_v35  ;;  %v23817_v46 = vld [vmem:[#allocation139_spill] sm:$0xff]  ;;  %v23827_v11 = vld [vmem:[#allocation112_spill] sm:$0xff] }
 0x3ce   :  { %v19535_v34 = vpack.c.bf16 %v23812_v41, %v23811_v26  ;;  %v19551_v41 = vpack.c.bf16 %v23821_v47, %v23820_v60  ;;  %v23823_v26 = vld [vmem:[#allocation138_spill] sm:$0xff]  ;;  %v23826_v35 = vld [vmem:[#allocation107_spill] sm:$0xff] }
 0x3cf   :  { %23807 = vst [vmem:[#allocation342_spill] sm:$0xff] %v19525_v57  ;;  %23816 = vst [vmem:[#allocation336_spill] sm:$0xff] %v19541_v20  ;;  %v23832_v60 = vld [vmem:[#allocation106_spill] sm:$0xff]  ;;  %v23833_v47 = vld [vmem:[#allocation111_spill] sm:$0xff] }
 0x3d0   :  { %14057 = vmatpush1.bf16.msra.mxu0 %v19511_v28  ;;  %14153 = vmatpush1.bf16.msra.mxu1 %v19515_v1  ;;  %23813 = vst [vmem:[#allocation344_spill] sm:$0xff] %v19535_v34  ;;  %v23818_v28 = vld [vmem:[#allocation144_spill] sm:$0xff]  ;;  %23822 = vst [vmem:[#allocation338_spill] sm:$0xff] %v19551_v41 }
 0x3d1   :  { %14059 = vmatprep.subr.bf16.mxu0 %v19521_v32  ;;  %14155 = vmatprep.subr.bf16.mxu1 %v19525_v57  ;;  %v19545_v45 = vpack.c.bf16 %v23818_v28, %v23817_v46  ;;  %v23824_v32 = vld [vmem:[#allocation143_spill] sm:$0xff]  ;;  %v19561_v28 = vpack.c.bf16 %v23827_v11, %v23826_v35  ;;  %v23829_v46 = vld [vmem:[#allocation149_spill] sm:$0xff]  ;;  %v23839_v11 = vld [vmem:[#allocation122_spill] sm:$0xff] }
 0x3d2   :  { %v19555_v1 = vpack.c.bf16 %v23824_v32, %v23823_v26  ;;  %v19571_v32 = vpack.c.bf16 %v23833_v47, %v23832_v60  ;;  %v23835_v26 = vld [vmem:[#allocation148_spill] sm:$0xff]  ;;  %v23838_v35 = vld [vmem:[#allocation117_spill] sm:$0xff] }
 0x3d3   :  { %23819 = vst [vmem:[#allocation341_spill] sm:$0xff] %v19545_v45  ;;  %23828 = vst [vmem:[#allocation347_spill] sm:$0xff] %v19561_v28  ;;  %v23844_v60 = vld [vmem:[#allocation116_spill] sm:$0xff]  ;;  %v23845_v47 = vld [vmem:[#allocation121_spill] sm:$0xff] }
 0x3d4   :  { %14061 = vmatpush1.bf16.msra.mxu0 %v19531_v22  ;;  %14157 = vmatpush1.bf16.msra.mxu1 %v19535_v34  ;;  %23825 = vst [vmem:[#allocation343_spill] sm:$0xff] %v19555_v1  ;;  %v23830_v22 = vld [vmem:[#allocation154_spill] sm:$0xff]  ;;  %23834 = vst [vmem:[#allocation349_spill] sm:$0xff] %v19571_v32 }
 0x3d5   :  { %14063 = vmatprep.subr.bf16.mxu0 %v19541_v20  ;;  %14159 = vmatprep.subr.bf16.mxu1 %v19545_v45  ;;  %v19565_v57 = vpack.c.bf16 %v23830_v22, %v23829_v46  ;;  %v23836_v20 = vld [vmem:[#allocation153_spill] sm:$0xff]  ;;  %v19581_v22 = vpack.c.bf16 %v23839_v11, %v23838_v35  ;;  %v23841_v46 = vld [vmem:[#allocation159_spill] sm:$0xff]  ;;  %v23851_v11 = vld [vmem:[#allocation132_spill] sm:$0xff] }
 0x3d6   :  { %v19575_v34 = vpack.c.bf16 %v23836_v20, %v23835_v26  ;;  %v19591_v20 = vpack.c.bf16 %v23845_v47, %v23844_v60  ;;  %v23847_v26 = vld [vmem:[#allocation158_spill] sm:$0xff]  ;;  %v23850_v35 = vld [vmem:[#allocation127_spill] sm:$0xff] }
 0x3d7   :  { %23831 = vst [vmem:[#allocation352_spill] sm:$0xff] %v19565_v57  ;;  %23840 = vst [vmem:[#allocation346_spill] sm:$0xff] %v19581_v22  ;;  %v23856_v60 = vld [vmem:[#allocation126_spill] sm:$0xff]  ;;  %v23857_v47 = vld [vmem:[#allocation131_spill] sm:$0xff] }
 0x3d8   :  { %14065 = vmatpush1.bf16.msra.mxu0 %v19551_v41  ;;  %14161 = vmatpush1.bf16.msra.mxu1 %v19555_v1  ;;  %23837 = vst [vmem:[#allocation354_spill] sm:$0xff] %v19575_v34  ;;  %v23842_v41 = vld [vmem:[#allocation164_spill] sm:$0xff]  ;;  %23846 = vst [vmem:[#allocation348_spill] sm:$0xff] %v19591_v20 }
 0x3d9   :  { %14067 = vmatprep.subr.bf16.mxu0 %v19561_v28  ;;  %14163 = vmatprep.subr.bf16.mxu1 %v19565_v57  ;;  %v19585_v45 = vpack.c.bf16 %v23842_v41, %v23841_v46  ;;  %v23848_v28 = vld [vmem:[#allocation163_spill] sm:$0xff]  ;;  %v19601_v41 = vpack.c.bf16 %v23851_v11, %v23850_v35  ;;  %v23853_v46 = vld [vmem:[#allocation169_spill] sm:$0xff]  ;;  %v23863_v11 = vld [vmem:[#allocation142_spill] sm:$0xff] }
 0x3da   :  { %v19595_v1 = vpack.c.bf16 %v23848_v28, %v23847_v26  ;;  %v19611_v28 = vpack.c.bf16 %v23857_v47, %v23856_v60  ;;  %v23859_v26 = vld [vmem:[#allocation168_spill] sm:$0xff]  ;;  %v23862_v35 = vld [vmem:[#allocation137_spill] sm:$0xff] }
 0x3db   :  { %23843 = vst [vmem:[#allocation351_spill] sm:$0xff] %v19585_v45  ;;  %23852 = vst [vmem:[#allocation357_spill] sm:$0xff] %v19601_v41  ;;  %v23869_v60 = vld [vmem:[#allocation141_spill] sm:$0xff] }
 0x3dc   :  { %14069 = vmatpush1.bf16.msra.mxu0 %v19571_v32  ;;  %14165 = vmatpush1.bf16.msra.mxu1 %v19575_v34  ;;  %23849 = vst [vmem:[#allocation353_spill] sm:$0xff] %v19595_v1  ;;  %v23854_v32 = vld [vmem:[#allocation174_spill] sm:$0xff]  ;;  %23858 = vst [vmem:[#allocation359_spill] sm:$0xff] %v19611_v28 }
 0x3dd   :  { %14071 = vmatprep.subr.bf16.mxu0 %v19581_v22  ;;  %14167 = vmatprep.subr.bf16.mxu1 %v19585_v45  ;;  %v19605_v57 = vpack.c.bf16 %v23854_v32, %v23853_v46  ;;  %v23860_v22 = vld [vmem:[#allocation173_spill] sm:$0xff]  ;;  %v19621_v32 = vpack.c.bf16 %v23863_v11, %v23862_v35  ;;  %v23865_v46 = vld [vmem:[#allocation179_spill] sm:$0xff]  ;;  %v23875_v35 = vld [vmem:[#allocation152_spill] sm:$0xff] }
 0x3de   :  { %v19615_v34 = vpack.c.bf16 %v23860_v22, %v23859_v26  ;;  %v23868_v22 = vld [vmem:[#allocation136_spill] sm:$0xff]  ;;  %v23871_v26 = vld [vmem:[#allocation178_spill] sm:$0xff] }
 0x3df   :  { %23855 = vst [vmem:[#allocation362_spill] sm:$0xff] %v19605_v57  ;;  %23864 = vst [vmem:[#allocation356_spill] sm:$0xff] %v19621_v32  ;;  %v19632_v47 = vpack.c.bf16 %v23869_v60, %v23868_v22  ;;  %v23881_v22 = vld [vmem:[#allocation151_spill] sm:$0xff] }
 0x3e0   :  { %14073 = vmatpush1.bf16.msra.mxu0 %v19591_v20  ;;  %14169 = vmatpush1.bf16.msra.mxu1 %v19595_v1  ;;  %23861 = vst [vmem:[#allocation364_spill] sm:$0xff] %v19615_v34  ;;  %v23866_v20 = vld [vmem:[#allocation184_spill] sm:$0xff] }
 0x3e1   :  { %14075 = vmatprep.subr.bf16.mxu0 %v19601_v41  ;;  %14171 = vmatprep.subr.bf16.mxu1 %v19605_v57  ;;  %v19625_v45 = vpack.c.bf16 %v23866_v20, %v23865_v46  ;;  %23870 = vst [vmem:[#allocation358_spill] sm:$0xff] %v19632_v47  ;;  %v23872_v57 = vld [vmem:[#allocation183_spill] sm:$0xff]  ;;  %v23877_v46 = vld [vmem:[#allocation189_spill] sm:$0xff] }
 0x3e2   :  { %v19636_v41 = vpack.c.bf16 %v23872_v57, %v23871_v26  ;;  %v23874_v20 = vld [vmem:[#allocation147_spill] sm:$0xff]  ;;  %v23880_v57 = vld [vmem:[#allocation146_spill] sm:$0xff]  ;;  %v23883_v26 = vld [vmem:[#allocation188_spill] sm:$0xff] }
 0x3e3   :  { %23867 = vst [vmem:[#allocation361_spill] sm:$0xff] %v19625_v45  ;;  %4371 = vmatmul.mubr.f32.vlgmr.msra.gmra.mrb[12].mxu1 %v23575_v55  ;;  %v19642_v11 = vpack.c.bf16 %v23875_v35, %v23874_v20  ;;  %v19654_v60 = vpack.c.bf16 %v23881_v22, %v23880_v57  ;;  %v23887_v35 = vld [vmem:[#allocation162_spill] sm:$0xff]  ;;  %v23893_v57 = vld [vmem:[#allocation161_spill] sm:$0xff] }
 0x3e4   :  { %14077 = vmatpush1.bf16.msra.mxu0 %v19611_v28  ;;  %14173 = vmatpush1.bf16.msra.mxu1 %v19615_v34  ;;  %23873 = vst [vmem:[#allocation363_spill] sm:$0xff] %v19636_v41  ;;  %v23878_v28 = vld [vmem:[#allocation194_spill] sm:$0xff] }
 0x3e5   :  { %14079 = vmatprep.subr.bf16.mxu0 %v19621_v32  ;;  %14175 = vmatprep.subr.bf16.mxu1 %v19625_v45  ;;  %23876 = vst [vmem:[#allocation408_spill] sm:$0xff] %v19642_v11  ;;  %v19646_v1 = vpack.c.bf16 %v23878_v28, %v23877_v46  ;;  %23882 = vst [vmem:[#allocation372_spill] sm:$0xff] %v19654_v60  ;;  %v23884_v45 = vld [vmem:[#allocation193_spill] sm:$0xff]  ;;  %v23889_v32 = vld [vmem:[#allocation199_spill] sm:$0xff] }
 0x3e6   :  { %4376 = vmatprep.mubr.f32.mxu1 %v18629_v43  ;;  %v19658_v20 = vpack.c.bf16 %v23884_v45, %v23883_v26  ;;  %v23886_v28 = vld [vmem:[#allocation157_spill] sm:$0xff]  ;;  %v23892_v45 = vld [vmem:[#allocation156_spill] sm:$0xff]  ;;  %v23895_v26 = vld [vmem:[#allocation198_spill] sm:$0xff] }
 0x3e7   :  { %23879 = vst [vmem:[#allocation367_spill] sm:$0xff] %v19646_v1  ;;  %4377 = vmatmul.mubr.f32.gmra.mrb[14].mxu1 %v18627_v5  ;;  %v19664_v46 = vpack.c.bf16 %v23887_v35, %v23886_v28  ;;  %v19676_v22 = vpack.c.bf16 %v23893_v57, %v23892_v45  ;;  %v23905_v45 = vld [vmem:[#allocation171_spill] sm:$0xff] }
 0x3e8   :  { %14081 = vmatpush1.bf16.msra.mxu0 %v19632_v47  ;;  %14177 = vmatpush1.bf16.msra.mxu1 %v19636_v41  ;;  %23885 = vst [vmem:[#allocation369_spill] sm:$0xff] %v19658_v20  ;;  %v23890_v47 = vld [vmem:[#allocation204_spill] sm:$0xff] }
 0x3e9   :  { %14083 = vmatprep.subr.bf16.mxu0 %v19642_v11  ;;  %14179 = vmatprep.subr.bf16.mxu1 %v19646_v1  ;;  %23888 = vst [vmem:[#allocation374_spill] sm:$0xff] %v19664_v46  ;;  %v19668_v34 = vpack.c.bf16 %v23890_v47, %v23889_v32  ;;  %23894 = vst [vmem:[#allocation371_spill] sm:$0xff] %v19676_v22  ;;  %v23896_v1 = vld [vmem:[#allocation203_spill] sm:$0xff]  ;;  %v23899_v47 = vld [vmem:[#allocation172_spill] sm:$0xff] }
 0x3ea   :  { %4382 = vmatprep.mubr.f32.mxu1 %v18606_v54  ;;  %v19680_v28 = vpack.c.bf16 %v23896_v1, %v23895_v26  ;;  %v23898_v32 = vld [vmem:[#allocation167_spill] sm:$0xff]  ;;  %v23901_v11 = vld [vmem:[#allocation90_spill] sm:$0xff] }
 0x3eb   :  { %23891 = vst [vmem:[#allocation366_spill] sm:$0xff] %v19668_v34  ;;  %4383 = vmatmul.mubr.f32.gmra.mrb[16].mxu1 %v18604_v16  ;;  %v19686_v35 = vpack.c.bf16 %v23899_v47, %v23898_v32  ;;  %v23904_v1 = vld [vmem:[#allocation166_spill] sm:$0xff]  ;;  %v23913_v47 = vld [vmem:[#allocation100_spill] sm:$0xff] }
 0x3ec   :  { %14085 = vmatpush1.bf16.msra.mxu0 %v19654_v60  ;;  %14181 = vmatpush1.bf16.msra.mxu1 %v19658_v20  ;;  %23897 = vst [vmem:[#allocation368_spill] sm:$0xff] %v19680_v28  ;;  %v23902_v60 = vld [vmem:[#allocation95_spill] sm:$0xff]  ;;  %v19697_v57 = vpack.c.bf16 %v23905_v45, %v23904_v1  ;;  %v23907_v26 = vld [vmem:[#allocation10_spill] sm:$0xff]  ;;  %v23917_v1 = vld [vmem:[#allocation181_spill] sm:$0xff] }
 0x3ed   :  { %14087 = vmatprep.subr.bf16.mxu0 %v19664_v46  ;;  %14183 = vmatprep.subr.bf16.mxu1 %v19668_v34  ;;  %23900 = vst [vmem:[#allocation373_spill] sm:$0xff] %v19686_v35  ;;  %v19690_v41 = vpack.c.bf16 %v23902_v60, %v23901_v11  ;;  %v23908_v34 = vld [vmem:[#allocation15_spill] sm:$0xff]  ;;  %v23910_v11 = vld [vmem:[#allocation177_spill] sm:$0xff]  ;;  %v23911_v60 = vld [vmem:[#allocation182_spill] sm:$0xff] }
 0x3ee   :  { %4453 = vmatprep.mubr.f32.mxu1 %v23630_v53  ;;  %23906 = vst [vmem:[#allocation382_spill] sm:$0xff] %v19697_v57  ;;  %v19701_v46 = vpack.c.bf16 %v23908_v34, %v23907_v26  ;;  %v19707_v32 = vpack.c.bf16 %v23911_v60, %v23910_v11  ;;  %v23916_v34 = vld [vmem:[#allocation176_spill] sm:$0xff]  ;;  %v23920_v11 = vld [vmem:[#allocation25_spill] sm:$0xff] }
 0x3ef   :  { %23903 = vst [vmem:[#allocation377_spill] sm:$0xff] %v19690_v41  ;;  %v19720_v45 = vpack.c.bf16 %v23917_v1, %v23916_v34  ;;  %v23919_v26 = vld [vmem:[#allocation20_spill] sm:$0xff]  ;;  %v23926_v1 = vld [vmem:[#allocation186_spill] sm:$0xff] }
 0x3f0   :  { %14089 = vmatpush1.bf16.msra.mxu0 %v19676_v22  ;;  %14185 = vmatpush1.bf16.msra.mxu1 %v19680_v28  ;;  %23909 = vst [vmem:[#allocation379_spill] sm:$0xff] %v19701_v46  ;;  %23912 = vst [vmem:[#allocation384_spill] sm:$0xff] %v19707_v32  ;;  %v23914_v22 = vld [vmem:[#allocation105_spill] sm:$0xff]  ;;  %v19724_v60 = vpack.c.bf16 %v23920_v11, %v23919_v26  ;;  %v23927_v26 = vld [vmem:[#allocation191_spill] sm:$0xff] }
 0x3f1   :  { %14091 = vmatprep.subr.bf16.mxu0 %v19686_v35  ;;  %14187 = vmatprep.subr.bf16.mxu1 %v19690_v41  ;;  %v19711_v20 = vpack.c.bf16 %v23914_v22, %v23913_v47  ;;  %23918 = vst [vmem:[#allocation381_spill] sm:$0xff] %v19720_v45  ;;  %v23921_v22 = vld [vmem:[#allocation187_spill] sm:$0xff]  ;;  %v23922_v47 = vld [vmem:[#allocation192_spill] sm:$0xff]  ;;  %v19745_v11 = vpack.c.bf16 %v23927_v26, %v23926_v1  ;;  %v23938_v26 = vld [vmem:[#allocation201_spill] sm:$0xff] }
 0x3f2   :  { %v19730_v41 = vpack.c.bf16 %v23922_v47, %v23921_v22  ;;  %v23928_v22 = vld [vmem:[#allocation30_spill] sm:$0xff]  ;;  %v23929_v47 = vld [vmem:[#allocation35_spill] sm:$0xff]  ;;  %v23934_v35 = vld [vmem:[#allocation120_spill] sm:$0xff] }
 0x3f3   :  { %23915 = vst [vmem:[#allocation376_spill] sm:$0xff] %v19711_v20  ;;  %12102 = vmatmul.mubr.msk.f32.vlgmr.msra.gmra.mrb[12].mxu1 %vm3635_vm10, %v23625_v4  ;;  %4205 = vmatmul.mubr.f32.vlgmr.msra.gmra.mrb[12].mxu0 %v23575_v55  ;;  %v23937_v1 = vld [vmem:[#allocation196_spill] sm:$0xff] }
 0x3f4   :  { %14093 = vmatpush1.bf16.msra.mxu0 %v19697_v57  ;;  %14189 = vmatpush3.bf16.msra.mxu1 %v19701_v46  ;;  %v23923_v46 = vld [vmem:[#allocation110_spill] sm:$0xff]  ;;  %v23924_v57 = vld [vmem:[#allocation115_spill] sm:$0xff] }
 0x3f5   :  { %4459 = vmatprep.mubr.f32.mxu1 %v23630_v53  ;;  %14095 = vmatprep.subr.bf16.mxu0 %v19707_v32  ;;  %v19736_v34 = vpack.c.bf16 %v23924_v57, %v23923_v46  ;;  %v23931_v46 = vld [vmem:[#allocation197_spill] sm:$0xff]  ;;  %v23932_v57 = vld [vmem:[#allocation202_spill] sm:$0xff] }
 0x3f6   :  { %14191 = vmatprep.subr.bf16.mxu1 %v19711_v20  ;;  %4210 = vmatprep.mubr.f32.mxu0 %v18629_v43  ;;  %v19749_v20 = vpack.c.bf16 %v23929_v47, %v23928_v22  ;;  %v19755_v32 = vpack.c.bf16 %v23932_v57, %v23931_v46  ;;  %v19770_v22 = vpack.c.bf16 %v23938_v26, %v23937_v1  ;;  %v23939_v47 = vld [vmem:[#allocation40_spill] sm:$0xff]  ;;  %v23942_v46 = vld [vmem:[#allocation130_spill] sm:$0xff]  ;;  %v23943_v57 = vld [vmem:[#allocation135_spill] sm:$0xff] }
 0x3f7   :  { %23925 = vst [vmem:[#allocation378_spill] sm:$0xff] %v19736_v34  ;;  %12103 = vmatmul.mubr.msk.f32.gmra.mrb[14].mxu1 %vm3635_vm10, %v23626_v49  ;;  %4211 = vmatmul.mubr.f32.gmra.mrb[14].mxu0 %v18627_v5  ;;  %v23945_v1 = vld [vmem:[#allocation50_spill] sm:$0xff]  ;;  %v23946_v26 = vld [vmem:[#allocation55_spill] sm:$0xff] }
 0x3f8   :  { %14097 = vmatpush1.bf16.msra.mxu0 %v19720_v45  ;;  %14193 = vmatpush3.bf16.msra.mxu1 %v19724_v60  ;;  %23930 = vst [vmem:[#allocation383_spill] sm:$0xff] %v19749_v20  ;;  %23933 = vst [vmem:[#allocation387_spill] sm:$0xff] %v19755_v32  ;;  %v23935_v45 = vld [vmem:[#allocation125_spill] sm:$0xff] }
 0x3f9   :  { %4465 = vmatprep.mubr.f32.mxu1 %v23630_v53  ;;  %14099 = vmatprep.subr.bf16.mxu0 %v19730_v41  ;;  %v19759_v28 = vpack.c.bf16 %v23935_v45, %v23934_v35  ;;  %v23940_v35 = vld [vmem:[#allocation45_spill] sm:$0xff] }
 0x3fa   :  { %14195 = vmatprep.subr.bf16.mxu1 %v19736_v34  ;;  %4216 = vmatprep.mubr.f32.mxu0 %v18606_v54  ;;  %v19774_v45 = vpack.c.bf16 %v23940_v35, %v23939_v47  ;;  %v19780_v34 = vpack.c.bf16 %v23943_v57, %v23942_v46  ;;  %v19788_v47 = vpack.c.bf16 %v23946_v26, %v23945_v1  ;;  %v23948_v35 = vld [vmem:[#allocation170_spill] sm:$0xff]  ;;  %v23951_v46 = vld [vmem:[#allocation140_spill] sm:$0xff]  ;;  %v23952_v57 = vld [vmem:[#allocation145_spill] sm:$0xff] }
 0x3fb   :  { %23936 = vst [vmem:[#allocation392_spill] sm:$0xff] %v19759_v28  ;;  %12104 = vmatmul.mubr.msk.f32.gmra.mrb[16].mxu1 %vm3635_vm10, %v23637_v33  ;;  %4217 = vmatmul.mubr.f32.gmra.mrb[16].mxu0 %v18604_v16  ;;  %v23955_v1 = vld [vmem:[#allocation65_spill] sm:$0xff] }
 0x3fc   :  { %14101 = vmatpush1.bf16.msra.mxu0 %v19745_v11  ;;  %14197 = vmatpush3.bf16.msra.mxu1 %v19749_v20  ;;  %23941 = vst [vmem:[#allocation389_spill] sm:$0xff] %v19774_v45  ;;  %23944 = vst [vmem:[#allocation394_spill] sm:$0xff] %v19780_v34 }
 0x3fd   :  { %14103 = vmatprep.subr.bf16.mxu0 %v19755_v32  ;;  %14199 = vmatprep.subr.bf16.mxu1 %v19759_v28  ;;  %23947 = vst [vmem:[#allocation386_spill] sm:$0xff] %v19788_v47  ;;  %v23949_v32 = vld [vmem:[#allocation175_spill] sm:$0xff]  ;;  %v19798_v28 = vpack.c.bf16 %v23952_v57, %v23951_v46  ;;  %v23959_v46 = vld [vmem:[#allocation150_spill] sm:$0xff] }
 0x3fe   :  { %4287 = vmatprep.mubr.f32.mxu0 %v23630_v53  ;;  %4536 = vmatprep.mubr.f32.mxu1 %v18473_v40  ;;  %v19792_v20 = vpack.c.bf16 %v23949_v32, %v23948_v35  ;;  %v23954_v40 = vld [vmem:[#allocation60_spill] sm:$0xff]  ;;  %v23957_v35 = vld [vmem:[#allocation185_spill] sm:$0xff]  ;;  %v23960_v57 = vld [vmem:[#allocation155_spill] sm:$0xff] }
 0x3ff   :  { %23953 = vst [vmem:[#allocation388_spill] sm:$0xff] %v19798_v28  ;;  %v19806_v26 = vpack.c.bf16 %v23955_v1, %v23954_v40  ;;  %v23956_v32 = vld [vmem:[#allocation180_spill] sm:$0xff]  ;;  %v23962_v40 = vld [vmem:[#allocation70_spill] sm:$0xff]  ;;  %v23963_v1 = vld [vmem:[#allocation75_spill] sm:$0xff] }
 0x400   :  { %14105 = vmatpush1.bf16.msra.mxu0 %v19770_v22  ;;  %14201 = vmatpush3.bf16.msra.mxu1 %v19774_v45  ;;  %23950 = vst [vmem:[#allocation391_spill] sm:$0xff] %v19792_v20  ;;  %v19816_v45 = vpack.c.bf16 %v23960_v57, %v23959_v46  ;;  %v23966_v46 = vld [vmem:[#allocation160_spill] sm:$0xff]  ;;  %v23967_v57 = vld [vmem:[#allocation165_spill] sm:$0xff] }
 0x401   :  { %14203 = vmatprep.subr.bf16.mxu1 %v19780_v34  ;;  %14218 = vmatprep.subr.bf16.mxu0 %v23638_v24  ;;  %v19810_v34 = vpack.c.bf16 %v23957_v35, %v23956_v32  ;;  %v19825_v32 = vpack.c.bf16 %v23963_v1, %v23962_v40  ;;  %v23964_v35 = vld [vmem:[#allocation190_spill] sm:$0xff]  ;;  %v23968_v40 = vld [vmem:[#allocation80_spill] sm:$0xff] }
 0x402   :  { %23961 = vst [vmem:[#allocation397_spill] sm:$0xff] %v19816_v45 }
 0x403   :  { %12099 = vmatmul.mubr.msk.f32.vlgmr.msra.gmra.mrb[12].mxu0 %vm3635_vm10, %v23625_v4  ;;  %23958 = vst [vmem:[#allocation393_spill] sm:$0xff] %v19810_v34 }
 0x404   :  { %14205 = vmatpush3.bf16.msra.mxu1 %v19788_v47  ;;  %14220 = vmatpush3.bf16.msra.mxu0 %v19792_v20  ;;  %v23965_v20 = vld [vmem:[#allocation195_spill] sm:$0xff]  ;;  %v19835_v47 = vpack.c.bf16 %v23967_v57, %v23966_v46 }
 0x405   :  { %4293 = vmatprep.mubr.f32.mxu0 %v23630_v53  ;;  %14207 = vmatprep.subr.bf16.mxu1 %v19798_v28  ;;  %v19829_v28 = vpack.c.bf16 %v23965_v20, %v23964_v35  ;;  %v23969_v20 = vld [vmem:[#allocation85_spill] sm:$0xff]  ;;  %v23970_v35 = vld [vmem:[#allocation200_spill] sm:$0xff]  ;;  %v24005_v46 = vld [vmem:[#allocation415_spill] sm:$0xff] }
 0x406   :  { %14221 = vmatprep.subr.bf16.mxu0 %v23638_v24  ;;  %v19844_v1 = vpack.c.bf16 %v23969_v20, %v23968_v40  ;;  %v5342_v57 = vrot.slane %v24005_v46, 1  ;;  %v24006_v40 = vld [vmem:[#allocation247_spill] sm:$0xff]  ;;  %v24007_v20 = vld [vmem:[#allocation252_spill] sm:$0xff] }
 0x407   :  { %12100 = vmatmul.mubr.msk.f32.gmra.mrb[14].mxu0 %vm3635_vm10, %v23626_v49 }
 0x408   :  { %14209 = vmatpush3.bf16.msra.mxu1 %v19806_v26  ;;  %14223 = vmatpush3.bf16.msra.mxu0 %v19810_v34  ;;  %v23971_v34 = vld [vmem:[#allocation205_spill] sm:$0xff] }
 0x409   :  { %4299 = vmatprep.mubr.f32.mxu0 %v23630_v53  ;;  %14211 = vmatprep.subr.bf16.mxu1 %v19816_v45  ;;  %v19848_v45 = vpack.c.bf16 %v23971_v34, %v23970_v35  ;;  %v24008_v35 = vld [vmem:[#allocation417_spill] sm:$0xff] }
 0x40a   :  { %14224 = vmatprep.subr.bf16.mxu0 %v23638_v24 }
 0x40b   :  { %12101 = vmatmul.mubr.msk.f32.gmra.mrb[16].mxu0 %vm3635_vm10, %v23637_v33 }
 0x40c   :  { %14213 = vmatpush3.bf16.msra.mxu1 %v19825_v32  ;;  %14226 = vmatpush3.bf16.msra.mxu0 %v19829_v28 }
 0x40d   :  { %14215 = vmatprep.subr.bf16.mxu1 %v19835_v47  ;;  %14227 = vmatprep.subr.bf16.mxu0 %v23638_v24 }
 0x40e   :  { %13106 = vmatprep.mubr.msk.f32.mxu0 %vm15055_vm0, %v23630_v53 }
 0x410   :  { %14217 = vmatpush3.bf16.msra.mxu1 %v19844_v1  ;;  %14229 = vmatpush3.bf16.msra.mxu0 %v19848_v45 }
 0x411   :  { %14231 = vmatprep.subr.bf16.mxu0 %v18739_v61  ;;  %14311 = vmatprep.subr.bf16.mxu1 %v18743_v23  ;;  %v5345_v61 = vrot.slane %v18731_v62, 1  ;;  %v23975_v23 = vld [vmem:[#allocation214_spill] sm:$0xff] }
 0x413   :  { %4537 = vmatmul.mubr.f32.vlgmr.msra.gmra.mrb[24].mxu1 %v23575_v55  ;;  %13107 = vmatmul.mubr.msk.f32.vlgmr.msra.gmra.mrb[24].mxu0 %vm3635_vm10, %v23625_v4  ;;  %v5344_v55 = vrot.slane %v18674_v59, 1  ;;  %v24003_v4 = vld [vmem:[#allocation243_spill] sm:$0xff] }
 0x414   :  { %14233 = vmatpush1.bf16.msra.mxu0 %v18747_v19  ;;  %14313 = vmatpush1.bf16.msra.mxu1 %v18751_v15  ;;  %v23976_v19 = vld [vmem:[#allocation206_spill] sm:$0xff]  ;;  %v23977_v15 = vld [vmem:[#allocation211_spill] sm:$0xff] }
 0x415   :  { %4541 = vmatprep.mubr.f32.mxu1 %v18629_v43  ;;  %14235 = vmatprep.subr.bf16.mxu0 %v18755_v17  ;;  %v23974_v43 = vld [vmem:[#allocation209_spill] sm:$0xff]  ;;  %v23978_v17 = vld [vmem:[#allocation208_spill] sm:$0xff] }
 0x416   :  { %14315 = vmatprep.subr.bf16.mxu1 %v18759_v39  ;;  %13109 = vmatprep.mubr.msk.f32.mxu0 %vm15055_vm0, %v23630_v53  ;;  %v23979_v39 = vld [vmem:[#allocation213_spill] sm:$0xff] }
 0x417   :  { %4542 = vmatmul.mubr.f32.gmra.mrb[26].mxu1 %v18627_v5  ;;  %13110 = vmatmul.mubr.msk.f32.gmra.mrb[26].mxu0 %vm3635_vm10, %v23626_v49  ;;  %v19886_v5 = vsel %vm1141_vm5, %v5344_v55, %v5345_v61  ;;  %v24002_v49 = vld [vmem:[#allocation238_spill] sm:$0xff]  ;;  %v19945_v55 = vrot.slane %v24008_v35, 1 }
 0x418   :  { %14237 = vmatpush1.bf16.msra.mxu0 %v18767_v3  ;;  %14317 = vmatpush1.bf16.msra.mxu1 %v18771_v10  ;;  %v23980_v3 = vld [vmem:[#allocation217_spill] sm:$0xff]  ;;  %v23981_v10 = vld [vmem:[#allocation222_spill] sm:$0xff] }
 0x419   :  { %4546 = vmatprep.mubr.f32.mxu1 %v18606_v54  ;;  %14239 = vmatprep.subr.bf16.mxu0 %v18777_v6  ;;  %v23973_v54 = vld [vmem:[#allocation212_spill] sm:$0xff]  ;;  %v23982_v6 = vld [vmem:[#allocation219_spill] sm:$0xff] }
 0x41a   :  { %14319 = vmatprep.subr.bf16.mxu1 %v18781_v7  ;;  %13112 = vmatprep.mubr.msk.f32.mxu0 %vm15055_vm0, %v23630_v53  ;;  %v23983_v7 = vld [vmem:[#allocation224_spill] sm:$0xff] }
 0x41b   :  { %4547 = vmatmul.mubr.f32.gmra.mrb[28].mxu1 %v18604_v16  ;;  %13113 = vmatmul.mubr.msk.f32.gmra.mrb[28].mxu0 %vm3635_vm10, %v23637_v33  ;;  %v23972_v16 = vld [vmem:[#allocation207_spill] sm:$0xff]  ;;  %v24004_v33 = vld [vmem:[#allocation412_spill] sm:$0xff] }
 0x41c   :  { %14241 = vmatpush1.bf16.msra.mxu0 %v18787_v42  ;;  %14321 = vmatpush1.bf16.msra.mxu1 %v18791_v30  ;;  %v23984_v42 = vld [vmem:[#allocation216_spill] sm:$0xff]  ;;  %v23985_v30 = vld [vmem:[#allocation221_spill] sm:$0xff]  ;;  %v5341_v34 = vrot.slane %v24004_v33, 1 }
 0x41d   :  { %14243 = vmatprep.subr.bf16.mxu0 %v18797_v8  ;;  %14323 = vmatprep.subr.bf16.mxu1 %v18801_v21  ;;  %v23986_v8 = vld [vmem:[#allocation218_spill] sm:$0xff]  ;;  %v23987_v21 = vld [vmem:[#allocation223_spill] sm:$0xff] }
 0x41e   :  { %5432 = vmatprep.mubr.f32.mxu0 %v19886_v5  ;;  %5598 = vmatprep.mubr.f32.mxu1 %v19886_v5 }
 0x420   :  { %14245 = vmatpush1.bf16.msra.mxu0 %v18807_v14  ;;  %14325 = vmatpush1.bf16.msra.mxu1 %v18811_v51  ;;  %v23988_v14 = vld [vmem:[#allocation227_spill] sm:$0xff]  ;;  %v23989_v51 = vld [vmem:[#allocation232_spill] sm:$0xff] }
 0x421   :  { %14247 = vmatprep.subr.bf16.mxu0 %v18817_v56  ;;  %14327 = vmatprep.subr.bf16.mxu1 %v18821_v48  ;;  %v23990_v56 = vld [vmem:[#allocation229_spill] sm:$0xff]  ;;  %v23991_v48 = vld [vmem:[#allocation234_spill] sm:$0xff] }
 0x424   :  { %14249 = vmatpush1.bf16.msra.mxu0 %v18829_v38  ;;  %14329 = vmatpush1.bf16.msra.mxu1 %v18833_v50  ;;  %v23992_v38 = vld [vmem:[#allocation226_spill] sm:$0xff]  ;;  %v23993_v50 = vld [vmem:[#allocation231_spill] sm:$0xff] }
 0x425   :  { %14251 = vmatprep.subr.bf16.mxu0 %v18839_v13  ;;  %14331 = vmatprep.subr.bf16.mxu1 %v18843_v29  ;;  %v23994_v13 = vld [vmem:[#allocation228_spill] sm:$0xff]  ;;  %v23995_v29 = vld [vmem:[#allocation233_spill] sm:$0xff] }
 0x428   :  { %14253 = vmatpush1.bf16.msra.mxu0 %v18854_v52  ;;  %14333 = vmatpush1.bf16.msra.mxu1 %v18858_v36  ;;  %v23996_v52 = vld [vmem:[#allocation237_spill] sm:$0xff]  ;;  %v23997_v36 = vld [vmem:[#allocation242_spill] sm:$0xff] }
 0x429   :  { %14255 = vmatprep.subr.bf16.mxu0 %v18864_v2  ;;  %14335 = vmatprep.subr.bf16.mxu1 %v18868_v31  ;;  %v23998_v2 = vld [vmem:[#allocation239_spill] sm:$0xff]  ;;  %v23999_v31 = vld [vmem:[#allocation244_spill] sm:$0xff] }
 0x42c   :  { %14257 = vmatpush1.bf16.msra.mxu0 %v18876_v37  ;;  %14337 = vmatpush1.bf16.msra.mxu1 %v18880_v0  ;;  %v24000_v37 = vld [vmem:[#allocation236_spill] sm:$0xff]  ;;  %v24001_v0 = vld [vmem:[#allocation241_spill] sm:$0xff] }
 0x42d   :  { %14259 = vmatprep.subr.bf16.mxu0 %v23972_v16  ;;  %14339 = vmatprep.subr.bf16.mxu1 %v23973_v54  ;;  %v24009_v16 = vld [vmem:[#allocation249_spill] sm:$0xff]  ;;  %v24010_v54 = vld [vmem:[#allocation254_spill] sm:$0xff] }
 0x430   :  { %14261 = vmatpush1.bf16.msra.mxu0 %v23974_v43  ;;  %14341 = vmatpush1.bf16.msra.mxu1 %v23975_v23  ;;  %v19950_v43 = vsel %vm1141_vm5, %v5341_v34, %v5342_v57  ;;  %v24011_v23 = vld [vmem:[#allocation416_spill] sm:$0xff] }
 0x431   :  { %14263 = vmatprep.subr.bf16.mxu0 %v23976_v19  ;;  %14343 = vmatprep.subr.bf16.mxu1 %v23977_v15  ;;  %v19953_v19 = vrot.slane %v24011_v23, 1  ;;  %v24012_v15 = vld [vmem:[#allocation246_spill] sm:$0xff] }
 0x434   :  { %14265 = vmatpush1.bf16.msra.mxu0 %v23978_v17  ;;  %14345 = vmatpush1.bf16.msra.mxu1 %v23979_v39  ;;  %v24013_v17 = vld [vmem:[#allocation251_spill] sm:$0xff]  ;;  %v19963_v39 = vsel %vm1141_vm5, %v5345_v61, %v19945_v55 }
 0x435   :  { %14267 = vmatprep.subr.bf16.mxu0 %v23980_v3  ;;  %14347 = vmatprep.subr.bf16.mxu1 %v23981_v10  ;;  %v24014_v3 = vld [vmem:[#allocation248_spill] sm:$0xff]  ;;  %v24015_v10 = vld [vmem:[#allocation253_spill] sm:$0xff]  ;;  %v24018_v61 = vld [vmem:[#allocation259_spill] sm:$0xff] }
 0x438   :  { %14269 = vmatpush1.bf16.msra.mxu0 %v23982_v6  ;;  %14349 = vmatpush1.bf16.msra.mxu1 %v23983_v7  ;;  %v19969_v6 = vsel %vm1141_vm5, %v5342_v57, %v19953_v19  ;;  %v24016_v7 = vld [vmem:[#allocation257_spill] sm:$0xff] }
 0x439   :  { %14271 = vmatprep.subr.bf16.mxu0 %v23984_v42  ;;  %14351 = vmatprep.subr.bf16.mxu1 %v23985_v30  ;;  %v24017_v42 = vld [vmem:[#allocation262_spill] sm:$0xff]  ;;  %v24019_v30 = vld [vmem:[#allocation264_spill] sm:$0xff]  ;;  %v24034_v57 = vld [vmem:[#allocation273_spill] sm:$0xff] }
 0x43c   :  { %14273 = vmatpush1.bf16.msra.mxu0 %v23986_v8  ;;  %14353 = vmatpush1.bf16.msra.mxu1 %v23987_v21  ;;  %v24020_v8 = vld [vmem:[#allocation256_spill] sm:$0xff]  ;;  %v24021_v21 = vld [vmem:[#allocation261_spill] sm:$0xff] }
 0x43d   :  { %14275 = vmatprep.subr.bf16.mxu0 %v23988_v14  ;;  %14355 = vmatprep.subr.bf16.mxu1 %v23989_v51  ;;  %v24022_v14 = vld [vmem:[#allocation258_spill] sm:$0xff]  ;;  %v24023_v51 = vld [vmem:[#allocation263_spill] sm:$0xff] }
 0x440   :  { %14277 = vmatpush1.bf16.msra.mxu0 %v23990_v56  ;;  %14357 = vmatpush1.bf16.msra.mxu1 %v23991_v48  ;;  %v24024_v56 = vld [vmem:[#allocation411_spill] sm:$0xff] }
 0x441   :  { %14279 = vmatprep.subr.bf16.mxu0 %v23992_v38  ;;  %14359 = vmatprep.subr.bf16.mxu1 %v23993_v50  ;;  %v5347_v48 = vrot.slane %v24024_v56, 1  ;;  %v24025_v38 = vld [vmem:[#allocation413_spill] sm:$0xff] }
 0x442   :  { %v5348_v50 = vrot.slane %v24025_v38, 1 }
 0x444   :  { %14281 = vmatpush1.bf16.msra.mxu0 %v23994_v13  ;;  %14361 = vmatpush1.bf16.msra.mxu1 %v23995_v29  ;;  %v24026_v13 = vld [vmem:[#allocation267_spill] sm:$0xff]  ;;  %v24027_v29 = vld [vmem:[#allocation272_spill] sm:$0xff] }
 0x445   :  { %14283 = vmatprep.subr.bf16.mxu0 %v23996_v52  ;;  %14363 = vmatprep.subr.bf16.mxu1 %v23997_v36  ;;  %v24028_v52 = vld [vmem:[#allocation269_spill] sm:$0xff]  ;;  %v24029_v36 = vld [vmem:[#allocation274_spill] sm:$0xff] }
 0x448   :  { %14285 = vmatpush1.bf16.msra.mxu0 %v23998_v2  ;;  %14365 = vmatpush1.bf16.msra.mxu1 %v23999_v31  ;;  %v5349_v2 = vsel %vm1141_vm5, %v5347_v48, %v5348_v50  ;;  %v24030_v31 = vld [vmem:[#allocation414_spill] sm:$0xff]  ;;  %v24050_v48 = vld [vmem:[#allocation293_spill] sm:$0xff] }
 0x449   :  { %14287 = vmatprep.subr.bf16.mxu0 %v24000_v37  ;;  %14367 = vmatprep.subr.bf16.mxu1 %v24001_v0  ;;  %v5354_v37 = vrot.slane %v24030_v31, 1  ;;  %v24031_v0 = vld [vmem:[#allocation266_spill] sm:$0xff] }
 0x44b   :  { %v5355_v34 = vsel %vm1141_vm5, %v5348_v50, %v5354_v37  ;;  %v24051_v50 = vld [vmem:[#allocation297_spill] sm:$0xff] }
 0x44c   :  { %14289 = vmatpush1.bf16.msra.mxu0 %v24002_v49  ;;  %14369 = vmatpush1.bf16.msra.mxu1 %v24003_v4  ;;  %v24032_v49 = vld [vmem:[#allocation271_spill] sm:$0xff]  ;;  %v24033_v4 = vld [vmem:[#allocation268_spill] sm:$0xff] }
 0x44d   :  { %14291 = vmatprep.subr.bf16.mxu0 %v24006_v40  ;;  %14371 = vmatprep.subr.bf16.mxu1 %v24007_v20  ;;  %v24035_v40 = vld [vmem:[#allocation277_spill] sm:$0xff]  ;;  %v24036_v20 = vld [vmem:[#allocation282_spill] sm:$0xff] }
 0x450   :  { %14293 = vmatpush1.bf16.msra.mxu0 %v24009_v16  ;;  %14373 = vmatpush1.bf16.msra.mxu1 %v24010_v54  ;;  %v24037_v16 = vld [vmem:[#allocation279_spill] sm:$0xff]  ;;  %v24038_v54 = vld [vmem:[#allocation284_spill] sm:$0xff] }
 0x451   :  { %14295 = vmatprep.subr.bf16.mxu0 %v24012_v15  ;;  %14375 = vmatprep.subr.bf16.mxu1 %v24013_v17  ;;  %v24039_v15 = vld [vmem:[#allocation276_spill] sm:$0xff]  ;;  %v24040_v17 = vld [vmem:[#allocation281_spill] sm:$0xff] }
 0x453   :  { %5433 = vmatmul.mubr.f32.vlgmr.msra.gmra.mrb[30].mxu0 %v19950_v43  ;;  %5599 = vmatmul.mubr.f32.vlgmr.msra.gmra.mrb[30].mxu1 %v19950_v43 }
 0x454   :  { %14297 = vmatpush1.bf16.msra.mxu0 %v24014_v3  ;;  %14377 = vmatpush1.bf16.msra.mxu1 %v24015_v10  ;;  %v24041_v3 = vld [vmem:[#allocation278_spill] sm:$0xff]  ;;  %v24042_v10 = vld [vmem:[#allocation283_spill] sm:$0xff] }
 0x455   :  { %14299 = vmatprep.subr.bf16.mxu0 %v24016_v7  ;;  %14379 = vmatprep.subr.bf16.mxu1 %v24017_v42  ;;  %v24043_v7 = vld [vmem:[#allocation287_spill] sm:$0xff]  ;;  %v24044_v42 = vld [vmem:[#allocation292_spill] sm:$0xff] }
 0x456   :  { %5438 = vmatprep.mubr.f32.mxu0 %v19963_v39  ;;  %5604 = vmatprep.mubr.f32.mxu1 %v19963_v39 }
 0x457   :  { %5439 = vmatmul.mubr.f32.gmra.mrb[32].mxu0 %v19969_v6  ;;  %5605 = vmatmul.mubr.f32.gmra.mrb[32].mxu1 %v19969_v6 }
 0x458   :  { %14301 = vmatpush1.bf16.msra.mxu0 %v24018_v61  ;;  %14381 = vmatpush1.bf16.msra.mxu1 %v24019_v30  ;;  %v24045_v61 = vld [vmem:[#allocation289_spill] sm:$0xff]  ;;  %v24046_v30 = vld [vmem:[#allocation294_spill] sm:$0xff] }
 0x459   :  { %14303 = vmatprep.subr.bf16.mxu0 %v24020_v8  ;;  %14383 = vmatprep.subr.bf16.mxu1 %v24021_v21  ;;  %v24048_v21 = vld [vmem:[#allocation291_spill] sm:$0xff] }
 0x45a   :  { %5444 = vmatprep.mubr.f32.mxu0 %v19945_v55  ;;  %5610 = vmatprep.mubr.f32.mxu1 %v19945_v55 }
 0x45b   :  { %5445 = vmatmul.mubr.f32.gmra.mrb[34].mxu0 %v19953_v19  ;;  %5611 = vmatmul.mubr.f32.gmra.mrb[34].mxu1 %v19953_v19 }
 0x45c   :  { %14305 = vmatpush1.bf16.msra.mxu0 %v24022_v14  ;;  %14385 = vmatpush1.bf16.msra.mxu1 %v24023_v51  ;;  %v24049_v14 = vld [vmem:[#allocation288_spill] sm:$0xff] }
 0x45d   :  { %14307 = vmatprep.subr.bf16.mxu0 %v24026_v13  ;;  %14387 = vmatprep.subr.bf16.mxu1 %v24027_v29  ;;  %v24052_v13 = vld [vmem:[#allocation302_spill] sm:$0xff]  ;;  %v24053_v29 = vld [vmem:[#allocation299_spill] sm:$0xff] }
 0x45e   :  { %5515 = vmatprep.mubr.f32.mxu0 %v23630_v53  ;;  %5681 = vmatprep.mubr.f32.mxu1 %v23630_v53 }
 0x460   :  { %14309 = vmatpush1.bf16.msra.mxu0 %v24028_v52  ;;  %14389 = vmatpush1.bf16.msra.mxu1 %v24029_v36  ;;  %v24054_v36 = vld [vmem:[#allocation304_spill] sm:$0xff] }
 0x461   :  { %14391 = vmatprep.subr.bf16.mxu0 %v24031_v0  ;;  %14422 = vmatprep.subr.bf16.mxu1 %v23638_v24  ;;  %v24056_v0 = vld [vmem:[#allocation301_spill] sm:$0xff] }
 0x463   :  { %12198 = vmatmul.mubr.msk.f32.vlgmr.msra.gmra.mrb[30].mxu0 %vm3635_vm10, %v5349_v2  ;;  %12201 = vmatmul.mubr.msk.f32.vlgmr.msra.gmra.mrb[30].mxu1 %vm3635_vm10, %v5349_v2 }
 0x464   :  { %14393 = vmatpush3.bf16.msra.mxu0 %v24032_v49  ;;  %14424 = vmatpush3.bf16.msra.mxu1 %v24033_v4  ;;  %v24058_v49 = vld [vmem:[#allocation303_spill] sm:$0xff] }
 0x465   :  { %14395 = vmatprep.subr.bf16.mxu0 %v24034_v57  ;;  %14425 = vmatprep.subr.bf16.mxu1 %v23638_v24  ;;  %v24059_v57 = vld [vmem:[#allocation307_spill] sm:$0xff] }
 0x466   :  { %5687 = vmatprep.mubr.f32.mxu1 %v23630_v53  ;;  %5521 = vmatprep.mubr.f32.mxu0 %v23630_v53 }
 0x467   :  { %12202 = vmatmul.mubr.msk.f32.gmra.mrb[32].mxu1 %vm3635_vm10, %v5355_v34  ;;  %12199 = vmatmul.mubr.msk.f32.gmra.mrb[32].mxu0 %vm3635_vm10, %v5355_v34 }
 0x468   :  { %14397 = vmatpush3.bf16.msra.mxu0 %v24035_v40  ;;  %14427 = vmatpush3.bf16.msra.mxu1 %v24036_v20 }
 0x469   :  { %14399 = vmatprep.subr.bf16.mxu0 %v24037_v16  ;;  %14428 = vmatprep.subr.bf16.mxu1 %v23638_v24  ;;  %v24063_v16 = vld [vmem:[#allocation306_spill] sm:$0xff] }
 0x46a   :  { %5693 = vmatprep.mubr.f32.mxu1 %v23630_v53  ;;  %5527 = vmatprep.mubr.f32.mxu0 %v23630_v53 }
 0x46b   :  { %12203 = vmatmul.mubr.msk.f32.gmra.mrb[34].mxu1 %vm3635_vm10, %v5354_v37  ;;  %12200 = vmatmul.mubr.msk.f32.gmra.mrb[34].mxu0 %vm3635_vm10, %v5354_v37 }
 0x46c   :  { %14401 = vmatpush3.bf16.msra.mxu0 %v24038_v54  ;;  %14430 = vmatpush3.bf16.msra.mxu1 %v24039_v15 }
 0x46d   :  { %14403 = vmatprep.subr.bf16.mxu0 %v24040_v17  ;;  %14431 = vmatprep.subr.bf16.mxu1 %v23638_v24  ;;  %v24065_v17 = vld [vmem:[#allocation308_spill] sm:$0xff] }
 0x46e   :  { %13131 = vmatprep.mubr.msk.f32.mxu1 %vm15055_vm0, %v23630_v53  ;;  %5764 = vmatprep.mubr.f32.mxu0 %v19886_v5 }
 0x470   :  { %14405 = vmatpush3.bf16.msra.mxu0 %v24041_v3  ;;  %14433 = vmatpush3.bf16.msra.mxu1 %v19257_v44  ;;  %v24047_v44 = vld [vmem:[#allocation286_spill] sm:$0xff]  ;;  %v24067_v3 = vld [vmem:[#allocation317_spill] sm:$0xff] }
 0x471   :  { %14407 = vmatprep.subr.bf16.mxu0 %v24042_v10  ;;  %14515 = vmatprep.subr.bf16.mxu1 %v24043_v7  ;;  %v24068_v10 = vld [vmem:[#allocation322_spill] sm:$0xff] }
 0x473   :  { %13132 = vmatmul.mubr.msk.f32.vlgmr.msra.gmra.mrb[36].mxu1 %vm3635_vm10, %v5349_v2  ;;  %v24055_v2 = vld [vmem:[#allocation296_spill] sm:$0xff] }
 0x474   :  { %14409 = vmatpush3.bf16.msra.mxu0 %v24044_v42  ;;  %14517 = vmatpush1.bf16.msra.mxu1 %v19280_v27  ;;  %v24069_v42 = vld [vmem:[#allocation319_spill] sm:$0xff] }
 0x475   :  { %14411 = vmatprep.subr.bf16.mxu0 %v24045_v61  ;;  %14519 = vmatprep.subr.bf16.mxu1 %v24046_v30  ;;  %v24070_v61 = vld [vmem:[#allocation324_spill] sm:$0xff] }
 0x476   :  { %v4120_v8 = vpop.f32.mrb[18].mxu1  ;;  %13134 = vmatprep.mubr.msk.f32.mxu1 %vm15055_vm0, %v23630_v53  ;;  %v24071_v30 = vld [vmem:[#allocation316_spill] sm:$0xff] }
 0x477   :  { %v13083_v5 = vpop.f32.mrb[19].mxu1  ;;  %13135 = vmatmul.mubr.msk.f32.gmra.mrb[38].mxu1 %vm3635_vm10, %v5355_v34 }
 0x478   :  { %14413 = vmatpush3.bf16.msra.mxu0 %v24047_v44  ;;  %14521 = vmatpush1.bf16.msra.mxu1 %v19301_v12  ;;  %v24073_v5 = vld [vmem:[#allocation318_spill] sm:$0xff]  ;;  %v24074_v44 = vld [vmem:[#allocation323_spill] sm:$0xff] }
 0x479   :  { %14415 = vmatprep.subr.bf16.mxu0 %v24048_v21  ;;  %14523 = vmatprep.subr.bf16.mxu1 %v24049_v14  ;;  %v24075_v21 = vld [vmem:[#allocation327_spill] sm:$0xff]  ;;  %v24076_v14 = vld [vmem:[#allocation332_spill] sm:$0xff] }
 0x47a   :  { %v4125_v27 = vpop.f32.mrb[20].mxu1  ;;  %13137 = vmatprep.mubr.msk.f32.mxu1 %vm15055_vm0, %v23630_v53 }
 0x47b   :  { %v13086_v51 = vpop.f32.mrb[21].mxu1  ;;  %13138 = vmatmul.mubr.msk.f32.gmra.mrb[40].mxu1 %vm3635_vm10, %v5354_v37  ;;  %v24057_v37 = vld [vmem:[#allocation298_spill] sm:$0xff] }
 0x47c   :  { %14417 = vmatpush3.bf16.msra.mxu0 %v24050_v48  ;;  %14525 = vmatpush1.bf16.msra.mxu1 %v24051_v50  ;;  %v24078_v51 = vld [vmem:[#allocation334_spill] sm:$0xff]  ;;  %v24080_v50 = vld [vmem:[#allocation331_spill] sm:$0xff] }
 0x47d   :  { %14419 = vmatprep.subr.bf16.mxu0 %v24052_v13  ;;  %14527 = vmatprep.subr.bf16.mxu1 %v24053_v29  ;;  %v24079_v48 = vld [vmem:[#allocation326_spill] sm:$0xff]  ;;  %v24081_v13 = vld [vmem:[#allocation328_spill] sm:$0xff]  ;;  %v24082_v29 = vld [vmem:[#allocation333_spill] sm:$0xff] }
 0x47e   :  { %v4130_v12 = vpop.f32.mrb[22].mxu1  ;;  %6096 = vmatprep.mubr.f32.mxu1 %v18674_v59 }
 0x47f   :  { %v13089_v52 = vpop.f32.mrb[23].mxu1 }
 0x480   :  { %14421 = vmatpush3.bf16.msra.mxu0 %v24054_v36  ;;  %14529 = vmatpush1.bf16.msra.mxu1 %v19348_v18  ;;  %v24084_v52 = vld [vmem:[#allocation342_spill] sm:$0xff]  ;;  %v24085_v36 = vld [vmem:[#allocation339_spill] sm:$0xff] }
 0x481   :  { %14435 = vmatprep.subr.bf16.mxu0 %v24055_v2  ;;  %14531 = vmatprep.subr.bf16.mxu1 %v24056_v0  ;;  %v24086_v2 = vld [vmem:[#allocation344_spill] sm:$0xff] }
 0x482   :  { %v24087_v0 = vld [vmem:[#allocation336_spill] sm:$0xff] }
 0x483   :  { %5765 = vmatmul.mubr.f32.vlgmr.msra.gmra.mrb[36].mxu0 %v19950_v43  ;;  %v24060_v43 = vld [vmem:[#allocation312_spill] sm:$0xff] }
 0x484   :  { %14437 = vmatpush1.bf16.msra.mxu0 %v24057_v37  ;;  %14533 = vmatpush1.bf16.msra.mxu1 %v19369_v58  ;;  %v24088_v37 = vld [vmem:[#allocation341_spill] sm:$0xff] }
 0x485   :  { %14439 = vmatprep.subr.bf16.mxu0 %v19375_v9  ;;  %14535 = vmatprep.subr.bf16.mxu1 %v24058_v49  ;;  %v24089_v49 = vld [vmem:[#allocation338_spill] sm:$0xff] }
 0x486   :  { %v12487_v4 = vpop.f32.mrb[18].mxu0  ;;  %5769 = vmatprep.mubr.f32.mxu0 %v19963_v39  ;;  %v24061_v39 = vld [vmem:[#allocation309_spill] sm:$0xff] }
 0x487   :  { %v12488_v34 = vpop.f32.mrb[19].mxu0  ;;  %5770 = vmatmul.mubr.f32.gmra.mrb[38].mxu0 %v19969_v6  ;;  %v24062_v6 = vld [vmem:[#allocation314_spill] sm:$0xff] }
 0x488   :  { %v12489_v18 = vadd.f32 %v12488_v34, %v12487_v4  ;;  %14441 = vmatpush1.bf16.msra.mxu0 %v24059_v57  ;;  %14537 = vmatpush1.bf16.msra.mxu1 %v19390_v25  ;;  %v24064_v25 = vld [vmem:[#allocation311_spill] sm:$0xff]  ;;  %v24093_v57 = vld [vmem:[#allocation349_spill] sm:$0xff] }
 0x489   :  { %14443 = vmatprep.subr.bf16.mxu0 %v19396_v63  ;;  %14539 = vmatprep.subr.bf16.mxu1 %v24060_v43  ;;  %v24090_v4 = vld [vmem:[#allocation343_spill] sm:$0xff]  ;;  %v24094_v43 = vld [vmem:[#allocation354_spill] sm:$0xff] }
 0x48a   :  { %v20064_v58 = vadd.f32 %v12489_v18, %v4120_v8  ;;  %v12490_v9 = vpop.f32.mrb[20].mxu0  ;;  %5774 = vmatprep.mubr.f32.mxu0 %v19945_v55  ;;  %v24066_v55 = vld [vmem:[#allocation313_spill] sm:$0xff]  ;;  %v24091_v34 = vld [vmem:[#allocation347_spill] sm:$0xff]  ;;  %v24092_v18 = vld [vmem:[#allocation352_spill] sm:$0xff] }
 0x48b   :  { %v12491_v40 = vpop.f32.mrb[21].mxu0  ;;  %5775 = vmatmul.mubr.f32.gmra.mrb[40].mxu0 %v19953_v19  ;;  %v24072_v8 = vld [vmem:[#allocation321_spill] sm:$0xff] }
 0x48c   :  { %14445 = vmatpush1.bf16.msra.mxu0 %v24061_v39  ;;  %14541 = vmatpush1.bf16.msra.mxu1 %v24062_v6  ;;  %v12492_v20 = vadd.f32 %v12491_v40, %v12490_v9  ;;  %v24095_v9 = vld [vmem:[#allocation346_spill] sm:$0xff]  ;;  %v24096_v40 = vld [vmem:[#allocation351_spill] sm:$0xff]  ;;  %v24097_v39 = vld [vmem:[#allocation348_spill] sm:$0xff] }
 0x48d   :  { %14447 = vmatprep.subr.bf16.mxu0 %v24063_v16  ;;  %14543 = vmatprep.subr.bf16.mxu1 %v24064_v25  ;;  %v24098_v6 = vld [vmem:[#allocation353_spill] sm:$0xff]  ;;  %v24100_v16 = vld [vmem:[#allocation362_spill] sm:$0xff]  ;;  %v24101_v25 = vld [vmem:[#allocation359_spill] sm:$0xff] }
 0x48e   :  { %v20072_v63 = vadd.f32 %v12492_v20, %v4125_v27  ;;  %v12493_v54 = vpop.f32.mrb[22].mxu0  ;;  %5930 = vmatprep.mubr.f32.mxu0 %v18674_v59  ;;  %v24077_v27 = vld [vmem:[#allocation329_spill] sm:$0xff] }
 0x48f   :  { %v12494_v15 = vpop.f32.mrb[23].mxu0  ;;  %v24099_v20 = vld [vmem:[#allocation357_spill] sm:$0xff] }
 0x490   :  { %14449 = vmatpush1.bf16.msra.mxu0 %v24065_v17  ;;  %14545 = vmatpush1.bf16.msra.mxu1 %v24066_v55  ;;  %v12495_v19 = vadd.f32 %v12494_v15, %v12493_v54  ;;  %v24102_v54 = vld [vmem:[#allocation364_spill] sm:$0xff]  ;;  %v24104_v17 = vld [vmem:[#allocation361_spill] sm:$0xff]  ;;  %v24105_v55 = vld [vmem:[#allocation358_spill] sm:$0xff] }
 0x491   :  { %14451 = vmatprep.subr.bf16.mxu0 %v24067_v3  ;;  %14547 = vmatprep.subr.bf16.mxu1 %v24068_v10  ;;  %v24103_v15 = vld [vmem:[#allocation356_spill] sm:$0xff]  ;;  %v24108_v10 = vld [vmem:[#allocation367_spill] sm:$0xff] }
 0x492   :  { %v20079_v7 = vadd.f32 %v12495_v19, %v4130_v12  ;;  %v24083_v12 = vld [vmem:[#allocation337_spill] sm:$0xff]  ;;  %v24106_v19 = vld [vmem:[#allocation363_spill] sm:$0xff]  ;;  %v24107_v3 = vld [vmem:[#allocation408_spill] sm:$0xff] }
 0x494   :  { %14453 = vmatpush1.bf16.msra.mxu0 %v24069_v42  ;;  %14549 = vmatpush1.bf16.msra.mxu1 %v24070_v61  ;;  %v24109_v42 = vld [vmem:[#allocation372_spill] sm:$0xff]  ;;  %v24110_v61 = vld [vmem:[#allocation369_spill] sm:$0xff] }
 0x495   :  { %14455 = vmatprep.subr.bf16.mxu0 %v24071_v30  ;;  %14551 = vmatprep.subr.bf16.mxu1 %v24072_v8  ;;  %v24111_v30 = vld [vmem:[#allocation374_spill] sm:$0xff] }
 0x496   :  { %v24112_v8 = vld [vmem:[#allocation366_spill] sm:$0xff] }
 0x498   :  { %14457 = vmatpush1.bf16.msra.mxu0 %v24073_v5  ;;  %14553 = vmatpush1.bf16.msra.mxu1 %v24074_v44  ;;  %v24113_v5 = vld [vmem:[#allocation371_spill] sm:$0xff]  ;;  %v24114_v44 = vld [vmem:[#allocation368_spill] sm:$0xff] }
 0x499   :  { %14459 = vmatprep.subr.bf16.mxu0 %v24075_v21  ;;  %14555 = vmatprep.subr.bf16.mxu1 %v24076_v14  ;;  %v20136_v21 = vld [vmem:[%s22731_s4] sm:$0x1f] }
 0x49a   :  { %v24115_v14 = vld [vmem:[#allocation406_spill] sm:$0xff] }
 0x49c   :  { %14461 = vmatpush1.bf16.msra.mxu0 %v24077_v27  ;;  %14557 = vmatpush1.bf16.msra.mxu1 %v24078_v51  ;;  %v4647_v27 = vsub.s32 3, %v24115_v14  ;;  %v24116_v51 = vld [vmem:[#allocation373_spill] sm:$0xff] }
 0x49d   :  { %14463 = vmatprep.subr.bf16.mxu0 %v24079_v48  ;;  %14559 = vmatprep.subr.bf16.mxu1 %v24080_v50  ;;  %v24117_v48 = vld [vmem:[#allocation377_spill] sm:$0xff]  ;;  %v24118_v50 = vsub.s32 2, %v24115_v14 }
 0x4a0   :  { %14465 = vmatpush1.bf16.msra.mxu0 %v24081_v13  ;;  %14561 = vmatpush1.bf16.msra.mxu1 %v24082_v29  ;;  %v20147_v13 = vrot.slane %v20136_v21, %v24118_v50  ;;  %v24120_v29 = vld [vmem:[#allocation382_spill] sm:$0xff]  ;;  %v24135_v50 = vsub.s32 1, %v24115_v14 }
 0x4a1   :  { %14467 = vmatprep.subr.bf16.mxu0 %v24083_v12  ;;  %14563 = vmatprep.subr.bf16.mxu1 %v24084_v52  ;;  %v24121_v12 = vld [vmem:[#allocation379_spill] sm:$0xff]  ;;  %v20152_v52 = vrot.slane %v20136_v21, %v4647_v27 }
 0x4a2   :  { %24119 = vst [vmem:[#allocation402_spill] sm:$0xff] %v20147_v13 }
 0x4a3   :  { %24122 = vst [vmem:[#allocation399_spill] sm:$0xff] %v20152_v52 }
 0x4a4   :  { %14469 = vmatpush1.bf16.msra.mxu0 %v24085_v36  ;;  %14565 = vmatpush1.bf16.msra.mxu1 %v24086_v2  ;;  %v24123_v36 = vld [vmem:[#allocation384_spill] sm:$0xff] }
 0x4a5   :  { %14471 = vmatprep.subr.bf16.mxu0 %v24087_v0  ;;  %14567 = vmatprep.subr.bf16.mxu1 %v24088_v37  ;;  %v24124_v0 = vld [vmem:[#allocation376_spill] sm:$0xff] }
 0x4a8   :  { %14473 = vmatpush1.bf16.msra.mxu0 %v24089_v49  ;;  %14569 = vmatpush1.bf16.msra.mxu1 %v24090_v4 }
 0x4a9   :  { %14475 = vmatprep.subr.bf16.mxu0 %v24091_v34  ;;  %14571 = vmatprep.subr.bf16.mxu1 %v24092_v18  ;;  %v24125_v34 = vld [vmem:[#allocation381_spill] sm:$0xff] }
 0x4ac   :  { %14477 = vmatpush1.bf16.msra.mxu0 %v24093_v57  ;;  %14573 = vmatpush1.bf16.msra.mxu1 %v24094_v43 }
 0x4ad   :  { %14479 = vmatprep.subr.bf16.mxu0 %v24095_v9  ;;  %14575 = vmatprep.subr.bf16.mxu1 %v24096_v40  ;;  %v24126_v9 = vld [vmem:[#allocation378_spill] sm:$0xff] }
 0x4b0   :  { %14481 = vmatpush1.bf16.msra.mxu0 %v24097_v39  ;;  %14577 = vmatpush1.bf16.msra.mxu1 %v24098_v6 }
 0x4b1   :  { %14483 = vmatprep.subr.bf16.mxu0 %v24099_v20  ;;  %14579 = vmatprep.subr.bf16.mxu1 %v24100_v16  ;;  %v24128_v16 = vld [vmem:[#allocation387_spill] sm:$0xff] }
 0x4b3   :  { %6097 = vmatmul.mubr.f32.vlgmr.msra.gmra.mrb[30].mxu1 %v24004_v33 }
 0x4b4   :  { %14485 = vmatpush1.bf16.msra.mxu0 %v24101_v25  ;;  %14581 = vmatpush1.bf16.msra.mxu1 %v24102_v54  ;;  %v24129_v25 = vld [vmem:[#allocation392_spill] sm:$0xff] }
 0x4b5   :  { %14487 = vmatprep.subr.bf16.mxu0 %v24103_v15  ;;  %14583 = vmatprep.subr.bf16.mxu1 %v24104_v17 }
 0x4b6   :  { %6102 = vmatprep.mubr.f32.mxu1 %v18731_v62 }
 0x4b7   :  { %6103 = vmatmul.mubr.f32.gmra.mrb[32].mxu1 %v24005_v46 }
 0x4b8   :  { %14489 = vmatpush1.bf16.msra.mxu0 %v24105_v55  ;;  %14585 = vmatpush1.bf16.msra.mxu1 %v24106_v19  ;;  %v24130_v55 = vld [vmem:[#allocation389_spill] sm:$0xff] }
 0x4b9   :  { %14491 = vmatprep.subr.bf16.mxu0 %v24107_v3  ;;  %14587 = vmatprep.subr.bf16.mxu1 %v24108_v10 }
 0x4ba   :  { %6108 = vmatprep.mubr.f32.mxu1 %v24008_v35 }
 0x4bb   :  { %6109 = vmatmul.mubr.f32.gmra.mrb[34].mxu1 %v24011_v23 }
 0x4bc   :  { %14493 = vmatpush1.bf16.msra.mxu0 %v24109_v42  ;;  %14589 = vmatpush1.bf16.msra.mxu1 %v24110_v61  ;;  %v24131_v42 = vld [vmem:[#allocation394_spill] sm:$0xff] }
 0x4bd   :  { %14495 = vmatprep.subr.bf16.mxu0 %v24111_v30  ;;  %14591 = vmatprep.subr.bf16.mxu1 %v24112_v8  ;;  %v24133_v30 = vld [vmem:[#allocation388_spill] sm:$0xff] }
 0x4be   :  { %6179 = vmatprep.mubr.f32.mxu1 %v23630_v53 }
 0x4c0   :  { %14497 = vmatpush1.bf16.msra.mxu0 %v24113_v5  ;;  %14593 = vmatpush1.bf16.msra.mxu1 %v24114_v44  ;;  %v24134_v5 = vld [vmem:[#allocation391_spill] sm:$0xff] }
 0x4c1   :  { %14499 = vmatprep.subr.bf16.mxu0 %v24116_v51  ;;  %14595 = vmatprep.subr.bf16.mxu1 %v24117_v48 }
 0x4c3   :  { %12210 = vmatmul.mubr.msk.f32.vlgmr.msra.gmra.mrb[30].mxu1 %vm3635_vm10, %v24024_v56  ;;  %5931 = vmatmul.mubr.f32.vlgmr.msra.gmra.mrb[30].mxu0 %v24004_v33 }
 0x4c4   :  { %14501 = vmatpush1.bf16.msra.mxu0 %v24120_v29  ;;  %14597 = vmatpush3.bf16.msra.mxu1 %v24121_v12  ;;  %v20234_v29 = vrot.slane %v20136_v21, %v24135_v50 }
 0x4c5   :  { %6185 = vmatprep.mubr.f32.mxu1 %v23630_v53  ;;  %14503 = vmatprep.subr.bf16.mxu0 %v24123_v36  ;;  %v24137_v36 = vld [vmem:[#allocation397_spill] sm:$0xff] }
 0x4c6   :  { %v4455_v2 = vpop.f32.mrb[12].mxu1  ;;  %14599 = vmatprep.subr.bf16.mxu1 %v24124_v0  ;;  %5936 = vmatprep.mubr.f32.mxu0 %v18731_v62  ;;  %24136 = vst [vmem:[#allocation404_spill] sm:$0xff] %v20234_v29 }
 0x4c7   :  { %v4660_v37 = vadd.f32 %v20147_v13, %v4455_v2  ;;  %v4457_v49 = vpop.f32.mrb[13].mxu1  ;;  %12211 = vmatmul.mubr.msk.f32.gmra.mrb[32].mxu1 %vm3635_vm10, %v24025_v38  ;;  %5937 = vmatmul.mubr.f32.gmra.mrb[32].mxu0 %v24005_v46  ;;  %v24138_v2 = vld [vmem:[#allocation393_spill] sm:$0xff] }
 0x4c8   :  { %v4661_v4 = vadd.f32 %v20152_v52, %v4457_v49  ;;  %14505 = vmatpush1.bf16.msra.mxu0 %v24125_v34  ;;  %14601 = vmatpush3.bf16.msra.mxu1 %v19724_v60  ;;  %v24127_v60 = vld [vmem:[#allocation383_spill] sm:$0xff] }
 0x4c9   :  { %v20165_v18 = vmax.f32 %v4660_v37, 0.0  ;;  %6191 = vmatprep.mubr.f32.mxu1 %v23630_v53  ;;  %14507 = vmatprep.subr.bf16.mxu0 %v19730_v41 }
 0x4ca   :  { %v20169_v57 = vmax.f32 %v4661_v4, 0.0  ;;  %v4461_v43 = vpop.f32.mrb[14].mxu1  ;;  %14603 = vmatprep.subr.bf16.mxu1 %v24126_v9  ;;  %5942 = vmatprep.mubr.f32.mxu0 %v24008_v35 }
 0x4cb   :  { %v4665_v40 = vadd.f32 %v20147_v13, %v4461_v43  ;;  %v4463_v39 = vpop.f32.mrb[15].mxu1  ;;  %12212 = vmatmul.mubr.msk.f32.gmra.mrb[34].mxu1 %vm3635_vm10, %v24030_v31  ;;  %4707 = vrot.lane.b32.xlu1 %v20165_v18, %s15059_s16 }
 0x4cc   :  { %14509 = vmatpush1.bf16.msra.mxu0 %v19745_v11  ;;  %14605 = vmatpush3.bf16.msra.mxu1 %v24127_v60  ;;  %v4666_v6 = vadd.f32 %v20152_v52, %v4463_v39  ;;  %v4781_v11 = vrot.slane %v20165_v18, 1  ;;  %v4784_v48 = vrot.slane %v20169_v57, 1 }
 0x4cd   :  { %v20180_v41 = vmax.f32 %v4665_v40, 0.0  ;;  %4709 = vrot.lane.b32.xlu0 %v20169_v57, %s15059_s16  ;;  %5943 = vmatmul.mubr.f32.gmra.mrb[34].mxu0 %v24011_v23 }
 0x4ce   :  { %v4467_v20 = vpop.f32.mrb[16].mxu1  ;;  %14511 = vmatprep.subr.bf16.mxu0 %v24128_v16  ;;  %14607 = vmatprep.subr.bf16.mxu1 %v24129_v25  ;;  %v20196_v19 = vmax.f32 %v4666_v6, 0.0 }
 0x4cf   :  { %v4670_v54 = vadd.f32 %v20147_v13, %v4467_v20  ;;  %v4469_v15 = vpop.f32.mrb[17].mxu1  ;;  %4717 = vrot.lane.b32.xlu1 %v20180_v41, %s15059_s16  ;;  %6013 = vmatprep.mubr.f32.mxu0 %v23630_v53  ;;  %v4782_v17 = vrot.slane %v20180_v41, 1 }
 0x4d0   :  { %14513 = vmatpush1.bf16.msra.mxu0 %v19770_v22  ;;  %14609 = vmatpush3.bf16.msra.mxu1 %v24130_v55  ;;  %v4671_v61 = vadd.f32 %v20152_v52, %v4469_v15  ;;  %v24132_v22 = vld [vmem:[#allocation386_spill] sm:$0xff]  ;;  %v4785_v44 = vrot.slane %v20196_v19, 1 }
 0x4d1   :  { %v20198_v3 = vmax.f32 %v4670_v54, 0.0  ;;  %v20201_v10 = vsel %vm1141_vm5, %v4781_v11, %v4782_v17  ;;  %14611 = vmatprep.subr.bf16.mxu1 %v24131_v42  ;;  %14626 = vmatprep.subr.bf16.mxu0 %v23638_v24 }
 0x4d2   :  { %4834 = vrot.lane.b32.xlu0 %v20201_v10, %s15059_s16  ;;  %6262 = vmatprep.mubr.f32.mxu1 %v18674_v59  ;;  %v20221_v59 = vmax.f32 %v4671_v61, 0.0  ;;  %v20239_v12 = vsel %vm1141_vm5, %v4784_v48, %v4785_v44  ;;  %v4651_v48 = vsub.s32 4, %v24115_v14 }
 0x4d3   :  { %12207 = vmatmul.mubr.msk.f32.vlgmr.msra.gmra.mrb[30].mxu0 %vm3635_vm10, %v24024_v56  ;;  %4719 = vrot.lane.b32.xlu1 %v20196_v19, %s15059_s16  ;;  %v20217_v8 = vrot.slane %v20198_v3, 1 }
 0x4d4   :  { %14613 = vmatpush3.bf16.msra.mxu1 %v24132_v22  ;;  %6019 = vmatprep.mubr.f32.mxu0 %v23630_v53  ;;  %v20250_v49 = vrot.slane %v20221_v59, 1 }
 0x4d5   :  { %14615 = vmatprep.subr.bf16.mxu1 %v24133_v30  ;;  %14628 = vmatpush3.bf16.msra.mxu0 %v24134_v5  ;;  %v20247_v37 = vsel %vm1141_vm5, %v4782_v17, %v20217_v8 }
 0x4d6   :  { %v4289_v27 = vpop.f32.mrb[12].mxu0  ;;  %4727 = vrot.lane.b32.xlu0 %v20198_v3, %s15059_s16  ;;  %14629 = vmatprep.subr.bf16.mxu0 %v23638_v24  ;;  %24139 = vst [vmem:[#allocation396_spill] sm:$0xff] %v20250_v49  ;;  %v20276_v6 = vsel %vm1141_vm5, %v4785_v44, %v20250_v49 }
 0x4d7   :  { %v4291_v51 = vpop.f32.mrb[13].mxu0  ;;  %12208 = vmatmul.mubr.msk.f32.gmra.mrb[32].mxu0 %vm3635_vm10, %v24025_v38  ;;  %4854 = vrot.lane.b32.xlu1 %v20217_v8, %s15059_s16 }
 0x4d8   :  { %14617 = vmatpush3.bf16.msra.mxu1 %v19806_v26  ;;  %6025 = vmatprep.mubr.f32.mxu0 %v23630_v53  ;;  %v24140_v26 = vsub.s32 0, %v24115_v14  ;;  %v4659_v43 = vadd.f32 %v20234_v29, %v4291_v51 }
 0x4d9   :  { %14619 = vmatprep.subr.bf16.mxu1 %v24137_v36  ;;  %14631 = vmatpush3.bf16.msra.mxu0 %v24138_v2 }
 0x4da   :  { %v4295_v0 = vpop.f32.mrb[14].mxu0  ;;  %4836 = vrot.lane.b32.xlu0 %v20239_v12, %s15059_s16  ;;  %14632 = vmatprep.subr.bf16.mxu0 %v23638_v24  ;;  %v20256_v4 = vrot.slane %v20136_v21, %v24140_v26  ;;  %v20282_v20 = vmax.f32 %v4659_v43, 0.0 }
 0x4db   :  { %v4297_v34 = vpop.f32.mrb[15].mxu0  ;;  %12209 = vmatmul.mubr.msk.f32.gmra.mrb[34].mxu0 %vm3635_vm10, %v24030_v31  ;;  %4844 = vrot.lane.b32.xlu1 %v20247_v37, %s15059_s16 }
 0x4dc   :  { %24141 = vst [vmem:[#allocation401_spill] sm:$0xff] %v20256_v4  ;;  %v4664_v9 = vadd.f32 %v20234_v29, %v4297_v34  ;;  %14621 = vmatpush3.bf16.msra.mxu1 %v19825_v32  ;;  %13156 = vmatprep.mubr.msk.f32.mxu0 %vm15055_vm0, %v23630_v53  ;;  %v4663_v40 = vadd.f32 %v20256_v4, %v4295_v0 }
 0x4dd   :  { %14623 = vmatprep.subr.bf16.mxu1 %v19835_v47  ;;  %14634 = vmatpush3.bf16.msra.mxu0 %v19829_v28  ;;  %v4658_v47 = vadd.f32 %v20256_v4, %v4289_v27  ;;  %v20348_v0 = vrot.slane %v20136_v21, %v4651_v48 }
 0x4de   :  { %v20270_v39 = vmax.f32 %v4664_v9, 0.0  ;;  %v4301_v60 = vpop.f32.mrb[16].mxu0  ;;  %4729 = vrot.lane.b32.xlu0 %v20221_v59, %s15059_s16  ;;  %14635 = vmatprep.subr.bf16.mxu0 %v23638_v24  ;;  %v20285_v16 = vmax.f32 %v4663_v40, 0.0 }
 0x4df   :  { %v4303_v32 = vpop.f32.mrb[17].mxu0  ;;  %4846 = vrot.lane.b32.xlu1 %v20276_v6, %s15059_s16  ;;  %v20295_v54 = vmax.f32 %v4658_v47, 0.0  ;;  %v4668_v15 = vadd.f32 %v20256_v4, %v4301_v60  ;;  %24142 = vst [vmem:[#allocation398_spill] sm:$0xff] %v20348_v0 }
 0x4e0   :  { %14625 = vmatpush3.bf16.msra.mxu1 %v19844_v1  ;;  %v4779_v25 = vrot.slane %v20270_v39, 1  ;;  %v4778_v1 = vrot.slane %v20282_v20, 1  ;;  %v4669_v11 = vadd.f32 %v20234_v29, %v4303_v32 }
 0x4e1   :  { %14702 = vmatprep.subr.bf16.mxu1 %v23638_v24  ;;  %14637 = vmatpush3.bf16.msra.mxu0 %v19848_v45  ;;  %v20319_v61 = vmax.f32 %v4668_v15, 0.0 }
 0x4e2   :  { %4856 = vrot.lane.b32.xlu0 %v20250_v49, %s15059_s16  ;;  %v20310_v17 = vsel %vm1141_vm5, %v4778_v1, %v4779_v25  ;;  %v20321_v22 = vmax.f32 %v4669_v11, 0.0 }
 0x4e3   :  { %6263 = vmatmul.mubr.f32.vlgmr.msra.gmra.mrb[42].mxu1 %v24004_v33  ;;  %4713 = vrot.lane.b32.xlu1 %v20285_v16, %s15059_s16 }
 0x4e4   :  { %14706 = vmatpush3.bf16.msra.mxu1 %v24134_v5  ;;  %6267 = vmatprep.mubr.f32.mxu1 %v18731_v62 }
 0x4e5   :  { %14703 = vmatprep.subr.bf16.mxu1 %v23638_v24  ;;  %13157 = vmatmul.mubr.msk.f32.vlgmr.msra.gmra.mrb[42].mxu0 %vm3635_vm10, %v24024_v56 }
 0x4e6   :  { %v12539_v33 = vpop.f32.mrb[24].mxu1  ;;  %4703 = vrot.lane.b32.xlu0 %v20295_v54, %s15059_s16  ;;  %v4618_v62 = vpop.f32.mrb[24].mxu0  ;;  %13159 = vmatprep.mubr.msk.f32.mxu0 %vm15055_vm0, %v23630_v53 }
 0x4e7   :  { %v12540_v55 = vpop.f32.mrb[25].mxu1  ;;  %6268 = vmatmul.mubr.f32.gmra.mrb[44].mxu1 %v24005_v46  ;;  %4832 = vrot.lane.b32.xlu1 %v20310_v17, %s15059_s16  ;;  %v13108_v56 = vpop.f32.mrb[25].mxu0 }
 0x4e8   :  { %v12541_v42 = vadd.f32 %v12540_v55, %v12539_v33  ;;  %14707 = vmatpush3.bf16.msra.mxu1 %v24138_v2  ;;  %6272 = vmatprep.mubr.f32.mxu1 %v24008_v35 }
 0x4e9   :  { %14704 = vmatprep.subr.bf16.mxu1 %v23638_v24  ;;  %13160 = vmatmul.mubr.msk.f32.gmra.mrb[44].mxu0 %vm3635_vm10, %v24025_v38  ;;  %v20338_v38 = vrot.slane %v20319_v61, 1 }
 0x4ea   :  { %v12542_v30 = vpop.f32.mrb[26].mxu1  ;;  %4705 = vrot.lane.b32.xlu0 %v20282_v20, %s15059_s16  ;;  %v4539_v46 = vadd.f32 %v12541_v42, %v20064_v58  ;;  %v4623_v5 = vpop.f32.mrb[26].mxu0 }
 0x4eb   :  { %v12543_v44 = vpop.f32.mrb[27].mxu1  ;;  %6273 = vmatmul.mubr.f32.gmra.mrb[46].mxu1 %v24011_v23  ;;  %4725 = vrot.lane.b32.xlu1 %v20321_v22, %s15059_s16  ;;  %v13111_v35 = vpop.f32.mrb[27].mxu0  ;;  %v4776_v23 = vrot.slane %v20285_v16, 1 }
 0x4ec   :  { %v12544_v27 = vadd.f32 %v12543_v44, %v12542_v30  ;;  %v4619_v51 = vadd.f32 %v4618_v62, %v4539_v46  ;;  %14708 = vmatpush3.bf16.msra.mxu1 %v19829_v28  ;;  %13162 = vmatprep.mubr.msk.f32.mxu1 %vm15055_vm0, %v23630_v53  ;;  %v4775_v28 = vrot.slane %v20295_v54, 1 }
 0x4ed   :  { %14705 = vmatprep.subr.bf16.mxu1 %v23638_v24  ;;  %v20361_v21 = vsel %vm1141_vm5, %v4776_v23, %v20338_v38 }
 0x4ee   :  { %v12545_v58 = vpop.f32.mrb[28].mxu1  ;;  %4715 = vrot.lane.b32.xlu0 %v20270_v39, %s15059_s16  ;;  %v4544_v50 = vadd.f32 %v12544_v27, %v20072_v63  ;;  %v4628_v36 = vpop.f32.mrb[28].mxu0  ;;  %v20352_v43 = vsel %vm1141_vm5, %v4775_v28, %v4776_v23  ;;  %v4662_v1 = vadd.f32 %v20348_v0, %v4619_v51 }
 0x4ef   :  { %v12546_v14 = vpop.f32.mrb[29].mxu1  ;;  %4850 = vrot.lane.b32.xlu1 %v20338_v38, %s15059_s16  ;;  %v13114_v2 = vpop.f32.mrb[29].mxu0 }
 0x4f0   :  { %v12547_v26 = vadd.f32 %v12546_v14, %v12545_v58  ;;  %v4624_v34 = vadd.f32 %v4623_v5, %v4544_v50  ;;  %14709 = vmatpush3.bf16.msra.mxu1 %v19848_v45  ;;  %v20402_v33 = vmax.f32 %v4662_v1, 0.0 }
 0x4f1   :  { %13170 = vmatprep.subr.mxu1 %v23630_v53 }
 0x4f2   :  { %v4667_v63 = vadd.f32 %v20348_v0, %v4624_v34  ;;  %4830 = vrot.lane.b32.xlu0 %v20352_v43, %s15059_s16  ;;  %v4549_v9 = vadd.f32 %v12547_v26, %v20079_v7  ;;  %v4787_v62 = vrot.slane %v20402_v33, 1 }
 0x4f3   :  { %13163 = vmatmul.mubr.msk.f32.vlgmr.msra.gmra.mrb[48].mxu1 %vm3635_vm10, %v24030_v31  ;;  %4840 = vrot.lane.b32.xlu1 %v20361_v21, %s15059_s16  ;;  %v20379_v31 = vrot.slane %v20321_v22, 1 }
 0x4f4   :  { %v20367_v45 = vmax.f32 %v4667_v63, 0.0  ;;  %v4629_v40 = vadd.f32 %v4628_v36, %v4549_v9  ;;  %13172 = vmatprep.mubr.msk.f32.mxu1 %vm15055_vm0, %v23630_v53 }
 0x4f5   :  { %v20398_v11 = vsel %vm1141_vm5, %v4779_v25, %v20379_v31 }
 0x4f6   :  { %v4672_v60 = vadd.f32 %v20348_v0, %v4629_v40  ;;  %4723 = vrot.lane.b32.xlu0 %v20319_v61, %s15059_s16  ;;  %v4788_v32 = vrot.slane %v20367_v45, 1 }
 0x4f7   :  { %4721 = vrot.lane.b32.xlu1 %v20367_v45, %s15059_s16 }
 0x4f8   :  { %v20376_v7 = vmax.f32 %v4672_v60, 0.0  ;;  %v20408_v55 = vsel %vm1141_vm5, %v4787_v62, %v4788_v32 }
 0x4fa   :  { %4852 = vrot.lane.b32.xlu0 %v20379_v31, %s15059_s16  ;;  %v20385_v47 = vrot.slane %v20376_v7, 1 }
 0x4fc   :  { %v20390_v15 = vsel %vm1141_vm5, %v4788_v32, %v20385_v47 }
 0x4fd   :  { %4848 = vrot.lane.b32.xlu1 %v20390_v15, %s15059_s16 }
 0x4fe   :  { %4842 = vrot.lane.b32.xlu0 %v20398_v11, %s15059_s16 }
 0x502   :  { %4711 = vrot.lane.b32.xlu0 %v20402_v33, %s15059_s16 }
 0x506   :  { %4838 = vrot.lane.b32.xlu0 %v20408_v55, %s15059_s16 }
 0x50a   :  { %4731 = vrot.lane.b32.xlu0 %v20376_v7, %s15059_s16 }
 0x50e   :  { %4858 = vrot.lane.b32.xlu0 %v20385_v47, %s15059_s16 }
 0x53d   :  { %v4708_v25 = vpop.permute.xlu1 %4707 }
 0x53f   :  { %v20416_v56 = vpop.permute.xlu0 %4709 }
 0x540   :  { %v4735_v36 = vsel %vm1864_vm9, %v4708_v25, %v20416_v56 }
 0x541   :  { %v20418_v42 = vpop.permute.xlu1 %4717  ;;  %v4762_v34 = vmax.f32 %v20165_v18, %v4735_v36 }
 0x543   :  { %v4817_v62 = vmax.f32 %v4762_v34, %v20201_v10  ;;  %v12125_v10 = vld [vmem:[%s22732_s5 + $0x100] sm:$0xff] }
 0x544   :  { %v20420_v30 = vpop.permute.xlu0 %4834 }
 0x545   :  { %v20422_v46 = vpop.permute.xlu1 %4719 }
 0x546   :  { %v5846_v5 = vpop.f32.mrb[36].mxu1  ;;  %v4739_v63 = vsel %vm1864_vm9, %v20418_v42, %v20422_v46 }
 0x547   :  { %v13133_v44 = vpop.f32.mrb[37].mxu1  ;;  %v4767_v60 = vmax.f32 %v20180_v41, %v4739_v63 }
 0x548   :  { %v20424_v35 = vpop.permute.xlu0 %4727 }
 0x549   :  { %v20426_v27 = vpop.permute.xlu1 %4854  ;;  %v4822_v63 = vmax.f32 %v4767_v60, %v20247_v37  ;;  %v12110_v37 = vld [vmem:[%s22732_s5 + $0x88] sm:$0xff] }
 0x54a   :  { %v5851_v51 = vpop.f32.mrb[38].mxu1 }
 0x54b   :  { %v13136_v48 = vpop.f32.mrb[39].mxu1 }
 0x54c   :  { %v20428_v23 = vpop.permute.xlu0 %4836 }
 0x54d   :  { %v20430_v58 = vpop.permute.xlu1 %4844  ;;  %v4862_v32 = vsel %vm1864_vm9, %v20420_v30, %v20428_v23 }
 0x54e   :  { %v20432_v50 = vpop.f32.mrb[40].mxu1  ;;  %v4889_v36 = vmax.f32 %v4817_v62, %v4862_v32 }
 0x54f   :  { %v13139_v14 = vpop.f32.mrb[41].mxu1 }
 0x550   :  { %v20436_v28 = vpop.permute.xlu0 %4729  ;;  %v20489_v24 = vmul.f32 %v12125_v10, %v4889_v36  ;;  %v20508_v4 = vmul.f32 %v12110_v37, %v4889_v36 }
 0x551   :  { %v4743_v2 = vsel %vm1864_vm9, %v20424_v35, %v20436_v28  ;;  %v20441_v26 = vpop.permute.xlu1 %4846 }
 0x552   :  { %v4772_v9 = vmax.f32 %v20198_v3, %v4743_v2  ;;  %v4866_v3 = vsel %vm1864_vm9, %v20430_v58, %v20441_v26 }
 0x553   :  { %v20479_v32 = vmax.f32 %v4822_v63, %v4866_v3  ;;  %v4909_v3 = vld [vmem:[%s22732_s5 + $0x38] sm:$0xff]  ;;  %v12185_v63 = vld [vmem:[%s22732_s5 + $0x2e0] sm:$0xff] }
 0x554   :  { %v20448_v40 = vpop.permute.xlu0 %4856  ;;  %v4827_v18 = vmax.f32 %v4772_v9, %v20217_v8  ;;  %v4904_v8 = vld [vmem:[%s22732_s5 + $0x10] sm:$0xff]  ;;  %v12140_v9 = vld [vmem:[%s22732_s5 + $0x178] sm:$0xff] }
 0x555   :  { %24143 = vst [vmem:[#allocation403_spill] sm:$0xff] %v20448_v40  ;;  %v4714_v1 = vpop.permute.xlu1 %4713  ;;  %v4870_v41 = vsel %vm1864_vm9, %v20426_v27, %v20448_v40  ;;  %24145 = vst [vmem:[#allocation410_spill] sm:$0xff] %v20479_v32  ;;  %v20491_v0 = vmul.f32 %v4904_v8, %v4889_v36  ;;  %v20506_v29 = vmul.f32 %v12140_v9, %v4889_v36  ;;  %v12150_v9 = vld [vmem:[%s22732_s5 + $0x1c8] sm:$0x3] }
 0x556   :  { %v12591_v44 = vpop.f32.mrb[36].mxu0  ;;  %v20481_v62 = vmax.f32 %v4827_v18, %v4870_v41  ;;  %v4914_v41 = vld [vmem:[%s22732_s5 + $0x60] sm:$0x3] }
 0x557   :  { %v12592_v48 = vpop.f32.mrb[37].mxu0 }
 0x558   :  { %v12593_v14 = vadd.f32 %v12592_v48, %v12591_v44  ;;  %v4704_v2 = vpop.permute.xlu0 %4703  ;;  %24146 = vst [vmem:[#allocation290_spill] sm:$0xff] %v20481_v62  ;;  %v12155_v48 = vld [vmem:[%s22732_s5 + $0x1f0] sm:$0xff] }
 0x559   :  { %v20463_v53 = vpop.permute.xlu1 %4832  ;;  %v20516_v40 = vmul.f32 %v12155_v48, %v4889_v36 }
 0x55a   :  { %v20471_v34 = vadd.f32 %v12593_v14, %v5846_v5  ;;  %v12594_v60 = vpop.f32.mrb[38].mxu0  ;;  %v12170_v5 = vld [vmem:[%s22732_s5 + $0x268] sm:$0xff] }
 0x55b   :  { %v12595_v44 = vpop.f32.mrb[39].mxu0 }
 0x55c   :  { %24144 = vst [vmem:[#allocation407_spill] sm:$0xff] %v20471_v34  ;;  %v4706_v14 = vpop.permute.xlu0 %4705  ;;  %v12596_v18 = vadd.f32 %v12595_v44, %v12594_v60  ;;  %v12120_v60 = vld [vmem:[%s22732_s5 + $0xd8] sm:$0x3] }
 0x55d   :  { %v4733_v34 = vsel %vm1864_vm9, %v4704_v2, %v4706_v14  ;;  %v4734_v10 = vsel %vm1864_vm9, %v4706_v14, %v4708_v25  ;;  %v20504_v8 = vpop.permute.xlu1 %4725  ;;  %v20518_v2 = vmul.f32 %v12170_v5, %v4889_v36  ;;  %v12135_v25 = vld [vmem:[%s22732_s5 + $0x150] sm:$0x3]  ;;  %v20533_v5 = vmul.f32 %v12185_v63, %v4889_v36  ;;  %v12160_v63 = vld [vmem:[%s22732_s5 + $0x218] sm:$0xff] }
 0x55e   :  { %v4761_v44 = vmax.f32 %v20282_v20, %v4734_v10  ;;  %v20514_v52 = vadd.f32 %v12596_v18, %v5851_v51  ;;  %v12597_v13 = vpop.f32.mrb[40].mxu0  ;;  %v4742_v37 = vsel %vm1864_vm9, %v20504_v8, %v20424_v35  ;;  %v20530_v20 = vmul.f32 %v4909_v3, %v20479_v32  ;;  %v12130_v35 = vld [vmem:[%s22732_s5 + $0x128] sm:$0xff] }
 0x55f   :  { %24148 = vst [vmem:[#allocation210_spill] sm:$0xff] %v20518_v2  ;;  %v4929_v51 = vmul.f32 %v4914_v41, %v20481_v62  ;;  %v12598_v48 = vpop.f32.mrb[41].mxu0  ;;  %24149 = vst [vmem:[#allocation215_spill] sm:$0xff] %v20533_v5  ;;  %v4760_v14 = vmax.f32 %v20295_v54, %v4733_v34  ;;  %v4987_v2 = vmul.f32 %v12120_v60, %v20481_v62 }
 0x560   :  { %24147 = vst [vmem:[#allocation295_spill] sm:$0xff] %v20514_v52  ;;  %v4816_v18 = vmax.f32 %v4761_v44, %v20310_v17  ;;  %v4716_v10 = vpop.permute.xlu0 %4715  ;;  %v12115_v52 = vld [vmem:[%s22732_s5 + $0xb0] sm:$0xff]  ;;  %v12599_v3 = vadd.f32 %v12598_v48, %v12597_v13  ;;  %v12145_v17 = vld [vmem:[%s22732_s5 + $0x1a0] sm:$0xff]  ;;  %v5043_v34 = vmul.f32 %v12135_v25, %v20481_v62  ;;  %v5099_v13 = vmul.f32 %v12150_v9, %v20481_v62  ;;  %v12124_v9 = vld [vmem:[%s22732_s5 + $0xf8] sm:$0xff] }
 0x561   :  { %v4737_v41 = vsel %vm1864_vm9, %v4714_v1, %v4716_v10  ;;  %v4738_v36 = vsel %vm1864_vm9, %v4716_v10, %v20418_v42  ;;  %v20547_v54 = vpop.permute.xlu1 %4850  ;;  %v12165_v1 = vld [vmem:[%s22732_s5 + $0x240] sm:$0x3]  ;;  %v4861_v42 = vsel %vm1864_vm9, %v20463_v53, %v20420_v30  ;;  %v4771_v60 = vmax.f32 %v20321_v22, %v4742_v37 }
 0x562   :  { %v4765_v44 = vmax.f32 %v20285_v16, %v4737_v41  ;;  %v20566_v25 = vadd.f32 %v12599_v3, %v20432_v50  ;;  %v4888_v48 = vmax.f32 %v4816_v18, %v4861_v42  ;;  %v4766_v10 = vmax.f32 %v20270_v39, %v4738_v36  ;;  %v4903_v16 = vld [vmem:[%s22732_s5 + $0x8] sm:$0xff]  ;;  %v12139_v39 = vld [vmem:[%s22732_s5 + $0x170] sm:$0xff]  ;;  %v12109_v50 = vld [vmem:[%s22732_s5 + $0x80] sm:$0xff] }
 0x563   :  { %v20573_v5 = vmul.f32 %v12115_v52, %v20479_v32  ;;  %v20576_v49 = vmul.f32 %v12130_v35, %v20479_v32  ;;  %v4815_v22 = vmax.f32 %v4760_v14, %v20352_v43  ;;  %v20589_v52 = vmul.f32 %v12145_v17, %v20479_v32  ;;  %v12123_v35 = vld [vmem:[%s22732_s5 + $0xf0] sm:$0xff]  ;;  %v4902_v3 = vld [vmem:[%s22732_s5] sm:$0xff] }
 0x564   :  { %24150 = vst [vmem:[#allocation370_spill] sm:$0xff] %v20566_v25  ;;  %v4831_v30 = vpop.permute.xlu0 %4830  ;;  %v20592_v37 = vmul.f32 %v12160_v63, %v20479_v32  ;;  %v20595_v43 = vmul.f32 %v12165_v1, %v20481_v62  ;;  %v20608_v41 = vsel %vm4946_vm11, %v4929_v51, 0.0  ;;  %v20611_v36 = vsel %vm4946_vm11, %v4987_v2, 0.0  ;;  %v12138_v51 = vld [vmem:[%s22732_s5 + $0x168] sm:$0xff]  ;;  %v12108_v2 = vld [vmem:[%s22732_s5 + $0x78] sm:$0xff] }
 0x565   :  { %24151 = vst [vmem:[#allocation375_spill] sm:$0xff] %v20576_v49  ;;  %24152 = vst [vmem:[#allocation409_spill] sm:$0xff] %v20589_v52  ;;  %v4860_v14 = vsel %vm1864_vm9, %v4831_v30, %v20463_v53  ;;  %v20599_v18 = vpop.permute.xlu1 %4840  ;;  %v12154_v53 = vld [vmem:[%s22732_s5 + $0x1e8] sm:$0xff]  ;;  %v20617_v17 = vsel %vm4946_vm11, %v5043_v34, 0.0  ;;  %v4826_v1 = vmax.f32 %v4771_v60, %v20379_v31  ;;  %v20621_v42 = vmax.f32 %v4765_v44, %v20361_v21  ;;  %v12153_v30 = vld [vmem:[%s22732_s5 + $0x1e0] sm:$0xff] }
 0x566   :  { %24153 = vst [vmem:[#allocation300_spill] sm:$0xff] %v20592_v37  ;;  %24154 = vst [vmem:[#allocation305_spill] sm:$0xff] %v20595_v43  ;;  %v4887_v63 = vmax.f32 %v4815_v22, %v4860_v14  ;;  %v20633_v34 = vsel %vm4946_vm11, %v5099_v13, 0.0  ;;  %v4821_v31 = vmax.f32 %v4766_v10, %v20398_v11  ;;  %v5032_v60 = vmul.f32 %v12124_v9, %v4888_v48  ;;  %v12168_v32 = vld [vmem:[%s22732_s5 + $0x258] sm:$0xff]  ;;  %v12169_v37 = vld [vmem:[%s22732_s5 + $0x260] sm:$0xff] }
 0x567   :  { %24155 = vst [vmem:[#allocation220_spill] sm:$0xff] %v20611_v36  ;;  %24156 = vst [vmem:[#allocation225_spill] sm:$0xff] %v20617_v17  ;;  %v4918_v21 = vmul.f32 %v4903_v16, %v4888_v48  ;;  %v5088_v44 = vmul.f32 %v12139_v39, %v4888_v48  ;;  %v4976_v62 = vmul.f32 %v12109_v50, %v4888_v48  ;;  %v12183_v11 = vld [vmem:[%s22732_s5 + $0x2d0] sm:$0xff]  ;;  %v12184_v50 = vld [vmem:[%s22732_s5 + $0x2d8] sm:$0xff] }
 0x568   :  { %24157 = vst [vmem:[#allocation380_spill] sm:$0xff] %v20633_v34  ;;  %v4724_v22 = vpop.permute.xlu0 %4723  ;;  %v5031_v14 = vmul.f32 %v12123_v35, %v4887_v63  ;;  %v4917_v25 = vmul.f32 %v4902_v3, %v4887_v63  ;;  %v5144_v43 = vmul.f32 %v12154_v53, %v4888_v48  ;;  %v5087_v9 = vmul.f32 %v12138_v51, %v4887_v63 }
 0x569   :  { %v4741_v13 = vsel %vm1864_vm9, %v4724_v22, %v20504_v8  ;;  %v4722_v10 = vpop.permute.xlu1 %4721  ;;  %v4975_v16 = vmul.f32 %v12108_v2, %v4887_v63  ;;  %v5143_v39 = vmul.f32 %v12153_v30, %v4887_v63  ;;  %v5199_v36 = vmul.f32 %v12168_v32, %v4887_v63 }
 0x56a   :  { %v4770_v35 = vmax.f32 %v20319_v61, %v4741_v13  ;;  %v4740_v3 = vsel %vm1864_vm9, %v20422_v46, %v4722_v10  ;;  %v4769_v53 = vmax.f32 %v20367_v45, %v4722_v10  ;;  %v5046_v34 = vadd.f32 %v5032_v60, %v5031_v14  ;;  %v12117_v14 = vld [vmem:[%s22732_s5 + $0xc0] sm:$0xff] }
 0x56b   :  { %v4768_v17 = vmax.f32 %v20196_v19, %v4740_v3  ;;  %v5200_v8 = vmul.f32 %v12169_v37, %v4888_v48  ;;  %v5255_v22 = vmul.f32 %v12183_v11, %v4887_v63  ;;  %v4932_v30 = vadd.f32 %v4918_v21, %v4917_v25  ;;  %v4912_v19 = vld [vmem:[%s22732_s5 + $0x50] sm:$0x3]  ;;  %v4910_v10 = vld [vmem:[%s22732_s5 + $0x40] sm:$0xff]  ;;  %v12116_v3 = vld [vmem:[%s22732_s5 + $0xb8] sm:$0xff] }
 0x56c   :  { %v4825_v51 = vmax.f32 %v4770_v35, %v20338_v38  ;;  %v4853_v2 = vpop.permute.xlu0 %4852  ;;  %v5158_v52 = vadd.f32 %v5144_v43, %v5143_v39  ;;  %v5256_v49 = vmul.f32 %v12184_v50, %v4888_v48  ;;  %v5102_v13 = vadd.f32 %v5088_v44, %v5087_v9  ;;  %v4913_v38 = vld [vmem:[%s22732_s5 + $0x58] sm:$0x3]  ;;  %v12113_v44 = vld [vmem:[%s22732_s5 + $0xa0] sm:$0xff]  ;;  %v12114_v9 = vld [vmem:[%s22732_s5 + $0xa8] sm:$0xff] }
 0x56d   :  { %v4868_v61 = vsel %vm1864_vm9, %v20547_v54, %v4853_v2  ;;  %v4869_v46 = vsel %vm1864_vm9, %v4853_v2, %v20426_v27  ;;  %v4990_v45 = vadd.f32 %v4976_v62, %v4975_v16  ;;  %v4824_v48 = vmax.f32 %v4769_v53, %v20390_v15 }
 0x56e   :  { %v20666_v32 = vmax.f32 %v4825_v51, %v4868_v61  ;;  %v20668_v25 = vmax.f32 %v4826_v1, %v4869_v46  ;;  %v20672_v54 = vadd.f32 %v5046_v34, %v20489_v24  ;;  %v4823_v27 = vmax.f32 %v4768_v17, %v20276_v6  ;;  %v4907_v24 = vld [vmem:[%s22732_s5 + $0x28] sm:$0xff]  ;;  %v4908_v34 = vld [vmem:[%s22732_s5 + $0x30] sm:$0xff] }
 0x56f   :  { %v4849_v62 = vpop.permute.xlu1 %4848  ;;  %v20676_v37 = vadd.f32 %v5158_v52, %v20516_v40  ;;  %v20678_v43 = vadd.f32 %v5200_v8, %v5199_v36  ;;  %v20680_v63 = vadd.f32 %v5256_v49, %v5255_v22  ;;  %v4911_v6 = vld [vmem:[%s22732_s5 + $0x48] sm:$0xff]  ;;  %v20704_v17 = vadd.f32 %v4932_v30, %v20491_v0  ;;  %v12129_v22 = vld [vmem:[%s22732_s5 + $0x120] sm:$0xff] }
 0x570   :  { %v4867_v60 = vsel %vm1864_vm9, %v20441_v26, %v4849_v62  ;;  %v20684_v1 = vmax.f32 %v4824_v48, %v4849_v62  ;;  %v4843_v21 = vpop.permute.xlu0 %4842  ;;  %v4927_v15 = vmul.f32 %v4912_v19, %v20666_v32  ;;  %v4928_v40 = vmul.f32 %v4913_v38, %v20668_v25  ;;  %v12118_v49 = vld [vmem:[%s22732_s5 + $0xc8] sm:$0x3]  ;;  %v12131_v19 = vld [vmem:[%s22732_s5 + $0x130] sm:$0xff]  ;;  %v12132_v38 = vld [vmem:[%s22732_s5 + $0x138] sm:$0xff] }
 0x571   :  { %v20697_v26 = vmax.f32 %v4823_v27, %v4867_v60  ;;  %v4864_v52 = vsel %vm1864_vm9, %v20599_v18, %v4843_v21  ;;  %v4865_v36 = vsel %vm1864_vm9, %v4843_v21, %v20430_v58  ;;  %v20721_v0 = vadd.f32 %v5102_v13, %v20506_v29  ;;  %v12128_v29 = vld [vmem:[%s22732_s5 + $0x118] sm:$0xff]  ;;  %v12127_v48 = vld [vmem:[%s22732_s5 + $0x110] sm:$0xff] }
 0x572   :  { %v20716_v18 = vmax.f32 %v20621_v42, %v4864_v52  ;;  %v20718_v11 = vmax.f32 %v4821_v31, %v4865_v36  ;;  %v20724_v58 = vadd.f32 %v4990_v45, %v20508_v4  ;;  %v4926_v16 = vmul.f32 %v4911_v6, %v20684_v1  ;;  %v12142_v6 = vld [vmem:[%s22732_s5 + $0x188] sm:$0xff]  ;;  %v4905_v36 = vld [vmem:[%s22732_s5 + $0x18] sm:$0xff] }
 0x573   :  { %v4947_v42 = vsel %vm4946_vm11, %v4927_v15, 0.0  ;;  %v4948_v31 = vsel %vm4946_vm11, %v4928_v40, 0.0  ;;  %v20739_v4 = vmul.f32 %v12118_v49, %v20666_v32  ;;  %v4984_v8 = vmul.f32 %v12117_v14, %v20684_v1 }
 0x574   :  { %v4712_v39 = vpop.permute.xlu0 %4711  ;;  %v4922_v50 = vmul.f32 %v4907_v24, %v20716_v18  ;;  %v4923_v35 = vmul.f32 %v4908_v34, %v20718_v11  ;;  %v4980_v53 = vmul.f32 %v12113_v44, %v20716_v18  ;;  %v4925_v30 = vmul.f32 %v4910_v10, %v20697_v26  ;;  %v12126_v24 = vld [vmem:[%s22732_s5 + $0x108] sm:$0xff]  ;;  %v12141_v34 = vld [vmem:[%s22732_s5 + $0x180] sm:$0xff] }
 0x575   :  { %v4736_v51 = vsel %vm1864_vm9, %v20416_v56, %v4712_v39  ;;  %v4764_v2 = vmax.f32 %v20402_v33, %v4712_v39  ;;  %v4981_v61 = vmul.f32 %v12114_v9, %v20718_v11  ;;  %v4949_v45 = vadd.f32 %v4948_v31, %v4947_v42 }
 0x576   :  { %v4763_v46 = vmax.f32 %v20169_v57, %v4736_v51  ;;  %v4939_v13 = vadd.f32 %v4923_v35, %v4922_v50  ;;  %v5036_v56 = vmul.f32 %v12128_v29, %v20716_v18  ;;  %v20769_v57 = vmul.f32 %v12116_v3, %v20697_v26 }
 0x577   :  { %v4819_v33 = vmax.f32 %v4764_v2, %v20408_v55  ;;  %v4997_v27 = vadd.f32 %v4981_v61, %v4980_v53  ;;  %v5037_v62 = vmul.f32 %v12129_v22, %v20718_v11  ;;  %v4906_v55 = vld [vmem:[%s22732_s5 + $0x20] sm:$0xff]  ;;  %v4942_v40 = vsel %vm3635_vm10, %v4926_v16, 0.0 }
 0x578   :  { %v4818_v60 = vmax.f32 %v4763_v46, %v20239_v12  ;;  %v4839_v21 = vpop.permute.xlu0 %4838  ;;  %v4940_v15 = vadd.f32 %v4939_v13, %v20530_v20  ;;  %v20785_v49 = vsel %vm3635_vm10, %v4984_v8, 0.0  ;;  %v12111_v20 = vld [vmem:[%s22732_s5 + $0x90] sm:$0xff]  ;;  %v5039_v44 = vmul.f32 %v12131_v19, %v20697_v26 }
 0x579   :  { %v4863_v12 = vsel %vm1864_vm9, %v20428_v23, %v4839_v21  ;;  %v20789_v52 = vmax.f32 %v4819_v33, %v4839_v21  ;;  %v5040_v14 = vmul.f32 %v12132_v38, %v20684_v1  ;;  %v12112_v23 = vld [vmem:[%s22732_s5 + $0x98] sm:$0xff]  ;;  %v4998_v9 = vadd.f32 %v4997_v27, %v20573_v5  ;;  %v24159_v27 = vld [vmem:[#allocation403_spill] sm:$0xff] }
 0x57a   :  { %v20802_v10 = vmax.f32 %v4818_v60, %v4863_v12  ;;  %v20809_v16 = vadd.f32 %v20608_v41, %v4949_v45  ;;  %v5053_v42 = vadd.f32 %v5037_v62, %v5036_v56  ;;  %v4941_v50 = vadd.f32 %v4940_v15, %v4925_v30  ;;  %v12143_v45 = vld [vmem:[%s22732_s5 + $0x190] sm:$0xff]  ;;  %v4915_v21 = vld [vmem:[%s22732_s5 + $0x68] sm:$0x3] }
 0x57b   :  { %v5035_v31 = vmul.f32 %v12127_v48, %v20789_v52  ;;  %v4921_v29 = vmul.f32 %v4906_v55, %v20789_v52  ;;  %v5091_v39 = vmul.f32 %v12142_v6, %v20789_v52  ;;  %v4979_v51 = vmul.f32 %v12112_v23, %v20789_v52  ;;  %v24158_v56 = vld [vmem:[#allocation396_spill] sm:$0xff]  ;;  %v12121_v23 = vld [vmem:[%s22732_s5 + $0xe0] sm:$0x3] }
 0x57c   :  { %v4732_v35 = vpop.permute.xlu0 %4731  ;;  %v5034_v3 = vmul.f32 %v12126_v24, %v20802_v10  ;;  %v4920_v53 = vmul.f32 %v4905_v36, %v20802_v10  ;;  %v5090_v8 = vmul.f32 %v12141_v34, %v20802_v10  ;;  %v4978_v5 = vmul.f32 %v12111_v20, %v20802_v10  ;;  %v12147_v24 = vld [vmem:[%s22732_s5 + $0x1b0] sm:$0xff]  ;;  %v24160_v34 = vld [vmem:[#allocation375_spill] sm:$0xff] }
 0x57d   :  { %v4744_v41 = vsel %vm1864_vm9, %v20436_v28, %v4732_v35  ;;  %v4774_v22 = vmax.f32 %v20376_v7, %v4732_v35  ;;  %v20823_v2 = vsel %vm3635_vm10, %v5040_v14, 0.0  ;;  %v5049_v7 = vsel %vm3635_vm10, %v5035_v31, 0.0  ;;  %v20858_v6 = vld [vmem:[%s22732_s5 + $0xd0] sm:$0x3]  ;;  %v12146_v14 = vld [vmem:[%s22732_s5 + $0x1a8] sm:$0xff] }
 0x57e   :  { %v4773_v30 = vmax.f32 %v20221_v59, %v4744_v41  ;;  %v5048_v61 = vadd.f32 %v20672_v54, %v5034_v3  ;;  %v4934_v46 = vadd.f32 %v20704_v17, %v4920_v53  ;;  %v5104_v13 = vadd.f32 %v20721_v0, %v5090_v8  ;;  %v4916_v0 = vld [vmem:[%s22732_s5 + $0x70] sm:$0x3]  ;;  %v20887_v41 = vld [vmem:[%s22732_s5 + $0x1f8] sm:$0xff] }
 0x57f   :  { %v4829_v28 = vmax.f32 %v4774_v22, %v20385_v47  ;;  %v4935_v19 = vsel %vm3635_vm10, %v4921_v29, 0.0  ;;  %v4992_v38 = vadd.f32 %v20724_v58, %v4978_v5  ;;  %v5105_v17 = vsel %vm3635_vm10, %v5091_v39, 0.0  ;;  %v12144_v47 = vld [vmem:[%s22732_s5 + $0x198] sm:$0xff]  ;;  %24161 = vst [vmem:[#allocation385_spill] sm:$0xff] %v20887_v41  ;;  %v20892_v22 = vld [vmem:[%s22732_s5 + $0x200] sm:$0xff] }
 0x580   :  { %v4828_v59 = vmax.f32 %v4773_v30, %v24158_v56  ;;  %v4859_v33 = vpop.permute.xlu0 %4858  ;;  %v5050_v54 = vadd.f32 %v5049_v7, %v5048_v61  ;;  %v4936_v48 = vadd.f32 %v4935_v19, %v4934_v46  ;;  %v5106_v58 = vadd.f32 %v5105_v17, %v5104_v13  ;;  %24162 = vst [vmem:[#allocation310_spill] sm:$0xff] %v20892_v22  ;;  %v12172_v46 = vld [vmem:[%s22732_s5 + $0x278] sm:$0xff] }
 0x581   :  { %v4871_v62 = vsel %vm1864_vm9, %v24159_v27, %v4859_v33  ;;  %v20846_v60 = vmax.f32 %v4829_v28, %v4859_v33  ;;  %v5092_v55 = vmul.f32 %v12143_v45, %v20716_v18  ;;  %v4993_v12 = vsel %vm3635_vm10, %v4979_v51, 0.0  ;;  %v24163_v28 = vld [vmem:[#allocation409_spill] sm:$0xff]  ;;  %v12137_v27 = vld [vmem:[%s22732_s5 + $0x160] sm:$0x3] }
 0x582   :  { %v20860_v15 = vmax.f32 %v4828_v59, %v4871_v62  ;;  %5051 = vadd.xlane.f32.xlu1 %v5050_v54  ;;  %4937 = vadd.xlane.f32.xlu0 %v4936_v48  ;;  %v4999_v36 = vadd.f32 %v4998_v9, %v20769_v57  ;;  %v5054_v20 = vadd.f32 %v5053_v42, %v24160_v34  ;;  %v12122_v57 = vld [vmem:[%s22732_s5 + $0xe8] sm:$0x3]  ;;  %v5004_v53 = vsel %vm4946_vm11, %v20739_v4, 0.0  ;;  %v12171_v4 = vld [vmem:[%s22732_s5 + $0x270] sm:$0xff] }
 0x583   :  { %v4994_v31 = vadd.f32 %v4993_v12, %v4992_v38  ;;  %v4943_v29 = vadd.f32 %v4942_v40, %v4941_v50  ;;  %v4931_v39 = vmul.f32 %v4916_v0, %v20846_v60  ;;  %v5093_v35 = vmul.f32 %v12144_v47, %v20718_v11  ;;  %v12136_v47 = vld [vmem:[%s22732_s5 + $0x158] sm:$0x3] }
 0x584   :  { %v4930_v9 = vmul.f32 %v4915_v21, %v20860_v15  ;;  %v5096_v42 = vmul.f32 %v12147_v24, %v20684_v1  ;;  %v4986_v3 = vmul.f32 %v20858_v6, %v20668_v25  ;;  %v5055_v8 = vadd.f32 %v5054_v20, %v5039_v44 }
 0x585   :  { %v5095_v40 = vmul.f32 %v12146_v14, %v20697_v26  ;;  %v5109_v50 = vadd.f32 %v5093_v35, %v5092_v55  ;;  %v4988_v5 = vmul.f32 %v12121_v23, %v20860_v15  ;;  %v5001_v44 = vadd.f32 %v20785_v49, %v4999_v36  ;;  %v12133_v49 = vld [vmem:[%s22732_s5 + $0x140] sm:$0x3]  ;;  %v12186_v55 = vld [vmem:[%s22732_s5 + $0x2e8] sm:$0xff]  ;;  %v24165_v36 = vld [vmem:[#allocation220_spill] sm:$0xff] }
 0x586   :  { %5107 = vadd.xlane.f32.xlu1 %v5106_v58  ;;  %4995 = vadd.xlane.f32.xlu0 %v4994_v31  ;;  %v4952_v51 = vsel %vm4946_vm11, %v4930_v9, 0.0  ;;  %v4989_v30 = vmul.f32 %v12122_v57, %v20846_v60  ;;  %v5005_v61 = vsel %vm4946_vm11, %v4986_v3, 0.0  ;;  %v4955_v45 = vsel %vm4954_vm12, %v4931_v39, 0.0  ;;  %v20952_v39 = vld [vmem:[%s22732_s5 + $0x208] sm:$0xff]  ;;  %v12159_v35 = vld [vmem:[%s22732_s5 + $0x210] sm:$0xff] }
 0x587   :  { %v4953_v13 = vadd.f32 %v4952_v51, %v20809_v16  ;;  %v5110_v7 = vadd.f32 %v5109_v50, %v24163_v28  ;;  %v5006_v19 = vadd.f32 %v5005_v61, %v5004_v53  ;;  %v5112_v38 = vsel %vm3635_vm10, %v5096_v42, 0.0  ;;  %v20919_v16 = vld [vmem:[%s22732_s5 + $0x148] sm:$0x3]  ;;  %24166 = vst [vmem:[#allocation315_spill] sm:$0xff] %v20952_v39  ;;  %v12148_v53 = vld [vmem:[%s22732_s5 + $0x1b8] sm:$0x3] }
 0x588   :  { %v5146_v56 = vmul.f32 %v20887_v41, %v20802_v10  ;;  %v5147_v59 = vmul.f32 %v20892_v22, %v20789_v52  ;;  %v5202_v33 = vmul.f32 %v12171_v4, %v20802_v10  ;;  %v5057_v54 = vadd.f32 %v20823_v2, %v5055_v8  ;;  %v24164_v2 = vld [vmem:[#allocation210_spill] sm:$0xff]  ;;  %v24168_v51 = vld [vmem:[#allocation215_spill] sm:$0xff]  ;;  %v14979_v22 = vld [vmem:[%s22732_s5 + $0x1f0] sm:$0xff] }
 0x589   :  { %v5111_v48 = vadd.f32 %v5110_v7, %v5095_v40  ;;  %v5009_v17 = vsel %vm4946_vm11, %v4988_v5, 0.0  ;;  %v5203_v0 = vmul.f32 %v12172_v46, %v20789_v52  ;;  %v5011_v62 = vsel %vm4954_vm12, %v4989_v30, 0.0  ;;  %v20970_v4 = vld [vmem:[%s22732_s5 + $0x220] sm:$0xff]  ;;  %v12162_v61 = vld [vmem:[%s22732_s5 + $0x228] sm:$0xff]  ;;  %v24169_v7 = vld [vmem:[#allocation225_spill] sm:$0xff] }
 0x58a   :  { %4944 = vadd.xlane.f32.xlu1 %v4943_v29  ;;  %5002 = vadd.xlane.f32.xlu0 %v5001_v44  ;;  %v5160_v58 = vadd.f32 %v20676_v37, %v5146_v56  ;;  %v5215_v21 = vadd.f32 %v20678_v43, %v24164_v2  ;;  %v5041_v24 = vmul.f32 %v12133_v49, %v20666_v32  ;;  %v5161_v20 = vsel %vm3635_vm10, %v5147_v59, 0.0  ;;  %v12187_v29 = vld [vmem:[%s22732_s5 + $0x2f0] sm:$0xff]  ;;  %v12152_v59 = vld [vmem:[%s22732_s5 + $0x1d8] sm:$0x3] }
 0x58b   :  { %v4956_v12 = vadd.f32 %v4955_v45, %v4953_v13  ;;  %v5008_v34 = vadd.f32 %v24165_v36, %v5006_v19  ;;  %v5042_v14 = vmul.f32 %v20919_v16, %v20668_v25  ;;  %v5044_v31 = vmul.f32 %v12136_v47, %v20860_v15  ;;  %24167 = vst [vmem:[#allocation230_spill] sm:$0xff] %v20970_v4  ;;  %v12151_v45 = vld [vmem:[%s22732_s5 + $0x1d0] sm:$0x3]  ;;  %v21002_v47 = vld [vmem:[%s22732_s5 + $0x280] sm:$0xff]  ;;  %v21020_v36 = vld [vmem:[%s22732_s5 + $0x238] sm:$0x3] }
 0x58c   :  { %v20942_v23 = vadd.f32 %v5161_v20, %v5160_v58  ;;  %v5216_v37 = vadd.f32 %v5215_v21, %v5202_v33  ;;  %v5045_v43 = vmul.f32 %v12137_v27, %v20846_v60  ;;  %v5217_v57 = vsel %vm3635_vm10, %v5203_v0, 0.0  ;;  %24170 = vst [vmem:[#allocation235_spill] sm:$0xff] %v21002_v47  ;;  %v21007_v27 = vld [vmem:[%s22732_s5 + $0x288] sm:$0xff]  ;;  %v24172_v2 = vld [vmem:[#allocation300_spill] sm:$0xff]  ;;  %24173 = vst [vmem:[#allocation395_spill] sm:$0xff] %v21020_v36 }
 0x58d   :  { %v5060_v9 = vsel %vm4946_vm11, %v5041_v24, 0.0  ;;  %v5061_v42 = vsel %vm4946_vm11, %v5042_v14, 0.0  ;;  %v5258_v3 = vmul.f32 %v12186_v55, %v20802_v10  ;;  %v5113_v8 = vadd.f32 %v5112_v38, %v5111_v48  ;;  %v12149_v10 = vld [vmem:[%s22732_s5 + $0x1c0] sm:$0x3]  ;;  %24171 = vst [vmem:[#allocation390_spill] sm:$0xff] %v21007_v27 }
 0x58e   :  { %4957 = vadd.xlane.f32.xlu1 %v4956_v12  ;;  %5058 = vadd.xlane.f32.xlu0 %v5057_v54  ;;  %v20964_v40 = vadd.f32 %v5217_v57, %v5216_v37  ;;  %v5062_v50 = vadd.f32 %v5061_v42, %v5060_v9  ;;  %v5065_v5 = vsel %vm4946_vm11, %v5044_v31, 0.0  ;;  %v5259_v44 = vmul.f32 %v12187_v29, %v20789_v52  ;;  %v12163_v12 = vld [vmem:[%s22732_s5 + $0x230] sm:$0x3] }
 0x58f   :  { %v5271_v30 = vadd.f32 %v20680_v63, %v24168_v51  ;;  %v5148_v46 = vmul.f32 %v20952_v39, %v20716_v18  ;;  %v5149_v13 = vmul.f32 %v12159_v35, %v20718_v11  ;;  %v5010_v28 = vadd.f32 %v5009_v17, %v5008_v34  ;;  %v21028_v31 = vld [vmem:[%s22732_s5 + $0x290] sm:$0xff] }
 0x590   :  { %v5064_v19 = vadd.f32 %v24169_v7, %v5062_v50  ;;  %v5067_v52 = vsel %vm4954_vm12, %v5045_v43, 0.0  ;;  %v5097_v63 = vmul.f32 %v12148_v53, %v20666_v32  ;;  %v5151_v38 = vmul.f32 %v20970_v4, %v20697_v26  ;;  %v12166_v43 = vld [vmem:[%s22732_s5 + $0x248] sm:$0x3]  ;;  %v24175_v53 = vld [vmem:[#allocation380_spill] sm:$0xff]  ;;  %v21050_v50 = vld [vmem:[%s22732_s5 + $0x298] sm:$0xff] }
 0x591   :  { %v5272_v49 = vadd.f32 %v5271_v30, %v5258_v3  ;;  %v5165_v56 = vadd.f32 %v5149_v13, %v5148_v46  ;;  %v5098_v33 = vmul.f32 %v12149_v10, %v20668_v25  ;;  %v5273_v48 = vsel %vm3635_vm10, %v5259_v44, 0.0  ;;  %24176 = vst [vmem:[#allocation325_spill] sm:$0xff] %v21050_v50  ;;  %v24177_v30 = vld [vmem:[#allocation410_spill] sm:$0xff] }
 0x592   :  { %5114 = vadd.xlane.f32.xlu0 %v5113_v8  ;;  %v5066_v54 = vadd.f32 %v5065_v5, %v5064_v19  ;;  %v5152_v17 = vmul.f32 %v12162_v61, %v20684_v1  ;;  %v5100_v0 = vmul.f32 %v12151_v45, %v20860_v15  ;;  %v5116_v24 = vsel %vm4946_vm11, %v5097_v63, 0.0  ;;  %v12167_v19 = vld [vmem:[%s22732_s5 + $0x250] sm:$0x3] }
 0x593   :  { %v21009_v58 = vadd.f32 %v5273_v48, %v5272_v49  ;;  %v5166_v21 = vadd.f32 %v5165_v56, %v24172_v2  ;;  %v5117_v55 = vsel %vm4946_vm11, %v5098_v33, 0.0  ;;  %v5012_v34 = vadd.f32 %v5011_v62, %v5010_v28  ;;  %v21037_v62 = vld [vmem:[%s22732_s5 + $0x2a0] sm:$0xff] }
 0x594   :  { %v21022_v20 = vadd.f32 %v5067_v52, %v5066_v54  ;;  %v5101_v14 = vmul.f32 %v12152_v59, %v20846_v60  ;;  %v5118_v37 = vadd.f32 %v5117_v55, %v5116_v24  ;;  %v5121_v35 = vsel %vm4946_vm11, %v5100_v0, 0.0  ;;  %24174 = vst [vmem:[#allocation320_spill] sm:$0xff] %v21037_v62  ;;  %v24178_v54 = vld [vmem:[#allocation305_spill] sm:$0xff]  ;;  %v24180_v0 = vld [vmem:[#allocation402_spill] sm:$0xff] }
 0x595   :  { %v5167_v29 = vadd.f32 %v5166_v21, %v5151_v38  ;;  %v5204_v57 = vmul.f32 %v21002_v47, %v20716_v18  ;;  %v5205_v9 = vmul.f32 %v21007_v27, %v20718_v11  ;;  %v5168_v3 = vsel %vm3635_vm10, %v5152_v17, 0.0  ;;  %v21079_v17 = vld [vmem:[%s22732_s5 + $0x2f8] sm:$0xff] }
 0x596   :  { %v21043_v42 = vpop.f32.mrb[30].mxu1  ;;  %5013 = vadd.xlane.f32.xlu0 %v5012_v34  ;;  %v5120_v8 = vadd.f32 %v24175_v53, %v5118_v37  ;;  %v5153_v5 = vmul.f32 %v12163_v12, %v20666_v32  ;;  %v5154_v10 = vmul.f32 %v21020_v36, %v20668_v25  ;;  %v5206_v61 = vmul.f32 %v21028_v31, %v24177_v30  ;;  %v21087_v34 = vld [vmem:[%s22732_s5 + $0x300] sm:$0xff] }
 0x597   :  { %v21055_v44 = vpop.f32.mrb[31].mxu1  ;;  %v21057_v51 = vadd.f32 %v5168_v3, %v5167_v29  ;;  %v5221_v46 = vadd.f32 %v5205_v9, %v5204_v57  ;;  %v5156_v13 = vmul.f32 %v12166_v43, %v20860_v15  ;;  %v5123_v28 = vsel %vm4954_vm12, %v5101_v14, 0.0  ;;  %24179 = vst [vmem:[#allocation240_spill] sm:$0xff] %v21079_v17  ;;  %24181 = vst [vmem:[#allocation245_spill] sm:$0xff] %v21087_v34  ;;  %v21093_v43 = vld [vmem:[%s22732_s5 + $0x2b8] sm:$0x3] }
 0x598   :  { %v5122_v45 = vadd.f32 %v5121_v35, %v5120_v8  ;;  %v5208_v7 = vmul.f32 %v21037_v62, %v20684_v1  ;;  %v5207_v52 = vmul.f32 %v21050_v50, %v20697_v26  ;;  %v5172_v49 = vsel %vm4946_vm11, %v5153_v5, 0.0  ;;  %v24182_v35 = vld [vmem:[#allocation399_spill] sm:$0xff] }
 0x599   :  { %v5222_v63 = vadd.f32 %v5221_v46, %v5206_v61  ;;  %v5173_v38 = vsel %vm4946_vm11, %v5154_v10, 0.0  ;;  %v5175_v48 = vsel %vm4946_vm11, %v24178_v54, 0.0  ;;  %v5157_v55 = vmul.f32 %v12167_v19, %v20846_v60  ;;  %v21103_v3 = vld [vmem:[%s22732_s5 + $0x308] sm:$0xff]  ;;  %v21110_v10 = vld [vmem:[%s22732_s5 + $0x318] sm:$0xff] }
 0x59a   :  { %v6187_v56 = vpop.f32.mrb[32].mxu1  ;;  %v21072_v59 = vadd.f32 %v5123_v28, %v5122_v45  ;;  %v5174_v33 = vadd.f32 %v5173_v38, %v5172_v49  ;;  %v5177_v12 = vsel %vm4946_vm11, %v5156_v13, 0.0  ;;  %v5224_v14 = vsel %vm3635_vm10, %v5208_v7, 0.0  ;;  %24183 = vst [vmem:[#allocation400_spill] sm:$0xff] %v21110_v10  ;;  %v21117_v46 = vld [vmem:[%s22732_s5 + $0x2a8] sm:$0x3] }
 0x59b   :  { %v6365_v2 = vadd.f32 %v6187_v56, %v24180_v0  ;;  %v6189_v21 = vpop.f32.mrb[33].mxu1  ;;  %v5223_v24 = vadd.f32 %v5222_v63, %v5207_v52  ;;  %v5260_v53 = vmul.f32 %v21079_v17, %v20716_v18  ;;  %v5261_v61 = vmul.f32 %v21087_v34, %v20718_v11  ;;  %24184 = vst [vmem:[#allocation405_spill] sm:$0xff] %v21117_v46  ;;  %v21122_v13 = vld [vmem:[%s22732_s5 + $0x330] sm:$0x3]  ;;  %v24186_v7 = vld [vmem:[#allocation290_spill] sm:$0xff] }
 0x59c   :  { %v5176_v37 = vadd.f32 %v5175_v48, %v5174_v33  ;;  %v6366_v57 = vadd.f32 %v6189_v21, %v24182_v35  ;;  %v5179_v45 = vsel %vm4954_vm12, %v5157_v55, 0.0  ;;  %v21130_v11 = vld [vmem:[%s22732_s5 + $0x310] sm:$0xff]  ;;  %v5211_v19 = vmul.f32 %v21093_v43, %v24186_v7  ;;  %v21146_v38 = vld [vmem:[%s22732_s5 + $0x2c0] sm:$0x3] }
 0x59d   :  { %v21095_v29 = vmax.f32 %v6365_v2, 0.0  ;;  %v21098_v9 = vadd.f32 %v5224_v14, %v5223_v24  ;;  %24185 = vst [vmem:[#allocation330_spill] sm:$0xff] %v21130_v11  ;;  %v21135_v28 = vld [vmem:[%s22732_s5 + $0x2b0] sm:$0x3]  ;;  %v5262_v63 = vmul.f32 %v21103_v3, %v24177_v30  ;;  %v5277_v49 = vadd.f32 %v5261_v61, %v5260_v53  ;;  %24187 = vst [vmem:[#allocation335_spill] sm:$0xff] %v21146_v38 }
 0x59e   :  { %v6193_v8 = vpop.f32.mrb[34].mxu1  ;;  %v5178_v5 = vadd.f32 %v5177_v12, %v5176_v37  ;;  %v21148_v56 = vmax.f32 %v6366_v57, 0.0  ;;  %v5264_v54 = vmul.f32 %v21110_v10, %v20684_v1  ;;  %v5209_v48 = vmul.f32 %v21117_v46, %v20666_v32  ;;  %v21158_v30 = vld [vmem:[%s22732_s5 + $0x320] sm:$0x3]  ;;  %v12182_v24 = vld [vmem:[%s22732_s5 + $0x2c8] sm:$0x3] }
 0x59f   :  { %v6195_v18 = vpop.f32.mrb[35].mxu1  ;;  %6417 = vrot.lane.b32.xlu1 %v21095_v29, %s15059_s16  ;;  %v6370_v33 = vadd.f32 %v6193_v8, %v24180_v0  ;;  %24188 = vst [vmem:[#allocation9_spill] sm:$0xff] %v21158_v30  ;;  %v5263_v2 = vmul.f32 %v21130_v11, %v20697_v26  ;;  %v5278_v21 = vadd.f32 %v5277_v49, %v5262_v63  ;;  %v5231_v37 = vsel %vm4946_vm11, %v5211_v19, 0.0  ;;  %v21180_v57 = vld [vmem:[%s22732_s5 + $0x328] sm:$0x3] }
 0x5a0   :  { %v21139_v52 = vadd.f32 %v5179_v45, %v5178_v5  ;;  %v5210_v55 = vmul.f32 %v21135_v28, %v20668_v25  ;;  %v5267_v1 = vmul.f32 %v21122_v13, %v24186_v7  ;;  %v6360_v12 = vadd.f32 %v21043_v42, %v24180_v0  ;;  %24189 = vst [vmem:[#allocation14_spill] sm:$0xff] %v21180_v57  ;;  %v21185_v53 = vld [vmem:[%s22732_s5 + $0x338] sm:$0x3] }
 0x5a1   :  { %v5212_v26 = vmul.f32 %v21146_v38, %v20860_v15  ;;  %v5228_v14 = vsel %vm4946_vm11, %v5209_v48, 0.0  ;;  %24190 = vst [vmem:[#allocation250_spill] sm:$0xff] %v21185_v53  ;;  %v6371_v42 = vadd.f32 %v6195_v18, %v24182_v35  ;;  %v5279_v0 = vadd.f32 %v5278_v21, %v5263_v2 }
 0x5a2   :  { %v5229_v8 = vsel %vm4946_vm11, %v5210_v55, 0.0  ;;  %v5265_v5 = vmul.f32 %v21158_v30, %v20666_v32  ;;  %v21191_v61 = vmax.f32 %v6370_v33, 0.0  ;;  %v5280_v45 = vsel %vm3635_vm10, %v5264_v54, 0.0  ;;  %v21207_v33 = vld [vmem:[%s22732_s5 + $0x340] sm:$0x3]  ;;  %v24197_v30 = vld [vmem:[#allocation407_spill] sm:$0xff] }
 0x5a3   :  { %6419 = vrot.lane.b32.xlu1 %v21148_v56, %s15059_s16  ;;  %v5213_v7 = vmul.f32 %v12182_v24, %v20846_v60  ;;  %v5230_v19 = vadd.f32 %v5229_v8, %v5228_v14  ;;  %v21195_v49 = vadd.f32 %v5280_v45, %v5279_v0  ;;  %v5233_v48 = vsel %vm4946_vm11, %v5212_v26, 0.0  ;;  %24191 = vst [vmem:[#allocation255_spill] sm:$0xff] %v21207_v33 }
 0x5a4   :  { %v5266_v18 = vmul.f32 %v21180_v57, %v20668_v25  ;;  %v5268_v2 = vmul.f32 %v21185_v53, %v20860_v15  ;;  %v5284_v54 = vsel %vm4946_vm11, %v5265_v5, 0.0  ;;  %v5287_v55 = vsel %vm4946_vm11, %v5267_v1, 0.0 }
 0x5a5   :  { %v5232_v32 = vadd.f32 %v5231_v37, %v5230_v19  ;;  %v6361_v25 = vadd.f32 %v21055_v44, %v24182_v35  ;;  %v21214_v15 = vmax.f32 %v6371_v42, 0.0  ;;  %v21216_v0 = vmax.f32 %v6360_v12, 0.0 }
 0x5a6   :  { %v6015_v63 = vpop.f32.mrb[30].mxu0  ;;  %v5285_v24 = vsel %vm4946_vm11, %v5266_v18, 0.0  ;;  %v5235_v8 = vsel %vm4954_vm12, %v5213_v7, 0.0  ;;  %v5269_v45 = vmul.f32 %v21207_v33, %v20846_v60  ;;  %v5289_v5 = vsel %vm4946_vm11, %v5268_v2, 0.0 }
 0x5a7   :  { %v6017_v21 = vpop.f32.mrb[31].mxu0  ;;  %6427 = vrot.lane.b32.xlu1 %v21191_v61, %s15059_s16  ;;  %v5234_v26 = vadd.f32 %v5233_v48, %v5232_v32  ;;  %v5286_v14 = vadd.f32 %v5285_v24, %v5284_v54  ;;  %v21229_v35 = vrot.slane %v21191_v61, 1  ;;  %v21231_v42 = vmax.f32 %v6361_v25, 0.0 }
 0x5a8   :  { %v5291_v60 = vsel %vm4954_vm12, %v5269_v45, 0.0  ;;  %v6482_v18 = vrot.slane %v21095_v29, 1  ;;  %v6481_v32 = vrot.slane %v21216_v0, 1  ;;  %v21255_v25 = vrot.slane %v21214_v15, 1 }
 0x5a9   :  { %v21224_v1 = vadd.f32 %v5235_v8, %v5234_v26  ;;  %v5288_v44 = vadd.f32 %v5287_v55, %v5286_v14  ;;  %v6485_v55 = vrot.slane %v21148_v56, 1  ;;  %v6484_v26 = vrot.slane %v21231_v42, 1  ;;  %v24195_v14 = vld [vmem:[#allocation401_spill] sm:$0xff] }
 0x5aa   :  { %v6021_v37 = vpop.f32.mrb[32].mxu0  ;;  %v21244_v54 = vsel %vm1141_vm5, %v6482_v18, %v21229_v35  ;;  %v21249_v24 = vsel %vm1141_vm5, %v6481_v32, %v6482_v18  ;;  %24194 = vst [vmem:[#allocation340_spill] sm:$0xff] %v21255_v25  ;;  %v6358_v8 = vadd.f32 %v6015_v63, %v24195_v14  ;;  %v24196_v32 = vld [vmem:[#allocation404_spill] sm:$0xff] }
 0x5ab   :  { %v6023_v19 = vpop.f32.mrb[33].mxu0  ;;  %6429 = vrot.lane.b32.xlu1 %v21214_v15, %s15059_s16  ;;  %24192 = vst [vmem:[#allocation8_spill] sm:$0xff] %v21224_v1  ;;  %v5290_v12 = vadd.f32 %v5289_v5, %v5288_v44  ;;  %v6363_v5 = vadd.f32 %v6021_v37, %v24195_v14  ;;  %v6359_v33 = vadd.f32 %v6017_v21, %v24196_v32 }
 0x5ac   :  { %6407 = vrot.lane.b32.xlu0 %v21216_v0, %s15059_s16  ;;  %v21268_v57 = vmax.f32 %v6358_v8, 0.0  ;;  %v6364_v63 = vadd.f32 %v6023_v19, %v24196_v32  ;;  %v21274_v1 = vsel %vm1141_vm5, %v6485_v55, %v21255_v25 }
 0x5ad   :  { %v21237_v2 = vadd.f32 %v5291_v60, %v5290_v12  ;;  %v21263_v12 = vsel %vm1141_vm5, %v6484_v26, %v6485_v55  ;;  %24198 = vst [vmem:[#allocation345_spill] sm:$0xff] %v21274_v1  ;;  %v21276_v26 = vmax.f32 %v6363_v5, 0.0  ;;  %v21282_v19 = vmax.f32 %v6359_v33, 0.0  ;;  %v24199_v55 = vld [vmem:[#allocation295_spill] sm:$0xff] }
 0x5ae   :  { %v6027_v7 = vpop.f32.mrb[34].mxu0 }
 0x5af   :  { %v6029_v48 = vpop.f32.mrb[35].mxu0  ;;  %6554 = vrot.lane.b32.xlu1 %v21229_v35, %s15059_s16  ;;  %24193 = vst [vmem:[#allocation13_spill] sm:$0xff] %v21237_v2  ;;  %v6476_v46 = vrot.slane %v21276_v26, 1  ;;  %v6368_v33 = vadd.f32 %v6027_v7, %v24195_v14 }
 0x5b0   :  { %6409 = vrot.lane.b32.xlu0 %v21231_v42, %s15059_s16 }
 0x5b3   :  { %6544 = vrot.lane.b32.xlu1 %v21244_v54, %s15059_s16 }
 0x5b4   :  { %6534 = vrot.lane.b32.xlu0 %v21249_v24, %s15059_s16 }
 0x5b6   :  { %v12643_v45 = vpop.f32.mrb[42].mxu1 }
 0x5b7   :  { %v12644_v44 = vpop.f32.mrb[43].mxu1  ;;  %6556 = vrot.lane.b32.xlu1 %v21255_v25, %s15059_s16 }
 0x5b8   :  { %v12645_v60 = vadd.f32 %v12644_v44, %v12643_v45  ;;  %6536 = vrot.lane.b32.xlu0 %v21263_v12, %s15059_s16  ;;  %v6344_v18 = vpop.f32.mrb[42].mxu0 }
 0x5b9   :  { %v13158_v53 = vpop.f32.mrb[43].mxu0 }
 0x5ba   :  { %v12646_v37 = vpop.f32.mrb[44].mxu1  ;;  %v6265_v2 = vadd.f32 %v12645_v60, %v24197_v30  ;;  %v21284_v30 = vmax.f32 %v6364_v63, 0.0  ;;  %v6369_v63 = vadd.f32 %v6029_v48, %v24196_v32  ;;  %v6478_v32 = vrot.slane %v21282_v19, 1 }
 0x5bb   :  { %v12647_v45 = vpop.f32.mrb[45].mxu1  ;;  %6546 = vrot.lane.b32.xlu1 %v21274_v1, %s15059_s16 }
 0x5bc   :  { %v12648_v44 = vadd.f32 %v12647_v45, %v12646_v37  ;;  %v6345_v21 = vadd.f32 %v6344_v18, %v6265_v2  ;;  %6403 = vrot.lane.b32.xlu0 %v21268_v57, %s15059_s16  ;;  %v6349_v53 = vpop.f32.mrb[44].mxu0  ;;  %v6475_v18 = vrot.slane %v21268_v57, 1  ;;  %v24200_v45 = vld [vmem:[#allocation370_spill] sm:$0xff]  ;;  %v6479_v14 = vrot.slane %v21284_v30, 1 }
 0x5bd   :  { %v13161_v8 = vpop.f32.mrb[45].mxu0 }
 0x5be   :  { %v12649_v60 = vpop.f32.mrb[46].mxu1  ;;  %v6270_v38 = vadd.f32 %v12648_v44, %v24199_v55  ;;  %v21299_v44 = vsel %vm1141_vm5, %v6475_v18, %v6476_v46  ;;  %v21314_v55 = vsel %vm1141_vm5, %v6478_v32, %v6479_v14 }
 0x5bf   :  { %v12650_v5 = vpop.f32.mrb[47].mxu1  ;;  %6405 = vrot.lane.b32.xlu1 %v21282_v19, %s15059_s16 }
 0x5c0   :  { %v12651_v37 = vadd.f32 %v12650_v5, %v12649_v60  ;;  %v6350_v2 = vadd.f32 %v6349_v53, %v6270_v38  ;;  %6415 = vrot.lane.b32.xlu0 %v21284_v30, %s15059_s16  ;;  %v21303_v38 = vmax.f32 %v6368_v33, 0.0  ;;  %v21305_v53 = vmax.f32 %v6369_v63, 0.0 }
 0x5c2   :  { %v6275_v8 = vadd.f32 %v12651_v37, %v24200_v45  ;;  %v21317_v5 = vrot.slane %v21305_v53, 1  ;;  %v24201_v37 = vld [vmem:[#allocation398_spill] sm:$0xff]  ;;  %v21326_v63 = vrot.slane %v21303_v38, 1 }
 0x5c3   :  { %6413 = vrot.lane.b32.xlu1 %v21276_v26, %s15059_s16  ;;  %v6367_v33 = vadd.f32 %v6350_v2, %v24201_v37  ;;  %v6362_v18 = vadd.f32 %v6345_v21, %v24201_v37 }
 0x5c4   :  { %6530 = vrot.lane.b32.xlu0 %v21299_v44, %s15059_s16  ;;  %v21343_v21 = vsel %vm1141_vm5, %v6476_v46, %v21326_v63 }
 0x5c5   :  { %v21328_v45 = vmax.f32 %v6367_v33, 0.0  ;;  %v21338_v2 = vmax.f32 %v6362_v18, 0.0 }
 0x5c6   :  { %v6354_v7 = vpop.f32.mrb[48].mxu1 }
 0x5c7   :  { %v6355_v60 = vadd.f32 %v6354_v7, %v6275_v8  ;;  %6423 = vrot.lane.b32.xlu1 %v21303_v38, %s15059_s16  ;;  %v13164_v48 = vpop.f32.mrb[49].mxu1  ;;  %v21334_v8 = vsel %vm1141_vm5, %v6479_v14, %v21317_v5  ;;  %v6487_v32 = vrot.slane %v21338_v2, 1 }
 0x5c8   :  { %6425 = vrot.lane.b32.xlu0 %v21305_v53, %s15059_s16  ;;  %v6488_v48 = vrot.slane %v21328_v45, 1 }
 0x5c9   :  { %v6372_v7 = vadd.f32 %v6355_v60, %v24201_v37 }
 0x5ca   :  { %v21356_v60 = vsel %vm1141_vm5, %v6487_v32, %v6488_v48 }
 0x5cb   :  { %6532 = vrot.lane.b32.xlu1 %v21314_v55, %s15059_s16  ;;  %v21350_v14 = vmax.f32 %v6372_v7, 0.0 }
 0x5cc   :  { %6552 = vrot.lane.b32.xlu0 %v21317_v5, %s15059_s16 }
 0x5cd   :  { %v21361_v46 = vrot.slane %v21350_v14, 1 }
 0x5cf   :  { %6550 = vrot.lane.b32.xlu1 %v21326_v63, %s15059_s16  ;;  %v21369_v37 = vsel %vm1141_vm5, %v6488_v48, %v21361_v46 }
 0x5d0   :  { %6542 = vrot.lane.b32.xlu0 %v21334_v8, %s15059_s16  ;;  %24202 = vst [vmem:[#allocation19_spill] sm:$0xff] %v21369_v37 }
 0x5d3   :  { %6540 = vrot.lane.b32.xlu1 %v21343_v21, %s15059_s16 }
 0x5d4   :  { %6411 = vrot.lane.b32.xlu0 %v21338_v2, %s15059_s16 }
 0x5d7   :  { %6421 = vrot.lane.b32.xlu1 %v21328_v45, %s15059_s16 }
 0x5d8   :  { %6538 = vrot.lane.b32.xlu0 %v21356_v60, %s15059_s16 }
 0x5db   :  { %6558 = vrot.lane.b32.xlu1 %v21361_v46, %s15059_s16 }
 0x5dc   :  { %6431 = vrot.lane.b32.xlu0 %v21350_v14, %s15059_s16 }
 0x5df   :  { %6548 = vrot.lane.b32.xlu1 %v21369_v37, %s15059_s16 }
 0x5fb   :  { %5163 = vadd.xlane.f32.xlu0 %v20942_v23 }
 0x5ff   :  { %5219 = vadd.xlane.f32.xlu0 %v20964_v40 }
 0x603   :  { %5069 = vadd.xlane.f32.xlu1 %v21022_v20  ;;  %5275 = vadd.xlane.f32.xlu0 %v21009_v58 }
 0x607   :  { %5170 = vadd.xlane.f32.xlu1 %v21057_v51 }
 0x60b   :  { %5125 = vadd.xlane.f32.xlu1 %v21072_v59 }
 0x60f   :  { %5226 = vadd.xlane.f32.xlu1 %v21098_v9  ;;  %v5052_v33 = vpop.xlane.xlu1 %5051  ;;  %v4938_v18 = vpop.xlane.xlu0 %4937 }
 0x613   :  { %5181 = vadd.xlane.f32.xlu1 %v21139_v52  ;;  %v5108_v7 = vpop.xlane.xlu1 %5107  ;;  %v4996_v23 = vpop.xlane.xlu0 %4995 }
 0x614   :  { %v5296_v40 = vsel %vm5295_vm13, %v4938_v18, %v4996_v23 }
 0x615   :  { %v5300_v20 = vsel %vm5299_vm14, %v5296_v40, %v5052_v33 }
 0x616   :  { %v21384_v58 = vsel %vm5303_vm15, %v5300_v20, %v5108_v7 }
 0x617   :  { %24203 = vst [vmem:[#allocation24_spill] sm:$0xff] %v21384_v58  ;;  %5282 = vadd.xlane.f32.xlu1 %v21195_v49  ;;  %v4945_v51 = vpop.xlane.xlu1 %4944  ;;  %v5003_v59 = vpop.xlane.xlu0 %5002 }
 0x618   :  { %v5297_v9 = vsel %vm5295_vm13, %v4945_v51, %v5003_v59 }
 0x61b   :  { %v4958_v48 = vpop.xlane.xlu1 %4957  ;;  %v5059_v32 = vpop.xlane.xlu0 %5058 }
 0x61c   :  { %v5301_v52 = vsel %vm5299_vm14, %v5297_v9, %v5059_v32 }
 0x61f   :  { %v6418_v10 = vpop.permute.xlu1 %6417  ;;  %v5115_v11 = vpop.xlane.xlu0 %5114 }
 0x620   :  { %v21390_v34 = vsel %vm5303_vm15, %v5301_v52, %v5115_v11 }
 0x621   :  { %24204 = vst [vmem:[#allocation260_spill] sm:$0xff] %v21390_v34 }
 0x623   :  { %v21392_v18 = vpop.permute.xlu1 %6419  ;;  %v5014_v33 = vpop.xlane.xlu0 %5013 }
 0x624   :  { %v21395_v7 = vsel %vm5295_vm13, %v4958_v48, %v5014_v33  ;;  %v6439_v58 = vsel %vm1864_vm9, %v6418_v10, %v21392_v18 }
 0x625   :  { %24205 = vst [vmem:[#allocation265_spill] sm:$0xff] %v21395_v7 }
 0x627   :  { %v6428_v49 = vpop.permute.xlu1 %6427  ;;  %v6408_v23 = vpop.permute.xlu0 %6407 }
 0x62b   :  { %v21397_v40 = vpop.permute.xlu1 %6429  ;;  %v21399_v20 = vpop.permute.xlu0 %6409 }
 0x62c   :  { %v6435_v32 = vsel %vm1864_vm9, %v6408_v23, %v21399_v20  ;;  %v6443_v48 = vsel %vm1864_vm9, %v6428_v49, %v21397_v40 }
 0x62d   :  { %v6462_v52 = vmax.f32 %v21216_v0, %v6435_v32  ;;  %v6472_v34 = vmax.f32 %v21191_v61, %v6443_v48  ;;  %v6467_v32 = vmax.f32 %v21095_v29, %v6439_v58  ;;  %v14974_v29 = vld [vmem:[%s22732_s5 + $0x88] sm:$0xff] }
 0x62f   :  { %v21401_v51 = vpop.permute.xlu1 %6554  ;;  %v21403_v59 = vpop.permute.xlu0 %6534  ;;  %v6517_v17 = vmax.f32 %v6462_v52, %v21249_v24  ;;  %v6527_v61 = vmax.f32 %v6472_v34, %v21229_v35  ;;  %v6522_v39 = vmax.f32 %v6467_v32, %v21244_v54  ;;  %v14973_v24 = vld [vmem:[%s22732_s5 + $0x10] sm:$0xff]  ;;  %v14977_v32 = vld [vmem:[%s22732_s5 + $0x60] sm:$0x3] }
 0x633   :  { %v21405_v9 = vpop.permute.xlu1 %6544  ;;  %v21407_v11 = vpop.permute.xlu0 %6536 }
 0x634   :  { %v6562_v36 = vsel %vm1864_vm9, %v21403_v59, %v21407_v11 }
 0x635   :  { %v6589_v48 = vmax.f32 %v6517_v17, %v6562_v36  ;;  %v14975_v36 = vld [vmem:[%s22732_s5 + $0x100] sm:$0xff]  ;;  %v14976_v17 = vld [vmem:[%s22732_s5 + $0x178] sm:$0xff] }
 0x637   :  { %v21414_v33 = vpop.permute.xlu1 %6556  ;;  %v6404_v7 = vpop.permute.xlu0 %6403  ;;  %v21438_v52 = vmul.f32 %v14973_v24, %v6589_v48  ;;  %v21443_v58 = vmul.f32 %v14974_v29, %v6589_v48  ;;  %v21453_v34 = vmul.f32 %v14976_v17, %v6589_v48  ;;  %v14978_v24 = vld [vmem:[%s22732_s5 + $0xd8] sm:$0x3]  ;;  %v21470_v41 = vmul.f32 %v14979_v22, %v6589_v48 }
 0x638   :  { %24206 = vst [vmem:[#allocation18_spill] sm:$0xff] %v21414_v33  ;;  %v6570_v62 = vsel %vm1864_vm9, %v21401_v51, %v21414_v33 }
 0x639   :  { %v21430_v27 = vmax.f32 %v6527_v61, %v6570_v62  ;;  %v21448_v62 = vmul.f32 %v14975_v36, %v6589_v48  ;;  %24208 = vst [vmem:[#allocation350_spill] sm:$0xff] %v21453_v34  ;;  %24209 = vst [vmem:[#allocation355_spill] sm:$0xff] %v21470_v41 }
 0x63b   :  { %v21426_v50 = vpop.permute.xlu1 %6546  ;;  %v6416_v0 = vpop.permute.xlu0 %6415  ;;  %v6614_v61 = vmul.f32 %v14977_v32, %v21430_v27  ;;  %v6654_v29 = vmul.f32 %v14978_v24, %v21430_v27  ;;  %v14981_v32 = vld [vmem:[%s22732_s5 + $0x150] sm:$0x3] }
 0x63c   :  { %24207 = vst [vmem:[#allocation23_spill] sm:$0xff] %v21426_v50  ;;  %v6566_v35 = vsel %vm1864_vm9, %v21405_v9, %v21426_v50  ;;  %v6438_v54 = vsel %vm1864_vm9, %v6416_v0, %v6418_v10  ;;  %v14980_v10 = vld [vmem:[%s22732_s5 + $0x268] sm:$0xff]  ;;  %v6694_v24 = vmul.f32 %v14981_v32, %v21430_v27 }
 0x63d   :  { %v21475_v34 = vmul.f32 %v14980_v10, %v6589_v48  ;;  %v14982_v50 = vld [vmem:[%s22732_s5 + $0x1c8] sm:$0x3]  ;;  %v14983_v10 = vld [vmem:[%s22732_s5 + $0x240] sm:$0x3]  ;;  %v6594_v33 = vmax.f32 %v6522_v39, %v6566_v35  ;;  %v6466_v32 = vmax.f32 %v21284_v30, %v6438_v54  ;;  %v21506_v39 = vsel %vm4946_vm11, %v6654_v29, 0.0 }
 0x63e   :  { %v6734_v1 = vmul.f32 %v14982_v50, %v21430_v27  ;;  %v6814_v50 = vmul.f32 %v21093_v43, %v21430_v27  ;;  %v21512_v35 = vsel %vm4946_vm11, %v6694_v24, 0.0 }
 0x63f   :  { %v6406_v47 = vpop.permute.xlu1 %6405  ;;  %v21432_v4 = vpop.permute.xlu0 %6530  ;;  %24210 = vst [vmem:[#allocation29_spill] sm:$0xff] %v21475_v34  ;;  %v6774_v34 = vmul.f32 %v14983_v10, %v21430_v27  ;;  %v14988_v10 = vld [vmem:[%s22732_s5 + $0x1a0] sm:$0xff] }
 0x640   :  { %v6433_v22 = vsel %vm1864_vm9, %v6404_v7, %v6406_v47  ;;  %v6434_v41 = vsel %vm1864_vm9, %v6406_v47, %v6408_v23  ;;  %v14984_v47 = vld [vmem:[%s22732_s5 + $0x2e0] sm:$0xff]  ;;  %v21503_v23 = vsel %vm4946_vm11, %v6614_v61, 0.0  ;;  %v21518_v61 = vsel %vm4946_vm11, %v6734_v1, 0.0 }
 0x641   :  { %v6460_v30 = vmax.f32 %v21268_v57, %v6433_v22  ;;  %v21521_v29 = vsel %vm4946_vm11, %v6774_v34, 0.0  ;;  %v6521_v57 = vmax.f32 %v6466_v32, %v21334_v8  ;;  %v14986_v34 = vld [vmem:[%s22732_s5 + $0xb0] sm:$0xff]  ;;  %v14987_v8 = vld [vmem:[%s22732_s5 + $0x128] sm:$0xff]  ;;  %v21551_v32 = vmul.f32 %v14988_v10, %v6594_v33 }
 0x643   :  { %v6414_v36 = vpop.permute.xlu1 %6413  ;;  %v6426_v17 = vpop.permute.xlu0 %6425  ;;  %v6515_v24 = vmax.f32 %v6460_v30, %v21299_v44  ;;  %v21566_v30 = vmul.f32 %v21103_v3, %v6594_v33 }
 0x644   :  { %v6442_v37 = vsel %vm1864_vm9, %v6426_v17, %v6428_v49  ;;  %v6437_v7 = vsel %vm1864_vm9, %v6414_v36, %v6416_v0  ;;  %v21500_v49 = vmul.f32 %v14984_v47, %v6589_v48  ;;  %v21544_v36 = vmul.f32 %v14987_v8, %v6594_v33 }
 0x645   :  { %v6471_v25 = vmax.f32 %v21305_v53, %v6442_v37  ;;  %v6461_v53 = vmax.f32 %v21282_v19, %v6434_v41  ;;  %v6465_v41 = vmax.f32 %v21276_v26, %v6437_v7  ;;  %v21539_v26 = vmul.f32 %v14986_v34, %v6594_v33 }
 0x647   :  { %v6424_v37 = vpop.permute.xlu1 %6423  ;;  %v6526_v43 = vmax.f32 %v6471_v25, %v21317_v5  ;;  %v6553_v0 = vpop.permute.xlu0 %6552  ;;  %v14985_v25 = vld [vmem:[%s22732_s5 + $0x38] sm:$0xff]  ;;  %v21531_v5 = vsel %vm4946_vm11, %v6814_v50, 0.0  ;;  %v6516_v22 = vmax.f32 %v6461_v53, %v21314_v55  ;;  %v21563_v55 = vmul.f32 %v21028_v31, %v6594_v33 }
 0x648   :  { %v6441_v48 = vsel %vm1864_vm9, %v6424_v37, %v6426_v17  ;;  %v6569_v54 = vsel %vm1864_vm9, %v6553_v0, %v21401_v51  ;;  %v21528_v19 = vmul.f32 %v14985_v25, %v6594_v33  ;;  %v14989_v50 = vld [vmem:[%s22732_s5 + $0x218] sm:$0xff]  ;;  %v14994_v25 = vld [vmem:[%s22732_s5 + $0x80] sm:$0xff] }
 0x649   :  { %v6470_v51 = vmax.f32 %v21303_v38, %v6441_v48  ;;  %v21534_v1 = vmax.f32 %v6526_v43, %v6569_v54  ;;  %v21556_v7 = vmul.f32 %v14989_v50, %v6594_v33  ;;  %v6520_v43 = vmax.f32 %v6465_v41, %v21343_v21  ;;  %v14990_v31 = vld [vmem:[%s22732_s5 + $0x58] sm:$0x3] }
 0x64a   :  { %v21575_v48 = vmul.f32 %v21122_v13, %v21430_v27  ;;  %v14991_v27 = vld [vmem:[%s22732_s5] sm:$0xff]  ;;  %v14993_v41 = vld [vmem:[%s22732_s5 + $0x78] sm:$0xff] }
 0x64b   :  { %v6533_v17 = vpop.permute.xlu1 %6532  ;;  %v6543_v38 = vpop.permute.xlu0 %6542  ;;  %v6613_v3 = vmul.f32 %v14990_v31, %v21534_v1  ;;  %v6653_v33 = vmul.f32 %v20858_v6, %v21534_v1  ;;  %v14996_v31 = vld [vmem:[%s22732_s5 + $0xf8] sm:$0xff] }
 0x64c   :  { %v6560_v47 = vsel %vm1864_vm9, %v21432_v4, %v6533_v17  ;;  %v6561_v44 = vsel %vm1864_vm9, %v6533_v17, %v21403_v59  ;;  %v6565_v4 = vsel %vm1864_vm9, %v6543_v38, %v21405_v9  ;;  %v6525_v59 = vmax.f32 %v6470_v51, %v21326_v63  ;;  %v14992_v63 = vld [vmem:[%s22732_s5 + $0x8] sm:$0xff] }
 0x64d   :  { %v21568_v53 = vmax.f32 %v6515_v24, %v6560_v47  ;;  %v21570_v37 = vmax.f32 %v6516_v22, %v6561_v44  ;;  %v14995_v24 = vld [vmem:[%s22732_s5 + $0xf0] sm:$0xff]  ;;  %v21613_v47 = vmul.f32 %v21135_v28, %v21534_v1 }
 0x64f   :  { %v6551_v54 = vpop.permute.xlu1 %6550  ;;  %v6412_v21 = vpop.permute.xlu0 %6411  ;;  %v6602_v13 = vmul.f32 %v14991_v27, %v21568_v53  ;;  %v6603_v9 = vmul.f32 %v14992_v63, %v21570_v37  ;;  %v6642_v6 = vmul.f32 %v14993_v41, %v21568_v53  ;;  %v6643_v51 = vmul.f32 %v14994_v25, %v21570_v37 }
 0x650   :  { %v6568_v34 = vsel %vm1864_vm9, %v6551_v54, %v6553_v0  ;;  %v6436_v8 = vsel %vm1864_vm9, %v21399_v20, %v6412_v21  ;;  %v6464_v17 = vmax.f32 %v21338_v2, %v6412_v21  ;;  %v6682_v22 = vmul.f32 %v14995_v24, %v21568_v53  ;;  %v15002_v24 = vld [vmem:[%s22732_s5 + $0x90] sm:$0xff] }
 0x651   :  { %v6463_v10 = vmax.f32 %v21231_v42, %v6436_v8  ;;  %v6617_v50 = vadd.f32 %v6603_v9, %v6602_v13  ;;  %v21617_v0 = vmul.f32 %v20919_v16, %v21534_v1  ;;  %v21619_v20 = vmax.f32 %v6521_v57, %v6565_v4  ;;  %v15001_v8 = vld [vmem:[%s22732_s5 + $0x18] sm:$0xff] }
 0x652   :  { %v6519_v2 = vmax.f32 %v6464_v17, %v21356_v60  ;;  %v6657_v44 = vadd.f32 %v6643_v51, %v6642_v6  ;;  %v6683_v42 = vmul.f32 %v14996_v31, %v21570_v37  ;;  %v21626_v54 = vmax.f32 %v6525_v59, %v6568_v34  ;;  %v15000_v6 = vld [vmem:[%s22732_s5 + $0x170] sm:$0xff] }
 0x653   :  { %v6541_v21 = vpop.permute.xlu1 %6540  ;;  %v6518_v28 = vmax.f32 %v6463_v10, %v21263_v12  ;;  %v6539_v27 = vpop.permute.xlu0 %6538  ;;  %v21630_v16 = vsel %vm4946_vm11, %v6613_v3, 0.0  ;;  %v21633_v57 = vsel %vm4946_vm11, %v6653_v33, 0.0  ;;  %v6618_v12 = vadd.f32 %v6617_v50, %v21438_v52  ;;  %v14997_v3 = vld [vmem:[%s22732_s5 + $0x168] sm:$0xff] }
 0x654   :  { %v6564_v60 = vsel %vm1864_vm9, %v6541_v21, %v6543_v38  ;;  %v6563_v4 = vsel %vm1864_vm9, %v21407_v11, %v6539_v27  ;;  %v21638_v13 = vmax.f32 %v6519_v2, %v6539_v27  ;;  %v6697_v63 = vadd.f32 %v6683_v42, %v6682_v22  ;;  %v14998_v38 = vld [vmem:[%s22732_s5 + $0x20] sm:$0xff]  ;;  %v15003_v22 = vld [vmem:[%s22732_s5 + $0x108] sm:$0xff] }
 0x655   :  { %v21640_v59 = vmax.f32 %v6520_v43, %v6564_v60  ;;  %v21642_v9 = vmax.f32 %v6518_v28, %v6563_v4  ;;  %v6722_v33 = vmul.f32 %v14997_v3, %v21568_v53  ;;  %v14999_v43 = vld [vmem:[%s22732_s5 + $0x98] sm:$0xff]  ;;  %v6658_v52 = vadd.f32 %v6657_v44, %v21443_v58  ;;  %v15004_v60 = vld [vmem:[%s22732_s5 + $0x28] sm:$0xff] }
 0x656   :  { %v6606_v11 = vmul.f32 %v14998_v38, %v21638_v13  ;;  %v6646_v41 = vmul.f32 %v14999_v43, %v21638_v13  ;;  %v6723_v25 = vmul.f32 %v15000_v6, %v21570_v37  ;;  %v6698_v50 = vadd.f32 %v6697_v63, %v21448_v62  ;;  %v24211_v63 = vld [vmem:[#allocation340_spill] sm:$0xff]  ;;  %v24212_v43 = vld [vmem:[#allocation18_spill] sm:$0xff]  ;;  %v24213_v6 = vld [vmem:[#allocation19_spill] sm:$0xff] }
 0x657   :  { %v6422_v51 = vpop.permute.xlu1 %6421  ;;  %v6432_v34 = vpop.permute.xlu0 %6431  ;;  %v6605_v17 = vmul.f32 %v15001_v8, %v21642_v9  ;;  %v6645_v58 = vmul.f32 %v15002_v24, %v21642_v9  ;;  %v6685_v10 = vmul.f32 %v15003_v22, %v21642_v9  ;;  %v6607_v62 = vmul.f32 %v15004_v60, %v21640_v59  ;;  %v15007_v8 = vld [vmem:[%s22732_s5 + $0xa8] sm:$0xff]  ;;  %v24214_v22 = vld [vmem:[#allocation345_spill] sm:$0xff] }
 0x658   :  { %v6440_v2 = vsel %vm1864_vm9, %v21392_v18, %v6422_v51  ;;  %v6469_v44 = vmax.f32 %v21328_v45, %v6422_v51  ;;  %v6444_v31 = vsel %vm1864_vm9, %v21397_v40, %v6432_v34  ;;  %v6474_v42 = vmax.f32 %v21350_v14, %v6432_v34  ;;  %v15005_v40 = vld [vmem:[%s22732_s5 + $0x110] sm:$0xff]  ;;  %v15011_v60 = vld [vmem:[%s22732_s5 + $0x1e8] sm:$0xff] }
 0x659   :  { %v6468_v21 = vmax.f32 %v21148_v56, %v6440_v2  ;;  %v6473_v28 = vmax.f32 %v21214_v15, %v6444_v31  ;;  %v6619_v27 = vadd.f32 %v6618_v12, %v6605_v17  ;;  %v6620_v45 = vsel %vm3635_vm10, %v6606_v11, 0.0  ;;  %v15006_v56 = vld [vmem:[%s22732_s5 + $0x30] sm:$0xff]  ;;  %v15010_v31 = vld [vmem:[%s22732_s5 + $0x1e0] sm:$0xff] }
 0x65a   :  { %v6529_v18 = vmax.f32 %v6474_v42, %v21361_v46  ;;  %v6686_v14 = vmul.f32 %v15005_v40, %v21638_v13  ;;  %v6608_v15 = vmul.f32 %v15006_v56, %v21619_v20  ;;  %v6659_v38 = vadd.f32 %v6658_v52, %v6645_v58 }
 0x65b   :  { %v6559_v4 = vpop.permute.xlu1 %6558  ;;  %v6528_v12 = vmax.f32 %v6473_v28, %v24211_v63  ;;  %v6621_v3 = vadd.f32 %v6620_v45, %v6619_v27  ;;  %v6699_v46 = vadd.f32 %v6698_v50, %v6685_v10  ;;  %v6524_v51 = vmax.f32 %v6469_v44, %v24213_v6  ;;  %v15009_v50 = vld [vmem:[%s22732_s5 + $0xa0] sm:$0xff]  ;;  %v24217_v6 = vld [vmem:[#allocation385_spill] sm:$0xff] }
 0x65c   :  { %v6571_v11 = vsel %vm1864_vm9, %v24212_v43, %v6559_v4  ;;  %v6737_v34 = vadd.f32 %v6723_v25, %v6722_v33  ;;  %v6648_v17 = vmul.f32 %v15007_v8, %v21619_v20  ;;  %v21705_v24 = vmax.f32 %v6529_v18, %v6559_v4  ;;  %v15008_v33 = vld [vmem:[%s22732_s5 + $0x180] sm:$0xff]  ;;  %v24215_v18 = vld [vmem:[#allocation23_spill] sm:$0xff] }
 0x65d   :  { %6622 = vadd.xlane.f32.xlu1 %v6621_v3  ;;  %v6523_v2 = vmax.f32 %v6468_v21, %v24214_v22  ;;  %v6660_v52 = vsel %vm3635_vm10, %v6646_v41, 0.0  ;;  %v6624_v58 = vadd.f32 %v6608_v15, %v6607_v62  ;;  %v6700_v10 = vsel %vm3635_vm10, %v6686_v14, 0.0  ;;  %v15012_v14 = vld [vmem:[%s22732_s5 + $0x188] sm:$0xff]  ;;  %v24216_v15 = vld [vmem:[#allocation350_spill] sm:$0xff]  ;;  %v15016_v22 = vld [vmem:[%s22732_s5 + $0xb8] sm:$0xff] }
 0x65e   :  { %v6725_v25 = vmul.f32 %v15008_v33, %v21642_v9  ;;  %v6647_v44 = vmul.f32 %v15009_v50, %v21640_v59  ;;  %v6762_v41 = vmul.f32 %v15010_v31, %v21568_v53  ;;  %v21722_v42 = vmax.f32 %v6528_v12, %v6571_v11 }
 0x65f   :  { %v6549_v21 = vpop.permute.xlu1 %6548  ;;  %v6661_v28 = vadd.f32 %v6660_v52, %v6659_v38  ;;  %v6701_v27 = vadd.f32 %v6700_v10, %v6699_v46  ;;  %v6763_v62 = vmul.f32 %v15011_v60, %v21570_v37  ;;  %v6726_v56 = vmul.f32 %v15012_v14, %v21638_v13  ;;  %v15013_v46 = vld [vmem:[%s22732_s5 + $0x48] sm:$0xff]  ;;  %v15017_v52 = vld [vmem:[%s22732_s5 + $0xc0] sm:$0xff] }
 0x660   :  { %v6567_v45 = vsel %vm1864_vm9, %v24215_v18, %v6549_v21  ;;  %v21730_v40 = vmax.f32 %v6524_v51, %v6549_v21  ;;  %v6738_v4 = vadd.f32 %v6737_v34, %v24216_v15  ;;  %v6625_v12 = vadd.f32 %v6624_v58, %v21528_v19  ;;  %v15014_v34 = vld [vmem:[%s22732_s5 + $0x118] sm:$0xff]  ;;  %v15015_v19 = vld [vmem:[%s22732_s5 + $0x40] sm:$0xff] }
 0x661   :  { %v21737_v63 = vmax.f32 %v6523_v2, %v6567_v45  ;;  %6662 = vadd.xlane.f32.xlu1 %v6661_v28  ;;  %v6664_v3 = vadd.f32 %v6648_v17, %v6647_v44  ;;  %v6777_v38 = vadd.f32 %v6763_v62, %v6762_v41  ;;  %v6765_v51 = vmul.f32 %v24217_v6, %v21642_v9  ;;  %v24219_v44 = vld [vmem:[#allocation355_spill] sm:$0xff]  ;;  %v15018_v41 = vld [vmem:[%s22732_s5 + $0x120] sm:$0xff] }
 0x662   :  { %v6611_v43 = vmul.f32 %v15013_v46, %v21730_v40  ;;  %v6739_v11 = vadd.f32 %v6738_v4, %v6725_v25  ;;  %v6687_v8 = vmul.f32 %v15014_v34, %v21640_v59  ;;  %v6651_v58 = vmul.f32 %v15017_v52, %v21730_v40  ;;  %v24218_v25 = vld [vmem:[#allocation310_spill] sm:$0xff]  ;;  %v15022_v46 = vld [vmem:[%s22732_s5 + $0x138] sm:$0xff] }
 0x663   :  { %v6610_v17 = vmul.f32 %v15015_v19, %v21737_v63  ;;  %v6650_v2 = vmul.f32 %v15016_v22, %v21737_v63  ;;  %v6665_v10 = vadd.f32 %v6664_v3, %v21539_v26  ;;  %v6740_v33 = vsel %vm3635_vm10, %v6726_v56, 0.0  ;;  %v15019_v26 = vld [vmem:[%s22732_s5 + $0x130] sm:$0xff]  ;;  %v15020_v56 = vld [vmem:[%s22732_s5 + $0x258] sm:$0xff] }
 0x664   :  { %v6766_v50 = vmul.f32 %v24218_v25, %v21638_v13  ;;  %v6778_v31 = vadd.f32 %v6777_v38, %v24219_v44  ;;  %v6688_v21 = vmul.f32 %v15018_v41, %v21619_v20  ;;  %v6627_v60 = vsel %vm3635_vm10, %v6611_v43, 0.0  ;;  %v15026_v52 = vld [vmem:[%s22732_s5 + $0x198] sm:$0xff] }
 0x665   :  { %6702 = vadd.xlane.f32.xlu1 %v6701_v27  ;;  %v6626_v28 = vadd.f32 %v6625_v12, %v6610_v17  ;;  %v6666_v62 = vadd.f32 %v6665_v10, %v6650_v2  ;;  %v6690_v18 = vmul.f32 %v15019_v26, %v21737_v63  ;;  %v6802_v15 = vmul.f32 %v15020_v56, %v21568_v53  ;;  %v15021_v27 = vld [vmem:[%s22732_s5 + $0x260] sm:$0xff]  ;;  %v24220_v25 = vld [vmem:[#allocation29_spill] sm:$0xff] }
 0x666   :  { %v6779_v45 = vadd.f32 %v6778_v31, %v6765_v51  ;;  %v6704_v14 = vadd.f32 %v6688_v21, %v6687_v8  ;;  %v6803_v4 = vmul.f32 %v15021_v27, %v21570_v37  ;;  %v6741_v3 = vadd.f32 %v6740_v33, %v6739_v11  ;;  %v15023_v51 = vld [vmem:[%s22732_s5 + $0x270] sm:$0xff]  ;;  %v15028_v21 = vld [vmem:[%s22732_s5 + $0x1a8] sm:$0xff] }
 0x667   :  { %v6628_v12 = vadd.f32 %v6627_v60, %v6626_v28  ;;  %v6667_v38 = vsel %vm3635_vm10, %v6651_v58, 0.0  ;;  %v6691_v43 = vmul.f32 %v15022_v46, %v21730_v40  ;;  %v6805_v34 = vmul.f32 %v15023_v51, %v21642_v9  ;;  %v15024_v11 = vld [vmem:[%s22732_s5 + $0x190] sm:$0xff]  ;;  %v24222_v51 = vld [vmem:[#allocation230_spill] sm:$0xff] }
 0x668   :  { %v6705_v6 = vadd.f32 %v6704_v14, %v21544_v36  ;;  %v6817_v8 = vadd.f32 %v6803_v4, %v6802_v15  ;;  %v6727_v19 = vmul.f32 %v15024_v11, %v21640_v59  ;;  %v6668_v17 = vadd.f32 %v6667_v38, %v6666_v62  ;;  %v15025_v36 = vld [vmem:[%s22732_s5 + $0x278] sm:$0xff]  ;;  %v15031_v14 = vld [vmem:[%s22732_s5 + $0x2e8] sm:$0xff] }
 0x669   :  { %6629 = vadd.xlane.f32.xlu0 %v6628_v12  ;;  %6742 = vadd.xlane.f32.xlu1 %v6741_v3  ;;  %v6780_v22 = vsel %vm3635_vm10, %v6766_v50, 0.0  ;;  %v6806_v2 = vmul.f32 %v15025_v36, %v21638_v13  ;;  %v6728_v58 = vmul.f32 %v15026_v52, %v21619_v20  ;;  %v15027_v50 = vld [vmem:[%s22732_s5 + $0x2d0] sm:$0xff]  ;;  %v6707_v41 = vsel %vm3635_vm10, %v6691_v43, 0.0  ;;  %v15029_v62 = vld [vmem:[%s22732_s5 + $0x2d8] sm:$0xff]  ;;  %v24221_v15 = vld [vmem:[#allocation315_spill] sm:$0xff] }
 0x66a   :  { %v6781_v10 = vadd.f32 %v6780_v22, %v6779_v45  ;;  %v6706_v33 = vadd.f32 %v6705_v6, %v6690_v18  ;;  %v6818_v44 = vadd.f32 %v6817_v8, %v24220_v25  ;;  %v6842_v31 = vmul.f32 %v15027_v50, %v21568_v53  ;;  %v15030_v53 = vld [vmem:[%s22732_s5 + $0x1b0] sm:$0xff]  ;;  %v15035_v36 = vld [vmem:[%s22732_s5 + $0x68] sm:$0x3] }
 0x66b   :  { %v6730_v28 = vmul.f32 %v15028_v21, %v21737_v63  ;;  %v6744_v60 = vadd.f32 %v6728_v58, %v6727_v19  ;;  %v6843_v26 = vmul.f32 %v15029_v62, %v21570_v37  ;;  %v6731_v45 = vmul.f32 %v15030_v53, %v21730_v40  ;;  %v15032_v3 = vld [vmem:[%s22732_s5 + $0x210] sm:$0xff]  ;;  %v24224_v21 = vld [vmem:[#allocation390_spill] sm:$0xff]  ;;  %v24225_v53 = vld [vmem:[#allocation325_spill] sm:$0xff] }
 0x66c   :  { %v6819_v18 = vadd.f32 %v6818_v44, %v6805_v34  ;;  %v6845_v56 = vmul.f32 %v15031_v14, %v21642_v9  ;;  %v6767_v27 = vmul.f32 %v24221_v15, %v21640_v59  ;;  %v6820_v37 = vsel %vm3635_vm10, %v6806_v2, 0.0  ;;  %v15033_v9 = vld [vmem:[%s22732_s5 + $0x2f0] sm:$0xff]  ;;  %v24223_v2 = vld [vmem:[#allocation235_spill] sm:$0xff] }
 0x66d   :  { %6669 = vadd.xlane.f32.xlu0 %v6668_v17  ;;  %6782 = vadd.xlane.f32.xlu1 %v6781_v10  ;;  %v6745_v4 = vadd.f32 %v6744_v60, %v21551_v32  ;;  %v6857_v12 = vadd.f32 %v6843_v26, %v6842_v31  ;;  %v6768_v38 = vmul.f32 %v15032_v3, %v21619_v20  ;;  %v15034_v19 = vld [vmem:[%s22732_s5 + $0x50] sm:$0x3]  ;;  %v6747_v22 = vsel %vm3635_vm10, %v6731_v45, 0.0  ;;  %v15036_v10 = vld [vmem:[%s22732_s5 + $0x228] sm:$0xff] }
 0x66e   :  { %v6708_v46 = vadd.f32 %v6707_v41, %v6706_v33  ;;  %v6821_v43 = vadd.f32 %v6820_v37, %v6819_v18  ;;  %v6846_v6 = vmul.f32 %v15033_v9, %v21638_v13  ;;  %v6770_v34 = vmul.f32 %v24222_v51, %v21737_v63  ;;  %v24229_v9 = vld [vmem:[#allocation245_spill] sm:$0xff] }
 0x66f   :  { %v6746_v8 = vadd.f32 %v6745_v4, %v6730_v28  ;;  %v6858_v32 = vadd.f32 %v6857_v12, %v21500_v49  ;;  %v6784_v11 = vadd.f32 %v6768_v38, %v6767_v27  ;;  %v6612_v17 = vmul.f32 %v15034_v19, %v21626_v54  ;;  %v24226_v27 = vld [vmem:[#allocation320_spill] sm:$0xff]  ;;  %v24228_v12 = vld [vmem:[#allocation395_spill] sm:$0xff] }
 0x670   :  { %v6615_v13 = vmul.f32 %v15035_v36, %v21722_v42  ;;  %v6807_v52 = vmul.f32 %v24223_v2, %v21640_v59  ;;  %v21857_v49 = vsel %vm4946_vm11, %v21617_v0, 0.0  ;;  %v6771_v33 = vmul.f32 %v15036_v10, %v21730_v40  ;;  %v15037_v0 = vld [vmem:[%s22732_s5 + $0x70] sm:$0x3] }
 0x671   :  { %6709 = vadd.xlane.f32.xlu0 %v6708_v46  ;;  %6822 = vadd.xlane.f32.xlu1 %v6821_v43  ;;  %v6859_v58 = vadd.f32 %v6858_v32, %v6845_v56  ;;  %v6785_v25 = vadd.f32 %v6784_v11, %v21556_v7  ;;  %v6631_v44 = vsel %vm4946_vm11, %v6612_v17, 0.0  ;;  %v6860_v50 = vsel %vm3635_vm10, %v6846_v6, 0.0  ;;  %v15038_v56 = vld [vmem:[%s22732_s5 + $0x1c0] sm:$0x3]  ;;  %v24227_v4 = vld [vmem:[#allocation240_spill] sm:$0xff] }
 0x672   :  { %v6616_v31 = vmul.f32 %v15037_v0, %v21705_v24  ;;  %v6633_v41 = vadd.f32 %v21630_v16, %v6631_v44  ;;  %v6808_v28 = vmul.f32 %v24224_v21, %v21619_v20  ;;  %v6748_v60 = vadd.f32 %v6747_v22, %v6746_v8  ;;  %v15039_v32 = vld [vmem:[%s22732_s5 + $0xc8] sm:$0x3]  ;;  %v15040_v11 = vld [vmem:[%s22732_s5 + $0xe0] sm:$0x3]  ;;  %v15042_v44 = vld [vmem:[%s22732_s5 + $0x158] sm:$0x3] }
 0x673   :  { %v6861_v62 = vadd.f32 %v6860_v50, %v6859_v58  ;;  %v6786_v26 = vadd.f32 %v6785_v25, %v6770_v34  ;;  %v6636_v7 = vsel %vm4946_vm11, %v6615_v13, 0.0  ;;  %v6810_v45 = vmul.f32 %v24225_v53, %v21737_v63  ;;  %v24230_v34 = vld [vmem:[#allocation330_spill] sm:$0xff]  ;;  %v24231_v13 = vld [vmem:[#allocation400_spill] sm:$0xff]  ;;  %v24232_v21 = vld [vmem:[#allocation405_spill] sm:$0xff] }
 0x674   :  { %v6635_v18 = vadd.f32 %v21503_v23, %v6633_v41  ;;  %v6824_v14 = vadd.f32 %v6808_v28, %v6807_v52  ;;  %v6733_v16 = vmul.f32 %v15038_v56, %v21534_v1  ;;  %v6787_v15 = vsel %vm3635_vm10, %v6771_v33, 0.0  ;;  %v15045_v53 = vld [vmem:[%s22732_s5 + $0xe8] sm:$0x3] }
 0x675   :  { %6749 = vadd.xlane.f32.xlu0 %v6748_v60  ;;  %6862 = vadd.xlane.f32.xlu1 %v6861_v62  ;;  %v6811_v37 = vmul.f32 %v24226_v27, %v21730_v40  ;;  %v6847_v23 = vmul.f32 %v24227_v4, %v21640_v59  ;;  %v6773_v3 = vmul.f32 %v24228_v12, %v21534_v1  ;;  %v6638_v46 = vsel %vm4954_vm12, %v6616_v31, 0.0  ;;  %v15043_v31 = vld [vmem:[%s22732_s5 + $0x1b8] sm:$0x3] }
 0x676   :  { %v6637_v38 = vadd.f32 %v6636_v7, %v6635_v18  ;;  %v6825_v43 = vadd.f32 %v6824_v14, %v21563_v55  ;;  %v6848_v6 = vmul.f32 %v24229_v9, %v21619_v20  ;;  %v6788_v51 = vadd.f32 %v6787_v15, %v6786_v26  ;;  %v15041_v20 = vld [vmem:[%s22732_s5 + $0x140] sm:$0x3]  ;;  %v24233_v7 = vld [vmem:[#allocation335_spill] sm:$0xff] }
 0x677   :  { %v6850_v8 = vmul.f32 %v24230_v34, %v21737_v63  ;;  %v6652_v59 = vmul.f32 %v15039_v32, %v21626_v54  ;;  %v6655_v19 = vmul.f32 %v15040_v11, %v21722_v42  ;;  %v6692_v63 = vmul.f32 %v15041_v20, %v21626_v54  ;;  %v15048_v34 = vld [vmem:[%s22732_s5 + $0x160] sm:$0x3]  ;;  %v24235_v11 = vld [vmem:[#allocation13_spill] sm:$0xff] }
 0x678   :  { %v6639_v55 = vadd.f32 %v6638_v46, %v6637_v38  ;;  %v6826_v17 = vadd.f32 %v6825_v43, %v6810_v45  ;;  %v6864_v22 = vadd.f32 %v6848_v6, %v6847_v23  ;;  %v6827_v36 = vsel %vm3635_vm10, %v6811_v37, 0.0  ;;  %v15046_v23 = vld [vmem:[%s22732_s5 + $0x230] sm:$0x3]  ;;  %v15047_v38 = vld [vmem:[%s22732_s5 + $0x248] sm:$0x3]  ;;  %v24236_v20 = vld [vmem:[#allocation9_spill] sm:$0xff] }
 0x679   :  { %6789 = vadd.xlane.f32.xlu0 %v6788_v51  ;;  %v6851_v2 = vmul.f32 %v24231_v13, %v21730_v40  ;;  %v6671_v52 = vsel %vm4946_vm11, %v6652_v59, 0.0  ;;  %v6752_v58 = vsel %vm4946_vm11, %v6733_v16, 0.0  ;;  %v6676_v25 = vsel %vm4946_vm11, %v6655_v19, 0.0  ;;  %v24234_v16 = vld [vmem:[#allocation8_spill] sm:$0xff] }
 0x67a   :  { %6640 = vadd.xlane.f32.xlu1 %v6639_v55  ;;  %v6865_v10 = vadd.f32 %v6864_v22, %v21566_v30  ;;  %v6673_v33 = vadd.f32 %v21633_v57, %v6671_v52  ;;  %v6695_v50 = vmul.f32 %v15042_v44, %v21722_v42  ;;  %v6828_v0 = vadd.f32 %v6827_v36, %v6826_v17  ;;  %v15044_v30 = vld [vmem:[%s22732_s5 + $0x1d0] sm:$0x3]  ;;  %v24237_v36 = vld [vmem:[#allocation14_spill] sm:$0xff] }
 0x67b   :  { %v6711_v40 = vsel %vm4946_vm11, %v6692_v63, 0.0  ;;  %v6732_v41 = vmul.f32 %v15043_v31, %v21626_v54  ;;  %v6735_v57 = vmul.f32 %v15044_v30, %v21722_v42  ;;  %v6812_v28 = vmul.f32 %v24232_v21, %v21626_v54  ;;  %v24238_v52 = vld [vmem:[#allocation250_spill] sm:$0xff] }
 0x67c   :  { %v6866_v60 = vadd.f32 %v6865_v10, %v6850_v8  ;;  %v6675_v62 = vadd.f32 %v21506_v39, %v6673_v33  ;;  %v6713_v26 = vadd.f32 %v21857_v49, %v6711_v40  ;;  %v6815_v18 = vmul.f32 %v24233_v7, %v21722_v42 }
 0x67d   :  { %6829 = vadd.xlane.f32.xlu0 %v6828_v0  ;;  %v6656_v45 = vmul.f32 %v15045_v53, %v21705_v24  ;;  %v6716_v14 = vsel %vm4946_vm11, %v6695_v50, 0.0  ;;  %v6751_v56 = vsel %vm4946_vm11, %v6732_v41, 0.0  ;;  %v6867_v39 = vsel %vm3635_vm10, %v6851_v2, 0.0  ;;  %v15050_v41 = vld [vmem:[%s22732_s5 + $0x250] sm:$0x3] }
 0x67e   :  { %5237 = vadd.xlane.f32.xlu1 %v24234_v16  ;;  %v6677_v15 = vadd.f32 %v6676_v25, %v6675_v62  ;;  %v6715_v49 = vadd.f32 %v21512_v35, %v6713_v26  ;;  %v6753_v27 = vadd.f32 %v6752_v58, %v6751_v56  ;;  %v6868_v37 = vadd.f32 %v6867_v39, %v6866_v60 }
 0x67f   :  { %v6756_v4 = vsel %vm4946_vm11, %v6735_v57, 0.0  ;;  %v6772_v12 = vmul.f32 %v15046_v23, %v21626_v54  ;;  %v6775_v46 = vmul.f32 %v15047_v38, %v21722_v42  ;;  %v6792_v35 = vsel %vm4946_vm11, %v6773_v3, 0.0  ;;  %v24240_v23 = vld [vmem:[#allocation24_spill] sm:$0xff] }
 0x680   :  { %v6717_v43 = vadd.f32 %v6716_v14, %v6715_v49  ;;  %v6755_v9 = vadd.f32 %v21518_v61, %v6753_v27  ;;  %v6831_v6 = vsel %vm4946_vm11, %v6812_v28, 0.0  ;;  %v6678_v51 = vsel %vm4954_vm12, %v6656_v45, 0.0  ;;  %v15051_v28 = vld [vmem:[%s22732_s5 + $0x2c8] sm:$0x3] }
 0x681   :  { %6869 = vadd.xlane.f32.xlu0 %v6868_v37  ;;  %v6696_v8 = vmul.f32 %v15048_v34, %v21705_v24  ;;  %v6791_v32 = vsel %vm4946_vm11, %v6772_v12, 0.0  ;;  %v6832_v59 = vsel %vm4946_vm11, %v21613_v47, 0.0  ;;  %v6679_v61 = vadd.f32 %v6678_v51, %v6677_v15 }
 0x682   :  { %5293 = vadd.xlane.f32.xlu1 %v24235_v11  ;;  %v6757_v3 = vadd.f32 %v6756_v4, %v6755_v9  ;;  %v6793_v19 = vadd.f32 %v6792_v35, %v6791_v32  ;;  %v6833_v55 = vadd.f32 %v6832_v59, %v6831_v6  ;;  %v6796_v17 = vsel %vm4946_vm11, %v6775_v46, 0.0  ;;  %v24241_v46 = vld [vmem:[#allocation260_spill] sm:$0xff] }
 0x683   :  { %v6836_v22 = vsel %vm4946_vm11, %v6815_v18, 0.0  ;;  %v6852_v63 = vmul.f32 %v24236_v20, %v21626_v54  ;;  %v6853_v13 = vmul.f32 %v24237_v36, %v21534_v1  ;;  %v6855_v58 = vmul.f32 %v24238_v52, %v21722_v42  ;;  %v15049_v54 = vld [vmem:[%s22732_s5 + $0x1d8] sm:$0x3]  ;;  %v24239_v18 = vld [vmem:[#allocation255_spill] sm:$0xff]  ;;  %s15062_s5 = smov 104  }
 0x684   :  { %v6795_v2 = vadd.f32 %v21521_v29, %v6793_v19  ;;  %v6835_v47 = vadd.f32 %v21531_v5, %v6833_v55  ;;  %v6718_v10 = vsel %vm4954_vm12, %v6696_v8, 0.0  ;;  %v6736_v1 = vmul.f32 %v15049_v54, %v21705_v24  ;;  %v22010_v32 = vld [vmem:[%s22733_s6 + $0x1f5] sm:$0xff] }
 0x685   :  { %6680 = vadd.xlane.f32.xlu0 %v6679_v61  ;;  %v6871_v33 = vsel %vm4946_vm11, %v6852_v63, 0.0  ;;  %v6872_v25 = vsel %vm4946_vm11, %v6853_v13, 0.0  ;;  %v6719_v5 = vadd.f32 %v6718_v10, %v6717_v43  ;;  %v6874_v42 = vsel %vm4946_vm11, %v21575_v48, 0.0  ;;  %13167 = vmatprep.mubr.msk.f32.mxu0 %vm5299_vm14, %v22010_v32 }
 0x686   :  { %v6797_v44 = vadd.f32 %v6796_v17, %v6795_v2  ;;  %v6837_v29 = vadd.f32 %v6836_v22, %v6835_v47  ;;  %v6873_v50 = vadd.f32 %v6872_v25, %v6871_v33  ;;  %v6876_v0 = vsel %vm4946_vm11, %v6855_v58, 0.0  ;;  %v24242_v58 = vld [vmem:[#allocation265_spill] sm:$0xff] }
 0x687   :  { %v6758_v31 = vsel %vm4954_vm12, %v6736_v1, 0.0  ;;  %v6776_v30 = vmul.f32 %v15050_v41, %v21705_v24  ;;  %v6816_v48 = vmul.f32 %v15051_v28, %v21705_v24  ;;  %v6856_v53 = vmul.f32 %v24239_v18, %v21705_v24 }
 0x688   :  { %v6875_v40 = vadd.f32 %v6874_v42, %v6873_v50  ;;  %v6759_v21 = vadd.f32 %v6758_v31, %v6757_v3  ;;  %v5164_v14 = vpop.xlane.xlu0 %5163  ;;  %vm5323_vm9 = vcmask 50176   ;;  %vm6911_vm10 = vcmask 1040384  }
 0x689   :  { %6720 = vadd.xlane.f32.xlu0 %v6719_v5  ;;  %v6798_v60 = vsel %vm4954_vm12, %v6776_v30, 0.0  ;;  %v6838_v7 = vsel %vm4954_vm12, %v6816_v48, 0.0  ;;  %v6878_v16 = vsel %vm4954_vm12, %v6856_v53, 0.0  ;;  %v5308_v12 = vsel %vm5307_vm1, %v24240_v23, %v5164_v14 }
 0x68a   :  { %v6877_v57 = vadd.f32 %v6876_v0, %v6875_v40  ;;  %v6799_v62 = vadd.f32 %v6798_v60, %v6797_v44  ;;  %v6839_v45 = vadd.f32 %v6838_v7, %v6837_v29  ;;  %vm7615_vm12 = vcmask 261120  }
 0x68c   :  { %v6879_v39 = vadd.f32 %v6878_v16, %v6877_v57  ;;  %v5220_v49 = vpop.xlane.xlu0 %5219 }
 0x68d   :  { %6760 = vadd.xlane.f32.xlu0 %v6759_v21  ;;  %v5312_v24 = vsel %vm5311_vm3, %v5308_v12, %v5220_v49 }
 0x690   :  { %v5070_v26 = vpop.xlane.xlu1 %5069  ;;  %v5276_v37 = vpop.xlane.xlu0 %5275 }
 0x691   :  { %6800 = vadd.xlane.f32.xlu0 %v6799_v62  ;;  %v5316_v38 = vsel %vm5315_vm4, %v5312_v24, %v5276_v37  ;;  %v5302_v10 = vsel %vm5299_vm14, %v24242_v58, %v5070_v26  ;;  %v6919_v58 = vld [vmem:[%s22734_s7] sm:$0xff] }
 0x692   :  { %v5320_v51 = vsel %vm5319_vm8, %v5316_v38, 0.0 }
 0x694   :  { %v5171_v56 = vpop.xlane.xlu1 %5170 }
 0x695   :  { %6840 = vadd.xlane.f32.xlu0 %v6839_v45  ;;  %v5309_v43 = vsel %vm5307_vm1, %v24241_v46, %v5171_v56 }
 0x698   :  { %v5126_v15 = vpop.xlane.xlu1 %5125 }
 0x699   :  { %6880 = vadd.xlane.f32.xlu0 %v6879_v39  ;;  %v5306_v33 = vsel %vm5303_vm15, %v5302_v10, %v5126_v15  ;;  %v6920_v10 = vld [vmem:[%s22734_s7 + $0x8] sm:$0xf] }
 0x69c   :  { %v5227_v27 = vpop.xlane.xlu1 %5226 }
 0x69d   :  { %v5313_v9 = vsel %vm5311_vm3, %v5309_v43, %v5227_v27 }
 0x6a0   :  { %v5182_v4 = vpop.xlane.xlu1 %5181 }
 0x6a1   :  { %v5310_v25 = vsel %vm5307_vm1, %v5306_v33, %v5182_v4  ;;  %v7343_v33 = vld [vmem:[%s22733_s6 + $0x7] sm:$0x1f] }
 0x6a4   :  { %v5283_v35 = vpop.xlane.xlu1 %5282 }
 0x6a5   :  { %v5317_v6 = vsel %vm5315_vm4, %v5313_v9, %v5283_v35 }
 0x6a6   :  { %v5321_v34 = vsel %vm5319_vm8, %v5317_v6, 0.0 }
 0x6a7   :  { %v5322_v8 = vadd.f32 %v5321_v34, %v5320_v51 }
 0x6ea   :  { %v6623_v59 = vpop.xlane.xlu1 %6622 }
 0x6ee   :  { %v6663_v11 = vpop.xlane.xlu1 %6662 }
 0x6ef   :  { %v6882_v30 = vsel %vm5295_vm13, %v6623_v59, %v6663_v11 }
 0x6f2   :  { %v6703_v61 = vpop.xlane.xlu1 %6702 }
 0x6f3   :  { %v6885_v28 = vsel %vm5299_vm14, %v6882_v30, %v6703_v61  ;;  %v7517_v30 = vld [vmem:[%s22733_s6 + $0x11] sm:$0x7f] }
 0x6f6   :  { %v6743_v3 = vpop.xlane.xlu1 %6742  ;;  %v6630_v19 = vpop.xlane.xlu0 %6629 }
 0x6f7   :  { %v6888_v60 = vsel %vm5303_vm15, %v6885_v28, %v6743_v3  ;;  %v12216_v3 = vld [vmem:[%s22733_s6] ss:$0 sm:$0xff]  ;;  %v7608_v28 = vld [vmem:[%s22733_s6 + $0x29] sm:$0xff] }
 0x6fa   :  { %v6783_v55 = vpop.xlane.xlu1 %6782  ;;  %v6670_v17 = vpop.xlane.xlu0 %6669 }
 0x6fb   :  { %v6883_v31 = vsel %vm5295_vm13, %v6630_v19, %v6670_v17  ;;  %v6891_v26 = vsel %vm5307_vm1, %v6888_v60, %v6783_v55 }
 0x6fe   :  { %v6823_v22 = vpop.xlane.xlu1 %6822  ;;  %v6710_v20 = vpop.xlane.xlu0 %6709 }
 0x6ff   :  { %v6886_v41 = vsel %vm5299_vm14, %v6883_v31, %v6710_v20  ;;  %v6894_v53 = vsel %vm5311_vm3, %v6891_v26, %v6823_v22  ;;  %v22050_v22 = vld [vmem:[%s22733_s6 + $0x201] sm:$0x3f]  ;;  %v22055_v20 = vld [vmem:[%s22733_s6 + $0x1fd] sm:$0xf] }
 0x702   :  { %v6863_v63 = vpop.xlane.xlu1 %6862  ;;  %v6750_v36 = vpop.xlane.xlu0 %6749 }
 0x703   :  { %v6889_v57 = vsel %vm5303_vm15, %v6886_v41, %v6750_v36  ;;  %v6897_v56 = vsel %vm5315_vm4, %v6894_v53, %v6863_v63  ;;  %v22060_v63 = vld [vmem:[%s22734_s7 + $0xc] sm:$0x3f]  ;;  %v22069_v36 = vld [vmem:[%s22733_s6 + $0x1d3] sm:$0xff] }
 0x704   :  { %v6900_v37 = vsel %vm5319_vm8, %v6897_v56, 0.0  ;;  %v12241_v56 = vld [vmem:[%s22733_s6 + $0x39] ss:$0 sm:$0xff] }
 0x706   :  { %v6790_v13 = vpop.xlane.xlu0 %6789 }
 0x707   :  { %v6641_v2 = vpop.xlane.xlu1 %6640  ;;  %v6892_v48 = vsel %vm5307_vm1, %v6889_v57, %v6790_v13  ;;  %v22078_v13 = vld [vmem:[%s22733_s6 + $0x1df] sm:$0xff]  ;;  %v24243_v57 = vmov 0.0|0.0  }
 0x70a   :  { %v6830_v47 = vpop.xlane.xlu0 %6829 }
 0x70b   :  { %v5238_v52 = vpop.xlane.xlu1 %5237  ;;  %v6895_v62 = vsel %vm5311_vm3, %v6892_v48, %v6830_v47  ;;  %v22094_v47 = vld [vmem:[%s22733_s6 + $0x1db] sm:$0xf]  ;;  %v7609_v48 = vld [vmem:[%s22733_s6 + $0x31] sm:$0xff] }
 0x70c   :  { %v5314_v1 = vsel %vm5311_vm3, %v5310_v25, %v5238_v52  ;;  %v22099_v52 = vld [vmem:[%s22733_s6 + $0x1e7] sm:$0xf]  ;;  %v7430_v25 = vld [vmem:[%s22733_s6 + $0xc] sm:$0x1f]  ;;  %v14642_v60 = vpack.c.bf16 %v7609_v48, %v7608_v28 }
 0x70e   :  { %v6870_v54 = vpop.xlane.xlu0 %6869 }
 0x70f   :  { %v5294_v44 = vpop.xlane.xlu1 %5293  ;;  %v6898_v18 = vsel %vm5315_vm4, %v6895_v62, %v6870_v54  ;;  %v7606_v54 = vld [vmem:[%s22733_s6 + $0x19] sm:$0xff]  ;;  %v12231_v62 = vld [vmem:[%s22733_s6 + $0x18] ss:$0 sm:$0xff] }
 0x710   :  { %v5318_v29 = vsel %vm5315_vm4, %v5314_v1, %v5294_v44  ;;  %v6901_v39 = vsel %vm5319_vm8, %v6898_v18, 0.0  ;;  %v7607_v1 = vld [vmem:[%s22733_s6 + $0x21] sm:$0xff] }
 0x711   :  { %v5324_v50 = vsel %vm5323_vm9, %v5318_v29, 0.0  ;;  %v6902_v12 = vadd.f32 %v6901_v39, %v6900_v37  ;;  %v14638_v44 = vpack.c.bf16 %v7607_v1, %v7606_v54  ;;  %v8479_v1 = vld [vmem:[%s22733_s6 + $0x88] sm:$0xff] }
 0x712   :  { %v5325_v5 = vadd.f32 %v5324_v50, %v5322_v8  ;;  %v6681_v42 = vpop.xlane.xlu0 %6680 }
 0x713   :  { %v6884_v45 = vsel %vm5295_vm13, %v6641_v2, %v6681_v42  ;;  %v7252_v2 = vld [vmem:[%s22733_s6 + $0x1] sm:$0x3f]  ;;  %vm7702_vm13 = vcmask 1043456  }
 0x714   :  { %v5326_v7 = vrot.slane %v5325_v5, 4 }
 0x716   :  { %v6721_v0 = vpop.xlane.xlu0 %6720  ;;  %v5327_v49 = vadd.f32 %v5326_v7, %v5325_v5 }
 0x717   :  { %v6887_v16 = vsel %vm5299_vm14, %v6884_v45, %v6721_v0 }
 0x718   :  { %v5328_v46 = vrot.slane %v5327_v49, 2 }
 0x71a   :  { %v6761_v40 = vpop.xlane.xlu0 %6760  ;;  %v5329_v35 = vadd.f32 %v5328_v46, %v5327_v49 }
 0x71b   :  { %v6890_v15 = vsel %vm5303_vm15, %v6887_v16, %v6761_v40  ;;  %vm22175_vm15 = vmpackc.low %vm7702_vm13, %vm15057_vm2  ;;  %vm7859_vm2 = vcmask 64512  }
 0x71c   :  { %v5330_v34 = vrot.slane %v5329_v35, 1 }
 0x71e   :  { %v6801_v21 = vpop.xlane.xlu0 %6800  ;;  %v5331_v11 = vadd.f32 %v5330_v34, %v5329_v35 }
 0x71f   :  { %v6893_v27 = vsel %vm5307_vm1, %v6890_v15, %v6801_v21  ;;  %v24244_v21 = vmov 0.0   ;;  %vm7698_vm1 = vcmask 97280  }
 0x722   :  { %v6841_v14 = vpop.xlane.xlu0 %6840 }
 0x723   :  { %v6896_v4 = vsel %vm5311_vm3, %v6893_v27, %v6841_v14  ;;  %v10992_v27 = vld [vmem:[%s22734_s7 + $0x2a] sm:$0x3f] }
 0x726   :  { %v6881_v23 = vpop.xlane.xlu0 %6880 }
 0x727   :  { %v6899_v24 = vsel %vm5315_vm4, %v6896_v4, %v6881_v23  ;;  %v22186_v4 = vld [vmem:[%s22733_s6 + $0x1eb] sm:$0x3f]  ;;  %v7777_v23 = vld [vmem:[%s22733_s6 + $0x3a] sm:$0x1f] }
 0x728   :  { %v6903_v38 = vsel %vm5323_vm9, %v6899_v24, 0.0  ;;  %v8013_v24 = vld [vmem:[%s22733_s6 + $0x4f] sm:$0xff] }
 0x729   :  { %v6904_v43 = vadd.f32 %v6903_v38, %v6902_v12  ;;  %v7858_v12 = vld [vmem:[%s22733_s6 + $0x3f] sm:$0xff]  ;;  %v8014_v38 = vld [vmem:[%s22733_s6 + $0x57] sm:$0xff] }
 0x72a   :  { %v14651_v46 = vpack.c.bf16 %v8014_v38, %v8013_v24 }
 0x72b   :  { %v6905_v9 = vrot.slane %v6904_v43, 4 }
 0x72d   :  { %v6906_v6 = vadd.f32 %v6905_v9, %v6904_v43  ;;  %v7934_v43 = vld [vmem:[%s22733_s6 + $0x47] sm:$0x7f] }
 0x72f   :  { %v6907_v51 = vrot.slane %v6906_v6, 2 }
 0x731   :  { %v6908_v8 = vadd.f32 %v6907_v51, %v6906_v6  ;;  %v8015_v6 = vld [vmem:[%s22733_s6 + $0x5f] sm:$0xff]  ;;  %v8016_v51 = vld [vmem:[%s22733_s6 + $0x67] sm:$0xff] }
 0x732   :  { %v14654_v34 = vpack.c.bf16 %v8016_v51, %v8015_v6  ;;  %v12278_v51 = vld [vmem:[%s22733_s6 + $0xc9] ss:$0 sm:$0xff] }
 0x733   :  { %v6909_v59 = vrot.slane %v6908_v8, 1 }
 0x735   :  { %v6910_v61 = vadd.f32 %v6909_v59, %v6908_v8  ;;  %v12248_v8 = vld [vmem:[%s22733_s6 + $0x4e] ss:$0 sm:$0xff] }
 0x737   :  { %v6912_v19 = vsel %vm6911_vm10, %v5331_v11, %v6910_v61 }
 0x738   :  { %v6917_v55 = vadd.f32 %v12216_v3, %v6912_v19  ;;  %v22244_v19 = vld [vmem:[%s22733_s6 + $0x1f1] sm:$0x3] }
 0x73a   :  { %v22045_v17 = vmax.f32 %v6917_v55, 0.0  ;;  %v12252_v55 = vld [vmem:[%s22733_s6 + $0x6f] ss:$0 sm:$0xff] }
 0x73c   :  { %13165 = vmatprep.subr.msk.mxu0 %vm4946_vm11, %v22045_v17  ;;  %13171 = vmatpush3.msk.msra.mxu1 %vm4946_vm11, %v22045_v17 }
 0x73d   :  { %13166 = vmatpush3.msk.msra.mxu0 %vm4946_vm11, %v22045_v17  ;;  %13173 = vmatmul.mubr.msk.f32.vlgmr.msra.gmra.mrb[50].mxu1 %vm5299_vm14, %v22050_v22 }
 0x73e   :  { %13168 = vmatmul.mubr.msk.f32.vlgmr.msra.gmra.mrb[46].mxu0 %vm5299_vm14, %v22055_v20  ;;  %13175 = vmatprep.subr.msk.mxu0 %vm1365_vm6, %v22060_v63 }
 0x73f   :  { %13176 = vmatpush3.msk.msra.mxu0 %vm1365_vm6, %v22060_v63  ;;  %13177 = vmatprep.mubr.msk.f32.mxu0 %vm5315_vm4, %v22069_v36 }
 0x740   :  { %13180 = vmatprep.subr.msk.mxu1 %vm1365_vm6, %v22060_v63  ;;  %13182 = vmatprep.mubr.msk.f32.mxu1 %vm5315_vm4, %v22078_v13 }
 0x741   :  { %13181 = vmatpush3.msk.msra.mxu1 %vm1365_vm6, %v22060_v63  ;;  %13185 = vmatprep.subr.msk.mxu0 %vm1365_vm6, %v7252_v2 }
 0x742   :  { %13178 = vmatmul.mubr.msk.f32.vlgmr.msra.gmra.mrb[48].mxu0 %vm5315_vm4, %v22094_v47  ;;  %13183 = vmatmul.mubr.msk.f32.vlgmr.msra.gmra.mrb[52].mxu1 %vm5315_vm4, %v22099_v52 }
 0x743   :  { %13186 = vmatpush3.msk.msra.mxu0 %vm1365_vm6, %v7252_v2  ;;  %13187 = vmatprep.mubr.msk.f32.mxu0 %vm5315_vm4, %v6919_v58 }
 0x744   :  { %13190 = vmatprep.subr.msk.mxu0 %vm1590_vm7, %v7343_v33  ;;  %14639 = vmatprep.subr.bf16.mxu1 %v14638_v44 }
 0x745   :  { %14641 = vmatpush3.bf16.msra.mxu1 %v14638_v44  ;;  %v8480_v44 = vld [vmem:[%s22733_s6 + $0x90] sm:$0xff] }
 0x746   :  { %13188 = vmatmul.mubr.msk.f32.vlgmr.msra.gmra.mrb[50].mxu0 %vm5315_vm4, %v6920_v10  ;;  %14643 = vmatprep.subr.bf16.mxu1 %v14642_v60  ;;  %v22258_v10 = vld [vmem:[%s22733_s6 + $0x1f3] sm:$0x3] }
 0x747   :  { %13191 = vmatpush3.msk.msra.mxu0 %vm1590_vm7, %v7343_v33  ;;  %v8247_v33 = vld [vmem:[%s22733_s6 + $0x70] sm:$0xff] }
 0x748   :  { %13195 = vmatprep.subr.msk.mxu0 %vm1590_vm7, %v7430_v25 }
 0x749   :  { %14645 = vmatpush3.bf16.msra.mxu1 %v14642_v60 }
 0x74a   :  { %14646 = vmatprep.subr.bf16.mxu1 %v24243_v57 }
 0x810   :  { %v22136_v29 = vpop.f32.mrb[50].mxu1 }
 0x811   :  { %v13169_v50 = vpop.f32.mrb[46].mxu0  ;;  %v13174_v5 = vpop.f32.mrb[51].mxu1 }
 0x812   :  { %v6999_v42 = vpop.f32.mrb[47].mxu0 }
 0x815   :  { %v13179_v0 = vpop.f32.mrb[48].mxu0  ;;  %v13184_v40 = vpop.f32.mrb[52].mxu1 }
 0x816   :  { %v7159_v31 = vpop.f32.mrb[49].mxu0  ;;  %v7242_v41 = vpop.f32.mrb[53].mxu1 }
 0x817   :  { %13192 = vmatprep.mubr.msk.f32.mxu0 %vm5311_vm3, %v7159_v31  ;;  %v8482_v31 = vld [vmem:[%s22733_s6 + $0xa0] sm:$0xff] }
 0x818   :  { %13193 = vmatmul.mubr.msk.f32.vlgmr.msra.gmra.mrb[50].mxu0 %vm5311_vm3, %v13179_v0  ;;  %v8401_v0 = vld [vmem:[%s22733_s6 + $0x80] sm:$0x7f] }
 0x819   :  { %13196 = vmatpush3.msk.msra.mxu0 %vm1590_vm7, %v7430_v25  ;;  %13197 = vmatprep.mubr.msk.f32.mxu0 %vm5311_vm3, %v7242_v41 }
 0x81a   :  { %13200 = vmatprep.subr.msk.mxu0 %vm1141_vm5, %v7517_v30 }
 0x820   :  { %13198 = vmatmul.mubr.msk.f32.vlgmr.msra.gmra.mrb[50].mxu0 %vm5311_vm3, %v13184_v40  ;;  %v8481_v40 = vld [vmem:[%s22733_s6 + $0x98] sm:$0xff] }
 0x821   :  { %13202 = vmatprep.mubr.msk.f32.mxu0 %vm5319_vm8, %v6999_v42  ;;  %13201 = vmatpush3.msk.msra.mxu0 %vm1141_vm5, %v7517_v30  ;;  %v14664_v41 = vpack.c.bf16 %v8482_v31, %v8481_v40  ;;  %v12259_v30 = vld [vmem:[%s22733_s6 + $0x87] ss:$0 sm:$0xff]  ;;  %v9596_v40 = vld [vmem:[%s22733_s6 + $0x114] sm:$0xff]  ;;  %v9597_v31 = vld [vmem:[%s22733_s6 + $0x11c] sm:$0xff] }
 0x822   :  { %14650 = vmatprep.subr.bf16.mxu0 %v24243_v57 }
 0x828   :  { %13203 = vmatmul.mubr.msk.f32.vlgmr.msra.gmra.mrb[50].mxu0 %vm5319_vm8, %v13169_v50  ;;  %v8326_v50 = vld [vmem:[%s22733_s6 + $0x78] sm:$0xff] }
 0x829   :  { %13246 = vmatprep.mubr.msk.f32.mxu0 %vm15055_vm0, %v24244_v21  ;;  %14652 = vmatpush3.bf16.msra.mxu0 %v14651_v46 }
 0x82a   :  { %14653 = vmatprep.subr.bf16.mxu0 %v24243_v57 }
 0x82d   :  { %14655 = vmatpush3.bf16.msra.mxu0 %v14654_v34 }
 0x82e   :  { %14656 = vmatprep.subr.bf16.mxu0 %v24243_v57 }
 0x8fb   :  { %v13204_v26 = vpop.f32.mrb[50].mxu0 }
 0x8fc   :  { %v14728_v7 = vadd.f32 %v13204_v26, %v12231_v62  ;;  %v7593_v18 = vpop.f32.mrb[51].mxu0 }
 0x8fd   :  { %v14729_v53 = vadd.f32 %v12231_v62, %v7593_v18  ;;  %v12263_v62 = vld [vmem:[%s22733_s6 + $0xa8] ss:$0 sm:$0xff] }
 0x8fe   :  { %v7605_v14 = vmax.f32 %v14728_v7, 0.0 }
 0x8ff   :  { %v7604_v45 = vmax.f32 %v14729_v53, 0.0  ;;  %v8860_v53 = vld [vmem:[%s22733_s6 + $0xa9] sm:$0xff] }
 0x901   :  { %13213 = vmatprep.mubr.msk.f32.mxu1 %vm7615_vm12, %v7604_v45  ;;  %v8947_v45 = vld [vmem:[%s22733_s6 + $0xb1] sm:$0xff] }
 0x902   :  { %13214 = vmatmul.mubr.msk.f32.vlgmr.msra.gmra.mrb[54].mxu1 %vm7615_vm12, %v7605_v14  ;;  %v9031_v14 = vld [vmem:[%s22733_s6 + $0xb9] sm:$0xff] }
 0x903   :  { %13220 = vmatprep.mubr.msk.f32.mxu1 %vm15055_vm0, %v24244_v21 }
 0x9d5   :  { %v13215_v16 = vpop.f32.mrb[54].mxu1 }
 0x9d6   :  { %v22170_v39 = vadd.f32 %v13215_v16, %v12241_v56  ;;  %v7688_v15 = vpop.f32.mrb[55].mxu1  ;;  %v9202_v16 = vld [vmem:[%s22733_s6 + $0xd2] sm:$0xff] }
 0x9d7   :  { %v22172_v49 = vadd.f32 %v12241_v56, %v7688_v15  ;;  %v9201_v56 = vld [vmem:[%s22733_s6 + $0xca] sm:$0xff] }
 0x9d9   :  { %v14647_v37 = vpack.c.bf16 %v22170_v39, %v22172_v49 }
 0x9db   :  { %14649 = vmatpush3.bf16.msk.msra.mxu1 %vm22175_vm15, %v14647_v37 }
 0x9dc   :  { %13223 = vmatprep.subr.mxu1 %v24244_v21 }
 0x9de   :  { %13221 = vmatmul.mubr.msk.f32.vlgmr.msra.gmra.mrb[56].mxu1 %vm7698_vm1, %v22186_v4 }
 0x9df   :  { %13224 = vmatpush3.msk.msra.mxu1 %vm1590_vm7, %v7777_v23  ;;  %13225 = vmatprep.mubr.msk.f32.mxu1 %vm15055_vm0, %v24244_v21  ;;  %vm11889_vm7 = vcmask 130048  }
 0x9e0   :  { %13228 = vmatprep.subr.mxu1 %v24244_v21 }
 0x9e2   :  { %13226 = vmatmul.mubr.msk.f32.vlgmr.msra.gmra.mrb[58].mxu1 %vm5311_vm3, %v22060_v63 }
 0x9e3   :  { %13230 = vmatprep.mubr.msk.f32.mxu1 %vm15055_vm0, %v24244_v21  ;;  %13229 = vmatpush3.msra.mxu1 %v7858_v12 }
 0x9e4   :  { %13233 = vmatprep.subr.mxu1 %v24244_v21 }
 0xab1   :  { %v7772_v9 = vpop.f32.mrb[56].mxu1 }
 0xab2   :  { %13231 = vmatmul.mubr.msk.f32.vlgmr.msra.gmra.mrb[58].mxu1 %vm7859_vm2, %v7772_v9  ;;  %v13222_v35 = vpop.f32.mrb[57].mxu1  ;;  %v9203_v9 = vld [vmem:[%s22733_s6 + $0xda] sm:$0xff] }
 0xab3   :  { %13234 = vmatpush3.msk.msra.mxu1 %vm1141_vm5, %v7934_v43  ;;  %13235 = vmatprep.mubr.msk.f32.mxu1 %vm15055_vm0, %v24244_v21  ;;  %v9115_v43 = vld [vmem:[%s22733_s6 + $0xc1] sm:$0xff] }
 0xab4   :  { %13256 = vmatprep.subr.mxu1 %v24244_v21  ;;  %v9204_v35 = vld [vmem:[%s22733_s6 + $0xe2] sm:$0xff] }
 0xab5   :  { %v14670_v6 = vpack.c.bf16 %v9204_v35, %v9203_v9 }
 0xaba   :  { %13236 = vmatmul.mubr.msk.f32.vlgmr.msra.gmra.mrb[58].mxu1 %vm5319_vm8, %v22136_v29  ;;  %v14661_v29 = vpack.c.bf16 %v8480_v44, %v8479_v1  ;;  %v9365_v1 = vld [vmem:[%s22733_s6 + $0xeb] sm:$0xff]  ;;  %v9443_v44 = vld [vmem:[%s22733_s6 + $0xf3] sm:$0xff] }
 0xabb   :  { %13258 = vmatprep.mubr.msk.f32.mxu1 %vm15055_vm0, %v24244_v21 }
 0xb8d   :  { %v8007_v59 = vpop.f32.mrb[58].mxu1 }
 0xb8e   :  { %v14730_v11 = vadd.f32 %v12248_v8, %v8007_v59  ;;  %v13237_v61 = vpop.f32.mrb[59].mxu1 }
 0xb90   :  { %v8012_v3 = vmax.f32 %v14730_v11, 0.0 }
 0xb92   :  { %13247 = vmatmul.mubr.msk.f32.vlgmr.msra.gmra.mrb[52].mxu0 %vm7615_vm12, %v8012_v3 }
 0xb93   :  { %14659 = vmatpush3.bf16.msk.msra.mxu0 %vm22175_vm15, %v14647_v37  ;;  %13253 = vmatprep.mubr.msk.f32.mxu0 %vm15055_vm0, %v24244_v21 }
 0xb94   :  { %13261 = vmatprep.subr.mxu0 %v24244_v21 }
 0xb96   :  { %13254 = vmatmul.mubr.msk.f32.vlgmr.msra.gmra.mrb[54].mxu0 %vm7698_vm1, %v22244_v19 }
 0xb97   :  { %13263 = vmatprep.mubr.msk.f32.mxu0 %vm15055_vm0, %v24244_v21  ;;  %13262 = vmatpush3.msra.mxu0 %v8247_v33 }
 0xb98   :  { %13266 = vmatprep.subr.mxu0 %v24244_v21 }
 0xc65   :  { %v8091_v63 = vpop.f32.mrb[52].mxu0 }
 0xc66   :  { %v22253_v2 = vadd.f32 %v12252_v55, %v8091_v63  ;;  %v13248_v58 = vpop.f32.mrb[53].mxu0  ;;  %v12285_v55 = vld [vmem:[%s22733_s6 + $0xea] ss:$0 sm:$0xff] }
 0xc68   :  { %13257 = vmatpush3.msk.msra.mxu1 %vm1365_vm6, %v22253_v2 }
 0xc69   :  { %13259 = vmatmul.mubr.msk.f32.vlgmr.msra.gmra.mrb[60].mxu1 %vm5315_vm4, %v22258_v10  ;;  %14660 = vmatprep.subr.bf16.mxu1 %v24243_v57  ;;  %v8165_v25 = vpop.f32.mrb[54].mxu0 }
 0xc6a   :  { %13284 = vmatprep.mubr.msk.f32.mxu1 %vm15055_vm0, %v24244_v21  ;;  %v13255_v54 = vpop.f32.mrb[55].mxu0  ;;  %14662 = vmatpush3.bf16.msra.mxu1 %v14661_v29  ;;  %v9594_v29 = vld [vmem:[%s22733_s6 + $0x104] sm:$0xff] }
 0xc6b   :  { %14663 = vmatprep.subr.bf16.mxu1 %v24243_v57 }
 0xc6e   :  { %14665 = vmatpush3.bf16.msra.mxu1 %v14664_v41  ;;  %v14682_v41 = vpack.c.bf16 %v9597_v31, %v9596_v40 }
 0xd3c   :  { %v8242_v5 = vpop.f32.mrb[60].mxu1 }
 0xd3d   :  { %13264 = vmatmul.mubr.msk.f32.vlgmr.msra.gmra.mrb[56].mxu0 %vm7859_vm2, %v8242_v5  ;;  %v13260_v42 = vpop.f32.mrb[61].mxu1 }
 0xd3e   :  { %13267 = vmatpush3.msra.mxu0 %v8326_v50  ;;  %13268 = vmatprep.mubr.msk.f32.mxu0 %vm15055_vm0, %v24244_v21  ;;  %v9595_v50 = vld [vmem:[%s22733_s6 + $0x10c] sm:$0xff] }
 0xd3f   :  { %13271 = vmatprep.subr.mxu0 %v24244_v21  ;;  %v14679_v5 = vpack.c.bf16 %v9595_v50, %v9594_v29 }
 0xd45   :  { %13269 = vmatmul.mubr.msk.f32.vlgmr.msra.gmra.mrb[56].mxu0 %vm7859_vm2, %v8165_v25 }
 0xd46   :  { %13272 = vmatpush3.msk.msra.mxu0 %vm1141_vm5, %v8401_v0  ;;  %13273 = vmatprep.mubr.msk.f32.mxu0 %vm15055_vm0, %v24244_v21  ;;  %vm11891_vm5 = vcmask 125952  }
 0xd47   :  { %13292 = vmatprep.subr.mxu0 %v24244_v21 }
 0xd4d   :  { %13274 = vmatmul.mubr.msk.f32.vlgmr.msra.gmra.mrb[56].mxu0 %vm5319_vm8, %v22045_v17 }
 0xd4e   :  { %13294 = vmatprep.mubr.msk.f32.mxu0 %vm15055_vm0, %v24244_v21 }
 0xe20   :  { %v8473_v28 = vpop.f32.mrb[56].mxu0 }
 0xe21   :  { %v14731_v48 = vadd.f32 %v12259_v30, %v8473_v28  ;;  %v13275_v17 = vpop.f32.mrb[57].mxu0  ;;  %v12291_v30 = vld [vmem:[%s22733_s6 + $0x103] ss:$0 sm:$0xff] }
 0xe23   :  { %v8478_v60 = vmax.f32 %v14731_v48, 0.0 }
 0xe25   :  { %13285 = vmatmul.mubr.msk.f32.vlgmr.msra.gmra.mrb[62].mxu1 %vm7615_vm12, %v8478_v60 }
 0xe26   :  { %13289 = vmatprep.mubr.msk.f32.mxu1 %vm5299_vm14, %v22010_v32 }
 0xef8   :  { %v8557_v26 = vpop.f32.mrb[62].mxu1 }
 0xef9   :  { %v22312_v7 = vadd.f32 %v12263_v62, %v8557_v26  ;;  %v13286_v18 = vpop.f32.mrb[63].mxu1  ;;  %v12294_v62 = vld [vmem:[%s22733_s6 + $0x124] ss:$0 sm:$0xff] }
 0xefb   :  { %13287 = vmatprep.subr.msk.mxu1 %vm4946_vm11, %v22312_v7  ;;  %13293 = vmatpush3.msk.msra.mxu0 %vm4946_vm11, %v22312_v7 }
 0xefc   :  { %13288 = vmatpush3.msk.msra.mxu1 %vm4946_vm11, %v22312_v7  ;;  %13302 = vmatprep.subr.msk.mxu0 %vm1365_vm6, %v22253_v2 }
 0xefd   :  { %13290 = vmatmul.mubr.msk.f32.vlgmr.msra.gmra.mrb[64].mxu1 %vm5299_vm14, %v22055_v20  ;;  %13295 = vmatmul.mubr.msk.f32.vlgmr.msra.gmra.mrb[58].mxu0 %vm5299_vm14, %v22050_v22 }
 0xefe   :  { %13297 = vmatprep.subr.msk.mxu1 %vm1365_vm6, %v22253_v2  ;;  %13303 = vmatpush3.msk.msra.mxu0 %vm1365_vm6, %v22253_v2 }
 0xeff   :  { %13298 = vmatpush3.msk.msra.mxu1 %vm1365_vm6, %v22253_v2  ;;  %13299 = vmatprep.mubr.msk.f32.mxu1 %vm5315_vm4, %v22069_v36 }
 0xf00   :  { %13307 = vmatprep.subr.mxu1 %v8860_v53  ;;  %13304 = vmatprep.mubr.msk.f32.mxu0 %vm5315_vm4, %v22078_v13 }
 0xf01   :  { %13300 = vmatmul.mubr.msk.f32.vlgmr.msra.gmra.mrb[66].mxu1 %vm5315_vm4, %v22094_v47  ;;  %13305 = vmatmul.mubr.msk.f32.vlgmr.msra.gmra.mrb[60].mxu0 %vm5315_vm4, %v22099_v52 }
 0xf02   :  { %13309 = vmatprep.mubr.msk.f32.mxu1 %vm7859_vm2, %v22172_v49  ;;  %13308 = vmatpush3.msra.mxu1 %v8860_v53 }
 0xf03   :  { %13312 = vmatprep.subr.mxu1 %v8947_v45 }
 0xf05   :  { %13310 = vmatmul.mubr.msk.f32.vlgmr.msra.gmra.mrb[68].mxu1 %vm7859_vm2, %v22170_v39  ;;  %v14666_v39 = vpack.c.bf16 %v9202_v16, %v9201_v56  ;;  %v10049_v16 = vld [vmem:[%s22733_s6 + $0x13e] sm:$0xff] }
 0xf06   :  { %13313 = vmatpush3.msra.mxu1 %v8947_v45  ;;  %v9820_v45 = vld [vmem:[%s22733_s6 + $0x125] sm:$0xff] }
 0xf07   :  { %13317 = vmatprep.subr.mxu1 %v9031_v14  ;;  %14667 = vmatprep.subr.bf16.mxu0 %v14666_v39 }
 0xf08   :  { %14669 = vmatpush3.bf16.msra.mxu0 %v14666_v39  ;;  %v10050_v39 = vld [vmem:[%s22733_s6 + $0x146] sm:$0xff] }
 0xf09   :  { %14671 = vmatprep.subr.bf16.mxu0 %v14670_v6 }
 0xf0c   :  { %14673 = vmatpush3.bf16.msra.mxu0 %v14670_v6 }
 0xf0d   :  { %14674 = vmatprep.subr.bf16.mxu0 %v24243_v57 }
 0xfd0   :  { %v13291_v15 = vpop.f32.mrb[64].mxu1  ;;  %v22359_v49 = vpop.f32.mrb[58].mxu0 }
 0xfd1   :  { %v8630_v37 = vpop.f32.mrb[65].mxu1  ;;  %v13296_v23 = vpop.f32.mrb[59].mxu0 }
 0xfd4   :  { %v13301_v12 = vpop.f32.mrb[66].mxu1  ;;  %v13306_v24 = vpop.f32.mrb[60].mxu0 }
 0xfd5   :  { %v8775_v38 = vpop.f32.mrb[67].mxu1  ;;  %v8850_v46 = vpop.f32.mrb[61].mxu0 }
 0xfd6   :  { %13314 = vmatprep.mubr.msk.f32.mxu1 %vm7859_vm2, %v8775_v38  ;;  %v10052_v38 = vld [vmem:[%s22733_s6 + $0x156] sm:$0xff] }
 0xfd7   :  { %13315 = vmatmul.mubr.msk.f32.vlgmr.msra.gmra.mrb[68].mxu1 %vm7859_vm2, %v13301_v12  ;;  %v9974_v12 = vld [vmem:[%s22733_s6 + $0x135] sm:$0xff] }
 0xfd8   :  { %13318 = vmatpush3.msra.mxu1 %v9031_v14  ;;  %13319 = vmatprep.mubr.msk.f32.mxu1 %vm7859_vm2, %v8850_v46 }
 0xfd9   :  { %13322 = vmatprep.subr.mxu1 %v9115_v43 }
 0xfdf   :  { %13320 = vmatmul.mubr.msk.f32.vlgmr.msra.gmra.mrb[68].mxu1 %vm7859_vm2, %v13306_v24  ;;  %v10051_v24 = vld [vmem:[%s22733_s6 + $0x14e] sm:$0xff] }
 0xfe0   :  { %13324 = vmatprep.mubr.msk.f32.mxu1 %vm7859_vm2, %v8630_v37  ;;  %13323 = vmatpush3.msra.mxu1 %v9115_v43  ;;  %v14692_v46 = vpack.c.bf16 %v10052_v38, %v10051_v24  ;;  %v12301_v43 = vld [vmem:[%s22733_s6 + $0x13d] ss:$0 sm:$0xff] }
 0xfe1   :  { %14678 = vmatprep.subr.bf16.mxu1 %v24243_v57 }
 0xfe7   :  { %13325 = vmatmul.mubr.msk.f32.vlgmr.msra.gmra.mrb[68].mxu1 %vm7859_vm2, %v13291_v15  ;;  %v14689_v15 = vpack.c.bf16 %v10050_v39, %v10049_v16 }
 0xfe8   :  { %13368 = vmatprep.mubr.msk.f32.mxu1 %vm15055_vm0, %v24244_v21  ;;  %14680 = vmatpush3.bf16.msra.mxu1 %v14679_v5 }
 0xfe9   :  { %14681 = vmatprep.subr.bf16.mxu1 %v24243_v57 }
 0xfec   :  { %14683 = vmatpush3.bf16.msra.mxu1 %v14682_v41 }
 0xfed   :  { %14684 = vmatprep.subr.bf16.mxu1 %v24243_v57 }
0x10ba   :  { %v13326_v34 = vpop.f32.mrb[68].mxu1 }
0x10bb   :  { %v14732_v8 = vadd.f32 %v13326_v34, %v12278_v51  ;;  %v9188_v59 = vpop.f32.mrb[69].mxu1 }
0x10bc   :  { %v14733_v11 = vadd.f32 %v12278_v51, %v9188_v59  ;;  %v12304_v51 = vld [vmem:[%s22733_s6 + $0x15e] ss:$0 sm:$0xff] }
0x10bd   :  { %v9200_v3 = vmax.f32 %v14732_v8, 0.0 }
0x10be   :  { %v9199_v61 = vmax.f32 %v14733_v11, 0.0 }
0x10c0   :  { %13335 = vmatprep.mubr.msk.f32.mxu0 %vm7615_vm12, %v9199_v61 }
0x10c1   :  { %13336 = vmatmul.mubr.msk.f32.vlgmr.msra.gmra.mrb[62].mxu0 %vm7615_vm12, %v9200_v3 }
0x10c2   :  { %13342 = vmatprep.mubr.msk.f32.mxu0 %vm15055_vm0, %v24244_v21 }
0x1194   :  { %v13337_v63 = vpop.f32.mrb[62].mxu0 }
0x1195   :  { %v22390_v58 = vadd.f32 %v13337_v63, %v12285_v55  ;;  %v9282_v33 = vpop.f32.mrb[63].mxu0 }
0x1196   :  { %v22392_v25 = vadd.f32 %v12285_v55, %v9282_v33 }
0x1198   :  { %v14675_v54 = vpack.c.bf16 %v22390_v58, %v22392_v25 }
0x119a   :  { %14677 = vmatpush3.bf16.msk.msra.mxu0 %vm22175_vm15, %v14675_v54 }
0x119b   :  { %13345 = vmatprep.subr.mxu0 %v24244_v21 }
0x119d   :  { %13343 = vmatmul.mubr.msk.f32.vlgmr.msra.gmra.mrb[64].mxu0 %vm7698_vm1, %v22186_v4 }
0x119e   :  { %13346 = vmatpush3.msra.mxu0 %v9365_v1  ;;  %13347 = vmatprep.mubr.msk.f32.mxu0 %vm15055_vm0, %v24244_v21 }
0x119f   :  { %13350 = vmatprep.subr.mxu0 %v24244_v21 }
0x11a1   :  { %13348 = vmatmul.mubr.msk.f32.vlgmr.msra.gmra.mrb[66].mxu0 %vm7859_vm2, %v22253_v2  ;;  %v9518_v2 = vld [vmem:[%s22733_s6 + $0xfb] sm:$0xff] }
0x11a2   :  { %13352 = vmatprep.mubr.msk.f32.mxu0 %vm15055_vm0, %v24244_v21  ;;  %13351 = vmatpush3.msra.mxu0 %v9443_v44 }
0x11a3   :  { %13355 = vmatprep.subr.mxu0 %v24244_v21 }
0x1270   :  { %v9360_v42 = vpop.f32.mrb[64].mxu0 }
0x1271   :  { %13353 = vmatmul.mubr.msk.f32.vlgmr.msra.gmra.mrb[66].mxu0 %vm7859_vm2, %v9360_v42  ;;  %v13344_v0 = vpop.f32.mrb[65].mxu0  ;;  %v10432_v42 = vld [vmem:[%s22734_s7 + $0x26] sm:$0xf] }
0x1272   :  { %13356 = vmatpush3.msra.mxu0 %v9518_v2  ;;  %13357 = vmatprep.mubr.msk.f32.mxu0 %vm15055_vm0, %v24244_v21 }
0x1273   :  { %13378 = vmatprep.subr.mxu0 %v24244_v21 }
0x1279   :  { %13358 = vmatmul.mubr.msk.f32.vlgmr.msra.gmra.mrb[66].mxu0 %vm7859_vm2, %v22359_v49  ;;  %v9899_v49 = vld [vmem:[%s22733_s6 + $0x12d] sm:$0xff] }
0x127a   :  { %13380 = vmatprep.mubr.msk.f32.mxu0 %vm15055_vm0, %v24244_v21 }
0x134c   :  { %v9588_v28 = vpop.f32.mrb[66].mxu0 }
0x134d   :  { %v14734_v48 = vadd.f32 %v12291_v30, %v9588_v28  ;;  %v13359_v17 = vpop.f32.mrb[67].mxu0 }
0x134f   :  { %v9593_v60 = vmax.f32 %v14734_v48, 0.0 }
0x1351   :  { %13369 = vmatmul.mubr.msk.f32.vlgmr.msra.gmra.mrb[70].mxu1 %vm7615_vm12, %v9593_v60 }
0x1352   :  { %14687 = vmatpush3.bf16.msk.msra.mxu1 %vm22175_vm15, %v14675_v54  ;;  %13375 = vmatprep.mubr.msk.f32.mxu1 %vm15055_vm0, %v24244_v21  ;;  %v12319_v54 = vld [vmem:[%s22733_s6 + $0x187] ss:$0 sm:$0xff] }
0x1353   :  { %13383 = vmatprep.subr.mxu1 %v24244_v21 }
0x1355   :  { %13376 = vmatmul.mubr.msk.f32.vlgmr.msra.gmra.mrb[72].mxu1 %vm7698_vm1, %v22244_v19 }
0x1356   :  { %13385 = vmatprep.mubr.msk.f32.mxu1 %vm15055_vm0, %v24244_v21  ;;  %13384 = vmatpush3.msra.mxu1 %v9820_v45 }
0x1357   :  { %13388 = vmatprep.subr.mxu1 %v24244_v21 }
0x1424   :  { %v9672_v26 = vpop.f32.mrb[70].mxu1 }
0x1425   :  { %v22456_v18 = vadd.f32 %v12294_v62, %v9672_v26  ;;  %v13370_v53 = vpop.f32.mrb[71].mxu1 }
0x1427   :  { %13379 = vmatpush3.msk.msra.mxu0 %vm1365_vm6, %v22456_v18 }
0x1428   :  { %13381 = vmatmul.mubr.msk.f32.vlgmr.msra.gmra.mrb[68].mxu0 %vm5315_vm4, %v22258_v10  ;;  %14688 = vmatprep.subr.bf16.mxu0 %v24243_v57  ;;  %v9742_v14 = vpop.f32.mrb[72].mxu1 }
0x1429   :  { %13406 = vmatprep.mubr.msk.f32.mxu0 %vm15055_vm0, %v24244_v21  ;;  %v13377_v56 = vpop.f32.mrb[73].mxu1  ;;  %14690 = vmatpush3.bf16.msra.mxu0 %v14689_v15 }
0x142a   :  { %14691 = vmatprep.subr.bf16.mxu0 %v24243_v57 }
0x142d   :  { %14693 = vmatpush3.bf16.msra.mxu0 %v14692_v46 }
0x14fb   :  { %v9815_v37 = vpop.f32.mrb[68].mxu0 }
0x14fc   :  { %13386 = vmatmul.mubr.msk.f32.vlgmr.msra.gmra.mrb[74].mxu1 %vm7859_vm2, %v9815_v37  ;;  %v13382_v23 = vpop.f32.mrb[69].mxu0 }
0x14fd   :  { %13389 = vmatpush3.msra.mxu1 %v9899_v49  ;;  %13390 = vmatprep.mubr.msk.f32.mxu1 %vm15055_vm0, %v24244_v21 }
0x14fe   :  { %13393 = vmatprep.subr.mxu1 %v24244_v21 }
0x1504   :  { %13391 = vmatmul.mubr.msk.f32.vlgmr.msra.gmra.mrb[74].mxu1 %vm7859_vm2, %v9742_v14 }
0x1505   :  { %13394 = vmatpush3.msra.mxu1 %v9974_v12  ;;  %13395 = vmatprep.mubr.msk.f32.mxu1 %vm15055_vm0, %v24244_v21 }
0x1506   :  { %13414 = vmatprep.subr.mxu1 %v24244_v21 }
0x150c   :  { %13396 = vmatmul.mubr.msk.f32.vlgmr.msra.gmra.mrb[74].mxu1 %vm7859_vm2, %v22312_v7 }
0x150d   :  { %13416 = vmatprep.mubr.msk.f32.mxu1 %vm15055_vm0, %v24244_v21 }
0x15df   :  { %v10043_v9 = vpop.f32.mrb[74].mxu1 }
0x15e0   :  { %v14735_v35 = vadd.f32 %v12301_v43, %v10043_v9  ;;  %v13397_v7 = vpop.f32.mrb[75].mxu1 }
0x15e2   :  { %v10048_v6 = vmax.f32 %v14735_v35, 0.0 }
0x15e4   :  { %13407 = vmatmul.mubr.msk.f32.vlgmr.msra.gmra.mrb[70].mxu0 %vm7615_vm12, %v10048_v6 }
0x15e5   :  { %13411 = vmatprep.mubr.msk.f32.mxu0 %vm5299_vm14, %v22010_v32  ;;  %v10434_v32 = vld [vmem:[%s22733_s6 + $0x17f] sm:$0xff] }
0x16b7   :  { %v10127_v34 = vpop.f32.mrb[70].mxu0 }
0x16b8   :  { %v22509_v8 = vadd.f32 %v12304_v51, %v10127_v34  ;;  %v13408_v59 = vpop.f32.mrb[71].mxu0  ;;  %v10995_v34 = vld [vmem:[%s22733_s6 + $0x1a0] sm:$0xff] }
0x16b9   :  { %v11074_v59 = vld [vmem:[%s22733_s6 + $0x188] sm:$0xff] }
0x16ba   :  { %13409 = vmatprep.subr.msk.mxu0 %vm4946_vm11, %v22509_v8  ;;  %13415 = vmatpush3.msk.msra.mxu1 %vm4946_vm11, %v22509_v8 }
0x16bb   :  { %13410 = vmatpush3.msk.msra.mxu0 %vm4946_vm11, %v22509_v8  ;;  %13424 = vmatprep.subr.msk.mxu1 %vm1365_vm6, %v22456_v18  ;;  %vm11895_vm11 = vcmask 128000  }
0x16bc   :  { %13412 = vmatmul.mubr.msk.f32.vlgmr.msra.gmra.mrb[72].mxu0 %vm5299_vm14, %v22055_v20  ;;  %13417 = vmatmul.mubr.msk.f32.vlgmr.msra.gmra.mrb[76].mxu1 %vm5299_vm14, %v22050_v22  ;;  %v10429_v22 = vld [vmem:[%s22734_s7 + $0x12] sm:$0xff]  ;;  %v10522_v20 = vld [vmem:[%s22733_s6 + $0x15f] sm:$0xff] }
0x16bd   :  { %13419 = vmatprep.subr.msk.mxu0 %vm1365_vm6, %v22456_v18  ;;  %13425 = vmatpush3.msk.msra.mxu1 %vm1365_vm6, %v22456_v18 }
0x16be   :  { %13420 = vmatpush3.msk.msra.mxu0 %vm1365_vm6, %v22456_v18  ;;  %13421 = vmatprep.mubr.msk.f32.mxu0 %vm5315_vm4, %v22069_v36  ;;  %v10430_v36 = vld [vmem:[%s22734_s7 + $0x1a] sm:$0xf] }
0x16bf   :  { %13429 = vmatprep.subr.mxu0 %v10434_v32  ;;  %13426 = vmatprep.mubr.msk.f32.mxu1 %vm5315_vm4, %v22078_v13  ;;  %v10605_v13 = vld [vmem:[%s22733_s6 + $0x167] sm:$0xff] }
0x16c0   :  { %13422 = vmatmul.mubr.msk.f32.vlgmr.msra.gmra.mrb[74].mxu0 %vm5315_vm4, %v22094_v47  ;;  %13427 = vmatmul.mubr.msk.f32.vlgmr.msra.gmra.mrb[78].mxu1 %vm5315_vm4, %v22099_v52  ;;  %v10689_v47 = vld [vmem:[%s22733_s6 + $0x16f] sm:$0xff] }
0x16c1   :  { %13430 = vmatpush3.msra.mxu0 %v10434_v32  ;;  %13431 = vmatprep.mubr.msk.f32.mxu0 %vm7859_vm2, %v10429_v22 }
0x16c2   :  { %13434 = vmatprep.subr.mxu0 %v10522_v20  ;;  %14694 = vmatprep.subr.bf16.mxu1 %v24243_v57 }
0x16c3   :  { %13458 = vmatprep.mubr.msk.f32.mxu1 %vm15055_vm0, %v24244_v21 }
0x16c4   :  { %13432 = vmatmul.mubr.msk.f32.vlgmr.msra.gmra.mrb[76].mxu0 %vm7859_vm2, %v10430_v36 }
0x16c5   :  { %13436 = vmatprep.mubr.msk.f32.mxu0 %vm7859_vm2, %v22392_v25  ;;  %13435 = vmatpush3.msra.mxu0 %v10522_v20  ;;  %v10773_v25 = vld [vmem:[%s22733_s6 + $0x177] sm:$0xff]  ;;  %v12333_v20 = vld [vmem:[%s22733_s6 + $0x1a8] ss:$0 sm:$0xff] }
0x16c6   :  { %13439 = vmatprep.subr.mxu0 %v10605_v13 }
0x16cc   :  { %13437 = vmatmul.mubr.msk.f32.vlgmr.msra.gmra.mrb[76].mxu0 %vm7859_vm2, %v22390_v58 }
0x16cd   :  { %13440 = vmatpush3.msra.mxu0 %v10605_v13 }
0x16ce   :  { %13444 = vmatprep.subr.mxu0 %v10689_v47 }
0x178f   :  { %v13413_v52 = vpop.f32.mrb[72].mxu0  ;;  %v22564_v11 = vpop.f32.mrb[76].mxu1 }
0x1790   :  { %v10200_v61 = vpop.f32.mrb[73].mxu0  ;;  %v13418_v3 = vpop.f32.mrb[77].mxu1 }
0x1793   :  { %v13423_v55 = vpop.f32.mrb[74].mxu0  ;;  %v13428_v63 = vpop.f32.mrb[78].mxu1 }
0x1794   :  { %v10345_v33 = vpop.f32.mrb[75].mxu0  ;;  %v10420_v58 = vpop.f32.mrb[79].mxu1 }
0x1795   :  { %13441 = vmatprep.mubr.msk.f32.mxu0 %vm7859_vm2, %v10345_v33 }
0x1796   :  { %13442 = vmatmul.mubr.msk.f32.vlgmr.msra.gmra.mrb[76].mxu0 %vm7859_vm2, %v13423_v55 }
0x1797   :  { %13445 = vmatpush3.msra.mxu0 %v10689_v47  ;;  %13446 = vmatprep.mubr.msk.f32.mxu0 %vm7859_vm2, %v10420_v58 }
0x1798   :  { %13449 = vmatprep.subr.mxu0 %v10773_v25 }
0x179e   :  { %13447 = vmatmul.mubr.msk.f32.vlgmr.msra.gmra.mrb[76].mxu0 %vm7859_vm2, %v13428_v63 }
0x179f   :  { %13451 = vmatprep.mubr.msk.f32.mxu0 %vm7859_vm2, %v10200_v61  ;;  %13450 = vmatpush3.msra.mxu0 %v10773_v25 }
0x17a0   :  { %14698 = vmatprep.subr.bf16.mxu0 %v24243_v57  ;;  %v10431_v57 = vld [vmem:[%s22734_s7 + $0x1e] sm:$0xff] }
0x17a6   :  { %13452 = vmatmul.mubr.msk.f32.vlgmr.msra.gmra.mrb[76].mxu0 %vm7859_vm2, %v13413_v52 }
0x17a7   :  { %13485 = vmatprep.mubr.msk.f32.mxu0 %vm15055_vm0, %v24244_v21 }
0x1879   :  { %v13453_v1 = vpop.f32.mrb[76].mxu0 }
0x187a   :  { %v14736_v44 = vadd.f32 %v13453_v1, %v12319_v54  ;;  %v10846_v29 = vpop.f32.mrb[77].mxu0 }
0x187b   :  { %v14737_v50 = vadd.f32 %v12319_v54, %v10846_v29  ;;  %v11474_v29 = vld [vmem:[%s22733_s6 + $0x1c1] sm:$0xff] }
0x187c   :  { %14941 = vtanh.f32 %v14736_v44  ;;  %v12329_v0 = vmul.f32 -1.442695, %v14736_v44 }
0x187d   :  { %14943 = vtanh.f32 %v14737_v50  ;;  %v12328_v40 = vmul.f32 -1.442695, %v14737_v50  ;;  %v11471_v50 = vld [vmem:[%s22734_s7 + $0x36] sm:$0x3] }
0x187e   :  { %14945 = vpow2.f32 %v12329_v0  ;;  %v11553_v0 = vld [vmem:[%s22733_s6 + $0x1a9] sm:$0xff] }
0x187f   :  { %14947 = vpow2.f32 %v12328_v40 }
0x1886   :  { %v14942_v5 = vpop.eup %14941 }
0x1887   :  { %v14944_v2 = vpop.eup %14943  ;;  %10885 = vrot.lane.b32.xlu0 %v14942_v5, %s15058_s2 }
0x1888   :  { %10883 = vrot.lane.b32.xlu1 %v14944_v2, %s15058_s2  ;;  %v14946_v31 = vpop.eup %14945 }
0x1889   :  { %v14948_v41 = vpop.eup %14947  ;;  %v10864_v30 = vadd.f32 1.0, %v14946_v31 }
0x188a   :  { %v10863_v28 = vadd.f32 1.0, %v14948_v41  ;;  %v11472_v41 = vld [vmem:[%s22734_s7 + $0x38] sm:$0x3] }
0x188b   :  { %14949 = vrcp.f32 %v10864_v30 }
0x188c   :  { %10873 = vrot.lane.b32.xlu1 %v10431_v57, %s15060_s25  ;;  %14951 = vrcp.f32 %v10863_v28 }
0x1890   :  { %10875 = vrot.lane.b32.xlu1 %v10432_v42, %s15060_s25 }
0x1895   :  { %v14950_v48 = vpop.eup %14949 }
0x1896   :  { %v14952_v60 = vpop.eup %14951 }
0x18f9   :  { %v10886_v17 = vpop.permute.xlu0 %10885 }
0x18fa   :  { %v10890_v62 = vmul.f32 %v14950_v48, %v10886_v17  ;;  %v10884_v26 = vpop.permute.xlu1 %10883  ;;  %v12343_v17 = vld [vmem:[%s22733_s6 + $0x1c9] ss:$0 sm:$0xff] }
0x18fb   :  { %v10889_v53 = vmul.f32 %v14952_v60, %v10884_v26 }
0x18fc   :  { %10895 = vrot.lane.b32.xlu1 %v10890_v62, %s15060_s25 }
0x18fd   :  { %10893 = vrot.lane.b32.xlu0 %v10889_v53, %s15060_s25 }
0x18fe   :  { %v10874_v45 = vpop.permute.xlu1 %10873 }
0x18ff   :  { %v10879_v16 = vmul.f32 %v14952_v60, %v10874_v45 }
0x1902   :  { %v10876_v14 = vpop.permute.xlu1 %10875 }
0x1903   :  { %v10880_v56 = vmul.f32 %v14950_v48, %v10876_v14 }
0x196e   :  { %v10896_v39 = vpop.permute.xlu1 %10895 }
0x196f   :  { %v10900_v15 = vadd.f32 %v10896_v39, %v10880_v56  ;;  %v10894_v49 = vpop.permute.xlu0 %10893 }
0x1970   :  { %v10899_v37 = vadd.f32 %v10894_v49, %v10879_v16 }
0x1971   :  { %14953 = vtanh.f32 %v10900_v15 }
0x1972   :  { %14955 = vtanh.f32 %v10899_v37 }
0x197b   :  { %v14954_v23 = vpop.eup %14953 }
0x197c   :  { %v14956_v12 = vpop.eup %14955  ;;  %10907 = vrot.lane.b32.xlu1 %v14954_v23, %s15061_s27  ;;  %v11805_v23 = vld [vmem:[%s22733_s6 + $0x1ca] sm:$0xff] }
0x197d   :  { %10905 = vrot.lane.b32.xlu0 %v14956_v12, %s15061_s27 }
0x19ee   :  { %v10908_v24 = vpop.permute.xlu1 %10907 }
0x19ef   :  { %v10912_v38 = vmul.f32 %v14950_v48, %v10908_v24  ;;  %v10906_v46 = vpop.permute.xlu0 %10905  ;;  %v11703_v48 = vld [vmem:[%s22733_s6 + $0x1b9] sm:$0xff] }
0x19f0   :  { %v10911_v43 = vmul.f32 %v14952_v60, %v10906_v46 }
0x19f1   :  { %10917 = vrot.lane.b32.xlu1 %v10912_v38, %s15062_s5 }
0x19f2   :  { %10915 = vrot.lane.b32.xlu0 %v10911_v43, %s15062_s5  ;;  %v12348_v43 = vld [vmem:[%s22733_s6 + $0x1d2] ss:$0 sm:$0xff] }
0x1a63   :  { %v10918_v9 = vpop.permute.xlu1 %10917 }
0x1a64   :  { %v11888_v35 = vsel %vm7859_vm2, %v10918_v9, %v10900_v15  ;;  %v10916_v7 = vpop.permute.xlu0 %10915 }
0x1a65   :  { %11892 = vst.msk [vmem:[%s22735_s8 + $0x8] sm:$0xf] %vm11891_vm5, %v11888_v35  ;;  %v14695_v6 = vpack.c.bf16 %v10918_v9, %v10916_v7  ;;  %v11887_v51 = vsel %vm7859_vm2, %v10916_v7, %v10899_v37 }
0x1a66   :  { %11890 = vst.msk [vmem:[%s22735_s8] sm:$0xff] %vm11889_vm7, %v11887_v51 }
0x1a67   :  { %14697 = vmatpush3.bf16.msk.msra.mxu1 %vm22175_vm15, %v14695_v6  ;;  %14701 = vmatpush3.bf16.msk.msra.mxu0 %vm22175_vm15, %v14695_v6 }
0x1a68   :  { %13461 = vmatprep.subr.mxu1 %v24244_v21  ;;  %13493 = vmatprep.subr.mxu0 %v24244_v21 }
0x1a6a   :  { %13459 = vmatmul.mubr.msk.f32.vlgmr.msra.gmra.mrb[80].mxu1 %vm7698_vm1, %v22186_v4  ;;  %13486 = vmatmul.mubr.msk.f32.vlgmr.msra.gmra.mrb[78].mxu0 %vm7698_vm1, %v22244_v19  ;;  %v11148_v4 = vld [vmem:[%s22733_s6 + $0x190] sm:$0xff] }
0x1a6b   :  { %13462 = vmatpush3.msra.mxu1 %v10995_v34  ;;  %13463 = vmatprep.mubr.msk.f32.mxu1 %vm15055_vm0, %v24244_v21  ;;  %v10993_v19 = vld [vmem:[%s22734_s7 + $0x30] sm:$0x3f] }
0x1a6c   :  { %13466 = vmatprep.subr.mxu1 %v24244_v21  ;;  %13495 = vmatprep.mubr.msk.f32.mxu0 %vm15055_vm0, %v24244_v21 }
0x1a6d   :  { %11306 = vrot.lane.b32.xlu1 %v10993_v19, %s15060_s25  ;;  %13494 = vmatpush3.msra.mxu0 %v11474_v29 }
0x1a6e   :  { %13464 = vmatmul.mubr.msk.f32.vlgmr.msra.gmra.mrb[82].mxu1 %vm7859_vm2, %v10992_v27  ;;  %13496 = vmatmul.mubr.msk.f32.vlgmr.msra.gmra.mrb[80].mxu0 %vm7859_vm2, %v11471_v50 }
0x1a6f   :  { %13467 = vmatpush3.msra.mxu1 %v11074_v59  ;;  %13468 = vmatprep.mubr.msk.f32.mxu1 %vm15055_vm0, %v24244_v21 }
0x1a70   :  { %13471 = vmatprep.subr.mxu1 %v24244_v21  ;;  %13498 = vmatprep.subr.mxu0 %v24244_v21 }
0x1a71   :  { %13500 = vmatprep.mubr.msk.f32.mxu0 %vm15055_vm0, %v24244_v21  ;;  %13499 = vmatpush3.msra.mxu0 %v11553_v0 }
0x1a72   :  { %13503 = vmatprep.subr.mxu0 %v24244_v21 }
0x1a76   :  { %13469 = vmatmul.mubr.msk.f32.vlgmr.msra.gmra.mrb[82].mxu1 %vm7859_vm2, %v22456_v18  ;;  %v11223_v18 = vld [vmem:[%s22733_s6 + $0x198] sm:$0xff] }
0x1a77   :  { %13473 = vmatprep.mubr.msk.f32.mxu1 %vm15055_vm0, %v24244_v21  ;;  %13472 = vmatpush3.msra.mxu1 %v11148_v4 }
0x1a78   :  { %13476 = vmatprep.subr.mxu1 %v24244_v21 }
0x1adf   :  { %v11307_v58 = vpop.permute.xlu1 %11306 }
0x1b3d   :  { %v10988_v32 = vpop.f32.mrb[80].mxu1  ;;  %v11392_v40 = vpop.f32.mrb[78].mxu0 }
0x1b3e   :  { %13474 = vmatmul.mubr.msk.f32.vlgmr.msra.gmra.mrb[82].mxu1 %vm7859_vm2, %v10988_v32  ;;  %v13460_v22 = vpop.f32.mrb[81].mxu1  ;;  %v13487_v31 = vpop.f32.mrb[79].mxu0 }
0x1b3f   :  { %13477 = vmatpush3.msra.mxu1 %v11223_v18  ;;  %13478 = vmatprep.mubr.msk.f32.mxu1 %vm15055_vm0, %v24244_v21 }
0x1b40   :  { %13488 = vmatprep.subr.mxu1 %v24244_v21 }
0x1b46   :  { %13479 = vmatmul.mubr.msk.f32.vlgmr.msra.gmra.mrb[82].mxu1 %vm7859_vm2, %v22564_v11 }
0x1b47   :  { %13490 = vmatprep.mubr.msk.f32.mxu1 %vm15055_vm0, %v24244_v21 }
0x1c19   :  { %v11293_v36 = vpop.f32.mrb[82].mxu1 }
0x1c1a   :  { %v14738_v13 = vadd.f32 %v12333_v20, %v11293_v36  ;;  %v13480_v47 = vpop.f32.mrb[83].mxu1 }
0x1c1c   :  { %14957 = vtanh.f32 %v14738_v13  ;;  %v12337_v61 = vmul.f32 -1.442695, %v14738_v13 }
0x1c1e   :  { %14959 = vpow2.f32 %v12337_v61 }
0x1c26   :  { %v14958_v52 = vpop.eup %14957 }
0x1c27   :  { %11311 = vrot.lane.b32.xlu0 %v14958_v52, %s15058_s2 }
0x1c28   :  { %v14960_v3 = vpop.eup %14959 }
0x1c29   :  { %v11301_v55 = vadd.f32 1.0, %v14960_v3 }
0x1c2b   :  { %14961 = vrcp.f32 %v11301_v55 }
0x1c35   :  { %v14962_v11 = vpop.eup %14961 }
0x1c36   :  { %v11309_v25 = vmul.f32 %v14962_v11, %v11307_v58 }
0x1c99   :  { %v11312_v63 = vpop.permute.xlu0 %11311 }
0x1c9a   :  { %v11314_v33 = vmul.f32 %v14962_v11, %v11312_v63 }
0x1c9c   :  { %11316 = vrot.lane.b32.xlu0 %v11314_v33, %s15060_s25 }
0x1d0e   :  { %v11317_v54 = vpop.permute.xlu0 %11316 }
0x1d0f   :  { %v11319_v1 = vadd.f32 %v11317_v54, %v11309_v25 }
0x1d11   :  { %14963 = vtanh.f32 %v11319_v1 }
0x1d1b   :  { %v14964_v44 = vpop.eup %14963 }
0x1d1c   :  { %11322 = vrot.lane.b32.xlu1 %v14964_v44, %s15061_s27 }
0x1d8e   :  { %v11323_v5 = vpop.permute.xlu1 %11322 }
0x1d8f   :  { %v11325_v2 = vmul.f32 %v14962_v11, %v11323_v5 }
0x1d91   :  { %11397 = vrot.lane.b32.xlu0 %v11325_v2, %s15062_s5 }
0x1d95   :  { %11785 = vrot.lane.b32.xlu0 %v11472_v41, %s15060_s25 }
0x1e03   :  { %v11398_v57 = vpop.permute.xlu0 %11397 }
0x1e04   :  { %v11894_v42 = vsel %vm7859_vm2, %v11398_v57, %v11319_v1  ;;  %13489 = vmatpush3.msk.msra.mxu1 %vm1365_vm6, %v11398_v57 }
0x1e05   :  { %11896 = vst.msk [vmem:[%s22735_s8 + $0xc] sm:$0x3f] %vm11895_vm11, %v11894_v42  ;;  %13491 = vmatmul.mubr.msk.f32.vlgmr.msra.gmra.mrb[84].mxu1 %vm5315_vm4, %v22258_v10  ;;  %13513 = vmatprep.subr.mxu1 %v24244_v21  ;;  %v11628_v10 = vld [vmem:[%s22733_s6 + $0x1b1] sm:$0xff] }
0x1e06   :  { %13515 = vmatprep.mubr.msk.f32.mxu1 %vm15055_vm0, %v24244_v21  ;;  %13514 = vmatpush3.msra.mxu1 %v11805_v23 }
0x1ed8   :  { %v11467_v30 = vpop.f32.mrb[84].mxu1 }
0x1ed9   :  { %13501 = vmatmul.mubr.msk.f32.vlgmr.msra.gmra.mrb[80].mxu0 %vm7859_vm2, %v11467_v30  ;;  %v13492_v28 = vpop.f32.mrb[85].mxu1 }
0x1eda   :  { %13504 = vmatpush3.msra.mxu0 %v11628_v10  ;;  %13505 = vmatprep.mubr.msk.f32.mxu0 %vm15055_vm0, %v24244_v21 }
0x1edb   :  { %13508 = vmatprep.subr.mxu0 %v24244_v21 }
0x1ee1   :  { %13506 = vmatmul.mubr.msk.f32.vlgmr.msra.gmra.mrb[80].mxu0 %vm7859_vm2, %v11392_v40 }
0x1ee2   :  { %13509 = vmatpush3.msra.mxu0 %v11703_v48  ;;  %13510 = vmatprep.mubr.msk.f32.mxu0 %vm15055_vm0, %v24244_v21  ;;  %vm11904_vm0 = vcmask 156672  }
0x1ee9   :  { %13511 = vmatmul.mubr.msk.f32.vlgmr.msra.gmra.mrb[80].mxu0 %vm7859_vm2, %v22509_v8  ;;  %v11786_v8 = vpop.permute.xlu0 %11785 }
0x1fbc   :  { %v11772_v60 = vpop.f32.mrb[80].mxu0 }
0x1fbd   :  { %v14739_v62 = vadd.f32 %v12343_v17, %v11772_v60  ;;  %v13512_v26 = vpop.f32.mrb[81].mxu0 }
0x1fbf   :  { %14965 = vtanh.f32 %v14739_v62  ;;  %v12347_v45 = vmul.f32 -1.442695, %v14739_v62 }
0x1fc1   :  { %14967 = vpow2.f32 %v12347_v45 }
0x1fc9   :  { %v14966_v53 = vpop.eup %14965 }
0x1fca   :  { %11790 = vrot.lane.b32.xlu1 %v14966_v53, %s15058_s2 }
0x1fcb   :  { %v14968_v14 = vpop.eup %14967 }
0x1fcc   :  { %v11780_v56 = vadd.f32 1.0, %v14968_v14 }
0x1fce   :  { %14969 = vrcp.f32 %v11780_v56 }
0x1fd8   :  { %v14970_v21 = vpop.eup %14969 }
0x1fd9   :  { %v11788_v15 = vmul.f32 %v14970_v21, %v11786_v8 }
0x203c   :  { %v11791_v16 = vpop.permute.xlu1 %11790 }
0x203d   :  { %v11793_v39 = vmul.f32 %v14970_v21, %v11791_v16 }
0x203f   :  { %11795 = vrot.lane.b32.xlu1 %v11793_v39, %s15060_s25 }
0x20b1   :  { %v11796_v49 = vpop.permute.xlu1 %11795 }
0x20b2   :  { %v11798_v37 = vadd.f32 %v11796_v49, %v11788_v15 }
0x20b4   :  { %14971 = vtanh.f32 %v11798_v37 }
0x20be   :  { %v14972_v12 = vpop.eup %14971 }
0x20bf   :  { %11801 = vrot.lane.b32.xlu0 %v14972_v12, %s15061_s27 }
0x2131   :  { %v11802_v24 = vpop.permute.xlu0 %11801 }
0x2132   :  { %v11804_v38 = vmul.f32 %v14970_v21, %v11802_v24 }
0x2134   :  { %11812 = vrot.lane.b32.xlu1 %v11804_v38, %s15062_s5 }
0x21a6   :  { %v11813_v46 = vpop.permute.xlu1 %11812 }
0x21a7   :  { %13516 = vmatmul.mubr.msk.f32.vlgmr.msra.gmra.mrb[86].mxu1 %vm7859_vm2, %v11813_v46  ;;  %v11902_v6 = vsel %vm7859_vm2, %v11813_v46, %v11798_v37 }
0x227a   :  { %v11882_v9 = vpop.f32.mrb[86].mxu1 }
0x227b   :  { %v11883_v35 = vadd.f32 %v12348_v43, %v11882_v9  ;;  %v13517_v7 = vpop.f32.mrb[87].mxu1 }
0x227d   :  { %11899 = vrot.lane.b32.xlu0 %v11883_v35, %s15061_s27 }
0x22ef   :  { %v11900_v51 = vpop.permute.xlu0 %11899 }
0x22f0   :  { %v11903_v34 = vsel %vm11889_vm7, %v11902_v6, %v11900_v51 }
0x22f1   :  { %11905 = vst.msk [vmem:[%s22735_s8 + $0x12] sm:$0x3] %vm11904_vm0, %v11903_v34 }
0x22f2   :  { %11910 = vsyncmov [#allocation3] }
0x22f5   :  { %s11911_s17 = vpop.sfrf %11910 }
0x22f6   :  { %p12350_p0 = scmp.ne.s32.totalorder %s11911_s17, 0 }
0x22f8   :  { %11915 = shalt.err (%p12350_p0)  }

</bundles_post_ra>
